<compile_context>
chip_gen: v5e
topology: v5e:2x2
jax: 0.10.0
libtpu: 0.0.40
codegen_flags: <defaults>
</compile_context>

<pallas_src>
import math

import jax
import jax.numpy as jnp
from jax.experimental import pallas as pl
from jax.experimental.pallas import tpu as pltpu


def go_kernel(patch_ref, flat_ref, w1_ref, b1_ref, weff_ref,
              wflat_ref, bproj_ref, whead_ref, bhead_ref, out_ref):
    P1, tb, K1 = patch_ref.shape          # [49, tb, 18] for a 9x9 board
    C = w1_ref.shape[1]

    # ---- conv1: a single MXU matmul over all positions of the tile + ReLU --
    x = patch_ref[...].reshape(P1 * tb, K1)        # layout-preserving (tb % 8 == 0)
    h1 = jnp.dot(x, w1_ref[...], preferred_element_type=jnp.float32)
    h1 = jnp.maximum(h1 + b1_ref[...], 0.0).reshape(P1, tb, C)

    # ---- flat path on the VPU (avoids a K=2 MXU matmul) --------------------
    f = flat_ref[...]
    hidden = (bproj_ref[...]
              + f[:, 0:1] * wflat_ref[0:1, :]
              + f[:, 1:2] * wflat_ref[1:2, :])     # [tb, H]

    # ---- conv2 ∘ proj folded: contraction over (position, channel) ---------
    # Independent partial accumulators keep the MXU result pops pipelined.
    n_par = 2 if tb >= 128 else 4
    n_par = min(n_par, P1)
    parts = [jnp.dot(h1[q], weff_ref[q * C:(q + 1) * C, :],
                     preferred_element_type=jnp.float32)
             for q in range(n_par)]
    for q in range(n_par, P1):
        k = q % n_par
        parts[k] = parts[k] + jnp.dot(h1[q], weff_ref[q * C:(q + 1) * C, :],
                                      preferred_element_type=jnp.float32)
    for p in parts:
        hidden = hidden + p
    hidden = jnp.maximum(hidden, 0.0)              # [tb, H]

    # ---- fused actor + value head, lane-dense padded output ----------------
    out_ref[...] = (jnp.dot(hidden, whead_ref[...],
                            preferred_element_type=jnp.float32)
                    + bhead_ref[...])


def _pallas_forward(patches, flat_in, w1_k, b1_k, weff, wflatproj, bproj_eff,
                    w_head, b_head, *, tb, n_tiles, single_buffer_weights):
    P1, Bp, K1 = patches.shape
    C = w1_k.shape[1]
    H = weff.shape[1]
    A_pad = w_head.shape[1]

    wkw = {}
    if single_buffer_weights:
        # Constant index_map -> double-buffering buys nothing; save VMEM.
        wkw = dict(pipeline_mode=pl.Buffered(1))

    def wspec(shape):
        return pl.BlockSpec(shape, lambda i: (0,) * len(shape), **wkw)

    return pl.pallas_call(
        go_kernel,
        out_shape=jax.ShapeDtypeStruct((Bp, A_pad), jnp.float32),
        grid_spec=pl.GridSpec(
            grid=(n_tiles,),
            in_specs=[
                pl.BlockSpec((P1, tb, K1), lambda i: (0, i, 0)),   # conv1 patches
                pl.BlockSpec((tb, 2), lambda i: (i, 0)),           # flat feats
                wspec((K1, C)),                                    # conv1 W
                wspec((1, C)),                                     # conv1 b
                wspec((P1 * C, H)),                                # conv2∘proj W
                wspec((2, H)),                                     # flat∘proj W
                wspec((1, H)),                                     # folded proj bias
                wspec((H, A_pad)),                                 # fused head W
                wspec((1, A_pad)),                                 # fused head b
            ],
            out_specs=pl.BlockSpec((tb, A_pad), lambda i: (i, 0)),
        ),
        compiler_params=pltpu.CompilerParams(
            dimension_semantics=("parallel",),
            vmem_limit_bytes=32 * 1024 * 1024),
    )(patches, flat_in, w1_k, b1_k, weff, wflatproj, bproj_eff, w_head, b_head)


def go_forward(obs, params, *, tile_b=None):
    """obs: [B, 2*G*G + 2].  params: torch-layout weights (see make_params)."""
    B, obs_dim = obs.shape
    G = int(math.isqrt((obs_dim - 2) // 2))
    full = G * G
    C = params["conv1_w"].shape[0]
    H = params["proj_w"].shape[0]
    A = params["actor_w"].shape[0]
    H1, H2 = G - 2, G - 4
    P1, P2 = H1 * H1, H2 * H2

    # ----- batch tile: multiple of 8, <=128, prefer >=2 tiles (v7x 2 TCs) ----
    b8 = max(8, ((B + 7) // 8) * 8)
    if tile_b is None:
        if b8 > 128:
            tile_b = 128
        elif b8 >= 64:
            tile_b = ((b8 // 2 + 7) // 8) * 8      # split -> both TensorCores
        else:
            tile_b = b8
    tb = max(8, (min(tile_b, b8) // 8) * 8)
    n_tiles = -(-B // tb)
    Bp = n_tiles * tb

    # ----- observation parsing + host-side conv1 im2col ----------------------
    obs = obs.astype(jnp.float32)
    black = obs[:, :full].reshape(B, G, G)
    white = obs[:, full:2 * full].reshape(B, G, G)
    board = jnp.stack([black, white], axis=-1)                  # [B, G, G, 2]
    # patches[q=(i,j), b, (di*3+dj)*2 + c] = board[b, i+di, j+dj, c]
    taps = [board[:, di:di + H1, dj:dj + H1, :]
            for di in range(3) for dj in range(3)]
    patches = jnp.stack(taps, axis=3).reshape(B, P1, 18)
    patches = jnp.transpose(patches, (1, 0, 2))                 # [P1, B, 18]
    flat_in = obs[:, -2:]                                       # [B, 2]
    if Bp != B:
        patches = jnp.pad(patches, ((0, 0), (0, Bp - B), (0, 0)))
        flat_in = jnp.pad(flat_in, ((0, Bp - B), (0, 0)))

    # ----- weight re-layout + algebraic folding (host-side, once per call) ---
    # conv1 weight rows ordered (di, dj, c_in) to match patch feature order.
    w1_k = jnp.transpose(params["conv1_w"], (2, 3, 1, 0)).reshape(18, C)
    b1_k = params["conv1_b"].reshape(1, C)

    # Fold conv2 (with its bias) into proj:
    #   Weff[q, c_in, :] = sum_{p + off = q} w2[off, c_in, :] @ Wproj[p, :, :]
    wproj_t = params["proj_w"].T                                # [cnn_flat+32, H]
    wp_cnn = wproj_t[:C * P2].reshape(C, H2, H2, H)             # torch (c, pi, pj)
    wp_cnn = jnp.transpose(wp_cnn, (1, 2, 0, 3))                # [H2, H2, c_out, H]
    w2 = jnp.transpose(params["conv2_w"], (2, 3, 1, 0))         # [3, 3, c_in, c_out]
    weff = jnp.zeros((H1, H1, C, H), jnp.float32)
    for di in range(3):
        for dj in range(3):
            contrib = jnp.einsum("io,pqoh->pqih", w2[di, dj], wp_cnn)
            weff = weff.at[di:di + H2, dj:dj + H2].add(contrib)
    weff = weff.reshape(P1 * C, H)

    wproj_flat = wproj_t[C * P2:]                               # [32, H]
    wflatproj = params["flat_w"].T @ wproj_flat                 # [2, H]
    bproj_eff = (params["proj_b"]
                 + params["conv2_b"] @ wp_cnn.sum(axis=(0, 1))  # conv2 bias
                 + params["flat_b"] @ wproj_flat).reshape(1, H)  # flat bias

    # Fused actor + value head, zero-padded to a lane-dense width.
    A_pad = max(128, ((A + 1 + 127) // 128) * 128)
    w_head = jnp.zeros((H, A_pad), jnp.float32)
    w_head = w_head.at[:, :A].set(params["actor_w"].T)
    w_head = w_head.at[:, A].set(params["value_w"][0])
    b_head = jnp.zeros((1, A_pad), jnp.float32)
    b_head = b_head.at[:, :A].set(params["actor_b"][None, :])
    b_head = b_head.at[:, A].set(params["value_b"][0])

    args = (patches, flat_in, w1_k, b1_k, weff, wflatproj, bproj_eff,
            w_head, b_head)
    try:
        out = _pallas_forward(*args, tb=tb, n_tiles=n_tiles,
                              single_buffer_weights=True)
    except Exception:
        # pl.Buffered(1) not supported on this JAX version -> default buffering.
        out = _pallas_forward(*args, tb=tb, n_tiles=n_tiles,
                              single_buffer_weights=False)

    logits = out[:B, :A]
    value = out[:B, A:A + 1]
    return logits, value


# ----------------------------- test harness ---------------------------------

def make_params(key, grid_size, cnn_channels, hidden_size, n_actions):
    """Torch-layout parameters: Linear [out,in], Conv2d [out,in,kh,kw]."""
    G, C, H = grid_size, cnn_channels, hidden_size
    cnn_flat = C * (G - 4) * (G - 4)
    k = jax.random.split(key, 10)

    def lin_w(kk, out_f, in_f, scale=None):
        s = (1.0 / math.sqrt(in_f)) if scale is None else scale
        return jax.random.normal(kk, (out_f, in_f), jnp.float32) * s

    return dict(
        conv1_w=jax.random.normal(k[0], (C, 2, 3, 3), jnp.float32) / math.sqrt(18),
        conv1_b=jax.random.normal(k[1], (C,), jnp.float32) * 0.1,
        conv2_w=jax.random.normal(k[2], (C, C, 3, 3), jnp.float32) / math.sqrt(9 * C),
        conv2_b=jax.random.normal(k[3], (C,), jnp.float32) * 0.1,
        flat_w=lin_w(k[4], 32, 2),
        flat_b=jax.random.normal(k[5], (32,), jnp.float32) * 0.1,
        proj_w=lin_w(k[6], H, cnn_flat + 32),
        proj_b=jax.random.normal(k[7], (H,), jnp.float32) * 0.1,
        actor_w=lin_w(k[8], n_actions, H, scale=0.01),
        actor_b=jnp.zeros((n_actions,), jnp.float32),
        value_w=lin_w(k[9], 1, H),
        value_b=jnp.zeros((1,), jnp.float32),
    )


def reference_forward(obs, p):
    """Pure-JAX mirror of the PyTorch module (NCHW convs, torch flatten order),
    kept at full f32 precision (HIGHEST)."""
    prec = jax.lax.Precision.HIGHEST
    B, obs_dim = obs.shape
    G = int(math.isqrt((obs_dim - 2) // 2))
    full = G * G
    black = obs[:, :full].reshape(B, 1, G, G).astype(jnp.float32)
    white = obs[:, full:2 * full].reshape(B, 1, G, G).astype(jnp.float32)
    x = jnp.concatenate([black, white], axis=1)
    y = jax.lax.conv_general_dilated(
        x, p["conv1_w"], (1, 1), "VALID",
        dimension_numbers=("NCHW", "OIHW", "NCHW"), precision=prec)
    y = jnp.maximum(y + p["conv1_b"][None, :, None, None], 0.0)
    y = jax.lax.conv_general_dilated(
        y, p["conv2_w"], (1, 1), "VALID",
        dimension_numbers=("NCHW", "OIHW", "NCHW"), precision=prec)
    y = y + p["conv2_b"][None, :, None, None]
    cnn = y.reshape(B, -1)
    flat_in = obs[:, -2:].astype(jnp.float32)
    flat_h = jnp.dot(flat_in, p["flat_w"].T, precision=prec) + p["flat_b"]
    feats = jnp.concatenate([cnn, flat_h], axis=1)
    hidden = jnp.maximum(jnp.dot(feats, p["proj_w"].T, precision=prec)
                         + p["proj_b"], 0.0)
    logits = jnp.dot(hidden, p["actor_w"].T, precision=prec) + p["actor_b"]
    value = jnp.dot(hidden, p["value_w"].T, precision=prec) + p["value_b"]
    return logits, value


if __name__ == "__main__":
    key = jax.random.PRNGKey(0)
    B, G, C, H = 64, 9, 32, 128         # 9x9 Go board, small cnn_channels
    A = G * G + 1                       # 82 actions (81 points + pass)

    kb, kw, kf, kp = jax.random.split(key, 4)
    black = (jax.random.uniform(kb, (B, G * G)) < 0.2).astype(jnp.float32)
    white = (jax.random.uniform(kw, (B, G * G)) < 0.2).astype(jnp.float32)
    flat2 = jax.random.normal(kf, (B, 2), jnp.float32)
    obs = jnp.concatenate([black, white, flat2], axis=1)   # [B, 2*G*G + 2]

    params = make_params(kp, G, C, H, A)

    logits, value = go_forward(obs, params)
    jax.block_until_ready((logits, value))

    r_logits, r_value = reference_forward(obs, params)
    assert logits.shape == (B, A) and value.shape == (B, 1)
    # Kernel matmuls run at default MXU precision (single-pass bf16, f32
    # accumulation) per the perf review; compare against the f32/HIGHEST
    # reference with a correspondingly relaxed tolerance.
    assert jnp.allclose(logits, r_logits, atol=5e-3, rtol=1e-2), \
        float(jnp.max(jnp.abs(logits - r_logits)))
    assert jnp.allclose(value, r_value, atol=5e-3, rtol=1e-2), \
        float(jnp.max(jnp.abs(value - r_value)))
    print("KERNEL_OK")
</pallas_src>

<mosaic_0001>
module attributes {stable_mosaic.version = 11 : i64} {
  func.func @go_kernel(%arg0: i32, %arg1: memref<49x32x18xf32, #tpu.memory_space<vmem>>, %arg2: memref<32x2xf32, #tpu.memory_space<vmem>>, %arg3: memref<18x32xf32, #tpu.memory_space<vmem>>, %arg4: memref<1x32xf32, #tpu.memory_space<vmem>>, %arg5: memref<1568x128xf32, #tpu.memory_space<vmem>>, %arg6: memref<2x128xf32, #tpu.memory_space<vmem>>, %arg7: memref<1x128xf32, #tpu.memory_space<vmem>>, %arg8: memref<128x128xf32, #tpu.memory_space<vmem>>, %arg9: memref<1x128xf32, #tpu.memory_space<vmem>>, %arg10: memref<32x128xf32, #tpu.memory_space<vmem>>) attributes {dimension_semantics = [#tpu.dimension_semantics<parallel>], iteration_bounds = array<i64: 2>, scalar_prefetch = 0 : i64, scratch_operands = 0 : i64, tpu.core_type = #tpu.core_type<tc>, window_params = [{transform_indices = @transform_0, window_bounds = array<i64: 49, 32, 18>}, {transform_indices = @transform_1, window_bounds = array<i64: 32, 2>}, {pipeline_mode = #tpu.pipeline_mode<synchronous>, transform_indices = @transform_2, window_bounds = array<i64: 18, 32>}, {pipeline_mode = #tpu.pipeline_mode<synchronous>, transform_indices = @transform_3, window_bounds = array<i64: 1, 32>}, {pipeline_mode = #tpu.pipeline_mode<synchronous>, transform_indices = @transform_4, window_bounds = array<i64: 1568, 128>}, {pipeline_mode = #tpu.pipeline_mode<synchronous>, transform_indices = @transform_5, window_bounds = array<i64: 2, 128>}, {pipeline_mode = #tpu.pipeline_mode<synchronous>, transform_indices = @transform_6, window_bounds = array<i64: 1, 128>}, {pipeline_mode = #tpu.pipeline_mode<synchronous>, transform_indices = @transform_7, window_bounds = array<i64: 128, 128>}, {pipeline_mode = #tpu.pipeline_mode<synchronous>, transform_indices = @transform_8, window_bounds = array<i64: 1, 128>}, {transform_indices = @transform_9, window_bounds = array<i64: 32, 128>}]} {
    %c0 = arith.constant 0 : index
    %c0_0 = arith.constant 0 : index
    %c0_1 = arith.constant 0 : index
    %0 = vector.load %arg1[%c0, %c0_0, %c0_1] : memref<49x32x18xf32, #tpu.memory_space<vmem>>, vector<49x32x18xf32>
    %1 = vector.shape_cast %0 : vector<49x32x18xf32> to vector<1568x18xf32>
    %c0_2 = arith.constant 0 : index
    %c0_3 = arith.constant 0 : index
    %2 = vector.load %arg3[%c0_2, %c0_3] : memref<18x32xf32, #tpu.memory_space<vmem>>, vector<18x32xf32>
    %cst = arith.constant dense<0.000000e+00> : vector<1568x32xf32>
    %3 = tpu.matmul %1, %2, %cst {dimension_numbers = #tpu.dot_dimension_numbers<[1], [0], [0], [1], [0, 0, 1, 1], [], []>} : vector<1568x18xf32>, vector<18x32xf32>, vector<1568x32xf32> -> vector<1568x32xf32>
    %c0_4 = arith.constant 0 : index
    %c0_5 = arith.constant 0 : index
    %4 = vector.load %arg4[%c0_4, %c0_5] : memref<1x32xf32, #tpu.memory_space<vmem>>, vector<1x32xf32>
    %5 = vector.broadcast %4 : vector<1x32xf32> to vector<1568x32xf32>
    %6 = arith.addf %3, %5 : vector<1568x32xf32>
    %cst_6 = arith.constant 0.000000e+00 : f32
    %7 = vector.broadcast %cst_6 : f32 to vector<1568x32xf32>
    %8 = arith.maximumf %6, %7 : vector<1568x32xf32>
    %9 = vector.shape_cast %8 : vector<1568x32xf32> to vector<49x32x32xf32>
    %c0_7 = arith.constant 0 : index
    %c0_8 = arith.constant 0 : index
    %10 = vector.load %arg2[%c0_7, %c0_8] : memref<32x2xf32, #tpu.memory_space<vmem>>, vector<32x2xf32>
    %c0_9 = arith.constant 0 : index
    %c0_10 = arith.constant 0 : index
    %11 = vector.load %arg7[%c0_9, %c0_10] : memref<1x128xf32, #tpu.memory_space<vmem>>, vector<1x128xf32>
    %12 = vector.extract_strided_slice %10 {offsets = [0, 0], sizes = [32, 1], strides = [1, 1]} : vector<32x2xf32> to vector<32x1xf32>
    %c0_11 = arith.constant 0 : index
    %c0_12 = arith.constant 0 : index
    %13 = vector.load %arg6[%c0_11, %c0_12] : memref<2x128xf32, #tpu.memory_space<vmem>>, vector<1x128xf32>
    %14 = vector.broadcast %12 : vector<32x1xf32> to vector<32x128xf32>
    %15 = vector.broadcast %13 : vector<1x128xf32> to vector<32x128xf32>
    %16 = arith.mulf %14, %15 : vector<32x128xf32>
    %17 = vector.broadcast %11 : vector<1x128xf32> to vector<32x128xf32>
    %18 = arith.addf %17, %16 : vector<32x128xf32>
    %19 = vector.extract_strided_slice %10 {offsets = [0, 1], sizes = [32, 1], strides = [1, 1]} : vector<32x2xf32> to vector<32x1xf32>
    %c1 = arith.constant 1 : index
    %c0_13 = arith.constant 0 : index
    %20 = vector.load %arg6[%c1, %c0_13] : memref<2x128xf32, #tpu.memory_space<vmem>>, vector<1x128xf32>
    %21 = vector.broadcast %19 : vector<32x1xf32> to vector<32x128xf32>
    %22 = vector.broadcast %20 : vector<1x128xf32> to vector<32x128xf32>
    %23 = arith.mulf %21, %22 : vector<32x128xf32>
    %24 = arith.addf %18, %23 : vector<32x128xf32>
    %25 = vector.extract_strided_slice %9 {offsets = [0, 0, 0], sizes = [1, 32, 32], strides = [1, 1, 1]} : vector<49x32x32xf32> to vector<1x32x32xf32>
    %26 = vector.shape_cast %25 : vector<1x32x32xf32> to vector<32x32xf32>
    %c0_14 = arith.constant 0 : index
    %c0_15 = arith.constant 0 : index
    %27 = vector.load %arg5[%c0_14, %c0_15] : memref<1568x128xf32, #tpu.memory_space<vmem>>, vector<32x128xf32>
    %cst_16 = arith.constant dense<0.000000e+00> : vector<32x128xf32>
    %28 = tpu.matmul %26, %27, %cst_16 {dimension_numbers = #tpu.dot_dimension_numbers<[1], [0], [0], [1], [0, 0, 1, 1], [], []>} : vector<32x32xf32>, vector<32x128xf32>, vector<32x128xf32> -> vector<32x128xf32>
    %29 = vector.extract_strided_slice %9 {offsets = [1, 0, 0], sizes = [1, 32, 32], strides = [1, 1, 1]} : vector<49x32x32xf32> to vector<1x32x32xf32>
    %30 = vector.shape_cast %29 : vector<1x32x32xf32> to vector<32x32xf32>
    %c32 = arith.constant 32 : index
    %c0_17 = arith.constant 0 : index
    %31 = vector.load %arg5[%c32, %c0_17] : memref<1568x128xf32, #tpu.memory_space<vmem>>, vector<32x128xf32>
    %cst_18 = arith.constant dense<0.000000e+00> : vector<32x128xf32>
    %32 = tpu.matmul %30, %31, %cst_18 {dimension_numbers = #tpu.dot_dimension_numbers<[1], [0], [0], [1], [0, 0, 1, 1], [], []>} : vector<32x32xf32>, vector<32x128xf32>, vector<32x128xf32> -> vector<32x128xf32>
    %33 = vector.extract_strided_slice %9 {offsets = [2, 0, 0], sizes = [1, 32, 32], strides = [1, 1, 1]} : vector<49x32x32xf32> to vector<1x32x32xf32>
    %34 = vector.shape_cast %33 : vector<1x32x32xf32> to vector<32x32xf32>
    %c64 = arith.constant 64 : index
    %c0_19 = arith.constant 0 : index
    %35 = vector.load %arg5[%c64, %c0_19] : memref<1568x128xf32, #tpu.memory_space<vmem>>, vector<32x128xf32>
    %cst_20 = arith.constant dense<0.000000e+00> : vector<32x128xf32>
    %36 = tpu.matmul %34, %35, %cst_20 {dimension_numbers = #tpu.dot_dimension_numbers<[1], [0], [0], [1], [0, 0, 1, 1], [], []>} : vector<32x32xf32>, vector<32x128xf32>, vector<32x128xf32> -> vector<32x128xf32>
    %37 = vector.extract_strided_slice %9 {offsets = [3, 0, 0], sizes = [1, 32, 32], strides = [1, 1, 1]} : vector<49x32x32xf32> to vector<1x32x32xf32>
    %38 = vector.shape_cast %37 : vector<1x32x32xf32> to vector<32x32xf32>
    %c96 = arith.constant 96 : index
    %c0_21 = arith.constant 0 : index
    %39 = vector.load %arg5[%c96, %c0_21] : memref<1568x128xf32, #tpu.memory_space<vmem>>, vector<32x128xf32>
    %cst_22 = arith.constant dense<0.000000e+00> : vector<32x128xf32>
    %40 = tpu.matmul %38, %39, %cst_22 {dimension_numbers = #tpu.dot_dimension_numbers<[1], [0], [0], [1], [0, 0, 1, 1], [], []>} : vector<32x32xf32>, vector<32x128xf32>, vector<32x128xf32> -> vector<32x128xf32>
    %41 = vector.extract_strided_slice %9 {offsets = [4, 0, 0], sizes = [1, 32, 32], strides = [1, 1, 1]} : vector<49x32x32xf32> to vector<1x32x32xf32>
    %42 = vector.shape_cast %41 : vector<1x32x32xf32> to vector<32x32xf32>
    %c128 = arith.constant 128 : index
    %c0_23 = arith.constant 0 : index
    %43 = vector.load %arg5[%c128, %c0_23] : memref<1568x128xf32, #tpu.memory_space<vmem>>, vector<32x128xf32>
    %cst_24 = arith.constant dense<0.000000e+00> : vector<32x128xf32>
    %44 = tpu.matmul %42, %43, %cst_24 {dimension_numbers = #tpu.dot_dimension_numbers<[1], [0], [0], [1], [0, 0, 1, 1], [], []>} : vector<32x32xf32>, vector<32x128xf32>, vector<32x128xf32> -> vector<32x128xf32>
    %45 = arith.addf %28, %44 : vector<32x128xf32>
    %46 = vector.extract_strided_slice %9 {offsets = [5, 0, 0], sizes = [1, 32, 32], strides = [1, 1, 1]} : vector<49x32x32xf32> to vector<1x32x32xf32>
    %47 = vector.shape_cast %46 : vector<1x32x32xf32> to vector<32x32xf32>
    %c160 = arith.constant 160 : index
    %c0_25 = arith.constant 0 : index
    %48 = vector.load %arg5[%c160, %c0_25] : memref<1568x128xf32, #tpu.memory_space<vmem>>, vector<32x128xf32>
    %cst_26 = arith.constant dense<0.000000e+00> : vector<32x128xf32>
    %49 = tpu.matmul %47, %48, %cst_26 {dimension_numbers = #tpu.dot_dimension_numbers<[1], [0], [0], [1], [0, 0, 1, 1], [], []>} : vector<32x32xf32>, vector<32x128xf32>, vector<32x128xf32> -> vector<32x128xf32>
    %50 = arith.addf %32, %49 : vector<32x128xf32>
    %51 = vector.extract_strided_slice %9 {offsets = [6, 0, 0], sizes = [1, 32, 32], strides = [1, 1, 1]} : vector<49x32x32xf32> to vector<1x32x32xf32>
    %52 = vector.shape_cast %51 : vector<1x32x32xf32> to vector<32x32xf32>
    %c192 = arith.constant 192 : index
    %c0_27 = arith.constant 0 : index
    %53 = vector.load %arg5[%c192, %c0_27] : memref<1568x128xf32, #tpu.memory_space<vmem>>, vector<32x128xf32>
    %cst_28 = arith.constant dense<0.000000e+00> : vector<32x128xf32>
    %54 = tpu.matmul %52, %53, %cst_28 {dimension_numbers = #tpu.dot_dimension_numbers<[1], [0], [0], [1], [0, 0, 1, 1], [], []>} : vector<32x32xf32>, vector<32x128xf32>, vector<32x128xf32> -> vector<32x128xf32>
    %55 = arith.addf %36, %54 : vector<32x128xf32>
    %56 = vector.extract_strided_slice %9 {offsets = [7, 0, 0], sizes = [1, 32, 32], strides = [1, 1, 1]} : vector<49x32x32xf32> to vector<1x32x32xf32>
    %57 = vector.shape_cast %56 : vector<1x32x32xf32> to vector<32x32xf32>
    %c224 = arith.constant 224 : index
    %c0_29 = arith.constant 0 : index
    %58 = vector.load %arg5[%c224, %c0_29] : memref<1568x128xf32, #tpu.memory_space<vmem>>, vector<32x128xf32>
    %cst_30 = arith.constant dense<0.000000e+00> : vector<32x128xf32>
    %59 = tpu.matmul %57, %58, %cst_30 {dimension_numbers = #tpu.dot_dimension_numbers<[1], [0], [0], [1], [0, 0, 1, 1], [], []>} : vector<32x32xf32>, vector<32x128xf32>, vector<32x128xf32> -> vector<32x128xf32>
    %60 = arith.addf %40, %59 : vector<32x128xf32>
    %61 = vector.extract_strided_slice %9 {offsets = [8, 0, 0], sizes = [1, 32, 32], strides = [1, 1, 1]} : vector<49x32x32xf32> to vector<1x32x32xf32>
    %62 = vector.shape_cast %61 : vector<1x32x32xf32> to vector<32x32xf32>
    %c256 = arith.constant 256 : index
    %c0_31 = arith.constant 0 : index
    %63 = vector.load %arg5[%c256, %c0_31] : memref<1568x128xf32, #tpu.memory_space<vmem>>, vector<32x128xf32>
    %cst_32 = arith.constant dense<0.000000e+00> : vector<32x128xf32>
    %64 = tpu.matmul %62, %63, %cst_32 {dimension_numbers = #tpu.dot_dimension_numbers<[1], [0], [0], [1], [0, 0, 1, 1], [], []>} : vector<32x32xf32>, vector<32x128xf32>, vector<32x128xf32> -> vector<32x128xf32>
    %65 = arith.addf %45, %64 : vector<32x128xf32>
    %66 = vector.extract_strided_slice %9 {offsets = [9, 0, 0], sizes = [1, 32, 32], strides = [1, 1, 1]} : vector<49x32x32xf32> to vector<1x32x32xf32>
    %67 = vector.shape_cast %66 : vector<1x32x32xf32> to vector<32x32xf32>
    %c288 = arith.constant 288 : index
    %c0_33 = arith.constant 0 : index
    %68 = vector.load %arg5[%c288, %c0_33] : memref<1568x128xf32, #tpu.memory_space<vmem>>, vector<32x128xf32>
    %cst_34 = arith.constant dense<0.000000e+00> : vector<32x128xf32>
    %69 = tpu.matmul %67, %68, %cst_34 {dimension_numbers = #tpu.dot_dimension_numbers<[1], [0], [0], [1], [0, 0, 1, 1], [], []>} : vector<32x32xf32>, vector<32x128xf32>, vector<32x128xf32> -> vector<32x128xf32>
    %70 = arith.addf %50, %69 : vector<32x128xf32>
    %71 = vector.extract_strided_slice %9 {offsets = [10, 0, 0], sizes = [1, 32, 32], strides = [1, 1, 1]} : vector<49x32x32xf32> to vector<1x32x32xf32>
    %72 = vector.shape_cast %71 : vector<1x32x32xf32> to vector<32x32xf32>
    %c320 = arith.constant 320 : index
    %c0_35 = arith.constant 0 : index
    %73 = vector.load %arg5[%c320, %c0_35] : memref<1568x128xf32, #tpu.memory_space<vmem>>, vector<32x128xf32>
    %cst_36 = arith.constant dense<0.000000e+00> : vector<32x128xf32>
    %74 = tpu.matmul %72, %73, %cst_36 {dimension_numbers = #tpu.dot_dimension_numbers<[1], [0], [0], [1], [0, 0, 1, 1], [], []>} : vector<32x32xf32>, vector<32x128xf32>, vector<32x128xf32> -> vector<32x128xf32>
    %75 = arith.addf %55, %74 : vector<32x128xf32>
    %76 = vector.extract_strided_slice %9 {offsets = [11, 0, 0], sizes = [1, 32, 32], strides = [1, 1, 1]} : vector<49x32x32xf32> to vector<1x32x32xf32>
    %77 = vector.shape_cast %76 : vector<1x32x32xf32> to vector<32x32xf32>
    %c352 = arith.constant 352 : index
    %c0_37 = arith.constant 0 : index
    %78 = vector.load %arg5[%c352, %c0_37] : memref<1568x128xf32, #tpu.memory_space<vmem>>, vector<32x128xf32>
    %cst_38 = arith.constant dense<0.000000e+00> : vector<32x128xf32>
    %79 = tpu.matmul %77, %78, %cst_38 {dimension_numbers = #tpu.dot_dimension_numbers<[1], [0], [0], [1], [0, 0, 1, 1], [], []>} : vector<32x32xf32>, vector<32x128xf32>, vector<32x128xf32> -> vector<32x128xf32>
    %80 = arith.addf %60, %79 : vector<32x128xf32>
    %81 = vector.extract_strided_slice %9 {offsets = [12, 0, 0], sizes = [1, 32, 32], strides = [1, 1, 1]} : vector<49x32x32xf32> to vector<1x32x32xf32>
    %82 = vector.shape_cast %81 : vector<1x32x32xf32> to vector<32x32xf32>
    %c384 = arith.constant 384 : index
    %c0_39 = arith.constant 0 : index
    %83 = vector.load %arg5[%c384, %c0_39] : memref<1568x128xf32, #tpu.memory_space<vmem>>, vector<32x128xf32>
    %cst_40 = arith.constant dense<0.000000e+00> : vector<32x128xf32>
    %84 = tpu.matmul %82, %83, %cst_40 {dimension_numbers = #tpu.dot_dimension_numbers<[1], [0], [0], [1], [0, 0, 1, 1], [], []>} : vector<32x32xf32>, vector<32x128xf32>, vector<32x128xf32> -> vector<32x128xf32>
    %85 = arith.addf %65, %84 : vector<32x128xf32>
    %86 = vector.extract_strided_slice %9 {offsets = [13, 0, 0], sizes = [1, 32, 32], strides = [1, 1, 1]} : vector<49x32x32xf32> to vector<1x32x32xf32>
    %87 = vector.shape_cast %86 : vector<1x32x32xf32> to vector<32x32xf32>
    %c416 = arith.constant 416 : index
    %c0_41 = arith.constant 0 : index
    %88 = vector.load %arg5[%c416, %c0_41] : memref<1568x128xf32, #tpu.memory_space<vmem>>, vector<32x128xf32>
    %cst_42 = arith.constant dense<0.000000e+00> : vector<32x128xf32>
    %89 = tpu.matmul %87, %88, %cst_42 {dimension_numbers = #tpu.dot_dimension_numbers<[1], [0], [0], [1], [0, 0, 1, 1], [], []>} : vector<32x32xf32>, vector<32x128xf32>, vector<32x128xf32> -> vector<32x128xf32>
    %90 = arith.addf %70, %89 : vector<32x128xf32>
    %91 = vector.extract_strided_slice %9 {offsets = [14, 0, 0], sizes = [1, 32, 32], strides = [1, 1, 1]} : vector<49x32x32xf32> to vector<1x32x32xf32>
    %92 = vector.shape_cast %91 : vector<1x32x32xf32> to vector<32x32xf32>
    %c448 = arith.constant 448 : index
    %c0_43 = arith.constant 0 : index
    %93 = vector.load %arg5[%c448, %c0_43] : memref<1568x128xf32, #tpu.memory_space<vmem>>, vector<32x128xf32>
    %cst_44 = arith.constant dense<0.000000e+00> : vector<32x128xf32>
    %94 = tpu.matmul %92, %93, %cst_44 {dimension_numbers = #tpu.dot_dimension_numbers<[1], [0], [0], [1], [0, 0, 1, 1], [], []>} : vector<32x32xf32>, vector<32x128xf32>, vector<32x128xf32> -> vector<32x128xf32>
    %95 = arith.addf %75, %94 : vector<32x128xf32>
    %96 = vector.extract_strided_slice %9 {offsets = [15, 0, 0], sizes = [1, 32, 32], strides = [1, 1, 1]} : vector<49x32x32xf32> to vector<1x32x32xf32>
    %97 = vector.shape_cast %96 : vector<1x32x32xf32> to vector<32x32xf32>
    %c480 = arith.constant 480 : index
    %c0_45 = arith.constant 0 : index
    %98 = vector.load %arg5[%c480, %c0_45] : memref<1568x128xf32, #tpu.memory_space<vmem>>, vector<32x128xf32>
    %cst_46 = arith.constant dense<0.000000e+00> : vector<32x128xf32>
    %99 = tpu.matmul %97, %98, %cst_46 {dimension_numbers = #tpu.dot_dimension_numbers<[1], [0], [0], [1], [0, 0, 1, 1], [], []>} : vector<32x32xf32>, vector<32x128xf32>, vector<32x128xf32> -> vector<32x128xf32>
    %100 = arith.addf %80, %99 : vector<32x128xf32>
    %101 = vector.extract_strided_slice %9 {offsets = [16, 0, 0], sizes = [1, 32, 32], strides = [1, 1, 1]} : vector<49x32x32xf32> to vector<1x32x32xf32>
    %102 = vector.shape_cast %101 : vector<1x32x32xf32> to vector<32x32xf32>
    %c512 = arith.constant 512 : index
    %c0_47 = arith.constant 0 : index
    %103 = vector.load %arg5[%c512, %c0_47] : memref<1568x128xf32, #tpu.memory_space<vmem>>, vector<32x128xf32>
    %cst_48 = arith.constant dense<0.000000e+00> : vector<32x128xf32>
    %104 = tpu.matmul %102, %103, %cst_48 {dimension_numbers = #tpu.dot_dimension_numbers<[1], [0], [0], [1], [0, 0, 1, 1], [], []>} : vector<32x32xf32>, vector<32x128xf32>, vector<32x128xf32> -> vector<32x128xf32>
    %105 = arith.addf %85, %104 : vector<32x128xf32>
    %106 = vector.extract_strided_slice %9 {offsets = [17, 0, 0], sizes = [1, 32, 32], strides = [1, 1, 1]} : vector<49x32x32xf32> to vector<1x32x32xf32>
    %107 = vector.shape_cast %106 : vector<1x32x32xf32> to vector<32x32xf32>
    %c544 = arith.constant 544 : index
    %c0_49 = arith.constant 0 : index
    %108 = vector.load %arg5[%c544, %c0_49] : memref<1568x128xf32, #tpu.memory_space<vmem>>, vector<32x128xf32>
    %cst_50 = arith.constant dense<0.000000e+00> : vector<32x128xf32>
    %109 = tpu.matmul %107, %108, %cst_50 {dimension_numbers = #tpu.dot_dimension_numbers<[1], [0], [0], [1], [0, 0, 1, 1], [], []>} : vector<32x32xf32>, vector<32x128xf32>, vector<32x128xf32> -> vector<32x128xf32>
    %110 = arith.addf %90, %109 : vector<32x128xf32>
    %111 = vector.extract_strided_slice %9 {offsets = [18, 0, 0], sizes = [1, 32, 32], strides = [1, 1, 1]} : vector<49x32x32xf32> to vector<1x32x32xf32>
    %112 = vector.shape_cast %111 : vector<1x32x32xf32> to vector<32x32xf32>
    %c576 = arith.constant 576 : index
    %c0_51 = arith.constant 0 : index
    %113 = vector.load %arg5[%c576, %c0_51] : memref<1568x128xf32, #tpu.memory_space<vmem>>, vector<32x128xf32>
    %cst_52 = arith.constant dense<0.000000e+00> : vector<32x128xf32>
    %114 = tpu.matmul %112, %113, %cst_52 {dimension_numbers = #tpu.dot_dimension_numbers<[1], [0], [0], [1], [0, 0, 1, 1], [], []>} : vector<32x32xf32>, vector<32x128xf32>, vector<32x128xf32> -> vector<32x128xf32>
    %115 = arith.addf %95, %114 : vector<32x128xf32>
    %116 = vector.extract_strided_slice %9 {offsets = [19, 0, 0], sizes = [1, 32, 32], strides = [1, 1, 1]} : vector<49x32x32xf32> to vector<1x32x32xf32>
    %117 = vector.shape_cast %116 : vector<1x32x32xf32> to vector<32x32xf32>
    %c608 = arith.constant 608 : index
    %c0_53 = arith.constant 0 : index
    %118 = vector.load %arg5[%c608, %c0_53] : memref<1568x128xf32, #tpu.memory_space<vmem>>, vector<32x128xf32>
    %cst_54 = arith.constant dense<0.000000e+00> : vector<32x128xf32>
    %119 = tpu.matmul %117, %118, %cst_54 {dimension_numbers = #tpu.dot_dimension_numbers<[1], [0], [0], [1], [0, 0, 1, 1], [], []>} : vector<32x32xf32>, vector<32x128xf32>, vector<32x128xf32> -> vector<32x128xf32>
    %120 = arith.addf %100, %119 : vector<32x128xf32>
    %121 = vector.extract_strided_slice %9 {offsets = [20, 0, 0], sizes = [1, 32, 32], strides = [1, 1, 1]} : vector<49x32x32xf32> to vector<1x32x32xf32>
    %122 = vector.shape_cast %121 : vector<1x32x32xf32> to vector<32x32xf32>
    %c640 = arith.constant 640 : index
    %c0_55 = arith.constant 0 : index
    %123 = vector.load %arg5[%c640, %c0_55] : memref<1568x128xf32, #tpu.memory_space<vmem>>, vector<32x128xf32>
    %cst_56 = arith.constant dense<0.000000e+00> : vector<32x128xf32>
    %124 = tpu.matmul %122, %123, %cst_56 {dimension_numbers = #tpu.dot_dimension_numbers<[1], [0], [0], [1], [0, 0, 1, 1], [], []>} : vector<32x32xf32>, vector<32x128xf32>, vector<32x128xf32> -> vector<32x128xf32>
    %125 = arith.addf %105, %124 : vector<32x128xf32>
    %126 = vector.extract_strided_slice %9 {offsets = [21, 0, 0], sizes = [1, 32, 32], strides = [1, 1, 1]} : vector<49x32x32xf32> to vector<1x32x32xf32>
    %127 = vector.shape_cast %126 : vector<1x32x32xf32> to vector<32x32xf32>
    %c672 = arith.constant 672 : index
    %c0_57 = arith.constant 0 : index
    %128 = vector.load %arg5[%c672, %c0_57] : memref<1568x128xf32, #tpu.memory_space<vmem>>, vector<32x128xf32>
    %cst_58 = arith.constant dense<0.000000e+00> : vector<32x128xf32>
    %129 = tpu.matmul %127, %128, %cst_58 {dimension_numbers = #tpu.dot_dimension_numbers<[1], [0], [0], [1], [0, 0, 1, 1], [], []>} : vector<32x32xf32>, vector<32x128xf32>, vector<32x128xf32> -> vector<32x128xf32>
    %130 = arith.addf %110, %129 : vector<32x128xf32>
    %131 = vector.extract_strided_slice %9 {offsets = [22, 0, 0], sizes = [1, 32, 32], strides = [1, 1, 1]} : vector<49x32x32xf32> to vector<1x32x32xf32>
    %132 = vector.shape_cast %131 : vector<1x32x32xf32> to vector<32x32xf32>
    %c704 = arith.constant 704 : index
    %c0_59 = arith.constant 0 : index
    %133 = vector.load %arg5[%c704, %c0_59] : memref<1568x128xf32, #tpu.memory_space<vmem>>, vector<32x128xf32>
    %cst_60 = arith.constant dense<0.000000e+00> : vector<32x128xf32>
    %134 = tpu.matmul %132, %133, %cst_60 {dimension_numbers = #tpu.dot_dimension_numbers<[1], [0], [0], [1], [0, 0, 1, 1], [], []>} : vector<32x32xf32>, vector<32x128xf32>, vector<32x128xf32> -> vector<32x128xf32>
    %135 = arith.addf %115, %134 : vector<32x128xf32>
    %136 = vector.extract_strided_slice %9 {offsets = [23, 0, 0], sizes = [1, 32, 32], strides = [1, 1, 1]} : vector<49x32x32xf32> to vector<1x32x32xf32>
    %137 = vector.shape_cast %136 : vector<1x32x32xf32> to vector<32x32xf32>
    %c736 = arith.constant 736 : index
    %c0_61 = arith.constant 0 : index
    %138 = vector.load %arg5[%c736, %c0_61] : memref<1568x128xf32, #tpu.memory_space<vmem>>, vector<32x128xf32>
    %cst_62 = arith.constant dense<0.000000e+00> : vector<32x128xf32>
    %139 = tpu.matmul %137, %138, %cst_62 {dimension_numbers = #tpu.dot_dimension_numbers<[1], [0], [0], [1], [0, 0, 1, 1], [], []>} : vector<32x32xf32>, vector<32x128xf32>, vector<32x128xf32> -> vector<32x128xf32>
    %140 = arith.addf %120, %139 : vector<32x128xf32>
    %141 = vector.extract_strided_slice %9 {offsets = [24, 0, 0], sizes = [1, 32, 32], strides = [1, 1, 1]} : vector<49x32x32xf32> to vector<1x32x32xf32>
    %142 = vector.shape_cast %141 : vector<1x32x32xf32> to vector<32x32xf32>
    %c768 = arith.constant 768 : index
    %c0_63 = arith.constant 0 : index
    %143 = vector.load %arg5[%c768, %c0_63] : memref<1568x128xf32, #tpu.memory_space<vmem>>, vector<32x128xf32>
    %cst_64 = arith.constant dense<0.000000e+00> : vector<32x128xf32>
    %144 = tpu.matmul %142, %143, %cst_64 {dimension_numbers = #tpu.dot_dimension_numbers<[1], [0], [0], [1], [0, 0, 1, 1], [], []>} : vector<32x32xf32>, vector<32x128xf32>, vector<32x128xf32> -> vector<32x128xf32>
    %145 = arith.addf %125, %144 : vector<32x128xf32>
    %146 = vector.extract_strided_slice %9 {offsets = [25, 0, 0], sizes = [1, 32, 32], strides = [1, 1, 1]} : vector<49x32x32xf32> to vector<1x32x32xf32>
    %147 = vector.shape_cast %146 : vector<1x32x32xf32> to vector<32x32xf32>
    %c800 = arith.constant 800 : index
    %c0_65 = arith.constant 0 : index
    %148 = vector.load %arg5[%c800, %c0_65] : memref<1568x128xf32, #tpu.memory_space<vmem>>, vector<32x128xf32>
    %cst_66 = arith.constant dense<0.000000e+00> : vector<32x128xf32>
    %149 = tpu.matmul %147, %148, %cst_66 {dimension_numbers = #tpu.dot_dimension_numbers<[1], [0], [0], [1], [0, 0, 1, 1], [], []>} : vector<32x32xf32>, vector<32x128xf32>, vector<32x128xf32> -> vector<32x128xf32>
    %150 = arith.addf %130, %149 : vector<32x128xf32>
    %151 = vector.extract_strided_slice %9 {offsets = [26, 0, 0], sizes = [1, 32, 32], strides = [1, 1, 1]} : vector<49x32x32xf32> to vector<1x32x32xf32>
    %152 = vector.shape_cast %151 : vector<1x32x32xf32> to vector<32x32xf32>
    %c832 = arith.constant 832 : index
    %c0_67 = arith.constant 0 : index
    %153 = vector.load %arg5[%c832, %c0_67] : memref<1568x128xf32, #tpu.memory_space<vmem>>, vector<32x128xf32>
    %cst_68 = arith.constant dense<0.000000e+00> : vector<32x128xf32>
    %154 = tpu.matmul %152, %153, %cst_68 {dimension_numbers = #tpu.dot_dimension_numbers<[1], [0], [0], [1], [0, 0, 1, 1], [], []>} : vector<32x32xf32>, vector<32x128xf32>, vector<32x128xf32> -> vector<32x128xf32>
    %155 = arith.addf %135, %154 : vector<32x128xf32>
    %156 = vector.extract_strided_slice %9 {offsets = [27, 0, 0], sizes = [1, 32, 32], strides = [1, 1, 1]} : vector<49x32x32xf32> to vector<1x32x32xf32>
    %157 = vector.shape_cast %156 : vector<1x32x32xf32> to vector<32x32xf32>
    %c864 = arith.constant 864 : index
    %c0_69 = arith.constant 0 : index
    %158 = vector.load %arg5[%c864, %c0_69] : memref<1568x128xf32, #tpu.memory_space<vmem>>, vector<32x128xf32>
    %cst_70 = arith.constant dense<0.000000e+00> : vector<32x128xf32>
    %159 = tpu.matmul %157, %158, %cst_70 {dimension_numbers = #tpu.dot_dimension_numbers<[1], [0], [0], [1], [0, 0, 1, 1], [], []>} : vector<32x32xf32>, vector<32x128xf32>, vector<32x128xf32> -> vector<32x128xf32>
    %160 = arith.addf %140, %159 : vector<32x128xf32>
    %161 = vector.extract_strided_slice %9 {offsets = [28, 0, 0], sizes = [1, 32, 32], strides = [1, 1, 1]} : vector<49x32x32xf32> to vector<1x32x32xf32>
    %162 = vector.shape_cast %161 : vector<1x32x32xf32> to vector<32x32xf32>
    %c896 = arith.constant 896 : index
    %c0_71 = arith.constant 0 : index
    %163 = vector.load %arg5[%c896, %c0_71] : memref<1568x128xf32, #tpu.memory_space<vmem>>, vector<32x128xf32>
    %cst_72 = arith.constant dense<0.000000e+00> : vector<32x128xf32>
    %164 = tpu.matmul %162, %163, %cst_72 {dimension_numbers = #tpu.dot_dimension_numbers<[1], [0], [0], [1], [0, 0, 1, 1], [], []>} : vector<32x32xf32>, vector<32x128xf32>, vector<32x128xf32> -> vector<32x128xf32>
    %165 = arith.addf %145, %164 : vector<32x128xf32>
    %166 = vector.extract_strided_slice %9 {offsets = [29, 0, 0], sizes = [1, 32, 32], strides = [1, 1, 1]} : vector<49x32x32xf32> to vector<1x32x32xf32>
    %167 = vector.shape_cast %166 : vector<1x32x32xf32> to vector<32x32xf32>
    %c928 = arith.constant 928 : index
    %c0_73 = arith.constant 0 : index
    %168 = vector.load %arg5[%c928, %c0_73] : memref<1568x128xf32, #tpu.memory_space<vmem>>, vector<32x128xf32>
    %cst_74 = arith.constant dense<0.000000e+00> : vector<32x128xf32>
    %169 = tpu.matmul %167, %168, %cst_74 {dimension_numbers = #tpu.dot_dimension_numbers<[1], [0], [0], [1], [0, 0, 1, 1], [], []>} : vector<32x32xf32>, vector<32x128xf32>, vector<32x128xf32> -> vector<32x128xf32>
    %170 = arith.addf %150, %169 : vector<32x128xf32>
    %171 = vector.extract_strided_slice %9 {offsets = [30, 0, 0], sizes = [1, 32, 32], strides = [1, 1, 1]} : vector<49x32x32xf32> to vector<1x32x32xf32>
    %172 = vector.shape_cast %171 : vector<1x32x32xf32> to vector<32x32xf32>
    %c960 = arith.constant 960 : index
    %c0_75 = arith.constant 0 : index
    %173 = vector.load %arg5[%c960, %c0_75] : memref<1568x128xf32, #tpu.memory_space<vmem>>, vector<32x128xf32>
    %cst_76 = arith.constant dense<0.000000e+00> : vector<32x128xf32>
    %174 = tpu.matmul %172, %173, %cst_76 {dimension_numbers = #tpu.dot_dimension_numbers<[1], [0], [0], [1], [0, 0, 1, 1], [], []>} : vector<32x32xf32>, vector<32x128xf32>, vector<32x128xf32> -> vector<32x128xf32>
    %175 = arith.addf %155, %174 : vector<32x128xf32>
    %176 = vector.extract_strided_slice %9 {offsets = [31, 0, 0], sizes = [1, 32, 32], strides = [1, 1, 1]} : vector<49x32x32xf32> to vector<1x32x32xf32>
    %177 = vector.shape_cast %176 : vector<1x32x32xf32> to vector<32x32xf32>
    %c992 = arith.constant 992 : index
    %c0_77 = arith.constant 0 : index
    %178 = vector.load %arg5[%c992, %c0_77] : memref<1568x128xf32, #tpu.memory_space<vmem>>, vector<32x128xf32>
    %cst_78 = arith.constant dense<0.000000e+00> : vector<32x128xf32>
    %179 = tpu.matmul %177, %178, %cst_78 {dimension_numbers = #tpu.dot_dimension_numbers<[1], [0], [0], [1], [0, 0, 1, 1], [], []>} : vector<32x32xf32>, vector<32x128xf32>, vector<32x128xf32> -> vector<32x128xf32>
    %180 = arith.addf %160, %179 : vector<32x128xf32>
    %181 = vector.extract_strided_slice %9 {offsets = [32, 0, 0], sizes = [1, 32, 32], strides = [1, 1, 1]} : vector<49x32x32xf32> to vector<1x32x32xf32>
    %182 = vector.shape_cast %181 : vector<1x32x32xf32> to vector<32x32xf32>
    %c1024 = arith.constant 1024 : index
    %c0_79 = arith.constant 0 : index
    %183 = vector.load %arg5[%c1024, %c0_79] : memref<1568x128xf32, #tpu.memory_space<vmem>>, vector<32x128xf32>
    %cst_80 = arith.constant dense<0.000000e+00> : vector<32x128xf32>
    %184 = tpu.matmul %182, %183, %cst_80 {dimension_numbers = #tpu.dot_dimension_numbers<[1], [0], [0], [1], [0, 0, 1, 1], [], []>} : vector<32x32xf32>, vector<32x128xf32>, vector<32x128xf32> -> vector<32x128xf32>
    %185 = arith.addf %165, %184 : vector<32x128xf32>
    %186 = vector.extract_strided_slice %9 {offsets = [33, 0, 0], sizes = [1, 32, 32], strides = [1, 1, 1]} : vector<49x32x32xf32> to vector<1x32x32xf32>
    %187 = vector.shape_cast %186 : vector<1x32x32xf32> to vector<32x32xf32>
    %c1056 = arith.constant 1056 : index
    %c0_81 = arith.constant 0 : index
    %188 = vector.load %arg5[%c1056, %c0_81] : memref<1568x128xf32, #tpu.memory_space<vmem>>, vector<32x128xf32>
    %cst_82 = arith.constant dense<0.000000e+00> : vector<32x128xf32>
    %189 = tpu.matmul %187, %188, %cst_82 {dimension_numbers = #tpu.dot_dimension_numbers<[1], [0], [0], [1], [0, 0, 1, 1], [], []>} : vector<32x32xf32>, vector<32x128xf32>, vector<32x128xf32> -> vector<32x128xf32>
    %190 = arith.addf %170, %189 : vector<32x128xf32>
    %191 = vector.extract_strided_slice %9 {offsets = [34, 0, 0], sizes = [1, 32, 32], strides = [1, 1, 1]} : vector<49x32x32xf32> to vector<1x32x32xf32>
    %192 = vector.shape_cast %191 : vector<1x32x32xf32> to vector<32x32xf32>
    %c1088 = arith.constant 1088 : index
    %c0_83 = arith.constant 0 : index
    %193 = vector.load %arg5[%c1088, %c0_83] : memref<1568x128xf32, #tpu.memory_space<vmem>>, vector<32x128xf32>
    %cst_84 = arith.constant dense<0.000000e+00> : vector<32x128xf32>
    %194 = tpu.matmul %192, %193, %cst_84 {dimension_numbers = #tpu.dot_dimension_numbers<[1], [0], [0], [1], [0, 0, 1, 1], [], []>} : vector<32x32xf32>, vector<32x128xf32>, vector<32x128xf32> -> vector<32x128xf32>
    %195 = arith.addf %175, %194 : vector<32x128xf32>
    %196 = vector.extract_strided_slice %9 {offsets = [35, 0, 0], sizes = [1, 32, 32], strides = [1, 1, 1]} : vector<49x32x32xf32> to vector<1x32x32xf32>
    %197 = vector.shape_cast %196 : vector<1x32x32xf32> to vector<32x32xf32>
    %c1120 = arith.constant 1120 : index
    %c0_85 = arith.constant 0 : index
    %198 = vector.load %arg5[%c1120, %c0_85] : memref<1568x128xf32, #tpu.memory_space<vmem>>, vector<32x128xf32>
    %cst_86 = arith.constant dense<0.000000e+00> : vector<32x128xf32>
    %199 = tpu.matmul %197, %198, %cst_86 {dimension_numbers = #tpu.dot_dimension_numbers<[1], [0], [0], [1], [0, 0, 1, 1], [], []>} : vector<32x32xf32>, vector<32x128xf32>, vector<32x128xf32> -> vector<32x128xf32>
    %200 = arith.addf %180, %199 : vector<32x128xf32>
    %201 = vector.extract_strided_slice %9 {offsets = [36, 0, 0], sizes = [1, 32, 32], strides = [1, 1, 1]} : vector<49x32x32xf32> to vector<1x32x32xf32>
    %202 = vector.shape_cast %201 : vector<1x32x32xf32> to vector<32x32xf32>
    %c1152 = arith.constant 1152 : index
    %c0_87 = arith.constant 0 : index
    %203 = vector.load %arg5[%c1152, %c0_87] : memref<1568x128xf32, #tpu.memory_space<vmem>>, vector<32x128xf32>
    %cst_88 = arith.constant dense<0.000000e+00> : vector<32x128xf32>
    %204 = tpu.matmul %202, %203, %cst_88 {dimension_numbers = #tpu.dot_dimension_numbers<[1], [0], [0], [1], [0, 0, 1, 1], [], []>} : vector<32x32xf32>, vector<32x128xf32>, vector<32x128xf32> -> vector<32x128xf32>
    %205 = arith.addf %185, %204 : vector<32x128xf32>
    %206 = vector.extract_strided_slice %9 {offsets = [37, 0, 0], sizes = [1, 32, 32], strides = [1, 1, 1]} : vector<49x32x32xf32> to vector<1x32x32xf32>
    %207 = vector.shape_cast %206 : vector<1x32x32xf32> to vector<32x32xf32>
    %c1184 = arith.constant 1184 : index
    %c0_89 = arith.constant 0 : index
    %208 = vector.load %arg5[%c1184, %c0_89] : memref<1568x128xf32, #tpu.memory_space<vmem>>, vector<32x128xf32>
    %cst_90 = arith.constant dense<0.000000e+00> : vector<32x128xf32>
    %209 = tpu.matmul %207, %208, %cst_90 {dimension_numbers = #tpu.dot_dimension_numbers<[1], [0], [0], [1], [0, 0, 1, 1], [], []>} : vector<32x32xf32>, vector<32x128xf32>, vector<32x128xf32> -> vector<32x128xf32>
    %210 = arith.addf %190, %209 : vector<32x128xf32>
    %211 = vector.extract_strided_slice %9 {offsets = [38, 0, 0], sizes = [1, 32, 32], strides = [1, 1, 1]} : vector<49x32x32xf32> to vector<1x32x32xf32>
    %212 = vector.shape_cast %211 : vector<1x32x32xf32> to vector<32x32xf32>
    %c1216 = arith.constant 1216 : index
    %c0_91 = arith.constant 0 : index
    %213 = vector.load %arg5[%c1216, %c0_91] : memref<1568x128xf32, #tpu.memory_space<vmem>>, vector<32x128xf32>
    %cst_92 = arith.constant dense<0.000000e+00> : vector<32x128xf32>
    %214 = tpu.matmul %212, %213, %cst_92 {dimension_numbers = #tpu.dot_dimension_numbers<[1], [0], [0], [1], [0, 0, 1, 1], [], []>} : vector<32x32xf32>, vector<32x128xf32>, vector<32x128xf32> -> vector<32x128xf32>
    %215 = arith.addf %195, %214 : vector<32x128xf32>
    %216 = vector.extract_strided_slice %9 {offsets = [39, 0, 0], sizes = [1, 32, 32], strides = [1, 1, 1]} : vector<49x32x32xf32> to vector<1x32x32xf32>
    %217 = vector.shape_cast %216 : vector<1x32x32xf32> to vector<32x32xf32>
    %c1248 = arith.constant 1248 : index
    %c0_93 = arith.constant 0 : index
    %218 = vector.load %arg5[%c1248, %c0_93] : memref<1568x128xf32, #tpu.memory_space<vmem>>, vector<32x128xf32>
    %cst_94 = arith.constant dense<0.000000e+00> : vector<32x128xf32>
    %219 = tpu.matmul %217, %218, %cst_94 {dimension_numbers = #tpu.dot_dimension_numbers<[1], [0], [0], [1], [0, 0, 1, 1], [], []>} : vector<32x32xf32>, vector<32x128xf32>, vector<32x128xf32> -> vector<32x128xf32>
    %220 = arith.addf %200, %219 : vector<32x128xf32>
    %221 = vector.extract_strided_slice %9 {offsets = [40, 0, 0], sizes = [1, 32, 32], strides = [1, 1, 1]} : vector<49x32x32xf32> to vector<1x32x32xf32>
    %222 = vector.shape_cast %221 : vector<1x32x32xf32> to vector<32x32xf32>
    %c1280 = arith.constant 1280 : index
    %c0_95 = arith.constant 0 : index
    %223 = vector.load %arg5[%c1280, %c0_95] : memref<1568x128xf32, #tpu.memory_space<vmem>>, vector<32x128xf32>
    %cst_96 = arith.constant dense<0.000000e+00> : vector<32x128xf32>
    %224 = tpu.matmul %222, %223, %cst_96 {dimension_numbers = #tpu.dot_dimension_numbers<[1], [0], [0], [1], [0, 0, 1, 1], [], []>} : vector<32x32xf32>, vector<32x128xf32>, vector<32x128xf32> -> vector<32x128xf32>
    %225 = arith.addf %205, %224 : vector<32x128xf32>
    %226 = vector.extract_strided_slice %9 {offsets = [41, 0, 0], sizes = [1, 32, 32], strides = [1, 1, 1]} : vector<49x32x32xf32> to vector<1x32x32xf32>
    %227 = vector.shape_cast %226 : vector<1x32x32xf32> to vector<32x32xf32>
    %c1312 = arith.constant 1312 : index
    %c0_97 = arith.constant 0 : index
    %228 = vector.load %arg5[%c1312, %c0_97] : memref<1568x128xf32, #tpu.memory_space<vmem>>, vector<32x128xf32>
    %cst_98 = arith.constant dense<0.000000e+00> : vector<32x128xf32>
    %229 = tpu.matmul %227, %228, %cst_98 {dimension_numbers = #tpu.dot_dimension_numbers<[1], [0], [0], [1], [0, 0, 1, 1], [], []>} : vector<32x32xf32>, vector<32x128xf32>, vector<32x128xf32> -> vector<32x128xf32>
    %230 = arith.addf %210, %229 : vector<32x128xf32>
    %231 = vector.extract_strided_slice %9 {offsets = [42, 0, 0], sizes = [1, 32, 32], strides = [1, 1, 1]} : vector<49x32x32xf32> to vector<1x32x32xf32>
    %232 = vector.shape_cast %231 : vector<1x32x32xf32> to vector<32x32xf32>
    %c1344 = arith.constant 1344 : index
    %c0_99 = arith.constant 0 : index
    %233 = vector.load %arg5[%c1344, %c0_99] : memref<1568x128xf32, #tpu.memory_space<vmem>>, vector<32x128xf32>
    %cst_100 = arith.constant dense<0.000000e+00> : vector<32x128xf32>
    %234 = tpu.matmul %232, %233, %cst_100 {dimension_numbers = #tpu.dot_dimension_numbers<[1], [0], [0], [1], [0, 0, 1, 1], [], []>} : vector<32x32xf32>, vector<32x128xf32>, vector<32x128xf32> -> vector<32x128xf32>
    %235 = arith.addf %215, %234 : vector<32x128xf32>
    %236 = vector.extract_strided_slice %9 {offsets = [43, 0, 0], sizes = [1, 32, 32], strides = [1, 1, 1]} : vector<49x32x32xf32> to vector<1x32x32xf32>
    %237 = vector.shape_cast %236 : vector<1x32x32xf32> to vector<32x32xf32>
    %c1376 = arith.constant 1376 : index
    %c0_101 = arith.constant 0 : index
    %238 = vector.load %arg5[%c1376, %c0_101] : memref<1568x128xf32, #tpu.memory_space<vmem>>, vector<32x128xf32>
    %cst_102 = arith.constant dense<0.000000e+00> : vector<32x128xf32>
    %239 = tpu.matmul %237, %238, %cst_102 {dimension_numbers = #tpu.dot_dimension_numbers<[1], [0], [0], [1], [0, 0, 1, 1], [], []>} : vector<32x32xf32>, vector<32x128xf32>, vector<32x128xf32> -> vector<32x128xf32>
    %240 = arith.addf %220, %239 : vector<32x128xf32>
    %241 = vector.extract_strided_slice %9 {offsets = [44, 0, 0], sizes = [1, 32, 32], strides = [1, 1, 1]} : vector<49x32x32xf32> to vector<1x32x32xf32>
    %242 = vector.shape_cast %241 : vector<1x32x32xf32> to vector<32x32xf32>
    %c1408 = arith.constant 1408 : index
    %c0_103 = arith.constant 0 : index
    %243 = vector.load %arg5[%c1408, %c0_103] : memref<1568x128xf32, #tpu.memory_space<vmem>>, vector<32x128xf32>
    %cst_104 = arith.constant dense<0.000000e+00> : vector<32x128xf32>
    %244 = tpu.matmul %242, %243, %cst_104 {dimension_numbers = #tpu.dot_dimension_numbers<[1], [0], [0], [1], [0, 0, 1, 1], [], []>} : vector<32x32xf32>, vector<32x128xf32>, vector<32x128xf32> -> vector<32x128xf32>
    %245 = arith.addf %225, %244 : vector<32x128xf32>
    %246 = vector.extract_strided_slice %9 {offsets = [45, 0, 0], sizes = [1, 32, 32], strides = [1, 1, 1]} : vector<49x32x32xf32> to vector<1x32x32xf32>
    %247 = vector.shape_cast %246 : vector<1x32x32xf32> to vector<32x32xf32>
    %c1440 = arith.constant 1440 : index
    %c0_105 = arith.constant 0 : index
    %248 = vector.load %arg5[%c1440, %c0_105] : memref<1568x128xf32, #tpu.memory_space<vmem>>, vector<32x128xf32>
    %cst_106 = arith.constant dense<0.000000e+00> : vector<32x128xf32>
    %249 = tpu.matmul %247, %248, %cst_106 {dimension_numbers = #tpu.dot_dimension_numbers<[1], [0], [0], [1], [0, 0, 1, 1], [], []>} : vector<32x32xf32>, vector<32x128xf32>, vector<32x128xf32> -> vector<32x128xf32>
    %250 = arith.addf %230, %249 : vector<32x128xf32>
    %251 = vector.extract_strided_slice %9 {offsets = [46, 0, 0], sizes = [1, 32, 32], strides = [1, 1, 1]} : vector<49x32x32xf32> to vector<1x32x32xf32>
    %252 = vector.shape_cast %251 : vector<1x32x32xf32> to vector<32x32xf32>
    %c1472 = arith.constant 1472 : index
    %c0_107 = arith.constant 0 : index
    %253 = vector.load %arg5[%c1472, %c0_107] : memref<1568x128xf32, #tpu.memory_space<vmem>>, vector<32x128xf32>
    %cst_108 = arith.constant dense<0.000000e+00> : vector<32x128xf32>
    %254 = tpu.matmul %252, %253, %cst_108 {dimension_numbers = #tpu.dot_dimension_numbers<[1], [0], [0], [1], [0, 0, 1, 1], [], []>} : vector<32x32xf32>, vector<32x128xf32>, vector<32x128xf32> -> vector<32x128xf32>
    %255 = arith.addf %235, %254 : vector<32x128xf32>
    %256 = vector.extract_strided_slice %9 {offsets = [47, 0, 0], sizes = [1, 32, 32], strides = [1, 1, 1]} : vector<49x32x32xf32> to vector<1x32x32xf32>
    %257 = vector.shape_cast %256 : vector<1x32x32xf32> to vector<32x32xf32>
    %c1504 = arith.constant 1504 : index
    %c0_109 = arith.constant 0 : index
    %258 = vector.load %arg5[%c1504, %c0_109] : memref<1568x128xf32, #tpu.memory_space<vmem>>, vector<32x128xf32>
    %cst_110 = arith.constant dense<0.000000e+00> : vector<32x128xf32>
    %259 = tpu.matmul %257, %258, %cst_110 {dimension_numbers = #tpu.dot_dimension_numbers<[1], [0], [0], [1], [0, 0, 1, 1], [], []>} : vector<32x32xf32>, vector<32x128xf32>, vector<32x128xf32> -> vector<32x128xf32>
    %260 = arith.addf %240, %259 : vector<32x128xf32>
    %261 = vector.extract_strided_slice %9 {offsets = [48, 0, 0], sizes = [1, 32, 32], strides = [1, 1, 1]} : vector<49x32x32xf32> to vector<1x32x32xf32>
    %262 = vector.shape_cast %261 : vector<1x32x32xf32> to vector<32x32xf32>
    %c1536 = arith.constant 1536 : index
    %c0_111 = arith.constant 0 : index
    %263 = vector.load %arg5[%c1536, %c0_111] : memref<1568x128xf32, #tpu.memory_space<vmem>>, vector<32x128xf32>
    %cst_112 = arith.constant dense<0.000000e+00> : vector<32x128xf32>
    %264 = tpu.matmul %262, %263, %cst_112 {dimension_numbers = #tpu.dot_dimension_numbers<[1], [0], [0], [1], [0, 0, 1, 1], [], []>} : vector<32x32xf32>, vector<32x128xf32>, vector<32x128xf32> -> vector<32x128xf32>
    %265 = arith.addf %245, %264 : vector<32x128xf32>
    %266 = arith.addf %24, %265 : vector<32x128xf32>
    %267 = arith.addf %266, %250 : vector<32x128xf32>
    %268 = arith.addf %267, %255 : vector<32x128xf32>
    %269 = arith.addf %268, %260 : vector<32x128xf32>
    %cst_113 = arith.constant 0.000000e+00 : f32
    %270 = vector.broadcast %cst_113 : f32 to vector<32x128xf32>
    %271 = arith.maximumf %269, %270 : vector<32x128xf32>
    %c0_114 = arith.constant 0 : index
    %c0_115 = arith.constant 0 : index
    %272 = vector.load %arg8[%c0_114, %c0_115] : memref<128x128xf32, #tpu.memory_space<vmem>>, vector<128x128xf32>
    %cst_116 = arith.constant dense<0.000000e+00> : vector<32x128xf32>
    %273 = tpu.matmul %271, %272, %cst_116 {dimension_numbers = #tpu.dot_dimension_numbers<[1], [0], [0], [1], [0, 0, 1, 1], [], []>} : vector<32x128xf32>, vector<128x128xf32>, vector<32x128xf32> -> vector<32x128xf32>
    %c0_117 = arith.constant 0 : index
    %c0_118 = arith.constant 0 : index
    %274 = vector.load %arg9[%c0_117, %c0_118] : memref<1x128xf32, #tpu.memory_space<vmem>>, vector<1x128xf32>
    %275 = vector.broadcast %274 : vector<1x128xf32> to vector<32x128xf32>
    %276 = arith.addf %273, %275 : vector<32x128xf32>
    %c0_119 = arith.constant 0 : index
    %c0_120 = arith.constant 0 : index
    %277 = vector.load %arg10[%c0_119, %c0_120] : memref<32x128xf32, #tpu.memory_space<vmem>>, vector<32x128xf32>
    tpu.vector_store %arg10[%c0_119, %c0_120], %276 {strides = array<i32>} : memref<32x128xf32, #tpu.memory_space<vmem>>, vector<32x128xf32>,
    return
  }
  func.func @transform_0(%arg0: i32) -> (i32, i32, i32) {
    %c0_i32 = arith.constant 0 : i32
    %c0_i32_0 = arith.constant 0 : i32
    %c0_i32_1 = arith.constant 0 : i32
    return %c0_i32, %arg0, %c0_i32_0 : i32, i32, i32
  }
  func.func @transform_1(%arg0: i32) -> (i32, i32) {
    %c0_i32 = arith.constant 0 : i32
    %c0_i32_0 = arith.constant 0 : i32
    return %arg0, %c0_i32 : i32, i32
  }
  func.func @transform_2(%arg0: i32) -> (i32, i32) {
    %c0_i32 = arith.constant 0 : i32
    %c0_i32_0 = arith.constant 0 : i32
    %c0_i32_1 = arith.constant 0 : i32
    return %c0_i32, %c0_i32_0 : i32, i32
  }
  func.func @transform_3(%arg0: i32) -> (i32, i32) {
    %c0_i32 = arith.constant 0 : i32
    %c0_i32_0 = arith.constant 0 : i32
    %c0_i32_1 = arith.constant 0 : i32
    return %c0_i32, %c0_i32_0 : i32, i32
  }
  func.func @transform_4(%arg0: i32) -> (i32, i32) {
    %c0_i32 = arith.constant 0 : i32
    %c0_i32_0 = arith.constant 0 : i32
    %c0_i32_1 = arith.constant 0 : i32
    return %c0_i32, %c0_i32_0 : i32, i32
  }
  func.func @transform_5(%arg0: i32) -> (i32, i32) {
    %c0_i32 = arith.constant 0 : i32
    %c0_i32_0 = arith.constant 0 : i32
    %c0_i32_1 = arith.constant 0 : i32
    return %c0_i32, %c0_i32_0 : i32, i32
  }
  func.func @transform_6(%arg0: i32) -> (i32, i32) {
    %c0_i32 = arith.constant 0 : i32
    %c0_i32_0 = arith.constant 0 : i32
    %c0_i32_1 = arith.constant 0 : i32
    return %c0_i32, %c0_i32_0 : i32, i32
  }
  func.func @transform_7(%arg0: i32) -> (i32, i32) {
    %c0_i32 = arith.constant 0 : i32
    %c0_i32_0 = arith.constant 0 : i32
    %c0_i32_1 = arith.constant 0 : i32
    return %c0_i32, %c0_i32_0 : i32, i32
  }
  func.func @transform_8(%arg0: i32) -> (i32, i32) {
    %c0_i32 = arith.constant 0 : i32
    %c0_i32_0 = arith.constant 0 : i32
    %c0_i32_1 = arith.constant 0 : i32
    return %c0_i32, %c0_i32_0 : i32, i32
  }
  func.func @transform_9(%arg0: i32) -> (i32, i32) {
    %c0_i32 = arith.constant 0 : i32
    %c0_i32_0 = arith.constant 0 : i32
    return %arg0, %c0_i32 : i32, i32
  }
}

module attributes {stable_mosaic.version = 11 : i64} {
  func.func @go_kernel(%arg0: i32, %arg1: memref<49x32x18xf32, #tpu.memory_space<vmem>>, %arg2: memref<32x2xf32, #tpu.memory_space<vmem>>, %arg3: memref<18x32xf32, #tpu.memory_space<vmem>>, %arg4: memref<1x32xf32, #tpu.memory_space<vmem>>, %arg5: memref<1568x128xf32, #tpu.memory_space<vmem>>, %arg6: memref<2x128xf32, #tpu.memory_space<vmem>>, %arg7: memref<1x128xf32, #tpu.memory_space<vmem>>, %arg8: memref<128x128xf32, #tpu.memory_space<vmem>>, %arg9: memref<1x128xf32, #tpu.memory_space<vmem>>, %arg10: memref<32x128xf32, #tpu.memory_space<vmem>>) attributes {dimension_semantics = [#tpu.dimension_semantics<parallel>], iteration_bounds = array<i64: 2>, scalar_prefetch = 0 : i64, scratch_operands = 0 : i64, tpu.core_type = #tpu.core_type<tc>, window_params = [{transform_indices = @transform_0, window_bounds = array<i64: 49, 32, 18>}, {transform_indices = @transform_1, window_bounds = array<i64: 32, 2>}, {pipeline_mode = #tpu.pipeline_mode<synchronous>, transform_indices = @transform_2, window_bounds = array<i64: 18, 32>}, {pipeline_mode = #tpu.pipeline_mode<synchronous>, transform_indices = @transform_3, window_bounds = array<i64: 1, 32>}, {pipeline_mode = #tpu.pipeline_mode<synchronous>, transform_indices = @transform_4, window_bounds = array<i64: 1568, 128>}, {pipeline_mode = #tpu.pipeline_mode<synchronous>, transform_indices = @transform_5, window_bounds = array<i64: 2, 128>}, {pipeline_mode = #tpu.pipeline_mode<synchronous>, transform_indices = @transform_6, window_bounds = array<i64: 1, 128>}, {pipeline_mode = #tpu.pipeline_mode<synchronous>, transform_indices = @transform_7, window_bounds = array<i64: 128, 128>}, {pipeline_mode = #tpu.pipeline_mode<synchronous>, transform_indices = @transform_8, window_bounds = array<i64: 1, 128>}, {transform_indices = @transform_9, window_bounds = array<i64: 32, 128>}]} {
    %c0 = arith.constant 0 : index
    %c0_0 = arith.constant 0 : index
    %c0_1 = arith.constant 0 : index
    %0 = vector.load %arg1[%c0, %c0_0, %c0_1] : memref<49x32x18xf32, #tpu.memory_space<vmem>>, vector<49x32x18xf32>
    %1 = vector.shape_cast %0 : vector<49x32x18xf32> to vector<1568x18xf32>
    %c0_2 = arith.constant 0 : index
    %c0_3 = arith.constant 0 : index
    %2 = vector.load %arg3[%c0_2, %c0_3] : memref<18x32xf32, #tpu.memory_space<vmem>>, vector<18x32xf32>
    %cst = arith.constant dense<0.000000e+00> : vector<1568x32xf32>
    %3 = tpu.matmul %1, %2, %cst {dimension_numbers = #tpu.dot_dimension_numbers<[1], [0], [0], [1], [0, 0, 1, 1], [], []>} : vector<1568x18xf32>, vector<18x32xf32>, vector<1568x32xf32> -> vector<1568x32xf32>
    %c0_4 = arith.constant 0 : index
    %c0_5 = arith.constant 0 : index
    %4 = vector.load %arg4[%c0_4, %c0_5] : memref<1x32xf32, #tpu.memory_space<vmem>>, vector<1x32xf32>
    %5 = vector.broadcast %4 : vector<1x32xf32> to vector<1568x32xf32>
    %6 = arith.addf %3, %5 : vector<1568x32xf32>
    %cst_6 = arith.constant 0.000000e+00 : f32
    %7 = vector.broadcast %cst_6 : f32 to vector<1568x32xf32>
    %8 = arith.maximumf %6, %7 : vector<1568x32xf32>
    %9 = vector.shape_cast %8 : vector<1568x32xf32> to vector<49x32x32xf32>
    %c0_7 = arith.constant 0 : index
    %c0_8 = arith.constant 0 : index
    %10 = vector.load %arg2[%c0_7, %c0_8] : memref<32x2xf32, #tpu.memory_space<vmem>>, vector<32x2xf32>
    %c0_9 = arith.constant 0 : index
    %c0_10 = arith.constant 0 : index
    %11 = vector.load %arg7[%c0_9, %c0_10] : memref<1x128xf32, #tpu.memory_space<vmem>>, vector<1x128xf32>
    %12 = vector.extract_strided_slice %10 {offsets = [0, 0], sizes = [32, 1], strides = [1, 1]} : vector<32x2xf32> to vector<32x1xf32>
    %c0_11 = arith.constant 0 : index
    %c0_12 = arith.constant 0 : index
    %13 = vector.load %arg6[%c0_11, %c0_12] : memref<2x128xf32, #tpu.memory_space<vmem>>, vector<1x128xf32>
    %14 = vector.broadcast %12 : vector<32x1xf32> to vector<32x128xf32>
    %15 = vector.broadcast %13 : vector<1x128xf32> to vector<32x128xf32>
    %16 = arith.mulf %14, %15 : vector<32x128xf32>
    %17 = vector.broadcast %11 : vector<1x128xf32> to vector<32x128xf32>
    %18 = arith.addf %17, %16 : vector<32x128xf32>
    %19 = vector.extract_strided_slice %10 {offsets = [0, 1], sizes = [32, 1], strides = [1, 1]} : vector<32x2xf32> to vector<32x1xf32>
    %c1 = arith.constant 1 : index
    %c0_13 = arith.constant 0 : index
    %20 = vector.load %arg6[%c1, %c0_13] : memref<2x128xf32, #tpu.memory_space<vmem>>, vector<1x128xf32>
    %21 = vector.broadcast %19 : vector<32x1xf32> to vector<32x128xf32>
    %22 = vector.broadcast %20 : vector<1x128xf32> to vector<32x128xf32>
    %23 = arith.mulf %21, %22 : vector<32x128xf32>
    %24 = arith.addf %18, %23 : vector<32x128xf32>
    %25 = vector.extract_strided_slice %9 {offsets = [0, 0, 0], sizes = [1, 32, 32], strides = [1, 1, 1]} : vector<49x32x32xf32> to vector<1x32x32xf32>
    %26 = vector.shape_cast %25 : vector<1x32x32xf32> to vector<32x32xf32>
    %c0_14 = arith.constant 0 : index
    %c0_15 = arith.constant 0 : index
    %27 = vector.load %arg5[%c0_14, %c0_15] : memref<1568x128xf32, #tpu.memory_space<vmem>>, vector<32x128xf32>
    %cst_16 = arith.constant dense<0.000000e+00> : vector<32x128xf32>
    %28 = tpu.matmul %26, %27, %cst_16 {dimension_numbers = #tpu.dot_dimension_numbers<[1], [0], [0], [1], [0, 0, 1, 1], [], []>} : vector<32x32xf32>, vector<32x128xf32>, vector<32x128xf32> -> vector<32x128xf32>
    %29 = vector.extract_strided_slice %9 {offsets = [1, 0, 0], sizes = [1, 32, 32], strides = [1, 1, 1]} : vector<49x32x32xf32> to vector<1x32x32xf32>
    %30 = vector.shape_cast %29 : vector<1x32x32xf32> to vector<32x32xf32>
    %c32 = arith.constant 32 : index
    %c0_17 = arith.constant 0 : index
    %31 = vector.load %arg5[%c32, %c0_17] : memref<1568x128xf32, #tpu.memory_space<vmem>>, vector<32x128xf32>
    %cst_18 = arith.constant dense<0.000000e+00> : vector<32x128xf32>
    %32 = tpu.matmul %30, %31, %cst_18 {dimension_numbers = #tpu.dot_dimension_numbers<[1], [0], [0], [1], [0, 0, 1, 1], [], []>} : vector<32x32xf32>, vector<32x128xf32>, vector<32x128xf32> -> vector<32x128xf32>
    %33 = vector.extract_strided_slice %9 {offsets = [2, 0, 0], sizes = [1, 32, 32], strides = [1, 1, 1]} : vector<49x32x32xf32> to vector<1x32x32xf32>
    %34 = vector.shape_cast %33 : vector<1x32x32xf32> to vector<32x32xf32>
    %c64 = arith.constant 64 : index
    %c0_19 = arith.constant 0 : index
    %35 = vector.load %arg5[%c64, %c0_19] : memref<1568x128xf32, #tpu.memory_space<vmem>>, vector<32x128xf32>
    %cst_20 = arith.constant dense<0.000000e+00> : vector<32x128xf32>
    %36 = tpu.matmul %34, %35, %cst_20 {dimension_numbers = #tpu.dot_dimension_numbers<[1], [0], [0], [1], [0, 0, 1, 1], [], []>} : vector<32x32xf32>, vector<32x128xf32>, vector<32x128xf32> -> vector<32x128xf32>
    %37 = vector.extract_strided_slice %9 {offsets = [3, 0, 0], sizes = [1, 32, 32], strides = [1, 1, 1]} : vector<49x32x32xf32> to vector<1x32x32xf32>
    %38 = vector.shape_cast %37 : vector<1x32x32xf32> to vector<32x32xf32>
    %c96 = arith.constant 96 : index
    %c0_21 = arith.constant 0 : index
    %39 = vector.load %arg5[%c96, %c0_21] : memref<1568x128xf32, #tpu.memory_space<vmem>>, vector<32x128xf32>
    %cst_22 = arith.constant dense<0.000000e+00> : vector<32x128xf32>
    %40 = tpu.matmul %38, %39, %cst_22 {dimension_numbers = #tpu.dot_dimension_numbers<[1], [0], [0], [1], [0, 0, 1, 1], [], []>} : vector<32x32xf32>, vector<32x128xf32>, vector<32x128xf32> -> vector<32x128xf32>
    %41 = vector.extract_strided_slice %9 {offsets = [4, 0, 0], sizes = [1, 32, 32], strides = [1, 1, 1]} : vector<49x32x32xf32> to vector<1x32x32xf32>
    %42 = vector.shape_cast %41 : vector<1x32x32xf32> to vector<32x32xf32>
    %c128 = arith.constant 128 : index
    %c0_23 = arith.constant 0 : index
    %43 = vector.load %arg5[%c128, %c0_23] : memref<1568x128xf32, #tpu.memory_space<vmem>>, vector<32x128xf32>
    %cst_24 = arith.constant dense<0.000000e+00> : vector<32x128xf32>
    %44 = tpu.matmul %42, %43, %cst_24 {dimension_numbers = #tpu.dot_dimension_numbers<[1], [0], [0], [1], [0, 0, 1, 1], [], []>} : vector<32x32xf32>, vector<32x128xf32>, vector<32x128xf32> -> vector<32x128xf32>
    %45 = arith.addf %28, %44 : vector<32x128xf32>
    %46 = vector.extract_strided_slice %9 {offsets = [5, 0, 0], sizes = [1, 32, 32], strides = [1, 1, 1]} : vector<49x32x32xf32> to vector<1x32x32xf32>
    %47 = vector.shape_cast %46 : vector<1x32x32xf32> to vector<32x32xf32>
    %c160 = arith.constant 160 : index
    %c0_25 = arith.constant 0 : index
    %48 = vector.load %arg5[%c160, %c0_25] : memref<1568x128xf32, #tpu.memory_space<vmem>>, vector<32x128xf32>
    %cst_26 = arith.constant dense<0.000000e+00> : vector<32x128xf32>
    %49 = tpu.matmul %47, %48, %cst_26 {dimension_numbers = #tpu.dot_dimension_numbers<[1], [0], [0], [1], [0, 0, 1, 1], [], []>} : vector<32x32xf32>, vector<32x128xf32>, vector<32x128xf32> -> vector<32x128xf32>
    %50 = arith.addf %32, %49 : vector<32x128xf32>
    %51 = vector.extract_strided_slice %9 {offsets = [6, 0, 0], sizes = [1, 32, 32], strides = [1, 1, 1]} : vector<49x32x32xf32> to vector<1x32x32xf32>
    %52 = vector.shape_cast %51 : vector<1x32x32xf32> to vector<32x32xf32>
    %c192 = arith.constant 192 : index
    %c0_27 = arith.constant 0 : index
    %53 = vector.load %arg5[%c192, %c0_27] : memref<1568x128xf32, #tpu.memory_space<vmem>>, vector<32x128xf32>
    %cst_28 = arith.constant dense<0.000000e+00> : vector<32x128xf32>
    %54 = tpu.matmul %52, %53, %cst_28 {dimension_numbers = #tpu.dot_dimension_numbers<[1], [0], [0], [1], [0, 0, 1, 1], [], []>} : vector<32x32xf32>, vector<32x128xf32>, vector<32x128xf32> -> vector<32x128xf32>
    %55 = arith.addf %36, %54 : vector<32x128xf32>
    %56 = vector.extract_strided_slice %9 {offsets = [7, 0, 0], sizes = [1, 32, 32], strides = [1, 1, 1]} : vector<49x32x32xf32> to vector<1x32x32xf32>
    %57 = vector.shape_cast %56 : vector<1x32x32xf32> to vector<32x32xf32>
    %c224 = arith.constant 224 : index
    %c0_29 = arith.constant 0 : index
    %58 = vector.load %arg5[%c224, %c0_29] : memref<1568x128xf32, #tpu.memory_space<vmem>>, vector<32x128xf32>
    %cst_30 = arith.constant dense<0.000000e+00> : vector<32x128xf32>
    %59 = tpu.matmul %57, %58, %cst_30 {dimension_numbers = #tpu.dot_dimension_numbers<[1], [0], [0], [1], [0, 0, 1, 1], [], []>} : vector<32x32xf32>, vector<32x128xf32>, vector<32x128xf32> -> vector<32x128xf32>
    %60 = arith.addf %40, %59 : vector<32x128xf32>
    %61 = vector.extract_strided_slice %9 {offsets = [8, 0, 0], sizes = [1, 32, 32], strides = [1, 1, 1]} : vector<49x32x32xf32> to vector<1x32x32xf32>
    %62 = vector.shape_cast %61 : vector<1x32x32xf32> to vector<32x32xf32>
    %c256 = arith.constant 256 : index
    %c0_31 = arith.constant 0 : index
    %63 = vector.load %arg5[%c256, %c0_31] : memref<1568x128xf32, #tpu.memory_space<vmem>>, vector<32x128xf32>
    %cst_32 = arith.constant dense<0.000000e+00> : vector<32x128xf32>
    %64 = tpu.matmul %62, %63, %cst_32 {dimension_numbers = #tpu.dot_dimension_numbers<[1], [0], [0], [1], [0, 0, 1, 1], [], []>} : vector<32x32xf32>, vector<32x128xf32>, vector<32x128xf32> -> vector<32x128xf32>
    %65 = arith.addf %45, %64 : vector<32x128xf32>
    %66 = vector.extract_strided_slice %9 {offsets = [9, 0, 0], sizes = [1, 32, 32], strides = [1, 1, 1]} : vector<49x32x32xf32> to vector<1x32x32xf32>
    %67 = vector.shape_cast %66 : vector<1x32x32xf32> to vector<32x32xf32>
    %c288 = arith.constant 288 : index
    %c0_33 = arith.constant 0 : index
    %68 = vector.load %arg5[%c288, %c0_33] : memref<1568x128xf32, #tpu.memory_space<vmem>>, vector<32x128xf32>
    %cst_34 = arith.constant dense<0.000000e+00> : vector<32x128xf32>
    %69 = tpu.matmul %67, %68, %cst_34 {dimension_numbers = #tpu.dot_dimension_numbers<[1], [0], [0], [1], [0, 0, 1, 1], [], []>} : vector<32x32xf32>, vector<32x128xf32>, vector<32x128xf32> -> vector<32x128xf32>
    %70 = arith.addf %50, %69 : vector<32x128xf32>
    %71 = vector.extract_strided_slice %9 {offsets = [10, 0, 0], sizes = [1, 32, 32], strides = [1, 1, 1]} : vector<49x32x32xf32> to vector<1x32x32xf32>
    %72 = vector.shape_cast %71 : vector<1x32x32xf32> to vector<32x32xf32>
    %c320 = arith.constant 320 : index
    %c0_35 = arith.constant 0 : index
    %73 = vector.load %arg5[%c320, %c0_35] : memref<1568x128xf32, #tpu.memory_space<vmem>>, vector<32x128xf32>
    %cst_36 = arith.constant dense<0.000000e+00> : vector<32x128xf32>
    %74 = tpu.matmul %72, %73, %cst_36 {dimension_numbers = #tpu.dot_dimension_numbers<[1], [0], [0], [1], [0, 0, 1, 1], [], []>} : vector<32x32xf32>, vector<32x128xf32>, vector<32x128xf32> -> vector<32x128xf32>
    %75 = arith.addf %55, %74 : vector<32x128xf32>
    %76 = vector.extract_strided_slice %9 {offsets = [11, 0, 0], sizes = [1, 32, 32], strides = [1, 1, 1]} : vector<49x32x32xf32> to vector<1x32x32xf32>
    %77 = vector.shape_cast %76 : vector<1x32x32xf32> to vector<32x32xf32>
    %c352 = arith.constant 352 : index
    %c0_37 = arith.constant 0 : index
    %78 = vector.load %arg5[%c352, %c0_37] : memref<1568x128xf32, #tpu.memory_space<vmem>>, vector<32x128xf32>
    %cst_38 = arith.constant dense<0.000000e+00> : vector<32x128xf32>
    %79 = tpu.matmul %77, %78, %cst_38 {dimension_numbers = #tpu.dot_dimension_numbers<[1], [0], [0], [1], [0, 0, 1, 1], [], []>} : vector<32x32xf32>, vector<32x128xf32>, vector<32x128xf32> -> vector<32x128xf32>
    %80 = arith.addf %60, %79 : vector<32x128xf32>
    %81 = vector.extract_strided_slice %9 {offsets = [12, 0, 0], sizes = [1, 32, 32], strides = [1, 1, 1]} : vector<49x32x32xf32> to vector<1x32x32xf32>
    %82 = vector.shape_cast %81 : vector<1x32x32xf32> to vector<32x32xf32>
    %c384 = arith.constant 384 : index
    %c0_39 = arith.constant 0 : index
    %83 = vector.load %arg5[%c384, %c0_39] : memref<1568x128xf32, #tpu.memory_space<vmem>>, vector<32x128xf32>
    %cst_40 = arith.constant dense<0.000000e+00> : vector<32x128xf32>
    %84 = tpu.matmul %82, %83, %cst_40 {dimension_numbers = #tpu.dot_dimension_numbers<[1], [0], [0], [1], [0, 0, 1, 1], [], []>} : vector<32x32xf32>, vector<32x128xf32>, vector<32x128xf32> -> vector<32x128xf32>
    %85 = arith.addf %65, %84 : vector<32x128xf32>
    %86 = vector.extract_strided_slice %9 {offsets = [13, 0, 0], sizes = [1, 32, 32], strides = [1, 1, 1]} : vector<49x32x32xf32> to vector<1x32x32xf32>
    %87 = vector.shape_cast %86 : vector<1x32x32xf32> to vector<32x32xf32>
    %c416 = arith.constant 416 : index
    %c0_41 = arith.constant 0 : index
    %88 = vector.load %arg5[%c416, %c0_41] : memref<1568x128xf32, #tpu.memory_space<vmem>>, vector<32x128xf32>
    %cst_42 = arith.constant dense<0.000000e+00> : vector<32x128xf32>
    %89 = tpu.matmul %87, %88, %cst_42 {dimension_numbers = #tpu.dot_dimension_numbers<[1], [0], [0], [1], [0, 0, 1, 1], [], []>} : vector<32x32xf32>, vector<32x128xf32>, vector<32x128xf32> -> vector<32x128xf32>
    %90 = arith.addf %70, %89 : vector<32x128xf32>
    %91 = vector.extract_strided_slice %9 {offsets = [14, 0, 0], sizes = [1, 32, 32], strides = [1, 1, 1]} : vector<49x32x32xf32> to vector<1x32x32xf32>
    %92 = vector.shape_cast %91 : vector<1x32x32xf32> to vector<32x32xf32>
    %c448 = arith.constant 448 : index
    %c0_43 = arith.constant 0 : index
    %93 = vector.load %arg5[%c448, %c0_43] : memref<1568x128xf32, #tpu.memory_space<vmem>>, vector<32x128xf32>
    %cst_44 = arith.constant dense<0.000000e+00> : vector<32x128xf32>
    %94 = tpu.matmul %92, %93, %cst_44 {dimension_numbers = #tpu.dot_dimension_numbers<[1], [0], [0], [1], [0, 0, 1, 1], [], []>} : vector<32x32xf32>, vector<32x128xf32>, vector<32x128xf32> -> vector<32x128xf32>
    %95 = arith.addf %75, %94 : vector<32x128xf32>
    %96 = vector.extract_strided_slice %9 {offsets = [15, 0, 0], sizes = [1, 32, 32], strides = [1, 1, 1]} : vector<49x32x32xf32> to vector<1x32x32xf32>
    %97 = vector.shape_cast %96 : vector<1x32x32xf32> to vector<32x32xf32>
    %c480 = arith.constant 480 : index
    %c0_45 = arith.constant 0 : index
    %98 = vector.load %arg5[%c480, %c0_45] : memref<1568x128xf32, #tpu.memory_space<vmem>>, vector<32x128xf32>
    %cst_46 = arith.constant dense<0.000000e+00> : vector<32x128xf32>
    %99 = tpu.matmul %97, %98, %cst_46 {dimension_numbers = #tpu.dot_dimension_numbers<[1], [0], [0], [1], [0, 0, 1, 1], [], []>} : vector<32x32xf32>, vector<32x128xf32>, vector<32x128xf32> -> vector<32x128xf32>
    %100 = arith.addf %80, %99 : vector<32x128xf32>
    %101 = vector.extract_strided_slice %9 {offsets = [16, 0, 0], sizes = [1, 32, 32], strides = [1, 1, 1]} : vector<49x32x32xf32> to vector<1x32x32xf32>
    %102 = vector.shape_cast %101 : vector<1x32x32xf32> to vector<32x32xf32>
    %c512 = arith.constant 512 : index
    %c0_47 = arith.constant 0 : index
    %103 = vector.load %arg5[%c512, %c0_47] : memref<1568x128xf32, #tpu.memory_space<vmem>>, vector<32x128xf32>
    %cst_48 = arith.constant dense<0.000000e+00> : vector<32x128xf32>
    %104 = tpu.matmul %102, %103, %cst_48 {dimension_numbers = #tpu.dot_dimension_numbers<[1], [0], [0], [1], [0, 0, 1, 1], [], []>} : vector<32x32xf32>, vector<32x128xf32>, vector<32x128xf32> -> vector<32x128xf32>
    %105 = arith.addf %85, %104 : vector<32x128xf32>
    %106 = vector.extract_strided_slice %9 {offsets = [17, 0, 0], sizes = [1, 32, 32], strides = [1, 1, 1]} : vector<49x32x32xf32> to vector<1x32x32xf32>
    %107 = vector.shape_cast %106 : vector<1x32x32xf32> to vector<32x32xf32>
    %c544 = arith.constant 544 : index
    %c0_49 = arith.constant 0 : index
    %108 = vector.load %arg5[%c544, %c0_49] : memref<1568x128xf32, #tpu.memory_space<vmem>>, vector<32x128xf32>
    %cst_50 = arith.constant dense<0.000000e+00> : vector<32x128xf32>
    %109 = tpu.matmul %107, %108, %cst_50 {dimension_numbers = #tpu.dot_dimension_numbers<[1], [0], [0], [1], [0, 0, 1, 1], [], []>} : vector<32x32xf32>, vector<32x128xf32>, vector<32x128xf32> -> vector<32x128xf32>
    %110 = arith.addf %90, %109 : vector<32x128xf32>
    %111 = vector.extract_strided_slice %9 {offsets = [18, 0, 0], sizes = [1, 32, 32], strides = [1, 1, 1]} : vector<49x32x32xf32> to vector<1x32x32xf32>
    %112 = vector.shape_cast %111 : vector<1x32x32xf32> to vector<32x32xf32>
    %c576 = arith.constant 576 : index
    %c0_51 = arith.constant 0 : index
    %113 = vector.load %arg5[%c576, %c0_51] : memref<1568x128xf32, #tpu.memory_space<vmem>>, vector<32x128xf32>
    %cst_52 = arith.constant dense<0.000000e+00> : vector<32x128xf32>
    %114 = tpu.matmul %112, %113, %cst_52 {dimension_numbers = #tpu.dot_dimension_numbers<[1], [0], [0], [1], [0, 0, 1, 1], [], []>} : vector<32x32xf32>, vector<32x128xf32>, vector<32x128xf32> -> vector<32x128xf32>
    %115 = arith.addf %95, %114 : vector<32x128xf32>
    %116 = vector.extract_strided_slice %9 {offsets = [19, 0, 0], sizes = [1, 32, 32], strides = [1, 1, 1]} : vector<49x32x32xf32> to vector<1x32x32xf32>
    %117 = vector.shape_cast %116 : vector<1x32x32xf32> to vector<32x32xf32>
    %c608 = arith.constant 608 : index
    %c0_53 = arith.constant 0 : index
    %118 = vector.load %arg5[%c608, %c0_53] : memref<1568x128xf32, #tpu.memory_space<vmem>>, vector<32x128xf32>
    %cst_54 = arith.constant dense<0.000000e+00> : vector<32x128xf32>
    %119 = tpu.matmul %117, %118, %cst_54 {dimension_numbers = #tpu.dot_dimension_numbers<[1], [0], [0], [1], [0, 0, 1, 1], [], []>} : vector<32x32xf32>, vector<32x128xf32>, vector<32x128xf32> -> vector<32x128xf32>
    %120 = arith.addf %100, %119 : vector<32x128xf32>
    %121 = vector.extract_strided_slice %9 {offsets = [20, 0, 0], sizes = [1, 32, 32], strides = [1, 1, 1]} : vector<49x32x32xf32> to vector<1x32x32xf32>
    %122 = vector.shape_cast %121 : vector<1x32x32xf32> to vector<32x32xf32>
    %c640 = arith.constant 640 : index
    %c0_55 = arith.constant 0 : index
    %123 = vector.load %arg5[%c640, %c0_55] : memref<1568x128xf32, #tpu.memory_space<vmem>>, vector<32x128xf32>
    %cst_56 = arith.constant dense<0.000000e+00> : vector<32x128xf32>
    %124 = tpu.matmul %122, %123, %cst_56 {dimension_numbers = #tpu.dot_dimension_numbers<[1], [0], [0], [1], [0, 0, 1, 1], [], []>} : vector<32x32xf32>, vector<32x128xf32>, vector<32x128xf32> -> vector<32x128xf32>
    %125 = arith.addf %105, %124 : vector<32x128xf32>
    %126 = vector.extract_strided_slice %9 {offsets = [21, 0, 0], sizes = [1, 32, 32], strides = [1, 1, 1]} : vector<49x32x32xf32> to vector<1x32x32xf32>
    %127 = vector.shape_cast %126 : vector<1x32x32xf32> to vector<32x32xf32>
    %c672 = arith.constant 672 : index
    %c0_57 = arith.constant 0 : index
    %128 = vector.load %arg5[%c672, %c0_57] : memref<1568x128xf32, #tpu.memory_space<vmem>>, vector<32x128xf32>
    %cst_58 = arith.constant dense<0.000000e+00> : vector<32x128xf32>
    %129 = tpu.matmul %127, %128, %cst_58 {dimension_numbers = #tpu.dot_dimension_numbers<[1], [0], [0], [1], [0, 0, 1, 1], [], []>} : vector<32x32xf32>, vector<32x128xf32>, vector<32x128xf32> -> vector<32x128xf32>
    %130 = arith.addf %110, %129 : vector<32x128xf32>
    %131 = vector.extract_strided_slice %9 {offsets = [22, 0, 0], sizes = [1, 32, 32], strides = [1, 1, 1]} : vector<49x32x32xf32> to vector<1x32x32xf32>
    %132 = vector.shape_cast %131 : vector<1x32x32xf32> to vector<32x32xf32>
    %c704 = arith.constant 704 : index
    %c0_59 = arith.constant 0 : index
    %133 = vector.load %arg5[%c704, %c0_59] : memref<1568x128xf32, #tpu.memory_space<vmem>>, vector<32x128xf32>
    %cst_60 = arith.constant dense<0.000000e+00> : vector<32x128xf32>
    %134 = tpu.matmul %132, %133, %cst_60 {dimension_numbers = #tpu.dot_dimension_numbers<[1], [0], [0], [1], [0, 0, 1, 1], [], []>} : vector<32x32xf32>, vector<32x128xf32>, vector<32x128xf32> -> vector<32x128xf32>
    %135 = arith.addf %115, %134 : vector<32x128xf32>
    %136 = vector.extract_strided_slice %9 {offsets = [23, 0, 0], sizes = [1, 32, 32], strides = [1, 1, 1]} : vector<49x32x32xf32> to vector<1x32x32xf32>
    %137 = vector.shape_cast %136 : vector<1x32x32xf32> to vector<32x32xf32>
    %c736 = arith.constant 736 : index
    %c0_61 = arith.constant 0 : index
    %138 = vector.load %arg5[%c736, %c0_61] : memref<1568x128xf32, #tpu.memory_space<vmem>>, vector<32x128xf32>
    %cst_62 = arith.constant dense<0.000000e+00> : vector<32x128xf32>
    %139 = tpu.matmul %137, %138, %cst_62 {dimension_numbers = #tpu.dot_dimension_numbers<[1], [0], [0], [1], [0, 0, 1, 1], [], []>} : vector<32x32xf32>, vector<32x128xf32>, vector<32x128xf32> -> vector<32x128xf32>
    %140 = arith.addf %120, %139 : vector<32x128xf32>
    %141 = vector.extract_strided_slice %9 {offsets = [24, 0, 0], sizes = [1, 32, 32], strides = [1, 1, 1]} : vector<49x32x32xf32> to vector<1x32x32xf32>
    %142 = vector.shape_cast %141 : vector<1x32x32xf32> to vector<32x32xf32>
    %c768 = arith.constant 768 : index
    %c0_63 = arith.constant 0 : index
    %143 = vector.load %arg5[%c768, %c0_63] : memref<1568x128xf32, #tpu.memory_space<vmem>>, vector<32x128xf32>
    %cst_64 = arith.constant dense<0.000000e+00> : vector<32x128xf32>
    %144 = tpu.matmul %142, %143, %cst_64 {dimension_numbers = #tpu.dot_dimension_numbers<[1], [0], [0], [1], [0, 0, 1, 1], [], []>} : vector<32x32xf32>, vector<32x128xf32>, vector<32x128xf32> -> vector<32x128xf32>
    %145 = arith.addf %125, %144 : vector<32x128xf32>
    %146 = vector.extract_strided_slice %9 {offsets = [25, 0, 0], sizes = [1, 32, 32], strides = [1, 1, 1]} : vector<49x32x32xf32> to vector<1x32x32xf32>
    %147 = vector.shape_cast %146 : vector<1x32x32xf32> to vector<32x32xf32>
    %c800 = arith.constant 800 : index
    %c0_65 = arith.constant 0 : index
    %148 = vector.load %arg5[%c800, %c0_65] : memref<1568x128xf32, #tpu.memory_space<vmem>>, vector<32x128xf32>
    %cst_66 = arith.constant dense<0.000000e+00> : vector<32x128xf32>
    %149 = tpu.matmul %147, %148, %cst_66 {dimension_numbers = #tpu.dot_dimension_numbers<[1], [0], [0], [1], [0, 0, 1, 1], [], []>} : vector<32x32xf32>, vector<32x128xf32>, vector<32x128xf32> -> vector<32x128xf32>
    %150 = arith.addf %130, %149 : vector<32x128xf32>
    %151 = vector.extract_strided_slice %9 {offsets = [26, 0, 0], sizes = [1, 32, 32], strides = [1, 1, 1]} : vector<49x32x32xf32> to vector<1x32x32xf32>
    %152 = vector.shape_cast %151 : vector<1x32x32xf32> to vector<32x32xf32>
    %c832 = arith.constant 832 : index
    %c0_67 = arith.constant 0 : index
    %153 = vector.load %arg5[%c832, %c0_67] : memref<1568x128xf32, #tpu.memory_space<vmem>>, vector<32x128xf32>
    %cst_68 = arith.constant dense<0.000000e+00> : vector<32x128xf32>
    %154 = tpu.matmul %152, %153, %cst_68 {dimension_numbers = #tpu.dot_dimension_numbers<[1], [0], [0], [1], [0, 0, 1, 1], [], []>} : vector<32x32xf32>, vector<32x128xf32>, vector<32x128xf32> -> vector<32x128xf32>
    %155 = arith.addf %135, %154 : vector<32x128xf32>
    %156 = vector.extract_strided_slice %9 {offsets = [27, 0, 0], sizes = [1, 32, 32], strides = [1, 1, 1]} : vector<49x32x32xf32> to vector<1x32x32xf32>
    %157 = vector.shape_cast %156 : vector<1x32x32xf32> to vector<32x32xf32>
    %c864 = arith.constant 864 : index
    %c0_69 = arith.constant 0 : index
    %158 = vector.load %arg5[%c864, %c0_69] : memref<1568x128xf32, #tpu.memory_space<vmem>>, vector<32x128xf32>
    %cst_70 = arith.constant dense<0.000000e+00> : vector<32x128xf32>
    %159 = tpu.matmul %157, %158, %cst_70 {dimension_numbers = #tpu.dot_dimension_numbers<[1], [0], [0], [1], [0, 0, 1, 1], [], []>} : vector<32x32xf32>, vector<32x128xf32>, vector<32x128xf32> -> vector<32x128xf32>
    %160 = arith.addf %140, %159 : vector<32x128xf32>
    %161 = vector.extract_strided_slice %9 {offsets = [28, 0, 0], sizes = [1, 32, 32], strides = [1, 1, 1]} : vector<49x32x32xf32> to vector<1x32x32xf32>
    %162 = vector.shape_cast %161 : vector<1x32x32xf32> to vector<32x32xf32>
    %c896 = arith.constant 896 : index
    %c0_71 = arith.constant 0 : index
    %163 = vector.load %arg5[%c896, %c0_71] : memref<1568x128xf32, #tpu.memory_space<vmem>>, vector<32x128xf32>
    %cst_72 = arith.constant dense<0.000000e+00> : vector<32x128xf32>
    %164 = tpu.matmul %162, %163, %cst_72 {dimension_numbers = #tpu.dot_dimension_numbers<[1], [0], [0], [1], [0, 0, 1, 1], [], []>} : vector<32x32xf32>, vector<32x128xf32>, vector<32x128xf32> -> vector<32x128xf32>
    %165 = arith.addf %145, %164 : vector<32x128xf32>
    %166 = vector.extract_strided_slice %9 {offsets = [29, 0, 0], sizes = [1, 32, 32], strides = [1, 1, 1]} : vector<49x32x32xf32> to vector<1x32x32xf32>
    %167 = vector.shape_cast %166 : vector<1x32x32xf32> to vector<32x32xf32>
    %c928 = arith.constant 928 : index
    %c0_73 = arith.constant 0 : index
    %168 = vector.load %arg5[%c928, %c0_73] : memref<1568x128xf32, #tpu.memory_space<vmem>>, vector<32x128xf32>
    %cst_74 = arith.constant dense<0.000000e+00> : vector<32x128xf32>
    %169 = tpu.matmul %167, %168, %cst_74 {dimension_numbers = #tpu.dot_dimension_numbers<[1], [0], [0], [1], [0, 0, 1, 1], [], []>} : vector<32x32xf32>, vector<32x128xf32>, vector<32x128xf32> -> vector<32x128xf32>
    %170 = arith.addf %150, %169 : vector<32x128xf32>
    %171 = vector.extract_strided_slice %9 {offsets = [30, 0, 0], sizes = [1, 32, 32], strides = [1, 1, 1]} : vector<49x32x32xf32> to vector<1x32x32xf32>
    %172 = vector.shape_cast %171 : vector<1x32x32xf32> to vector<32x32xf32>
    %c960 = arith.constant 960 : index
    %c0_75 = arith.constant 0 : index
    %173 = vector.load %arg5[%c960, %c0_75] : memref<1568x128xf32, #tpu.memory_space<vmem>>, vector<32x128xf32>
    %cst_76 = arith.constant dense<0.000000e+00> : vector<32x128xf32>
    %174 = tpu.matmul %172, %173, %cst_76 {dimension_numbers = #tpu.dot_dimension_numbers<[1], [0], [0], [1], [0, 0, 1, 1], [], []>} : vector<32x32xf32>, vector<32x128xf32>, vector<32x128xf32> -> vector<32x128xf32>
    %175 = arith.addf %155, %174 : vector<32x128xf32>
    %176 = vector.extract_strided_slice %9 {offsets = [31, 0, 0], sizes = [1, 32, 32], strides = [1, 1, 1]} : vector<49x32x32xf32> to vector<1x32x32xf32>
    %177 = vector.shape_cast %176 : vector<1x32x32xf32> to vector<32x32xf32>
    %c992 = arith.constant 992 : index
    %c0_77 = arith.constant 0 : index
    %178 = vector.load %arg5[%c992, %c0_77] : memref<1568x128xf32, #tpu.memory_space<vmem>>, vector<32x128xf32>
    %cst_78 = arith.constant dense<0.000000e+00> : vector<32x128xf32>
    %179 = tpu.matmul %177, %178, %cst_78 {dimension_numbers = #tpu.dot_dimension_numbers<[1], [0], [0], [1], [0, 0, 1, 1], [], []>} : vector<32x32xf32>, vector<32x128xf32>, vector<32x128xf32> -> vector<32x128xf32>
    %180 = arith.addf %160, %179 : vector<32x128xf32>
    %181 = vector.extract_strided_slice %9 {offsets = [32, 0, 0], sizes = [1, 32, 32], strides = [1, 1, 1]} : vector<49x32x32xf32> to vector<1x32x32xf32>
    %182 = vector.shape_cast %181 : vector<1x32x32xf32> to vector<32x32xf32>
    %c1024 = arith.constant 1024 : index
    %c0_79 = arith.constant 0 : index
    %183 = vector.load %arg5[%c1024, %c0_79] : memref<1568x128xf32, #tpu.memory_space<vmem>>, vector<32x128xf32>
    %cst_80 = arith.constant dense<0.000000e+00> : vector<32x128xf32>
    %184 = tpu.matmul %182, %183, %cst_80 {dimension_numbers = #tpu.dot_dimension_numbers<[1], [0], [0], [1], [0, 0, 1, 1], [], []>} : vector<32x32xf32>, vector<32x128xf32>, vector<32x128xf32> -> vector<32x128xf32>
    %185 = arith.addf %165, %184 : vector<32x128xf32>
    %186 = vector.extract_strided_slice %9 {offsets = [33, 0, 0], sizes = [1, 32, 32], strides = [1, 1, 1]} : vector<49x32x32xf32> to vector<1x32x32xf32>
    %187 = vector.shape_cast %186 : vector<1x32x32xf32> to vector<32x32xf32>
    %c1056 = arith.constant 1056 : index
    %c0_81 = arith.constant 0 : index
    %188 = vector.load %arg5[%c1056, %c0_81] : memref<1568x128xf32, #tpu.memory_space<vmem>>, vector<32x128xf32>
    %cst_82 = arith.constant dense<0.000000e+00> : vector<32x128xf32>
    %189 = tpu.matmul %187, %188, %cst_82 {dimension_numbers = #tpu.dot_dimension_numbers<[1], [0], [0], [1], [0, 0, 1, 1], [], []>} : vector<32x32xf32>, vector<32x128xf32>, vector<32x128xf32> -> vector<32x128xf32>
    %190 = arith.addf %170, %189 : vector<32x128xf32>
    %191 = vector.extract_strided_slice %9 {offsets = [34, 0, 0], sizes = [1, 32, 32], strides = [1, 1, 1]} : vector<49x32x32xf32> to vector<1x32x32xf32>
    %192 = vector.shape_cast %191 : vector<1x32x32xf32> to vector<32x32xf32>
    %c1088 = arith.constant 1088 : index
    %c0_83 = arith.constant 0 : index
    %193 = vector.load %arg5[%c1088, %c0_83] : memref<1568x128xf32, #tpu.memory_space<vmem>>, vector<32x128xf32>
    %cst_84 = arith.constant dense<0.000000e+00> : vector<32x128xf32>
    %194 = tpu.matmul %192, %193, %cst_84 {dimension_numbers = #tpu.dot_dimension_numbers<[1], [0], [0], [1], [0, 0, 1, 1], [], []>} : vector<32x32xf32>, vector<32x128xf32>, vector<32x128xf32> -> vector<32x128xf32>
    %195 = arith.addf %175, %194 : vector<32x128xf32>
    %196 = vector.extract_strided_slice %9 {offsets = [35, 0, 0], sizes = [1, 32, 32], strides = [1, 1, 1]} : vector<49x32x32xf32> to vector<1x32x32xf32>
    %197 = vector.shape_cast %196 : vector<1x32x32xf32> to vector<32x32xf32>
    %c1120 = arith.constant 1120 : index
    %c0_85 = arith.constant 0 : index
    %198 = vector.load %arg5[%c1120, %c0_85] : memref<1568x128xf32, #tpu.memory_space<vmem>>, vector<32x128xf32>
    %cst_86 = arith.constant dense<0.000000e+00> : vector<32x128xf32>
    %199 = tpu.matmul %197, %198, %cst_86 {dimension_numbers = #tpu.dot_dimension_numbers<[1], [0], [0], [1], [0, 0, 1, 1], [], []>} : vector<32x32xf32>, vector<32x128xf32>, vector<32x128xf32> -> vector<32x128xf32>
    %200 = arith.addf %180, %199 : vector<32x128xf32>
    %201 = vector.extract_strided_slice %9 {offsets = [36, 0, 0], sizes = [1, 32, 32], strides = [1, 1, 1]} : vector<49x32x32xf32> to vector<1x32x32xf32>
    %202 = vector.shape_cast %201 : vector<1x32x32xf32> to vector<32x32xf32>
    %c1152 = arith.constant 1152 : index
    %c0_87 = arith.constant 0 : index
    %203 = vector.load %arg5[%c1152, %c0_87] : memref<1568x128xf32, #tpu.memory_space<vmem>>, vector<32x128xf32>
    %cst_88 = arith.constant dense<0.000000e+00> : vector<32x128xf32>
    %204 = tpu.matmul %202, %203, %cst_88 {dimension_numbers = #tpu.dot_dimension_numbers<[1], [0], [0], [1], [0, 0, 1, 1], [], []>} : vector<32x32xf32>, vector<32x128xf32>, vector<32x128xf32> -> vector<32x128xf32>
    %205 = arith.addf %185, %204 : vector<32x128xf32>
    %206 = vector.extract_strided_slice %9 {offsets = [37, 0, 0], sizes = [1, 32, 32], strides = [1, 1, 1]} : vector<49x32x32xf32> to vector<1x32x32xf32>
    %207 = vector.shape_cast %206 : vector<1x32x32xf32> to vector<32x32xf32>
    %c1184 = arith.constant 1184 : index
    %c0_89 = arith.constant 0 : index
    %208 = vector.load %arg5[%c1184, %c0_89] : memref<1568x128xf32, #tpu.memory_space<vmem>>, vector<32x128xf32>
    %cst_90 = arith.constant dense<0.000000e+00> : vector<32x128xf32>
    %209 = tpu.matmul %207, %208, %cst_90 {dimension_numbers = #tpu.dot_dimension_numbers<[1], [0], [0], [1], [0, 0, 1, 1], [], []>} : vector<32x32xf32>, vector<32x128xf32>, vector<32x128xf32> -> vector<32x128xf32>
    %210 = arith.addf %190, %209 : vector<32x128xf32>
    %211 = vector.extract_strided_slice %9 {offsets = [38, 0, 0], sizes = [1, 32, 32], strides = [1, 1, 1]} : vector<49x32x32xf32> to vector<1x32x32xf32>
    %212 = vector.shape_cast %211 : vector<1x32x32xf32> to vector<32x32xf32>
    %c1216 = arith.constant 1216 : index
    %c0_91 = arith.constant 0 : index
    %213 = vector.load %arg5[%c1216, %c0_91] : memref<1568x128xf32, #tpu.memory_space<vmem>>, vector<32x128xf32>
    %cst_92 = arith.constant dense<0.000000e+00> : vector<32x128xf32>
    %214 = tpu.matmul %212, %213, %cst_92 {dimension_numbers = #tpu.dot_dimension_numbers<[1], [0], [0], [1], [0, 0, 1, 1], [], []>} : vector<32x32xf32>, vector<32x128xf32>, vector<32x128xf32> -> vector<32x128xf32>
    %215 = arith.addf %195, %214 : vector<32x128xf32>
    %216 = vector.extract_strided_slice %9 {offsets = [39, 0, 0], sizes = [1, 32, 32], strides = [1, 1, 1]} : vector<49x32x32xf32> to vector<1x32x32xf32>
    %217 = vector.shape_cast %216 : vector<1x32x32xf32> to vector<32x32xf32>
    %c1248 = arith.constant 1248 : index
    %c0_93 = arith.constant 0 : index
    %218 = vector.load %arg5[%c1248, %c0_93] : memref<1568x128xf32, #tpu.memory_space<vmem>>, vector<32x128xf32>
    %cst_94 = arith.constant dense<0.000000e+00> : vector<32x128xf32>
    %219 = tpu.matmul %217, %218, %cst_94 {dimension_numbers = #tpu.dot_dimension_numbers<[1], [0], [0], [1], [0, 0, 1, 1], [], []>} : vector<32x32xf32>, vector<32x128xf32>, vector<32x128xf32> -> vector<32x128xf32>
    %220 = arith.addf %200, %219 : vector<32x128xf32>
    %221 = vector.extract_strided_slice %9 {offsets = [40, 0, 0], sizes = [1, 32, 32], strides = [1, 1, 1]} : vector<49x32x32xf32> to vector<1x32x32xf32>
    %222 = vector.shape_cast %221 : vector<1x32x32xf32> to vector<32x32xf32>
    %c1280 = arith.constant 1280 : index
    %c0_95 = arith.constant 0 : index
    %223 = vector.load %arg5[%c1280, %c0_95] : memref<1568x128xf32, #tpu.memory_space<vmem>>, vector<32x128xf32>
    %cst_96 = arith.constant dense<0.000000e+00> : vector<32x128xf32>
    %224 = tpu.matmul %222, %223, %cst_96 {dimension_numbers = #tpu.dot_dimension_numbers<[1], [0], [0], [1], [0, 0, 1, 1], [], []>} : vector<32x32xf32>, vector<32x128xf32>, vector<32x128xf32> -> vector<32x128xf32>
    %225 = arith.addf %205, %224 : vector<32x128xf32>
    %226 = vector.extract_strided_slice %9 {offsets = [41, 0, 0], sizes = [1, 32, 32], strides = [1, 1, 1]} : vector<49x32x32xf32> to vector<1x32x32xf32>
    %227 = vector.shape_cast %226 : vector<1x32x32xf32> to vector<32x32xf32>
    %c1312 = arith.constant 1312 : index
    %c0_97 = arith.constant 0 : index
    %228 = vector.load %arg5[%c1312, %c0_97] : memref<1568x128xf32, #tpu.memory_space<vmem>>, vector<32x128xf32>
    %cst_98 = arith.constant dense<0.000000e+00> : vector<32x128xf32>
    %229 = tpu.matmul %227, %228, %cst_98 {dimension_numbers = #tpu.dot_dimension_numbers<[1], [0], [0], [1], [0, 0, 1, 1], [], []>} : vector<32x32xf32>, vector<32x128xf32>, vector<32x128xf32> -> vector<32x128xf32>
    %230 = arith.addf %210, %229 : vector<32x128xf32>
    %231 = vector.extract_strided_slice %9 {offsets = [42, 0, 0], sizes = [1, 32, 32], strides = [1, 1, 1]} : vector<49x32x32xf32> to vector<1x32x32xf32>
    %232 = vector.shape_cast %231 : vector<1x32x32xf32> to vector<32x32xf32>
    %c1344 = arith.constant 1344 : index
    %c0_99 = arith.constant 0 : index
    %233 = vector.load %arg5[%c1344, %c0_99] : memref<1568x128xf32, #tpu.memory_space<vmem>>, vector<32x128xf32>
    %cst_100 = arith.constant dense<0.000000e+00> : vector<32x128xf32>
    %234 = tpu.matmul %232, %233, %cst_100 {dimension_numbers = #tpu.dot_dimension_numbers<[1], [0], [0], [1], [0, 0, 1, 1], [], []>} : vector<32x32xf32>, vector<32x128xf32>, vector<32x128xf32> -> vector<32x128xf32>
    %235 = arith.addf %215, %234 : vector<32x128xf32>
    %236 = vector.extract_strided_slice %9 {offsets = [43, 0, 0], sizes = [1, 32, 32], strides = [1, 1, 1]} : vector<49x32x32xf32> to vector<1x32x32xf32>
    %237 = vector.shape_cast %236 : vector<1x32x32xf32> to vector<32x32xf32>
    %c1376 = arith.constant 1376 : index
    %c0_101 = arith.constant 0 : index
    %238 = vector.load %arg5[%c1376, %c0_101] : memref<1568x128xf32, #tpu.memory_space<vmem>>, vector<32x128xf32>
    %cst_102 = arith.constant dense<0.000000e+00> : vector<32x128xf32>
    %239 = tpu.matmul %237, %238, %cst_102 {dimension_numbers = #tpu.dot_dimension_numbers<[1], [0], [0], [1], [0, 0, 1, 1], [], []>} : vector<32x32xf32>, vector<32x128xf32>, vector<32x128xf32> -> vector<32x128xf32>
    %240 = arith.addf %220, %239 : vector<32x128xf32>
    %241 = vector.extract_strided_slice %9 {offsets = [44, 0, 0], sizes = [1, 32, 32], strides = [1, 1, 1]} : vector<49x32x32xf32> to vector<1x32x32xf32>
    %242 = vector.shape_cast %241 : vector<1x32x32xf32> to vector<32x32xf32>
    %c1408 = arith.constant 1408 : index
    %c0_103 = arith.constant 0 : index
    %243 = vector.load %arg5[%c1408, %c0_103] : memref<1568x128xf32, #tpu.memory_space<vmem>>, vector<32x128xf32>
    %cst_104 = arith.constant dense<0.000000e+00> : vector<32x128xf32>
    %244 = tpu.matmul %242, %243, %cst_104 {dimension_numbers = #tpu.dot_dimension_numbers<[1], [0], [0], [1], [0, 0, 1, 1], [], []>} : vector<32x32xf32>, vector<32x128xf32>, vector<32x128xf32> -> vector<32x128xf32>
    %245 = arith.addf %225, %244 : vector<32x128xf32>
    %246 = vector.extract_strided_slice %9 {offsets = [45, 0, 0], sizes = [1, 32, 32], strides = [1, 1, 1]} : vector<49x32x32xf32> to vector<1x32x32xf32>
    %247 = vector.shape_cast %246 : vector<1x32x32xf32> to vector<32x32xf32>
    %c1440 = arith.constant 1440 : index
    %c0_105 = arith.constant 0 : index
    %248 = vector.load %arg5[%c1440, %c0_105] : memref<1568x128xf32, #tpu.memory_space<vmem>>, vector<32x128xf32>
    %cst_106 = arith.constant dense<0.000000e+00> : vector<32x128xf32>
    %249 = tpu.matmul %247, %248, %cst_106 {dimension_numbers = #tpu.dot_dimension_numbers<[1], [0], [0], [1], [0, 0, 1, 1], [], []>} : vector<32x32xf32>, vector<32x128xf32>, vector<32x128xf32> -> vector<32x128xf32>
    %250 = arith.addf %230, %249 : vector<32x128xf32>
    %251 = vector.extract_strided_slice %9 {offsets = [46, 0, 0], sizes = [1, 32, 32], strides = [1, 1, 1]} : vector<49x32x32xf32> to vector<1x32x32xf32>
    %252 = vector.shape_cast %251 : vector<1x32x32xf32> to vector<32x32xf32>
    %c1472 = arith.constant 1472 : index
    %c0_107 = arith.constant 0 : index
    %253 = vector.load %arg5[%c1472, %c0_107] : memref<1568x128xf32, #tpu.memory_space<vmem>>, vector<32x128xf32>
    %cst_108 = arith.constant dense<0.000000e+00> : vector<32x128xf32>
    %254 = tpu.matmul %252, %253, %cst_108 {dimension_numbers = #tpu.dot_dimension_numbers<[1], [0], [0], [1], [0, 0, 1, 1], [], []>} : vector<32x32xf32>, vector<32x128xf32>, vector<32x128xf32> -> vector<32x128xf32>
    %255 = arith.addf %235, %254 : vector<32x128xf32>
    %256 = vector.extract_strided_slice %9 {offsets = [47, 0, 0], sizes = [1, 32, 32], strides = [1, 1, 1]} : vector<49x32x32xf32> to vector<1x32x32xf32>
    %257 = vector.shape_cast %256 : vector<1x32x32xf32> to vector<32x32xf32>
    %c1504 = arith.constant 1504 : index
    %c0_109 = arith.constant 0 : index
    %258 = vector.load %arg5[%c1504, %c0_109] : memref<1568x128xf32, #tpu.memory_space<vmem>>, vector<32x128xf32>
    %cst_110 = arith.constant dense<0.000000e+00> : vector<32x128xf32>
    %259 = tpu.matmul %257, %258, %cst_110 {dimension_numbers = #tpu.dot_dimension_numbers<[1], [0], [0], [1], [0, 0, 1, 1], [], []>} : vector<32x32xf32>, vector<32x128xf32>, vector<32x128xf32> -> vector<32x128xf32>
    %260 = arith.addf %240, %259 : vector<32x128xf32>
    %261 = vector.extract_strided_slice %9 {offsets = [48, 0, 0], sizes = [1, 32, 32], strides = [1, 1, 1]} : vector<49x32x32xf32> to vector<1x32x32xf32>
    %262 = vector.shape_cast %261 : vector<1x32x32xf32> to vector<32x32xf32>
    %c1536 = arith.constant 1536 : index
    %c0_111 = arith.constant 0 : index
    %263 = vector.load %arg5[%c1536, %c0_111] : memref<1568x128xf32, #tpu.memory_space<vmem>>, vector<32x128xf32>
    %cst_112 = arith.constant dense<0.000000e+00> : vector<32x128xf32>
    %264 = tpu.matmul %262, %263, %cst_112 {dimension_numbers = #tpu.dot_dimension_numbers<[1], [0], [0], [1], [0, 0, 1, 1], [], []>} : vector<32x32xf32>, vector<32x128xf32>, vector<32x128xf32> -> vector<32x128xf32>
    %265 = arith.addf %245, %264 : vector<32x128xf32>
    %266 = arith.addf %24, %265 : vector<32x128xf32>
    %267 = arith.addf %266, %250 : vector<32x128xf32>
    %268 = arith.addf %267, %255 : vector<32x128xf32>
    %269 = arith.addf %268, %260 : vector<32x128xf32>
    %cst_113 = arith.constant 0.000000e+00 : f32
    %270 = vector.broadcast %cst_113 : f32 to vector<32x128xf32>
    %271 = arith.maximumf %269, %270 : vector<32x128xf32>
    %c0_114 = arith.constant 0 : index
    %c0_115 = arith.constant 0 : index
    %272 = vector.load %arg8[%c0_114, %c0_115] : memref<128x128xf32, #tpu.memory_space<vmem>>, vector<128x128xf32>
    %cst_116 = arith.constant dense<0.000000e+00> : vector<32x128xf32>
    %273 = tpu.matmul %271, %272, %cst_116 {dimension_numbers = #tpu.dot_dimension_numbers<[1], [0], [0], [1], [0, 0, 1, 1], [], []>} : vector<32x128xf32>, vector<128x128xf32>, vector<32x128xf32> -> vector<32x128xf32>
    %c0_117 = arith.constant 0 : index
    %c0_118 = arith.constant 0 : index
    %274 = vector.load %arg9[%c0_117, %c0_118] : memref<1x128xf32, #tpu.memory_space<vmem>>, vector<1x128xf32>
    %275 = vector.broadcast %274 : vector<1x128xf32> to vector<32x128xf32>
    %276 = arith.addf %273, %275 : vector<32x128xf32>
    %c0_119 = arith.constant 0 : index
    %c0_120 = arith.constant 0 : index
    %277 = vector.load %arg10[%c0_119, %c0_120] : memref<32x128xf32, #tpu.memory_space<vmem>>, vector<32x128xf32>
    tpu.vector_store %arg10[%c0_119, %c0_120], %276 {strides = array<i32>} : memref<32x128xf32, #tpu.memory_space<vmem>>, vector<32x128xf32>,
    return
  }
  func.func @transform_0(%arg0: i32) -> (i32, i32, i32) {
    %c0_i32 = arith.constant 0 : i32
    %c0_i32_0 = arith.constant 0 : i32
    %c0_i32_1 = arith.constant 0 : i32
    return %c0_i32, %arg0, %c0_i32_0 : i32, i32, i32
  }
  func.func @transform_1(%arg0: i32) -> (i32, i32) {
    %c0_i32 = arith.constant 0 : i32
    %c0_i32_0 = arith.constant 0 : i32
    return %arg0, %c0_i32 : i32, i32
  }
  func.func @transform_2(%arg0: i32) -> (i32, i32) {
    %c0_i32 = arith.constant 0 : i32
    %c0_i32_0 = arith.constant 0 : i32
    %c0_i32_1 = arith.constant 0 : i32
    return %c0_i32, %c0_i32_0 : i32, i32
  }
  func.func @transform_3(%arg0: i32) -> (i32, i32) {
    %c0_i32 = arith.constant 0 : i32
    %c0_i32_0 = arith.constant 0 : i32
    %c0_i32_1 = arith.constant 0 : i32
    return %c0_i32, %c0_i32_0 : i32, i32
  }
  func.func @transform_4(%arg0: i32) -> (i32, i32) {
    %c0_i32 = arith.constant 0 : i32
    %c0_i32_0 = arith.constant 0 : i32
    %c0_i32_1 = arith.constant 0 : i32
    return %c0_i32, %c0_i32_0 : i32, i32
  }
  func.func @transform_5(%arg0: i32) -> (i32, i32) {
    %c0_i32 = arith.constant 0 : i32
    %c0_i32_0 = arith.constant 0 : i32
    %c0_i32_1 = arith.constant 0 : i32
    return %c0_i32, %c0_i32_0 : i32, i32
  }
  func.func @transform_6(%arg0: i32) -> (i32, i32) {
    %c0_i32 = arith.constant 0 : i32
    %c0_i32_0 = arith.constant 0 : i32
    %c0_i32_1 = arith.constant 0 : i32
    return %c0_i32, %c0_i32_0 : i32, i32
  }
  func.func @transform_7(%arg0: i32) -> (i32, i32) {
    %c0_i32 = arith.constant 0 : i32
    %c0_i32_0 = arith.constant 0 : i32
    %c0_i32_1 = arith.constant 0 : i32
    return %c0_i32, %c0_i32_0 : i32, i32
  }
  func.func @transform_8(%arg0: i32) -> (i32, i32) {
    %c0_i32 = arith.constant 0 : i32
    %c0_i32_0 = arith.constant 0 : i32
    %c0_i32_1 = arith.constant 0 : i32
    return %c0_i32, %c0_i32_0 : i32, i32
  }
  func.func @transform_9(%arg0: i32) -> (i32, i32) {
    %c0_i32 = arith.constant 0 : i32
    %c0_i32_0 = arith.constant 0 : i32
    return %arg0, %c0_i32 : i32, i32
  }
}

</mosaic_0001>

<bundles_post_ra>
// kernel: tpu_custom_call.1
= control target key start
LH: loop header
LB: loop body
LE: loop exit
PB: predicated region body
PF: predicated region fallthrough
CT: control target
= control target key end

     0   :  { %14 = vsyncpa [#allocation4], 0  ;;  %s8773_s0 = inlined_call_operand.vmem [shape: f32[49,64,18], index: 0, kind: input, shape index: {}]   ;;  %s8774_s1 = inlined_call_operand.vmem [shape: f32[64,2], index: 1, kind: input, shape index: {}]   ;;  %s8775_s2 = inlined_call_operand.vmem [shape: f32[18,32], index: 2, kind: input, shape index: {}]   ;;  %s8776_s3 = inlined_call_operand.vmem [shape: f32[1,32], index: 3, kind: input, shape index: {}]   ;;  %s8777_s4 = inlined_call_operand.vmem [shape: f32[1568,128], index: 4, kind: input, shape index: {}]   ;;  %s8778_s5 = inlined_call_operand.vmem [shape: f32[2,128], index: 5, kind: input, shape index: {}]   ;;  %s8779_s6 = inlined_call_operand.vmem [shape: f32[1,128], index: 6, kind: input, shape index: {}]   ;;  %s8780_s7 = inlined_call_operand.vmem [shape: f32[128,128], index: 7, kind: input, shape index: {}]   ;;  %s8781_s8 = inlined_call_operand.vmem [shape: f32[1,128], index: 8, kind: input, shape index: {}]   ;;  %s8782_s9 = inlined_call_operand.hbm [shape: f32[64,128], index: 9, kind: output, shape index: {}]  }
   0x1   :  { %16 = vsyncpa [#allocation4 + $0x1], 0  ;;  %s5967_s30 = smov 0   ;;  %s5969_s10 = smov 0  }
   0x2   :  { %s5971_s11 = smov 0   ;;  %s5973_s12 = smov 0  }
   0x3 LB: > { %s5988_s13 = sadd.s32 4294967295, %s5911_s12   ;;  %s5371_s14 = sadd.s32 4294967294, %s5911_s12   ;;  %s5911_s12 = sphi %s5973_s12, %s8988_s12   ;;  %s5907_s11 = sphi %s5971_s11, %s8987_s11   ;;  %s5903_s10 = sphi %s5969_s10, %s8986_s10   ;;  %s5899_s30 = sphi %s5967_s30, %s8985_s30  }
   0x4   : > { %s5992_s15 = sadd.s32 1, %s5911_s12   ;;  %s29_s16 = sadd.s32 1, %s5907_s11 }
   0x5   : > { %s26_s17 = ssub.s32 %s5911_s12, %s5992_s15  ;;  %p36_p0 = scmp.ne.s32.totalorder %s5907_s11, %s5903_s10 }
   0x6   : > { %p27_p1 = scmp.eq.s32.totalorder %s26_s17, 0  ;;  %p37_p2 = scmp.eq.s32.totalorder %s5911_s12, 0 }
   0x7   : > { %p239_p3 = scmp.eq.s32.totalorder %s5988_s13, 1  ;;  %p244_p4 = scmp.ne.s32.totalorder %s5903_s10, %s5899_s30 }
   0x8   : > { %s6004_s18 = scalar_select %p27_p1, %s5907_s11, %s29_s16  }
   0x9   : > { %p38_p5 = por %p37_p2, %p36_p0  ;;  %p6006_p6 = por %p239_p3, %p36_p0 }
   0xa   : > { %p245_p7 = scmp.eq.s32.totalorder %s5371_s14, 1  ;;  %p5373_p9 = scmp.ge.s32.totalorder %s5911_s12, 2 }
   0xc   : > { %p6010_p8 = por %p245_p7, %p244_p4  ;;  %282 = sbr.rel (%p5373_p9) target bundleno = 217 (0xd9), region = 44 }
  0x11   : > { %285 = sbr.rel (!%p38_p5) target bundleno = 217 (0xd9), region = 48  ;;  %s287_s21 = sand.u32 (%p38_p5), 1, %s5907_s11  }
  0x12   : > { %s5778_s22 = sshll.u32 (%p38_p5), %s5911_s12, 5  ;;  %s5789_s23 = smul.u32 (%p38_p5), 1568, %s287_s21 }
  0x13   : > { %s6022_s26 = scalar_lea.vmem (%p38_p5), %s8773_s0, %s5778_s22 }
  0x14   : > { %v711_v0 = vld [vmem:[%s6022_s26] sm:$0xff] (%p38_p5)  ;;  %v713_v1 = vld [vmem:[%s6022_s26 + $0x8] sm:$0xff] (%p38_p5)  ;;  %v715_v2 = vld [vmem:[%s6022_s26 + $0x10] sm:$0xff] (%p38_p5)  ;;  %s6027_s27 = scalar_lea.vmem (%p38_p5), [#allocation2], %s5789_s23 }
  0x15   : > { %712 = vst [vmem:[%s6027_s27] sm:$0xff] (%p38_p5), %v711_v0  ;;  %v717_v3 = vld [vmem:[%s6022_s26 + $0x18] sm:$0xff] (%p38_p5)  ;;  %v719_v4 = vld [vmem:[%s6022_s26 + $0x40] sm:$0xff] (%p38_p5)  ;;  %v721_v5 = vld [vmem:[%s6022_s26 + $0x48] sm:$0xff] (%p38_p5) }
  0x16   : > { %714 = vst [vmem:[%s6027_s27 + $0x8] sm:$0xff] %v713_v1  ;;  %v723_v6 = vld [vmem:[%s6022_s26 + $0x50] sm:$0xff]  ;;  %v725_v7 = vld [vmem:[%s6022_s26 + $0x58] sm:$0xff]  ;;  %v727_v8 = vld [vmem:[%s6022_s26 + $0x80] sm:$0xff] }
  0x17   : > { %716 = vst [vmem:[%s6027_s27 + $0x10] sm:$0xff] %v715_v2  ;;  %v729_v9 = vld [vmem:[%s6022_s26 + $0x88] sm:$0xff]  ;;  %v731_v10 = vld [vmem:[%s6022_s26 + $0x90] sm:$0xff]  ;;  %v733_v11 = vld [vmem:[%s6022_s26 + $0x98] sm:$0xff] }
  0x18   : > { %718 = vst [vmem:[%s6027_s27 + $0x18] sm:$0xff] %v717_v3  ;;  %v735_v12 = vld [vmem:[%s6022_s26 + $0xc0] sm:$0xff]  ;;  %v737_v13 = vld [vmem:[%s6022_s26 + $0xc8] sm:$0xff]  ;;  %v739_v14 = vld [vmem:[%s6022_s26 + $0xd0] sm:$0xff] }
  0x19   : > { %720 = vst [vmem:[%s6027_s27 + $0x20] sm:$0xff] %v719_v4  ;;  %v741_v15 = vld [vmem:[%s6022_s26 + $0xd8] sm:$0xff]  ;;  %v743_v16 = vld [vmem:[%s6022_s26 + $0x100] sm:$0xff]  ;;  %v745_v17 = vld [vmem:[%s6022_s26 + $0x108] sm:$0xff] }
  0x1a   : > { %722 = vst [vmem:[%s6027_s27 + $0x28] sm:$0xff] %v721_v5  ;;  %v747_v18 = vld [vmem:[%s6022_s26 + $0x110] sm:$0xff]  ;;  %v749_v19 = vld [vmem:[%s6022_s26 + $0x118] sm:$0xff]  ;;  %v751_v20 = vld [vmem:[%s6022_s26 + $0x140] sm:$0xff] }
  0x1b   : > { %724 = vst [vmem:[%s6027_s27 + $0x30] sm:$0xff] %v723_v6  ;;  %v753_v21 = vld [vmem:[%s6022_s26 + $0x148] sm:$0xff]  ;;  %v755_v22 = vld [vmem:[%s6022_s26 + $0x150] sm:$0xff]  ;;  %v757_v23 = vld [vmem:[%s6022_s26 + $0x158] sm:$0xff] }
  0x1c   : > { %726 = vst [vmem:[%s6027_s27 + $0x38] sm:$0xff] %v725_v7  ;;  %v759_v24 = vld [vmem:[%s6022_s26 + $0x180] sm:$0xff]  ;;  %v761_v25 = vld [vmem:[%s6022_s26 + $0x188] sm:$0xff]  ;;  %v763_v26 = vld [vmem:[%s6022_s26 + $0x190] sm:$0xff] }
  0x1d   : > { %728 = vst [vmem:[%s6027_s27 + $0x40] sm:$0xff] %v727_v8  ;;  %v765_v27 = vld [vmem:[%s6022_s26 + $0x198] sm:$0xff]  ;;  %v767_v28 = vld [vmem:[%s6022_s26 + $0x1c0] sm:$0xff]  ;;  %v769_v29 = vld [vmem:[%s6022_s26 + $0x1c8] sm:$0xff] }
  0x1e   : > { %730 = vst [vmem:[%s6027_s27 + $0x48] sm:$0xff] %v729_v9  ;;  %v771_v30 = vld [vmem:[%s6022_s26 + $0x1d0] sm:$0xff]  ;;  %v773_v31 = vld [vmem:[%s6022_s26 + $0x1d8] sm:$0xff]  ;;  %v775_v32 = vld [vmem:[%s6022_s26 + $0x200] sm:$0xff] }
  0x1f   : > { %732 = vst [vmem:[%s6027_s27 + $0x50] sm:$0xff] %v731_v10  ;;  %v777_v33 = vld [vmem:[%s6022_s26 + $0x208] sm:$0xff]  ;;  %v779_v34 = vld [vmem:[%s6022_s26 + $0x210] sm:$0xff]  ;;  %v781_v35 = vld [vmem:[%s6022_s26 + $0x218] sm:$0xff] }
  0x20   : > { %734 = vst [vmem:[%s6027_s27 + $0x58] sm:$0xff] %v733_v11  ;;  %v783_v36 = vld [vmem:[%s6022_s26 + $0x240] sm:$0xff]  ;;  %v785_v37 = vld [vmem:[%s6022_s26 + $0x248] sm:$0xff]  ;;  %v787_v38 = vld [vmem:[%s6022_s26 + $0x250] sm:$0xff] }
  0x21   : > { %736 = vst [vmem:[%s6027_s27 + $0x60] sm:$0xff] %v735_v12  ;;  %v789_v39 = vld [vmem:[%s6022_s26 + $0x258] sm:$0xff]  ;;  %v791_v40 = vld [vmem:[%s6022_s26 + $0x280] sm:$0xff]  ;;  %v793_v41 = vld [vmem:[%s6022_s26 + $0x288] sm:$0xff] }
  0x22   : > { %738 = vst [vmem:[%s6027_s27 + $0x68] sm:$0xff] %v737_v13  ;;  %v795_v42 = vld [vmem:[%s6022_s26 + $0x290] sm:$0xff]  ;;  %v797_v43 = vld [vmem:[%s6022_s26 + $0x298] sm:$0xff]  ;;  %v799_v44 = vld [vmem:[%s6022_s26 + $0x2c0] sm:$0xff] }
  0x23   : > { %740 = vst [vmem:[%s6027_s27 + $0x70] sm:$0xff] %v739_v14  ;;  %v801_v45 = vld [vmem:[%s6022_s26 + $0x2c8] sm:$0xff]  ;;  %v803_v46 = vld [vmem:[%s6022_s26 + $0x2d0] sm:$0xff]  ;;  %v805_v47 = vld [vmem:[%s6022_s26 + $0x2d8] sm:$0xff] }
  0x24   : > { %742 = vst [vmem:[%s6027_s27 + $0x78] sm:$0xff] %v741_v15  ;;  %v807_v48 = vld [vmem:[%s6022_s26 + $0x300] sm:$0xff]  ;;  %v809_v49 = vld [vmem:[%s6022_s26 + $0x308] sm:$0xff]  ;;  %v811_v50 = vld [vmem:[%s6022_s26 + $0x310] sm:$0xff] }
  0x25   : > { %744 = vst [vmem:[%s6027_s27 + $0x80] sm:$0xff] %v743_v16  ;;  %v813_v51 = vld [vmem:[%s6022_s26 + $0x318] sm:$0xff]  ;;  %v815_v52 = vld [vmem:[%s6022_s26 + $0x340] sm:$0xff]  ;;  %v817_v53 = vld [vmem:[%s6022_s26 + $0x348] sm:$0xff] }
  0x26   : > { %746 = vst [vmem:[%s6027_s27 + $0x88] sm:$0xff] %v745_v17  ;;  %v819_v54 = vld [vmem:[%s6022_s26 + $0x350] sm:$0xff]  ;;  %v821_v55 = vld [vmem:[%s6022_s26 + $0x358] sm:$0xff]  ;;  %v823_v56 = vld [vmem:[%s6022_s26 + $0x380] sm:$0xff] }
  0x27   : > { %748 = vst [vmem:[%s6027_s27 + $0x90] sm:$0xff] %v747_v18  ;;  %v825_v57 = vld [vmem:[%s6022_s26 + $0x388] sm:$0xff]  ;;  %v827_v58 = vld [vmem:[%s6022_s26 + $0x390] sm:$0xff]  ;;  %v829_v59 = vld [vmem:[%s6022_s26 + $0x398] sm:$0xff] }
  0x28   : > { %750 = vst [vmem:[%s6027_s27 + $0x98] sm:$0xff] %v749_v19  ;;  %v831_v60 = vld [vmem:[%s6022_s26 + $0x3c0] sm:$0xff]  ;;  %v833_v61 = vld [vmem:[%s6022_s26 + $0x3c8] sm:$0xff]  ;;  %v835_v62 = vld [vmem:[%s6022_s26 + $0x3d0] sm:$0xff] }
  0x29   : > { %752 = vst [vmem:[%s6027_s27 + $0xa0] sm:$0xff] %v751_v20  ;;  %v837_v63 = vld [vmem:[%s6022_s26 + $0x3d8] sm:$0xff]  ;;  %v839_v0 = vld [vmem:[%s6022_s26 + $0x400] sm:$0xff]  ;;  %v841_v1 = vld [vmem:[%s6022_s26 + $0x408] sm:$0xff] }
  0x2a   : > { %754 = vst [vmem:[%s6027_s27 + $0xa8] sm:$0xff] %v753_v21  ;;  %v843_v2 = vld [vmem:[%s6022_s26 + $0x410] sm:$0xff]  ;;  %v845_v3 = vld [vmem:[%s6022_s26 + $0x418] sm:$0xff]  ;;  %v847_v4 = vld [vmem:[%s6022_s26 + $0x440] sm:$0xff] }
  0x2b   : > { %756 = vst [vmem:[%s6027_s27 + $0xb0] sm:$0xff] %v755_v22  ;;  %v849_v5 = vld [vmem:[%s6022_s26 + $0x448] sm:$0xff]  ;;  %v851_v6 = vld [vmem:[%s6022_s26 + $0x450] sm:$0xff]  ;;  %v853_v7 = vld [vmem:[%s6022_s26 + $0x458] sm:$0xff] }
  0x2c   : > { %758 = vst [vmem:[%s6027_s27 + $0xb8] sm:$0xff] %v757_v23  ;;  %v855_v8 = vld [vmem:[%s6022_s26 + $0x480] sm:$0xff]  ;;  %v857_v9 = vld [vmem:[%s6022_s26 + $0x488] sm:$0xff]  ;;  %v859_v10 = vld [vmem:[%s6022_s26 + $0x490] sm:$0xff] }
  0x2d   : > { %760 = vst [vmem:[%s6027_s27 + $0xc0] sm:$0xff] %v759_v24  ;;  %v861_v11 = vld [vmem:[%s6022_s26 + $0x498] sm:$0xff]  ;;  %v863_v12 = vld [vmem:[%s6022_s26 + $0x4c0] sm:$0xff]  ;;  %v865_v13 = vld [vmem:[%s6022_s26 + $0x4c8] sm:$0xff] }
  0x2e   : > { %762 = vst [vmem:[%s6027_s27 + $0xc8] sm:$0xff] %v761_v25  ;;  %v867_v14 = vld [vmem:[%s6022_s26 + $0x4d0] sm:$0xff]  ;;  %v869_v15 = vld [vmem:[%s6022_s26 + $0x4d8] sm:$0xff]  ;;  %v871_v16 = vld [vmem:[%s6022_s26 + $0x500] sm:$0xff] }
  0x2f   : > { %764 = vst [vmem:[%s6027_s27 + $0xd0] sm:$0xff] %v763_v26  ;;  %v873_v17 = vld [vmem:[%s6022_s26 + $0x508] sm:$0xff]  ;;  %v875_v18 = vld [vmem:[%s6022_s26 + $0x510] sm:$0xff]  ;;  %v877_v19 = vld [vmem:[%s6022_s26 + $0x518] sm:$0xff] }
  0x30   : > { %766 = vst [vmem:[%s6027_s27 + $0xd8] sm:$0xff] %v765_v27  ;;  %v879_v20 = vld [vmem:[%s6022_s26 + $0x540] sm:$0xff]  ;;  %v881_v21 = vld [vmem:[%s6022_s26 + $0x548] sm:$0xff]  ;;  %v883_v22 = vld [vmem:[%s6022_s26 + $0x550] sm:$0xff] }
  0x31   : > { %768 = vst [vmem:[%s6027_s27 + $0xe0] sm:$0xff] %v767_v28  ;;  %v885_v23 = vld [vmem:[%s6022_s26 + $0x558] sm:$0xff]  ;;  %v887_v24 = vld [vmem:[%s6022_s26 + $0x580] sm:$0xff]  ;;  %v889_v25 = vld [vmem:[%s6022_s26 + $0x588] sm:$0xff] }
  0x32   : > { %770 = vst [vmem:[%s6027_s27 + $0xe8] sm:$0xff] %v769_v29  ;;  %v891_v26 = vld [vmem:[%s6022_s26 + $0x590] sm:$0xff]  ;;  %v893_v27 = vld [vmem:[%s6022_s26 + $0x598] sm:$0xff]  ;;  %v895_v28 = vld [vmem:[%s6022_s26 + $0x5c0] sm:$0xff] }
  0x33   : > { %772 = vst [vmem:[%s6027_s27 + $0xf0] sm:$0xff] %v771_v30  ;;  %v897_v29 = vld [vmem:[%s6022_s26 + $0x5c8] sm:$0xff]  ;;  %v899_v30 = vld [vmem:[%s6022_s26 + $0x5d0] sm:$0xff] }
  0x34   : > { %774 = vst [vmem:[%s6027_s27 + $0xf8] sm:$0xff] %v773_v31  ;;  %v901_v31 = vld [vmem:[%s6022_s26 + $0x5d8] sm:$0xff] }
  0x35   : > { %776 = vst [vmem:[%s6027_s27 + $0x100] sm:$0xff] %v775_v32  ;;  %v903_v32 = vld [vmem:[%s6022_s26 + $0x600] sm:$0xff] }
  0x36   : > { %778 = vst [vmem:[%s6027_s27 + $0x108] sm:$0xff] %v777_v33  ;;  %v905_v33 = vld [vmem:[%s6022_s26 + $0x608] sm:$0xff] }
  0x37   : > { %780 = vst [vmem:[%s6027_s27 + $0x110] sm:$0xff] %v779_v34  ;;  %v907_v34 = vld [vmem:[%s6022_s26 + $0x610] sm:$0xff] }
  0x38   : > { %782 = vst [vmem:[%s6027_s27 + $0x118] sm:$0xff] %v781_v35  ;;  %v909_v35 = vld [vmem:[%s6022_s26 + $0x618] sm:$0xff] }
  0x39   : > { %784 = vst [vmem:[%s6027_s27 + $0x120] sm:$0xff] %v783_v36  ;;  %v911_v36 = vld [vmem:[%s6022_s26 + $0x640] sm:$0xff] }
  0x3a   : > { %786 = vst [vmem:[%s6027_s27 + $0x128] sm:$0xff] %v785_v37  ;;  %v913_v37 = vld [vmem:[%s6022_s26 + $0x648] sm:$0xff] }
  0x3b   : > { %788 = vst [vmem:[%s6027_s27 + $0x130] sm:$0xff] %v787_v38  ;;  %v915_v38 = vld [vmem:[%s6022_s26 + $0x650] sm:$0xff] }
  0x3c   : > { %790 = vst [vmem:[%s6027_s27 + $0x138] sm:$0xff] %v789_v39  ;;  %v917_v39 = vld [vmem:[%s6022_s26 + $0x658] sm:$0xff] }
  0x3d   : > { %792 = vst [vmem:[%s6027_s27 + $0x140] sm:$0xff] %v791_v40  ;;  %v919_v40 = vld [vmem:[%s6022_s26 + $0x680] sm:$0xff] }
  0x3e   : > { %794 = vst [vmem:[%s6027_s27 + $0x148] sm:$0xff] %v793_v41  ;;  %v921_v41 = vld [vmem:[%s6022_s26 + $0x688] sm:$0xff] }
  0x3f   : > { %796 = vst [vmem:[%s6027_s27 + $0x150] sm:$0xff] %v795_v42  ;;  %v923_v42 = vld [vmem:[%s6022_s26 + $0x690] sm:$0xff] }
  0x40   : > { %798 = vst [vmem:[%s6027_s27 + $0x158] sm:$0xff] %v797_v43  ;;  %v925_v43 = vld [vmem:[%s6022_s26 + $0x698] sm:$0xff] }
  0x41   : > { %800 = vst [vmem:[%s6027_s27 + $0x160] sm:$0xff] %v799_v44  ;;  %v927_v44 = vld [vmem:[%s6022_s26 + $0x6c0] sm:$0xff] }
  0x42   : > { %802 = vst [vmem:[%s6027_s27 + $0x168] sm:$0xff] %v801_v45  ;;  %v929_v45 = vld [vmem:[%s6022_s26 + $0x6c8] sm:$0xff] }
  0x43   : > { %804 = vst [vmem:[%s6027_s27 + $0x170] sm:$0xff] %v803_v46  ;;  %v931_v46 = vld [vmem:[%s6022_s26 + $0x6d0] sm:$0xff] }
  0x44   : > { %806 = vst [vmem:[%s6027_s27 + $0x178] sm:$0xff] %v805_v47  ;;  %v933_v47 = vld [vmem:[%s6022_s26 + $0x6d8] sm:$0xff] }
  0x45   : > { %808 = vst [vmem:[%s6027_s27 + $0x180] sm:$0xff] %v807_v48  ;;  %v935_v48 = vld [vmem:[%s6022_s26 + $0x700] sm:$0xff] }
  0x46   : > { %810 = vst [vmem:[%s6027_s27 + $0x188] sm:$0xff] %v809_v49  ;;  %v937_v49 = vld [vmem:[%s6022_s26 + $0x708] sm:$0xff] }
  0x47   : > { %812 = vst [vmem:[%s6027_s27 + $0x190] sm:$0xff] %v811_v50  ;;  %v939_v50 = vld [vmem:[%s6022_s26 + $0x710] sm:$0xff] }
  0x48   : > { %814 = vst [vmem:[%s6027_s27 + $0x198] sm:$0xff] %v813_v51  ;;  %v941_v51 = vld [vmem:[%s6022_s26 + $0x718] sm:$0xff] }
  0x49   : > { %816 = vst [vmem:[%s6027_s27 + $0x1a0] sm:$0xff] %v815_v52  ;;  %v943_v52 = vld [vmem:[%s6022_s26 + $0x740] sm:$0xff] }
  0x4a   : > { %818 = vst [vmem:[%s6027_s27 + $0x1a8] sm:$0xff] %v817_v53  ;;  %v945_v53 = vld [vmem:[%s6022_s26 + $0x748] sm:$0xff] }
  0x4b   : > { %820 = vst [vmem:[%s6027_s27 + $0x1b0] sm:$0xff] %v819_v54  ;;  %v947_v54 = vld [vmem:[%s6022_s26 + $0x750] sm:$0xff] }
  0x4c   : > { %822 = vst [vmem:[%s6027_s27 + $0x1b8] sm:$0xff] %v821_v55  ;;  %v949_v55 = vld [vmem:[%s6022_s26 + $0x758] sm:$0xff] }
  0x4d   : > { %824 = vst [vmem:[%s6027_s27 + $0x1c0] sm:$0xff] %v823_v56  ;;  %v951_v56 = vld [vmem:[%s6022_s26 + $0x780] sm:$0xff] }
  0x4e   : > { %826 = vst [vmem:[%s6027_s27 + $0x1c8] sm:$0xff] %v825_v57  ;;  %v953_v57 = vld [vmem:[%s6022_s26 + $0x788] sm:$0xff] }
  0x4f   : > { %828 = vst [vmem:[%s6027_s27 + $0x1d0] sm:$0xff] %v827_v58  ;;  %v955_v58 = vld [vmem:[%s6022_s26 + $0x790] sm:$0xff] }
  0x50   : > { %830 = vst [vmem:[%s6027_s27 + $0x1d8] sm:$0xff] %v829_v59  ;;  %v957_v59 = vld [vmem:[%s6022_s26 + $0x798] sm:$0xff] }
  0x51   : > { %832 = vst [vmem:[%s6027_s27 + $0x1e0] sm:$0xff] %v831_v60  ;;  %v959_v60 = vld [vmem:[%s6022_s26 + $0x7c0] sm:$0xff] }
  0x52   : > { %834 = vst [vmem:[%s6027_s27 + $0x1e8] sm:$0xff] %v833_v61  ;;  %v961_v61 = vld [vmem:[%s6022_s26 + $0x7c8] sm:$0xff] }
  0x53   : > { %836 = vst [vmem:[%s6027_s27 + $0x1f0] sm:$0xff] %v835_v62  ;;  %v963_v62 = vld [vmem:[%s6022_s26 + $0x7d0] sm:$0xff] }
  0x54   : > { %838 = vst [vmem:[%s6027_s27 + $0x1f8] sm:$0xff] %v837_v63  ;;  %v965_v63 = vld [vmem:[%s6022_s26 + $0x7d8] sm:$0xff] }
  0x55   : > { %840 = vst [vmem:[%s6027_s27 + $0x200] sm:$0xff] %v839_v0  ;;  %v967_v0 = vld [vmem:[%s6022_s26 + $0x800] sm:$0xff] }
  0x56   : > { %842 = vst [vmem:[%s6027_s27 + $0x208] sm:$0xff] %v841_v1  ;;  %v969_v1 = vld [vmem:[%s6022_s26 + $0x808] sm:$0xff] }
  0x57   : > { %844 = vst [vmem:[%s6027_s27 + $0x210] sm:$0xff] %v843_v2  ;;  %v971_v2 = vld [vmem:[%s6022_s26 + $0x810] sm:$0xff] }
  0x58   : > { %846 = vst [vmem:[%s6027_s27 + $0x218] sm:$0xff] %v845_v3  ;;  %v973_v3 = vld [vmem:[%s6022_s26 + $0x818] sm:$0xff] }
  0x59   : > { %848 = vst [vmem:[%s6027_s27 + $0x220] sm:$0xff] %v847_v4  ;;  %v975_v4 = vld [vmem:[%s6022_s26 + $0x840] sm:$0xff] }
  0x5a   : > { %850 = vst [vmem:[%s6027_s27 + $0x228] sm:$0xff] %v849_v5  ;;  %v977_v5 = vld [vmem:[%s6022_s26 + $0x848] sm:$0xff] }
  0x5b   : > { %852 = vst [vmem:[%s6027_s27 + $0x230] sm:$0xff] %v851_v6  ;;  %v979_v6 = vld [vmem:[%s6022_s26 + $0x850] sm:$0xff] }
  0x5c   : > { %854 = vst [vmem:[%s6027_s27 + $0x238] sm:$0xff] %v853_v7  ;;  %v981_v7 = vld [vmem:[%s6022_s26 + $0x858] sm:$0xff] }
  0x5d   : > { %856 = vst [vmem:[%s6027_s27 + $0x240] sm:$0xff] %v855_v8  ;;  %v983_v8 = vld [vmem:[%s6022_s26 + $0x880] sm:$0xff] }
  0x5e   : > { %858 = vst [vmem:[%s6027_s27 + $0x248] sm:$0xff] %v857_v9  ;;  %v985_v9 = vld [vmem:[%s6022_s26 + $0x888] sm:$0xff] }
  0x5f   : > { %860 = vst [vmem:[%s6027_s27 + $0x250] sm:$0xff] %v859_v10  ;;  %v987_v10 = vld [vmem:[%s6022_s26 + $0x890] sm:$0xff] }
  0x60   : > { %862 = vst [vmem:[%s6027_s27 + $0x258] sm:$0xff] %v861_v11  ;;  %v989_v11 = vld [vmem:[%s6022_s26 + $0x898] sm:$0xff] }
  0x61   : > { %864 = vst [vmem:[%s6027_s27 + $0x260] sm:$0xff] %v863_v12  ;;  %v991_v12 = vld [vmem:[%s6022_s26 + $0x8c0] sm:$0xff] }
  0x62   : > { %866 = vst [vmem:[%s6027_s27 + $0x268] sm:$0xff] %v865_v13  ;;  %v993_v13 = vld [vmem:[%s6022_s26 + $0x8c8] sm:$0xff] }
  0x63   : > { %868 = vst [vmem:[%s6027_s27 + $0x270] sm:$0xff] %v867_v14  ;;  %v995_v14 = vld [vmem:[%s6022_s26 + $0x8d0] sm:$0xff] }
  0x64   : > { %870 = vst [vmem:[%s6027_s27 + $0x278] sm:$0xff] %v869_v15  ;;  %v997_v15 = vld [vmem:[%s6022_s26 + $0x8d8] sm:$0xff] }
  0x65   : > { %872 = vst [vmem:[%s6027_s27 + $0x280] sm:$0xff] %v871_v16  ;;  %v999_v16 = vld [vmem:[%s6022_s26 + $0x900] sm:$0xff] }
  0x66   : > { %874 = vst [vmem:[%s6027_s27 + $0x288] sm:$0xff] %v873_v17  ;;  %v1001_v17 = vld [vmem:[%s6022_s26 + $0x908] sm:$0xff] }
  0x67   : > { %876 = vst [vmem:[%s6027_s27 + $0x290] sm:$0xff] %v875_v18  ;;  %v1003_v18 = vld [vmem:[%s6022_s26 + $0x910] sm:$0xff] }
  0x68   : > { %878 = vst [vmem:[%s6027_s27 + $0x298] sm:$0xff] %v877_v19  ;;  %v1005_v19 = vld [vmem:[%s6022_s26 + $0x918] sm:$0xff] }
  0x69   : > { %880 = vst [vmem:[%s6027_s27 + $0x2a0] sm:$0xff] %v879_v20  ;;  %v1007_v20 = vld [vmem:[%s6022_s26 + $0x940] sm:$0xff] }
  0x6a   : > { %882 = vst [vmem:[%s6027_s27 + $0x2a8] sm:$0xff] %v881_v21  ;;  %v1009_v21 = vld [vmem:[%s6022_s26 + $0x948] sm:$0xff] }
  0x6b   : > { %884 = vst [vmem:[%s6027_s27 + $0x2b0] sm:$0xff] %v883_v22  ;;  %v1011_v22 = vld [vmem:[%s6022_s26 + $0x950] sm:$0xff] }
  0x6c   : > { %886 = vst [vmem:[%s6027_s27 + $0x2b8] sm:$0xff] %v885_v23  ;;  %v1013_v23 = vld [vmem:[%s6022_s26 + $0x958] sm:$0xff] }
  0x6d   : > { %888 = vst [vmem:[%s6027_s27 + $0x2c0] sm:$0xff] %v887_v24  ;;  %v1015_v24 = vld [vmem:[%s6022_s26 + $0x980] sm:$0xff] }
  0x6e   : > { %890 = vst [vmem:[%s6027_s27 + $0x2c8] sm:$0xff] %v889_v25  ;;  %v1017_v25 = vld [vmem:[%s6022_s26 + $0x988] sm:$0xff] }
  0x6f   : > { %892 = vst [vmem:[%s6027_s27 + $0x2d0] sm:$0xff] %v891_v26  ;;  %v1019_v26 = vld [vmem:[%s6022_s26 + $0x990] sm:$0xff] }
  0x70   : > { %894 = vst [vmem:[%s6027_s27 + $0x2d8] sm:$0xff] %v893_v27  ;;  %v1021_v27 = vld [vmem:[%s6022_s26 + $0x998] sm:$0xff] }
  0x71   : > { %896 = vst [vmem:[%s6027_s27 + $0x2e0] sm:$0xff] %v895_v28  ;;  %v1023_v28 = vld [vmem:[%s6022_s26 + $0x9c0] sm:$0xff] }
  0x72   : > { %898 = vst [vmem:[%s6027_s27 + $0x2e8] sm:$0xff] %v897_v29  ;;  %v1025_v29 = vld [vmem:[%s6022_s26 + $0x9c8] sm:$0xff] }
  0x73   : > { %900 = vst [vmem:[%s6027_s27 + $0x2f0] sm:$0xff] %v899_v30  ;;  %v1027_v30 = vld [vmem:[%s6022_s26 + $0x9d0] sm:$0xff] }
  0x74   : > { %902 = vst [vmem:[%s6027_s27 + $0x2f8] sm:$0xff] %v901_v31  ;;  %v1029_v31 = vld [vmem:[%s6022_s26 + $0x9d8] sm:$0xff] }
  0x75   : > { %904 = vst [vmem:[%s6027_s27 + $0x300] sm:$0xff] %v903_v32  ;;  %v1031_v32 = vld [vmem:[%s6022_s26 + $0xa00] sm:$0xff] }
  0x76   : > { %906 = vst [vmem:[%s6027_s27 + $0x308] sm:$0xff] %v905_v33  ;;  %v1033_v33 = vld [vmem:[%s6022_s26 + $0xa08] sm:$0xff] }
  0x77   : > { %908 = vst [vmem:[%s6027_s27 + $0x310] sm:$0xff] %v907_v34  ;;  %v1035_v34 = vld [vmem:[%s6022_s26 + $0xa10] sm:$0xff] }
  0x78   : > { %910 = vst [vmem:[%s6027_s27 + $0x318] sm:$0xff] %v909_v35  ;;  %v1037_v35 = vld [vmem:[%s6022_s26 + $0xa18] sm:$0xff] }
  0x79   : > { %912 = vst [vmem:[%s6027_s27 + $0x320] sm:$0xff] %v911_v36  ;;  %v1039_v36 = vld [vmem:[%s6022_s26 + $0xa40] sm:$0xff] }
  0x7a   : > { %914 = vst [vmem:[%s6027_s27 + $0x328] sm:$0xff] %v913_v37  ;;  %v1041_v37 = vld [vmem:[%s6022_s26 + $0xa48] sm:$0xff] }
  0x7b   : > { %916 = vst [vmem:[%s6027_s27 + $0x330] sm:$0xff] %v915_v38  ;;  %v1043_v38 = vld [vmem:[%s6022_s26 + $0xa50] sm:$0xff] }
  0x7c   : > { %918 = vst [vmem:[%s6027_s27 + $0x338] sm:$0xff] %v917_v39  ;;  %v1045_v39 = vld [vmem:[%s6022_s26 + $0xa58] sm:$0xff] }
  0x7d   : > { %920 = vst [vmem:[%s6027_s27 + $0x340] sm:$0xff] %v919_v40  ;;  %v1047_v40 = vld [vmem:[%s6022_s26 + $0xa80] sm:$0xff] }
  0x7e   : > { %922 = vst [vmem:[%s6027_s27 + $0x348] sm:$0xff] %v921_v41  ;;  %v1049_v41 = vld [vmem:[%s6022_s26 + $0xa88] sm:$0xff] }
  0x7f   : > { %924 = vst [vmem:[%s6027_s27 + $0x350] sm:$0xff] %v923_v42  ;;  %v1051_v42 = vld [vmem:[%s6022_s26 + $0xa90] sm:$0xff] }
  0x80   : > { %926 = vst [vmem:[%s6027_s27 + $0x358] sm:$0xff] %v925_v43  ;;  %v1053_v43 = vld [vmem:[%s6022_s26 + $0xa98] sm:$0xff] }
  0x81   : > { %928 = vst [vmem:[%s6027_s27 + $0x360] sm:$0xff] %v927_v44  ;;  %v1055_v44 = vld [vmem:[%s6022_s26 + $0xac0] sm:$0xff] }
  0x82   : > { %930 = vst [vmem:[%s6027_s27 + $0x368] sm:$0xff] %v929_v45  ;;  %v1057_v45 = vld [vmem:[%s6022_s26 + $0xac8] sm:$0xff] }
  0x83   : > { %932 = vst [vmem:[%s6027_s27 + $0x370] sm:$0xff] %v931_v46  ;;  %v1059_v46 = vld [vmem:[%s6022_s26 + $0xad0] sm:$0xff] }
  0x84   : > { %934 = vst [vmem:[%s6027_s27 + $0x378] sm:$0xff] %v933_v47  ;;  %v1061_v47 = vld [vmem:[%s6022_s26 + $0xad8] sm:$0xff] }
  0x85   : > { %936 = vst [vmem:[%s6027_s27 + $0x380] sm:$0xff] %v935_v48  ;;  %v1063_v48 = vld [vmem:[%s6022_s26 + $0xb00] sm:$0xff] }
  0x86   : > { %938 = vst [vmem:[%s6027_s27 + $0x388] sm:$0xff] %v937_v49  ;;  %v1065_v49 = vld [vmem:[%s6022_s26 + $0xb08] sm:$0xff] }
  0x87   : > { %940 = vst [vmem:[%s6027_s27 + $0x390] sm:$0xff] %v939_v50  ;;  %v1067_v50 = vld [vmem:[%s6022_s26 + $0xb10] sm:$0xff] }
  0x88   : > { %942 = vst [vmem:[%s6027_s27 + $0x398] sm:$0xff] %v941_v51  ;;  %v1069_v51 = vld [vmem:[%s6022_s26 + $0xb18] sm:$0xff] }
  0x89   : > { %944 = vst [vmem:[%s6027_s27 + $0x3a0] sm:$0xff] %v943_v52  ;;  %v1071_v52 = vld [vmem:[%s6022_s26 + $0xb40] sm:$0xff] }
  0x8a   : > { %946 = vst [vmem:[%s6027_s27 + $0x3a8] sm:$0xff] %v945_v53  ;;  %v1073_v53 = vld [vmem:[%s6022_s26 + $0xb48] sm:$0xff] }
  0x8b   : > { %948 = vst [vmem:[%s6027_s27 + $0x3b0] sm:$0xff] %v947_v54  ;;  %v1075_v54 = vld [vmem:[%s6022_s26 + $0xb50] sm:$0xff] }
  0x8c   : > { %950 = vst [vmem:[%s6027_s27 + $0x3b8] sm:$0xff] %v949_v55  ;;  %v1077_v55 = vld [vmem:[%s6022_s26 + $0xb58] sm:$0xff] }
  0x8d   : > { %952 = vst [vmem:[%s6027_s27 + $0x3c0] sm:$0xff] %v951_v56  ;;  %v1079_v56 = vld [vmem:[%s6022_s26 + $0xb80] sm:$0xff] }
  0x8e   : > { %954 = vst [vmem:[%s6027_s27 + $0x3c8] sm:$0xff] %v953_v57  ;;  %v1081_v57 = vld [vmem:[%s6022_s26 + $0xb88] sm:$0xff] }
  0x8f   : > { %956 = vst [vmem:[%s6027_s27 + $0x3d0] sm:$0xff] %v955_v58  ;;  %v1083_v58 = vld [vmem:[%s6022_s26 + $0xb90] sm:$0xff] }
  0x90   : > { %958 = vst [vmem:[%s6027_s27 + $0x3d8] sm:$0xff] %v957_v59  ;;  %v1085_v59 = vld [vmem:[%s6022_s26 + $0xb98] sm:$0xff] }
  0x91   : > { %960 = vst [vmem:[%s6027_s27 + $0x3e0] sm:$0xff] %v959_v60  ;;  %v1087_v60 = vld [vmem:[%s6022_s26 + $0xbc0] sm:$0xff] }
  0x92   : > { %962 = vst [vmem:[%s6027_s27 + $0x3e8] sm:$0xff] %v961_v61  ;;  %v1089_v61 = vld [vmem:[%s6022_s26 + $0xbc8] sm:$0xff] }
  0x93   : > { %964 = vst [vmem:[%s6027_s27 + $0x3f0] sm:$0xff] %v963_v62  ;;  %v1091_v62 = vld [vmem:[%s6022_s26 + $0xbd0] sm:$0xff] }
  0x94   : > { %966 = vst [vmem:[%s6027_s27 + $0x3f8] sm:$0xff] %v965_v63  ;;  %v1093_v63 = vld [vmem:[%s6022_s26 + $0xbd8] sm:$0xff] }
  0x95   : > { %968 = vst [vmem:[%s6027_s27 + $0x400] sm:$0xff] %v967_v0  ;;  %v1095_v0 = vld [vmem:[%s6022_s26 + $0xc00] sm:$0xff] }
  0x96   : > { %970 = vst [vmem:[%s6027_s27 + $0x408] sm:$0xff] %v969_v1  ;;  %v1097_v1 = vld [vmem:[%s6022_s26 + $0xc08] sm:$0xff] }
  0x97   : > { %972 = vst [vmem:[%s6027_s27 + $0x410] sm:$0xff] %v971_v2  ;;  %v1099_v2 = vld [vmem:[%s6022_s26 + $0xc10] sm:$0xff] }
  0x98   : > { %974 = vst [vmem:[%s6027_s27 + $0x418] sm:$0xff] %v973_v3  ;;  %v1101_v3 = vld [vmem:[%s6022_s26 + $0xc18] sm:$0xff] }
  0x99   : > { %976 = vst [vmem:[%s6027_s27 + $0x420] sm:$0xff] %v975_v4 }
  0x9a   : > { %978 = vst [vmem:[%s6027_s27 + $0x428] sm:$0xff] %v977_v5 }
  0x9b   : > { %980 = vst [vmem:[%s6027_s27 + $0x430] sm:$0xff] %v979_v6 }
  0x9c   : > { %982 = vst [vmem:[%s6027_s27 + $0x438] sm:$0xff] %v981_v7 }
  0x9d   : > { %984 = vst [vmem:[%s6027_s27 + $0x440] sm:$0xff] %v983_v8 }
  0x9e   : > { %986 = vst [vmem:[%s6027_s27 + $0x448] sm:$0xff] %v985_v9 }
  0x9f   : > { %988 = vst [vmem:[%s6027_s27 + $0x450] sm:$0xff] %v987_v10 }
  0xa0   : > { %990 = vst [vmem:[%s6027_s27 + $0x458] sm:$0xff] %v989_v11 }
  0xa1   : > { %992 = vst [vmem:[%s6027_s27 + $0x460] sm:$0xff] %v991_v12 }
  0xa2   : > { %994 = vst [vmem:[%s6027_s27 + $0x468] sm:$0xff] %v993_v13 }
  0xa3   : > { %996 = vst [vmem:[%s6027_s27 + $0x470] sm:$0xff] %v995_v14 }
  0xa4   : > { %998 = vst [vmem:[%s6027_s27 + $0x478] sm:$0xff] %v997_v15 }
  0xa5   : > { %1000 = vst [vmem:[%s6027_s27 + $0x480] sm:$0xff] %v999_v16 }
  0xa6   : > { %1002 = vst [vmem:[%s6027_s27 + $0x488] sm:$0xff] %v1001_v17 }
  0xa7   : > { %1004 = vst [vmem:[%s6027_s27 + $0x490] sm:$0xff] %v1003_v18 }
  0xa8   : > { %1006 = vst [vmem:[%s6027_s27 + $0x498] sm:$0xff] %v1005_v19 }
  0xa9   : > { %1008 = vst [vmem:[%s6027_s27 + $0x4a0] sm:$0xff] %v1007_v20 }
  0xaa   : > { %1010 = vst [vmem:[%s6027_s27 + $0x4a8] sm:$0xff] %v1009_v21 }
  0xab   : > { %1012 = vst [vmem:[%s6027_s27 + $0x4b0] sm:$0xff] %v1011_v22 }
  0xac   : > { %1014 = vst [vmem:[%s6027_s27 + $0x4b8] sm:$0xff] %v1013_v23 }
  0xad   : > { %1016 = vst [vmem:[%s6027_s27 + $0x4c0] sm:$0xff] %v1015_v24 }
  0xae   : > { %1018 = vst [vmem:[%s6027_s27 + $0x4c8] sm:$0xff] %v1017_v25 }
  0xaf   : > { %1020 = vst [vmem:[%s6027_s27 + $0x4d0] sm:$0xff] %v1019_v26 }
  0xb0   : > { %1022 = vst [vmem:[%s6027_s27 + $0x4d8] sm:$0xff] %v1021_v27 }
  0xb1   : > { %1024 = vst [vmem:[%s6027_s27 + $0x4e0] sm:$0xff] %v1023_v28 }
  0xb2   : > { %1026 = vst [vmem:[%s6027_s27 + $0x4e8] sm:$0xff] %v1025_v29 }
  0xb3   : > { %1028 = vst [vmem:[%s6027_s27 + $0x4f0] sm:$0xff] %v1027_v30 }
  0xb4   : > { %1030 = vst [vmem:[%s6027_s27 + $0x4f8] sm:$0xff] %v1029_v31 }
  0xb5   : > { %1032 = vst [vmem:[%s6027_s27 + $0x500] sm:$0xff] %v1031_v32 }
  0xb6   : > { %1034 = vst [vmem:[%s6027_s27 + $0x508] sm:$0xff] %v1033_v33 }
  0xb7   : > { %1036 = vst [vmem:[%s6027_s27 + $0x510] sm:$0xff] %v1035_v34 }
  0xb8   : > { %1038 = vst [vmem:[%s6027_s27 + $0x518] sm:$0xff] %v1037_v35 }
  0xb9   : > { %1040 = vst [vmem:[%s6027_s27 + $0x520] sm:$0xff] %v1039_v36 }
  0xba   : > { %1042 = vst [vmem:[%s6027_s27 + $0x528] sm:$0xff] %v1041_v37 }
  0xbb   : > { %1044 = vst [vmem:[%s6027_s27 + $0x530] sm:$0xff] %v1043_v38 }
  0xbc   : > { %1046 = vst [vmem:[%s6027_s27 + $0x538] sm:$0xff] %v1045_v39 }
  0xbd   : > { %1048 = vst [vmem:[%s6027_s27 + $0x540] sm:$0xff] %v1047_v40 }
  0xbe   : > { %1050 = vst [vmem:[%s6027_s27 + $0x548] sm:$0xff] %v1049_v41 }
  0xbf   : > { %1052 = vst [vmem:[%s6027_s27 + $0x550] sm:$0xff] %v1051_v42 }
  0xc0   : > { %1054 = vst [vmem:[%s6027_s27 + $0x558] sm:$0xff] %v1053_v43 }
  0xc1   : > { %1056 = vst [vmem:[%s6027_s27 + $0x560] sm:$0xff] %v1055_v44 }
  0xc2   : > { %1058 = vst [vmem:[%s6027_s27 + $0x568] sm:$0xff] %v1057_v45 }
  0xc3   : > { %1060 = vst [vmem:[%s6027_s27 + $0x570] sm:$0xff] %v1059_v46 }
  0xc4   : > { %1062 = vst [vmem:[%s6027_s27 + $0x578] sm:$0xff] %v1061_v47 }
  0xc5   : > { %1064 = vst [vmem:[%s6027_s27 + $0x580] sm:$0xff] %v1063_v48 }
  0xc6   : > { %1066 = vst [vmem:[%s6027_s27 + $0x588] sm:$0xff] %v1065_v49 }
  0xc7   : > { %1068 = vst [vmem:[%s6027_s27 + $0x590] sm:$0xff] %v1067_v50 }
  0xc8   : > { %1070 = vst [vmem:[%s6027_s27 + $0x598] sm:$0xff] %v1069_v51 }
  0xc9   : > { %1072 = vst [vmem:[%s6027_s27 + $0x5a0] sm:$0xff] %v1071_v52 }
  0xca   : > { %1074 = vst [vmem:[%s6027_s27 + $0x5a8] sm:$0xff] %v1073_v53 }
  0xcb   : > { %1076 = vst [vmem:[%s6027_s27 + $0x5b0] sm:$0xff] %v1075_v54 }
  0xcc   : > { %1078 = vst [vmem:[%s6027_s27 + $0x5b8] sm:$0xff] %v1077_v55 }
  0xcd   : > { %1080 = vst [vmem:[%s6027_s27 + $0x5c0] sm:$0xff] %v1079_v56 }
  0xce   : > { %1082 = vst [vmem:[%s6027_s27 + $0x5c8] sm:$0xff] %v1081_v57 }
  0xcf   : > { %1084 = vst [vmem:[%s6027_s27 + $0x5d0] sm:$0xff] %v1083_v58 }
  0xd0   : > { %1086 = vst [vmem:[%s6027_s27 + $0x5d8] sm:$0xff] %v1085_v59 }
  0xd1   : > { %1088 = vst [vmem:[%s6027_s27 + $0x5e0] sm:$0xff] %v1087_v60 }
  0xd2   : > { %1090 = vst [vmem:[%s6027_s27 + $0x5e8] sm:$0xff] %v1089_v61 }
  0xd3   : > { %1092 = vst [vmem:[%s6027_s27 + $0x5f0] sm:$0xff] %v1091_v62 }
  0xd4   : > { %1094 = vst [vmem:[%s6027_s27 + $0x5f8] sm:$0xff] %v1093_v63 }
  0xd5   : > { %1096 = vst [vmem:[%s6027_s27 + $0x600] sm:$0xff] %v1095_v0 }
  0xd6   : > { %1098 = vst [vmem:[%s6027_s27 + $0x608] sm:$0xff] %v1097_v1 }
  0xd7   : > { %1100 = vst [vmem:[%s6027_s27 + $0x610] sm:$0xff] %v1099_v2 }
  0xd8   : > { %1102 = vst [vmem:[%s6027_s27 + $0x618] sm:$0xff] %v1101_v3 }
  0xd9 PF: > { %p5376_p10 = scmp.ge.s32.totalorder %s5911_s12, 1  ;;  %p1116_p11 = scmp.lt.s32.totalorder %s5911_s12, 3 }
  0xdb   : > { %p1117_p12 = pnand %p5376_p10, %p1116_p11 }
  0xdd   : > { %1120 = sbr.rel (%p1117_p12) target bundleno = 1686 (0x696), region = 90 }
  0xe2   : > { %v1369_v4 = vld [vmem:[%s8775_s2 + $0x10] sm:$0x3]  ;;  %vm1963_vm0 = vcmask 1041408   ;;  %v1368_v5 = vld [vmem:[%s8775_s2 + $0x8] sm:$0xff]  ;;  %s6427_s17 = sand.u32 1, %s5903_s10   ;;  %v1367_v6 = vld [vmem:[%s8775_s2] sm:$0xff] }
  0xe3   : > { %5380 = vmatpush.msk.msra.mxu0 %vm1963_vm0, %v1369_v4  ;;  %5781 = vmatpush.msk.msra.mxu2 %vm1963_vm0, %v1369_v4  ;;  %s5790_s23 = smul.u32 1568, %s6427_s17  ;;  %vm1374_vm1 = vcmask 146432   ;;  %vm2852_vm2 = vcmask 261120   ;;  %s5378_s27 = sshll.u32 %s5988_s13, 2 }
  0xe4   : > { %5780 = vmatpush.msk.msra.mxu1 %vm1963_vm0, %v1369_v4  ;;  %5782 = vmatpush.msk.msra.mxu3 %vm1963_vm0, %v1369_v4  ;;  %p1165_p13 = scmp.lt.s32.totalorder %s5378_s27, 7  ;;  %s5276_s22 = scalar_lea.sflag [#allocation4], %s6427_s17 }
  0xe5   : > { %1981 = vmatpush.msra.mxu0 %v1368_v5  ;;  %5784 = vmatpush.msra.mxu2 %v1368_v5  ;;  %s6433_s24 = scalar_lea.vmem [#allocation2], %s5790_s23  ;;  %s5377_s23 = sshll.u32 %s6427_s17, 5 }
  0xe6   : > { %v1171_v7 = vld [vmem:[%s6433_s24] sm:$0xff]  ;;  %v1301_v8 = vld [vmem:[%s6433_s24 + $0x410] sm:$0xff]  ;;  %5783 = vmatpush.msra.mxu1 %v1368_v5  ;;  %5785 = vmatpush.msra.mxu3 %v1368_v5  ;;  %v1270_v9 = vld [vmem:[%s6433_s24 + $0x318] sm:$0xff]  ;;  %s8990_s27 = smov (!%p1165_p13, %s5378_s27), 7  ;;  %s1162_s26 = scalar_lea.vmem [#allocation3], %s5377_s23 }
  0xe7   : > { %1982 = vmatpush.msra.mxu0 %v1367_v6  ;;  %5787 = vmatpush.msra.mxu2 %v1367_v6  ;;  %v1332_v10 = vld [vmem:[%s6433_s24 + $0x508] sm:$0xff]  ;;  %v1302_v12 = vld [vmem:[%s6433_s24 + $0x418] sm:$0xff]  ;;  %v1271_v13 = vld [vmem:[%s6433_s24 + $0x320] sm:$0xff]  ;;  %s5379_s21 = sshll.u32 %s8990_s27, 3  ;;  %s5779_s27 = sshll.u32 %s5988_s13, 5 }
  0xe8   : > { %5381 = vmatmul.msk.f32.vlgmr.msra.gmra.mxu0 %vm1374_vm1, %v1171_v7  ;;  %5511 = vmatmul.msk.f32.vlgmr.msra.gmra.mxu2 %vm1374_vm1, %v1301_v8  ;;  %v1172_v11 = vld [vmem:[%s6433_s24 + $0x8] sm:$0xff]  ;;  %v1333_v14 = vld [vmem:[%s6433_s24 + $0x510] sm:$0xff]  ;;  %v1303_v16 = vld [vmem:[%s6433_s24 + $0x420] sm:$0xff]  ;;  %s5287_s14 = scalar_lea.hbm %s8782_s9, %s5779_s27  ;;  %s5288_s16 = sshll.u32 %s1162_s26, 4  ;;  %s5289_s16 = int_to_ptr.vmem [resolvable:$true] %s5288_s16 }
  0xe9   : > { %5786 = vmatpush.msra.mxu1 %v1367_v6  ;;  %5788 = vmatpush.msra.mxu3 %v1367_v6  ;;  %v1173_v15 = vld [vmem:[%s6433_s24 + $0x10] sm:$0xff]  ;;  %v1272_v17 = vld [vmem:[%s6433_s24 + $0x328] sm:$0xff]  ;;  %v1334_v18 = vld [vmem:[%s6433_s24 + $0x518] sm:$0xff]  ;;  %s5869_s27 = scalar_lea.hbm %s8782_s9, 64 }
  0xea   : > { %5480 = vmatmul.msk.f32.vlgmr.msra.gmra.mxu1 %vm1374_vm1, %v1270_v9  ;;  %5542 = vmatmul.msk.f32.vlgmr.msra.gmra.mxu3 %vm1374_vm1, %v1332_v10  ;;  %v1174_v19 = vld [vmem:[%s6433_s24 + $0x18] sm:$0xff]  ;;  %v1304_v20 = vld [vmem:[%s6433_s24 + $0x428] sm:$0xff]  ;;  %v1273_v21 = vld [vmem:[%s6433_s24 + $0x330] sm:$0xff] }
  0xeb   : > { %v1335_v22 = vld [vmem:[%s6433_s24 + $0x520] sm:$0xff]  ;;  %v1305_v24 = vld [vmem:[%s6433_s24 + $0x430] sm:$0xff]  ;;  %v1274_v25 = vld [vmem:[%s6433_s24 + $0x338] sm:$0xff] }
  0xec   : > { %v1175_v23 = vld [vmem:[%s6433_s24 + $0x20] sm:$0xff]  ;;  %v1336_v26 = vld [vmem:[%s6433_s24 + $0x528] sm:$0xff]  ;;  %v1306_v28 = vld [vmem:[%s6433_s24 + $0x438] sm:$0xff] }
  0xed   : > { %v1176_v27 = vld [vmem:[%s6433_s24 + $0x28] sm:$0xff]  ;;  %v1275_v29 = vld [vmem:[%s6433_s24 + $0x340] sm:$0xff]  ;;  %v1337_v30 = vld [vmem:[%s6433_s24 + $0x530] sm:$0xff] }
  0xee   : > { %v1177_v31 = vld [vmem:[%s6433_s24 + $0x30] sm:$0xff]  ;;  %v1307_v32 = vld [vmem:[%s6433_s24 + $0x440] sm:$0xff]  ;;  %v1276_v33 = vld [vmem:[%s6433_s24 + $0x348] sm:$0xff] }
  0xef   : > { %v1338_v34 = vld [vmem:[%s6433_s24 + $0x538] sm:$0xff]  ;;  %v1308_v36 = vld [vmem:[%s6433_s24 + $0x448] sm:$0xff]  ;;  %v1277_v37 = vld [vmem:[%s6433_s24 + $0x350] sm:$0xff] }
  0xf0   : > { %5382 = vmatmul.msk.f32.gmra.mxu0 %vm1374_vm1, %v1172_v11  ;;  %5512 = vmatmul.msk.f32.gmra.mxu2 %vm1374_vm1, %v1302_v12  ;;  %v1178_v35 = vld [vmem:[%s6433_s24 + $0x38] sm:$0xff]  ;;  %v1339_v38 = vld [vmem:[%s6433_s24 + $0x540] sm:$0xff]  ;;  %v1309_v40 = vld [vmem:[%s6433_s24 + $0x450] sm:$0xff] }
  0xf1   : > { %v1179_v39 = vld [vmem:[%s6433_s24 + $0x40] sm:$0xff]  ;;  %v1278_v41 = vld [vmem:[%s6433_s24 + $0x358] sm:$0xff]  ;;  %v1340_v42 = vld [vmem:[%s6433_s24 + $0x548] sm:$0xff] }
  0xf2   : > { %5481 = vmatmul.msk.f32.gmra.mxu1 %vm1374_vm1, %v1271_v13  ;;  %5543 = vmatmul.msk.f32.gmra.mxu3 %vm1374_vm1, %v1333_v14  ;;  %v1180_v43 = vld [vmem:[%s6433_s24 + $0x48] sm:$0xff]  ;;  %v1310_v44 = vld [vmem:[%s6433_s24 + $0x458] sm:$0xff]  ;;  %v1279_v45 = vld [vmem:[%s6433_s24 + $0x360] sm:$0xff] }
  0xf3   : > { %v1341_v46 = vld [vmem:[%s6433_s24 + $0x550] sm:$0xff]  ;;  %v1311_v48 = vld [vmem:[%s6433_s24 + $0x460] sm:$0xff]  ;;  %v1280_v49 = vld [vmem:[%s6433_s24 + $0x368] sm:$0xff] }
  0xf4   : > { %v1181_v47 = vld [vmem:[%s6433_s24 + $0x50] sm:$0xff]  ;;  %v1342_v50 = vld [vmem:[%s6433_s24 + $0x558] sm:$0xff]  ;;  %v1312_v52 = vld [vmem:[%s6433_s24 + $0x468] sm:$0xff] }
  0xf5   : > { %v1182_v51 = vld [vmem:[%s6433_s24 + $0x58] sm:$0xff]  ;;  %v1281_v53 = vld [vmem:[%s6433_s24 + $0x370] sm:$0xff]  ;;  %v1343_v54 = vld [vmem:[%s6433_s24 + $0x560] sm:$0xff] }
  0xf6   : > { %v1183_v55 = vld [vmem:[%s6433_s24 + $0x60] sm:$0xff]  ;;  %v1313_v56 = vld [vmem:[%s6433_s24 + $0x470] sm:$0xff]  ;;  %v1282_v57 = vld [vmem:[%s6433_s24 + $0x378] sm:$0xff] }
  0xf7   : > { %v1344_v58 = vld [vmem:[%s6433_s24 + $0x568] sm:$0xff]  ;;  %v1314_v60 = vld [vmem:[%s6433_s24 + $0x478] sm:$0xff]  ;;  %v1283_v61 = vld [vmem:[%s6433_s24 + $0x380] sm:$0xff] }
  0xf8   : > { %5383 = vmatmul.msk.f32.gmra.mxu0 %vm1374_vm1, %v1173_v15  ;;  %5513 = vmatmul.msk.f32.gmra.mxu2 %vm1374_vm1, %v1303_v16  ;;  %v1184_v59 = vld [vmem:[%s6433_s24 + $0x68] sm:$0xff]  ;;  %v1345_v62 = vld [vmem:[%s6433_s24 + $0x570] sm:$0xff]  ;;  %v1315_v0 = vld [vmem:[%s6433_s24 + $0x480] sm:$0xff] }
  0xf9   : > { %v1185_v63 = vld [vmem:[%s6433_s24 + $0x70] sm:$0xff]  ;;  %v1284_v1 = vld [vmem:[%s6433_s24 + $0x388] sm:$0xff]  ;;  %v1346_v2 = vld [vmem:[%s6433_s24 + $0x578] sm:$0xff] }
  0xfa   : > { %5482 = vmatmul.msk.f32.gmra.mxu1 %vm1374_vm1, %v1272_v17  ;;  %5544 = vmatmul.msk.f32.gmra.mxu3 %vm1374_vm1, %v1334_v18  ;;  %v1186_v3 = vld [vmem:[%s6433_s24 + $0x78] sm:$0xff]  ;;  %v1316_v4 = vld [vmem:[%s6433_s24 + $0x488] sm:$0xff]  ;;  %v1285_v5 = vld [vmem:[%s6433_s24 + $0x390] sm:$0xff] }
  0xfb   : > { %v1347_v6 = vld [vmem:[%s6433_s24 + $0x580] sm:$0xff]  ;;  %v1317_v9 = vld [vmem:[%s6433_s24 + $0x490] sm:$0xff]  ;;  %v1286_v10 = vld [vmem:[%s6433_s24 + $0x398] sm:$0xff] }
  0xfc   : > { %v1187_v8 = vld [vmem:[%s6433_s24 + $0x80] sm:$0xff]  ;;  %v1348_v11 = vld [vmem:[%s6433_s24 + $0x588] sm:$0xff]  ;;  %v1318_v14 = vld [vmem:[%s6433_s24 + $0x498] sm:$0xff] }
  0xfd   : > { %v1188_v13 = vld [vmem:[%s6433_s24 + $0x88] sm:$0xff]  ;;  %v1287_v15 = vld [vmem:[%s6433_s24 + $0x3a0] sm:$0xff]  ;;  %v1349_v16 = vld [vmem:[%s6433_s24 + $0x590] sm:$0xff] }
  0xfe   : > { %v1189_v18 = vld [vmem:[%s6433_s24 + $0x90] sm:$0xff] }
 0x100   : > { %5384 = vmatmul.msk.f32.gmra.mxu0 %vm1374_vm1, %v1174_v19  ;;  %5514 = vmatmul.msk.f32.gmra.mxu2 %vm1374_vm1, %v1304_v20  ;;  %v1319_v19 = vld [vmem:[%s6433_s24 + $0x4a0] sm:$0xff]  ;;  %v1288_v20 = vld [vmem:[%s6433_s24 + $0x3a8] sm:$0xff] }
 0x102   : > { %5483 = vmatmul.msk.f32.gmra.mxu1 %vm1374_vm1, %v1273_v21  ;;  %5545 = vmatmul.msk.f32.gmra.mxu3 %vm1374_vm1, %v1335_v22  ;;  %v1350_v21 = vld [vmem:[%s6433_s24 + $0x598] sm:$0xff] }
 0x108   : > { %5385 = vmatmul.msk.f32.gmra.mxu0 %vm1374_vm1, %v1175_v23  ;;  %5515 = vmatmul.msk.f32.gmra.mxu2 %vm1374_vm1, %v1305_v24  ;;  %v1190_v23 = vld [vmem:[%s6433_s24 + $0x98] sm:$0xff]  ;;  %v1320_v24 = vld [vmem:[%s6433_s24 + $0x4a8] sm:$0xff] }
 0x10a   : > { %5484 = vmatmul.msk.f32.gmra.mxu1 %vm1374_vm1, %v1274_v25  ;;  %5546 = vmatmul.msk.f32.gmra.mxu3 %vm1374_vm1, %v1336_v26  ;;  %v1289_v25 = vld [vmem:[%s6433_s24 + $0x3b0] sm:$0xff]  ;;  %v1351_v26 = vld [vmem:[%s6433_s24 + $0x5a0] sm:$0xff] }
 0x110   : > { %5386 = vmatmul.msk.f32.gmra.mxu0 %vm1374_vm1, %v1176_v27  ;;  %5516 = vmatmul.msk.f32.gmra.mxu2 %vm1374_vm1, %v1306_v28  ;;  %v1191_v28 = vld [vmem:[%s6433_s24 + $0xa0] sm:$0xff] }
 0x112   : > { %5485 = vmatmul.msk.f32.gmra.mxu1 %vm1374_vm1, %v1275_v29  ;;  %5547 = vmatmul.msk.f32.gmra.mxu3 %vm1374_vm1, %v1337_v30  ;;  %v1321_v29 = vld [vmem:[%s6433_s24 + $0x4b0] sm:$0xff]  ;;  %v1290_v30 = vld [vmem:[%s6433_s24 + $0x3b8] sm:$0xff] }
 0x118   : > { %5387 = vmatmul.msk.f32.gmra.mxu0 %vm1374_vm1, %v1177_v31  ;;  %5517 = vmatmul.msk.f32.gmra.mxu2 %vm1374_vm1, %v1307_v32  ;;  %v1352_v31 = vld [vmem:[%s6433_s24 + $0x5a8] sm:$0xff] }
 0x11a   : > { %5486 = vmatmul.msk.f32.gmra.mxu1 %vm1374_vm1, %v1276_v33  ;;  %5548 = vmatmul.msk.f32.gmra.mxu3 %vm1374_vm1, %v1338_v34  ;;  %v1192_v33 = vld [vmem:[%s6433_s24 + $0xa8] sm:$0xff]  ;;  %v1322_v34 = vld [vmem:[%s6433_s24 + $0x4b8] sm:$0xff] }
 0x120   : > { %5388 = vmatmul.msk.f32.gmra.mxu0 %vm1374_vm1, %v1178_v35  ;;  %5518 = vmatmul.msk.f32.gmra.mxu2 %vm1374_vm1, %v1308_v36  ;;  %v1291_v36 = vld [vmem:[%s6433_s24 + $0x3c0] sm:$0xff] }
 0x122   : > { %5487 = vmatmul.msk.f32.gmra.mxu1 %vm1374_vm1, %v1277_v37  ;;  %5549 = vmatmul.msk.f32.gmra.mxu3 %vm1374_vm1, %v1339_v38  ;;  %v1353_v37 = vld [vmem:[%s6433_s24 + $0x5b0] sm:$0xff] }
 0x128   : > { %5389 = vmatmul.msk.f32.gmra.mxu0 %vm1374_vm1, %v1179_v39  ;;  %5519 = vmatmul.msk.f32.gmra.mxu2 %vm1374_vm1, %v1309_v40  ;;  %v1193_v40 = vld [vmem:[%s6433_s24 + $0xb0] sm:$0xff] }
 0x12a   : > { %5488 = vmatmul.msk.f32.gmra.mxu1 %vm1374_vm1, %v1278_v41  ;;  %5550 = vmatmul.msk.f32.gmra.mxu3 %vm1374_vm1, %v1340_v42  ;;  %v1323_v41 = vld [vmem:[%s6433_s24 + $0x4c0] sm:$0xff] }
 0x130   : > { %5390 = vmatmul.msk.f32.gmra.mxu0 %vm1374_vm1, %v1180_v43  ;;  %5520 = vmatmul.msk.f32.gmra.mxu2 %vm1374_vm1, %v1310_v44  ;;  %v1292_v43 = vld [vmem:[%s6433_s24 + $0x3c8] sm:$0xff]  ;;  %v1354_v44 = vld [vmem:[%s6433_s24 + $0x5b8] sm:$0xff] }
 0x132   : > { %5489 = vmatmul.msk.f32.gmra.mxu1 %vm1374_vm1, %v1279_v45  ;;  %5551 = vmatmul.msk.f32.gmra.mxu3 %vm1374_vm1, %v1341_v46 }
 0x138   : > { %5391 = vmatmul.msk.f32.gmra.mxu0 %vm1374_vm1, %v1181_v47  ;;  %5521 = vmatmul.msk.f32.gmra.mxu2 %vm1374_vm1, %v1311_v48  ;;  %v1194_v47 = vld [vmem:[%s6433_s24 + $0xb8] sm:$0xff]  ;;  %v1324_v48 = vld [vmem:[%s6433_s24 + $0x4c8] sm:$0xff] }
 0x13a   : > { %5490 = vmatmul.msk.f32.gmra.mxu1 %vm1374_vm1, %v1280_v49  ;;  %5552 = vmatmul.msk.f32.gmra.mxu3 %vm1374_vm1, %v1342_v50  ;;  %v1293_v50 = vld [vmem:[%s6433_s24 + $0x3d0] sm:$0xff] }
 0x140   : > { %5392 = vmatmul.msk.f32.gmra.mxu0 %vm1374_vm1, %v1182_v51  ;;  %5522 = vmatmul.msk.f32.gmra.mxu2 %vm1374_vm1, %v1312_v52  ;;  %v1355_v51 = vld [vmem:[%s6433_s24 + $0x5c0] sm:$0xff] }
 0x142   : > { %5491 = vmatmul.msk.f32.gmra.mxu1 %vm1374_vm1, %v1281_v53  ;;  %5553 = vmatmul.msk.f32.gmra.mxu3 %vm1374_vm1, %v1343_v54 }
 0x148   : > { %5393 = vmatmul.msk.f32.gmra.mxu0 %vm1374_vm1, %v1183_v55  ;;  %5523 = vmatmul.msk.f32.gmra.mxu2 %vm1374_vm1, %v1313_v56  ;;  %v1195_v55 = vld [vmem:[%s6433_s24 + $0xc0] sm:$0xff]  ;;  %v1325_v56 = vld [vmem:[%s6433_s24 + $0x4d0] sm:$0xff] }
 0x14a   : > { %5492 = vmatmul.msk.f32.gmra.mxu1 %vm1374_vm1, %v1282_v57  ;;  %5554 = vmatmul.msk.f32.gmra.mxu3 %vm1374_vm1, %v1344_v58  ;;  %v1294_v57 = vld [vmem:[%s6433_s24 + $0x3d8] sm:$0xff]  ;;  %v1356_v58 = vld [vmem:[%s6433_s24 + $0x5c8] sm:$0xff] }
 0x150   : > { %5394 = vmatmul.msk.f32.gmra.mxu0 %vm1374_vm1, %v1184_v59  ;;  %5524 = vmatmul.msk.f32.gmra.mxu2 %vm1374_vm1, %v1314_v60 }
 0x152   : > { %5493 = vmatmul.msk.f32.gmra.mxu1 %vm1374_vm1, %v1283_v61  ;;  %5555 = vmatmul.msk.f32.gmra.mxu3 %vm1374_vm1, %v1345_v62 }
 0x158   : > { %5395 = vmatmul.msk.f32.gmra.mxu0 %vm1374_vm1, %v1185_v63  ;;  %5525 = vmatmul.msk.f32.gmra.mxu2 %vm1374_vm1, %v1315_v0  ;;  %v1196_v63 = vld [vmem:[%s6433_s24 + $0xc8] sm:$0xff]  ;;  %v1326_v0 = vld [vmem:[%s6433_s24 + $0x4d8] sm:$0xff] }
 0x15a   : > { %5494 = vmatmul.msk.f32.gmra.mxu1 %vm1374_vm1, %v1284_v1  ;;  %5556 = vmatmul.msk.f32.gmra.mxu3 %vm1374_vm1, %v1346_v2  ;;  %v1295_v1 = vld [vmem:[%s6433_s24 + $0x3e0] sm:$0xff]  ;;  %v1357_v2 = vld [vmem:[%s6433_s24 + $0x5d0] sm:$0xff] }
 0x160   : > { %5396 = vmatmul.msk.f32.gmra.mxu0 %vm1374_vm1, %v1186_v3  ;;  %5526 = vmatmul.msk.f32.gmra.mxu2 %vm1374_vm1, %v1316_v4 }
 0x162   : > { %5495 = vmatmul.msk.f32.gmra.mxu1 %vm1374_vm1, %v1285_v5  ;;  %5557 = vmatmul.msk.f32.gmra.mxu3 %vm1374_vm1, %v1347_v6  ;;  %v1197_v6 = vld [vmem:[%s6433_s24 + $0xd0] sm:$0xff] }
 0x165   : > { %v6563_v7 = vpop.f32.mrf.mxu0 }
 0x167   : > { %v6631_v42 = vpop.f32.mrf.mxu1 }
 0x168   : > { %5397 = vmatmul.msk.f32.gmra.mxu0 %vm1374_vm1, %v1187_v8  ;;  %5527 = vmatmul.msk.f32.gmra.mxu2 %vm1374_vm1, %v1317_v9  ;;  %v1327_v8 = vld [vmem:[%s6433_s24 + $0x4e0] sm:$0xff] }
 0x16a   : > { %5496 = vmatmul.msk.f32.gmra.mxu1 %vm1374_vm1, %v1286_v10  ;;  %5558 = vmatmul.msk.f32.gmra.mxu3 %vm1374_vm1, %v1348_v11  ;;  %v1296_v10 = vld [vmem:[%s6433_s24 + $0x3e8] sm:$0xff]  ;;  %v1358_v11 = vld [vmem:[%s6433_s24 + $0x5d8] sm:$0xff] }
 0x16b   : > { %v6625_v38 = vpop.f32.mrf.mxu2 }
 0x16d   : > { %v6573_v12 = vpop.f32.mrf.mxu0  ;;  %v6617_v35 = vpop.f32.mrf.mxu3 }
 0x16e   : > { %8785 = vst [vmem:[#allocation6_spill] sm:$0xff] %v6617_v35 }
 0x16f   : > { %v6649_v52 = vpop.f32.mrf.mxu1 }
 0x170   : > { %5398 = vmatmul.msk.f32.gmra.mxu0 %vm1374_vm1, %v1188_v13  ;;  %5528 = vmatmul.msk.f32.gmra.mxu2 %vm1374_vm1, %v1318_v14  ;;  %v2835_v13 = vld [vmem:[%s8777_s4 + $0x18] sm:$0xff]  ;;  %v2834_v14 = vld [vmem:[%s8777_s4 + $0x10] sm:$0xff] }
 0x171   : > { %2918 = vmatpush.msrb.mxu2 %v2835_v13 }
 0x172   : > { %5497 = vmatmul.msk.f32.gmra.mxu1 %vm1374_vm1, %v1287_v15  ;;  %5559 = vmatmul.msk.f32.gmra.mxu3 %vm1374_vm1, %v1349_v16  ;;  %v2833_v16 = vld [vmem:[%s8777_s4 + $0x8] sm:$0xff] }
 0x173   : > { %v6645_v49 = vpop.f32.mrf.mxu2  ;;  %2919 = vmatpush.msrb.mxu2 %v2834_v14 }
 0x175   : > { %v6583_v17 = vpop.f32.mrf.mxu0  ;;  %v6635_v45 = vpop.f32.mrf.mxu3  ;;  %2920 = vmatpush.msrb.mxu2 %v2833_v16  ;;  %v1202_v16 = vld [vmem:[%s6433_s24 + $0xf8] sm:$0xff] }
 0x176   : > { %8786 = vst [vmem:[#allocation7_spill] sm:$0xff] %v6635_v45  ;;  %v1242_v45 = vld [vmem:[%s6433_s24 + $0x238] sm:$0xff] }
 0x177   : > { %v6667_v60 = vpop.f32.mrf.mxu1 }
 0x178   : > { %5399 = vmatmul.msk.f32.gmra.mxu0 %vm1374_vm1, %v1189_v18  ;;  %5529 = vmatmul.msk.f32.gmra.mxu2 %vm1374_vm1, %v1319_v19  ;;  %v1198_v19 = vld [vmem:[%s6433_s24 + $0xd8] sm:$0xff] }
 0x17a   : > { %5498 = vmatmul.msk.f32.gmra.mxu1 %vm1374_vm1, %v1288_v20  ;;  %5560 = vmatmul.msk.f32.gmra.mxu3 %vm1374_vm1, %v1350_v21  ;;  %v1328_v20 = vld [vmem:[%s6433_s24 + $0x4e8] sm:$0xff] }
 0x17b   : > { %v6663_v59 = vpop.f32.mrf.mxu2 }
 0x17d   : > { %v6593_v22 = vpop.f32.mrf.mxu0  ;;  %v6653_v53 = vpop.f32.mrf.mxu3 }
 0x17e   : > { %8787 = vst [vmem:[#allocation8_spill] sm:$0xff] %v6653_v53 }
 0x17f   : > { %v6685_v4 = vpop.f32.mrf.mxu1 }
 0x180   : > { %5400 = vmatmul.msk.f32.gmra.mxu0 %vm1374_vm1, %v1190_v23  ;;  %5530 = vmatmul.msk.f32.gmra.mxu2 %vm1374_vm1, %v1320_v24  ;;  %v2832_v23 = vld [vmem:[%s8777_s4] sm:$0xff]  ;;  %v1297_v24 = vld [vmem:[%s6433_s24 + $0x3f0] sm:$0xff] }
 0x181   : > { %2921 = vmatpush.msrb.mxu2 %v2832_v23  ;;  %v1363_v23 = vld [vmem:[%s6433_s24 + $0x600] sm:$0xff] }
 0x182   : > { %5499 = vmatmul.msk.f32.gmra.mxu1 %vm1374_vm1, %v1289_v25  ;;  %5561 = vmatmul.msk.f32.gmra.mxu3 %vm1374_vm1, %v1351_v26  ;;  %v1359_v25 = vld [vmem:[%s6433_s24 + $0x5e0] sm:$0xff] }
 0x183   : > { %v6681_v3 = vpop.f32.mrf.mxu2 }
 0x185   : > { %v6603_v27 = vpop.f32.mrf.mxu0  ;;  %v6671_v61 = vpop.f32.mrf.mxu3 }
 0x186   : > { %8788 = vst [vmem:[#allocation9_spill] sm:$0xff] %v6671_v61 }
 0x187   : > { %v6714_v21 = vpop.f32.mrf.mxu1 }
 0x188   : > { %5401 = vmatmul.msk.f32.gmra.mxu0 %vm1374_vm1, %v1191_v28  ;;  %5531 = vmatmul.msk.f32.gmra.mxu2 %vm1374_vm1, %v1321_v29  ;;  %v2851_v28 = vld [vmem:[%s8777_s4 + $0x98] sm:$0xff]  ;;  %v2850_v29 = vld [vmem:[%s8777_s4 + $0x90] sm:$0xff] }
 0x189   : > { %2877 = vmatpush.msrb.mxu1 %v2851_v28 }
 0x18a   : > { %5500 = vmatmul.msk.f32.gmra.mxu1 %vm1374_vm1, %v1290_v30  ;;  %5562 = vmatmul.msk.f32.gmra.mxu3 %vm1374_vm1, %v1352_v31  ;;  %v1199_v31 = vld [vmem:[%s6433_s24 + $0xe0] sm:$0xff] }
 0x18b   : > { %v6705_v15 = vpop.f32.mrf.mxu2  ;;  %2878 = vmatpush.msrb.mxu1 %v2850_v29  ;;  %v2937_v29 = vld [vmem:[%s8777_s4 + $0xb0] sm:$0xff] }
 0x18d   : > { %v6613_v32 = vpop.f32.mrf.mxu0  ;;  %v6691_v9 = vpop.f32.mrf.mxu3 }
 0x18e   : > { %8789 = vst [vmem:[#allocation10_spill] sm:$0xff] %v6691_v9 }
 0x190   : > { %5402 = vmatmul.msk.f32.gmra.mxu0 %vm1374_vm1, %v1192_v33  ;;  %5532 = vmatmul.msk.f32.gmra.mxu2 %vm1374_vm1, %v1322_v34  ;;  %v1329_v33 = vld [vmem:[%s6433_s24 + $0x4f0] sm:$0xff] }
 0x192   : > { %5501 = vmatmul.msk.f32.gmra.mxu1 %vm1374_vm1, %v1291_v36  ;;  %5563 = vmatmul.msk.f32.gmra.mxu3 %vm1374_vm1, %v1353_v37  ;;  %v2849_v36 = vld [vmem:[%s8777_s4 + $0x88] sm:$0xff]  ;;  %v1298_v37 = vld [vmem:[%s6433_s24 + $0x3f8] sm:$0xff] }
 0x193   : > { %v6737_v34 = vpop.f32.mrf.mxu2  ;;  %2879 = vmatpush.msrb.mxu1 %v2849_v36 }
 0x195   : > { %v6627_v39 = vpop.f32.mrf.mxu0  ;;  %v6721_v26 = vpop.f32.mrf.mxu3 }
 0x196   : > { %8790 = vst [vmem:[#allocation11_spill] sm:$0xff] %v6721_v26 }
 0x198   : > { %5403 = vmatmul.msk.f32.gmra.mxu0 %vm1374_vm1, %v1193_v40  ;;  %5533 = vmatmul.msk.f32.gmra.mxu2 %vm1374_vm1, %v1323_v41  ;;  %v1360_v40 = vld [vmem:[%s6433_s24 + $0x5e8] sm:$0xff]  ;;  %v6744_v41 = vpop.f32.mrf.mxu1 }
 0x19a   : > { %5502 = vmatmul.msk.f32.gmra.mxu1 %vm1374_vm1, %v1292_v43  ;;  %5564 = vmatmul.msk.f32.gmra.mxu3 %vm1374_vm1, %v1354_v44  ;;  %v2848_v43 = vld [vmem:[%s8777_s4 + $0x80] sm:$0xff] }
 0x19b   : > { %2880 = vmatpush.msrb.mxu1 %v2848_v43  ;;  %v2936_v43 = vld [vmem:[%s8777_s4 + $0xa8] sm:$0xff] }
 0x19d   : > { %v6641_v46 = vpop.f32.mrf.mxu0  ;;  %v6751_v44 = vpop.f32.mrf.mxu3 }
 0x19e   : > { %8791 = vst [vmem:[#allocation12_spill] sm:$0xff] %v6751_v44 }
 0x1a0   : > { %5404 = vmatmul.msk.f32.gmra.mxu0 %vm1374_vm1, %v1194_v47  ;;  %5534 = vmatmul.msk.f32.gmra.mxu2 %vm1374_vm1, %v1324_v48  ;;  %v1200_v48 = vld [vmem:[%s6433_s24 + $0xe8] sm:$0xff] }
 0x1a2   : > { %5503 = vmatmul.msk.f32.gmra.mxu1 %vm1374_vm1, %v1293_v50  ;;  %5565 = vmatmul.msk.f32.gmra.mxu3 %vm1374_vm1, %v1355_v51  ;;  %v1330_v50 = vld [vmem:[%s6433_s24 + $0x4f8] sm:$0xff]  ;;  %v1299_v51 = vld [vmem:[%s6433_s24 + $0x400] sm:$0xff] }
 0x1a5   : > { %v6657_v54 = vpop.f32.mrf.mxu0 }
 0x1a8   : > { %5405 = vmatmul.msk.f32.gmra.mxu0 %vm1374_vm1, %v1195_v55  ;;  %5535 = vmatmul.msk.f32.gmra.mxu2 %vm1374_vm1, %v1325_v56  ;;  %v1361_v55 = vld [vmem:[%s6433_s24 + $0x5f0] sm:$0xff]  ;;  %v6761_v56 = vpop.f32.mrf.mxu2 }
 0x1aa   : > { %5504 = vmatmul.msk.f32.gmra.mxu1 %vm1374_vm1, %v1294_v57  ;;  %5566 = vmatmul.msk.f32.gmra.mxu3 %vm1374_vm1, %v1356_v58  ;;  %v6765_v57 = vpop.f32.mrf.mxu1  ;;  %v6769_v58 = vpop.f32.mrf.mxu3 }
 0x1ab   : > { %8792 = vst [vmem:[#allocation13_spill] sm:$0xff] %v6769_v58 }
 0x1ad   : > { %v6673_v62 = vpop.f32.mrf.mxu0 }
 0x1b0   : > { %5406 = vmatmul.msk.f32.gmra.mxu0 %vm1374_vm1, %v1196_v63  ;;  %5536 = vmatmul.msk.f32.gmra.mxu2 %vm1374_vm1, %v1326_v0  ;;  %v1201_v0 = vld [vmem:[%s6433_s24 + $0xf0] sm:$0xff] }
 0x1b2   : > { %5505 = vmatmul.msk.f32.gmra.mxu1 %vm1374_vm1, %v1295_v1  ;;  %5567 = vmatmul.msk.f32.gmra.mxu3 %vm1374_vm1, %v1357_v2  ;;  %v1331_v1 = vld [vmem:[%s6433_s24 + $0x500] sm:$0xff]  ;;  %v6790_v13 = vpop.f32.mrf.mxu1 }
 0x1b3   : > { %v6778_v2 = vld [vmem:[%s8776_s3] ss:$0 sm:$0xff] }
 0x1b5   : > { %v6687_v5 = vpop.f32.mrf.mxu0 }
 0x1b8   : > { %5407 = vmatmul.msk.f32.gmra.mxu0 %vm1374_vm1, %v1197_v6  ;;  %5537 = vmatmul.msk.f32.gmra.mxu2 %vm1374_vm1, %v1327_v8  ;;  %v1300_v6 = vld [vmem:[%s6433_s24 + $0x408] sm:$0xff]  ;;  %v1362_v8 = vld [vmem:[%s6433_s24 + $0x5f8] sm:$0xff] }
 0x1ba   : > { %5506 = vmatmul.msk.f32.gmra.mxu1 %vm1374_vm1, %v1296_v10  ;;  %5568 = vmatmul.msk.f32.gmra.mxu3 %vm1374_vm1, %v1358_v11  ;;  %v1985_v10 = vadd.f32 %v6778_v2, %v6563_v7  ;;  %v6786_v11 = vpop.f32.mrf.mxu2  ;;  %v1988_v7 = vadd.f32 %v6778_v2, %v6573_v12  ;;  %v2838_v12 = vld [vmem:[%s8777_s4 + $0x30] sm:$0xff] }
 0x1bc   : > { %v2573_v36 = vmax.f32 %v1988_v7, 0.0  ;;  %v1365_v7 = vld [vmem:[%s6433_s24 + $0x610] sm:$0xff] }
 0x1bd   : > { %v6710_v18 = vpop.f32.mrf.mxu0 }
 0x1c0   : > { %5408 = vmatmul.msk.f32.gmra.mxu0 %vm1374_vm1, %v1198_v19  ;;  %5538 = vmatmul.msk.f32.gmra.mxu2 %vm1374_vm1, %v1328_v20  ;;  %v2572_v19 = vmax.f32 %v1985_v10, 0.0  ;;  %v6795_v20 = vpop.f32.mrf.mxu3  ;;  %v1204_v10 = vld [vmem:[%s6433_s24 + $0x108] sm:$0xff] }
 0x1c1   : > { %8793 = vst [vmem:[#allocation14_spill] sm:$0xff] %v6795_v20 }
 0x1c2   : > { %5507 = vmatmul.msk.f32.gmra.mxu1 %vm1374_vm1, %v1297_v24  ;;  %5569 = vmatmul.msk.f32.gmra.mxu3 %vm1374_vm1, %v1359_v25  ;;  %v2938_v24 = vld [vmem:[%s8777_s4 + $0xb8] sm:$0xff]  ;;  %v6809_v28 = vpop.f32.mrf.mxu2 }
 0x1c3   : > { %v2839_v25 = vld [vmem:[%s8777_s4 + $0x38] sm:$0xff]  ;;  %2963 = vmatpush.msrb.mxu3 %v2938_v24 }
 0x1c4   : > { %3004 = vmatpush.msra.mxu1 %v2839_v25 }
 0x1c5   : > { %v6733_v30 = vpop.f32.mrf.mxu0  ;;  %2964 = vmatpush.msrb.mxu3 %v2937_v29 }
 0x1c6   : > { %3005 = vmatpush.msra.mxu1 %v2838_v12 }
 0x1c7   : > { %2965 = vmatpush.msrb.mxu3 %v2936_v43 }
 0x1c8   : > { %5409 = vmatmul.msk.f32.gmra.mxu0 %vm1374_vm1, %v1199_v31  ;;  %5539 = vmatmul.msk.f32.gmra.mxu2 %vm1374_vm1, %v1329_v33  ;;  %v1203_v33 = vld [vmem:[%s6433_s24 + $0x100] sm:$0xff] }
 0x1ca   : > { %5508 = vmatmul.msk.f32.gmra.mxu1 %vm1374_vm1, %v1298_v37  ;;  %5570 = vmatmul.msk.f32.gmra.mxu3 %vm1374_vm1, %v1360_v40  ;;  %v6818_v37 = vpop.f32.mrf.mxu1 }
 0x1cd   : > { %v6755_v47 = vpop.f32.mrf.mxu0 }
 0x1d0   : > { %5410 = vmatmul.msk.f32.gmra.mxu0 %vm1374_vm1, %v1200_v48  ;;  %5540 = vmatmul.msk.f32.gmra.mxu2 %vm1374_vm1, %v1330_v50  ;;  %v2837_v48 = vld [vmem:[%s8777_s4 + $0x28] sm:$0xff] }
 0x1d1   : > { %v1364_v50 = vld [vmem:[%s6433_s24 + $0x608] sm:$0xff]  ;;  %3006 = vmatpush.msra.mxu1 %v2837_v48 }
 0x1d2   : > { %5509 = vmatmul.msk.f32.gmra.mxu1 %vm1374_vm1, %v1299_v51  ;;  %5571 = vmatmul.msk.f32.gmra.mxu3 %vm1374_vm1, %v1361_v55  ;;  %v6828_v51 = vpop.f32.mrf.mxu3  ;;  %v6847_v24 = vpop.f32.mrf.mxu1 }
 0x1d3   : > { %8794 = vst [vmem:[#allocation15_spill] sm:$0xff] %v6828_v51 }
 0x1d5   : > { %v6771_v63 = vpop.f32.mrf.mxu0 }
 0x1d8   : > { %5411 = vmatmul.msk.f32.gmra.mxu0 %vm1374_vm1, %v1201_v0  ;;  %5541 = vmatmul.msk.f32.gmra.mxu2 %vm1374_vm1, %v1331_v1  ;;  %v2935_v0 = vld [vmem:[%s8777_s4 + $0xa0] sm:$0xff] }
 0x1d9   : > { %v2836_v1 = vld [vmem:[%s8777_s4 + $0x20] sm:$0xff]  ;;  %2966 = vmatpush.msrb.mxu3 %v2935_v0  ;;  %v1206_v0 = vld [vmem:[%s6433_s24 + $0x118] sm:$0xff] }
 0x1da   : > { %5510 = vmatmul.msk.f32.gmra.mxu1 %vm1374_vm1, %v1300_v6  ;;  %5572 = vmatmul.msk.f32.gmra.mxu3 %vm1374_vm1, %v1362_v8  ;;  %v1991_v6 = vadd.f32 %v6778_v2, %v6583_v17  ;;  %v1994_v17 = vadd.f32 %v6778_v2, %v6593_v22  ;;  %v6853_v29 = vpop.f32.mrf.mxu3  ;;  %v6864_v22 = vpop.f32.mrf.mxu1 }
 0x1db   : > { %3007 = vmatpush.msra.mxu1 %v2836_v1  ;;  %8795 = vst [vmem:[#allocation16_spill] sm:$0xff] %v6853_v29 }
 0x1dd   : > { %v6792_v14 = vpop.f32.mrf.mxu0 }
 0x1e0   : > { %5412 = vmatmul.msk.f32.gmra.mxu0 %vm1374_vm1, %v1202_v16  ;;  %5581 = vmatmul.msk.f32.vlgmr.msrb.gmra.mxu2 %vm2852_vm2, %v2572_v19  ;;  %v2574_v16 = vmax.f32 %v1991_v6, 0.0  ;;  %v6843_v19 = vpop.f32.mrf.mxu2 }
 0x1e2   : > { %5573 = vmatmul.msk.f32.gmra.mxu3 %vm1374_vm1, %v1363_v23 }
 0x1e5   : > { %v2032_v31 = vpop.f32.mrf.mxu0 }
 0x1e6   : > { %v2033_v40 = vadd.f32 %v6778_v2, %v2032_v31  ;;  %v1205_v31 = vld [vmem:[%s6433_s24 + $0x110] sm:$0xff] }
 0x1e8   : > { %v2588_v55 = vmax.f32 %v2033_v40, 0.0  ;;  %5413 = vmatmul.msk.f32.gmra.mxu0 %vm1374_vm1, %v1203_v33  ;;  %5582 = vmatmul.msk.f32.gmra.mxu2 %vm2852_vm2, %v2573_v36  ;;  %v2575_v33 = vmax.f32 %v1994_v17, 0.0  ;;  %v1366_v40 = vld [vmem:[%s6433_s24 + $0x618] sm:$0xff]  ;;  %v6860_v43 = vpop.f32.mrf.mxu2 }
 0x1ea   : > { %5577 = vmatmul.msk.f32.vlgmr.msrb.gmra.mxu1 %vm2852_vm2, %v2588_v55  ;;  %5574 = vmatmul.msk.f32.gmra.mxu3 %vm1374_vm1, %v1364_v50  ;;  %v6868_v50 = vpop.f32.mrf.mxu3 }
 0x1eb   : > { %8796 = vst [vmem:[#allocation17_spill] sm:$0xff] %v6868_v50  ;;  %v1238_v50 = vld [vmem:[%s6433_s24 + $0x218] sm:$0xff] }
 0x1ed   : > { %v2035_v8 = vpop.f32.mrf.mxu0 }
 0x1ee   : > { %v2036_v23 = vadd.f32 %v6778_v2, %v2035_v8  ;;  %v3024_v8 = vld [vmem:[%s8777_s4 + $0xd8] sm:$0xff] }
 0x1ef   : > { %3049 = vmatpush.msra.mxu2 %v3024_v8  ;;  %v1208_v8 = vld [vmem:[%s6433_s24 + $0x128] sm:$0xff] }
 0x1f0   : > { %v2589_v25 = vmax.f32 %v2036_v23, 0.0  ;;  %5414 = vmatmul.msk.f32.gmra.mxu0 %vm1374_vm1, %v1204_v10  ;;  %5583 = vmatmul.msk.f32.gmra.mxu2 %vm2852_vm2, %v2574_v16  ;;  %v2843_v10 = vld [vmem:[%s8777_s4 + $0x58] sm:$0xff]  ;;  %v1997_v16 = vadd.f32 %v6778_v2, %v6603_v27  ;;  %v6882_v23 = vpop.f32.mrf.mxu1  ;;  %v3022_v27 = vld [vmem:[%s8777_s4 + $0xc8] sm:$0xff] }
 0x1f1   : > { %3090 = vmatpush.msra.mxu3 %v2843_v10 }
 0x1f2   : > { %5578 = vmatmul.msk.f32.gmra.mxu1 %vm2852_vm2, %v2589_v25  ;;  %5575 = vmatmul.msk.f32.gmra.mxu3 %vm1374_vm1, %v1365_v7  ;;  %v3023_v7 = vld [vmem:[%s8777_s4 + $0xd0] sm:$0xff] }
 0x1f3   : > { %v2842_v25 = vld [vmem:[%s8777_s4 + $0x50] sm:$0xff]  ;;  %3050 = vmatpush.msra.mxu2 %v3023_v7 }
 0x1f4   : > { %3091 = vmatpush.msra.mxu3 %v2842_v25 }
 0x1f5   : > { %v2038_v12 = vpop.f32.mrf.mxu0  ;;  %3051 = vmatpush.msra.mxu2 %v3022_v27 }
 0x1f6   : > { %v2039_v36 = vadd.f32 %v6778_v2, %v2038_v12  ;;  %v1207_v12 = vld [vmem:[%s6433_s24 + $0x120] sm:$0xff] }
 0x1f8   : > { %v2590_v48 = vmax.f32 %v2039_v36, 0.0  ;;  %5415 = vmatmul.msk.f32.gmra.mxu0 %vm1374_vm1, %v1205_v31  ;;  %5584 = vmatmul.msk.f32.gmra.mxu2 %vm2852_vm2, %v2575_v33  ;;  %v6891_v31 = vpop.f32.mrf.mxu3  ;;  %v2841_v36 = vld [vmem:[%s8777_s4 + $0x48] sm:$0xff]  ;;  %v6912_v10 = vpop.f32.mrf.mxu1 }
 0x1f9   : > { %8797 = vst [vmem:[#allocation18_spill] sm:$0xff] %v6891_v31  ;;  %3092 = vmatpush.msra.mxu3 %v2841_v36 }
 0x1fa   : > { %5579 = vmatmul.msk.f32.gmra.mxu1 %vm2852_vm2, %v2590_v48  ;;  %5576 = vmatmul.msk.f32.gmra.mxu3 %vm1374_vm1, %v1366_v40  ;;  %v2576_v40 = vmax.f32 %v1997_v16, 0.0 }
 0x1fd   : > { %v2041_v55 = vpop.f32.mrf.mxu0 }
 0x1fe   : > { %v2042_v1 = vadd.f32 %v6778_v2, %v2041_v55  ;;  %v3021_v55 = vld [vmem:[%s8777_s4 + $0xc0] sm:$0xff] }
 0x1ff   : > { %3052 = vmatpush.msra.mxu2 %v3021_v55 }
 0x200   : > { %v2591_v6 = vmax.f32 %v2042_v1, 0.0  ;;  %5416 = vmatmul.msk.f32.gmra.mxu0 %vm1374_vm1, %v1206_v0  ;;  %v2840_v0 = vld [vmem:[%s8777_s4 + $0x40] sm:$0xff]  ;;  %v2000_v1 = vadd.f32 %v6778_v2, %v6613_v32  ;;  %v6915_v25 = vpop.f32.mrf.mxu3  ;;  %v2003_v32 = vadd.f32 %v6778_v2, %v6627_v39  ;;  %v6933_v39 = vpop.f32.mrf.mxu2 }
 0x201   : > { %3093 = vmatpush.msra.mxu3 %v2840_v0  ;;  %8798 = vst [vmem:[#allocation19_spill] sm:$0xff] %v6915_v25  ;;  %v2006_v0 = vadd.f32 %v6778_v2, %v6641_v46  ;;  %v3110_v46 = vld [vmem:[%s8777_s4 + $0xf8] sm:$0xff] }
 0x202   : > { %5580 = vmatmul.msk.f32.gmra.mxu1 %vm2852_vm2, %v2591_v6  ;;  %v2577_v7 = vmax.f32 %v2000_v1, 0.0  ;;  %v2578_v36 = vmax.f32 %v2003_v32, 0.0  ;;  %v2847_v32 = vld [vmem:[%s8777_s4 + $0x78] sm:$0xff] }
 0x203   : > { %3135 = vmatpush.msrb.mxu1 %v3110_v46  ;;  %3176 = vmatpush.msrb.mxu2 %v2847_v32  ;;  %v3107_v46 = vld [vmem:[%s8777_s4 + $0xe0] sm:$0xff]  ;;  %v1230_v25 = vld [vmem:[%s6433_s24 + $0x1d8] sm:$0xff] }
 0x204   : > { %v2844_v32 = vld [vmem:[%s8777_s4 + $0x60] sm:$0xff] }
 0x205   : > { %v2044_v17 = vpop.f32.mrf.mxu0 }
 0x206   : > { %v2045_v33 = vadd.f32 %v6778_v2, %v2044_v17 }
 0x208   : > { %v2592_v48 = vmax.f32 %v2045_v33, 0.0  ;;  %5417 = vmatmul.msk.f32.gmra.mxu0 %vm1374_vm1, %v1207_v12  ;;  %v1209_v33 = vld [vmem:[%s6433_s24 + $0x130] sm:$0xff]  ;;  %v6927_v55 = vpop.f32.mrf.mxu3 }
 0x209   : > { %8799 = vst [vmem:[#allocation20_spill] sm:$0xff] %v6927_v55 }
 0x20a   : > { %5585 = vmatmul.msk.f32.vlgmr.msrb.gmra.mxu3 %vm2852_vm2, %v2592_v48  ;;  %5589 = vmatmul.msk.f32.vlgmr.msra.gmra.mxu1 %vm2852_vm2, %v2576_v40  ;;  %v6924_v40 = vpop.f32.mrf.mxu1 }
 0x20d   : > { %v2047_v6 = vpop.f32.mrf.mxu0 }
 0x20e   : > { %v2048_v16 = vadd.f32 %v6778_v2, %v2047_v6  ;;  %v1210_v6 = vld [vmem:[%s6433_s24 + $0x138] sm:$0xff] }
 0x210   : > { %v2593_v17 = vmax.f32 %v2048_v16, 0.0  ;;  %5418 = vmatmul.msk.f32.gmra.mxu0 %vm1374_vm1, %v1208_v8  ;;  %v2579_v16 = vmax.f32 %v2006_v0, 0.0  ;;  %v1211_v0 = vld [vmem:[%s6433_s24 + $0x140] sm:$0xff] }
 0x212   : > { %5586 = vmatmul.msk.f32.gmra.mxu3 %vm2852_vm2, %v2593_v17  ;;  %5590 = vmatmul.msk.f32.gmra.mxu1 %vm2852_vm2, %v2577_v7  ;;  %v6938_v17 = vpop.f32.mrf.mxu1 }
 0x215   : > { %v2050_v12 = vpop.f32.mrf.mxu0 }
 0x216   : > { %v2051_v27 = vadd.f32 %v6778_v2, %v2050_v12  ;;  %v2009_v12 = vadd.f32 %v6778_v2, %v6657_v54  ;;  %v3108_v54 = vld [vmem:[%s8777_s4 + $0xe8] sm:$0xff] }
 0x218   : > { %v2594_v48 = vmax.f32 %v2051_v27, 0.0  ;;  %5419 = vmatmul.msk.f32.gmra.mxu0 %vm1374_vm1, %v1209_v33  ;;  %v6950_v33 = vpop.f32.mrf.mxu3  ;;  %v3109_v27 = vld [vmem:[%s8777_s4 + $0xf0] sm:$0xff] }
 0x219   : > { %8800 = vst [vmem:[#allocation21_spill] sm:$0xff] %v6950_v33  ;;  %3136 = vmatpush.msrb.mxu1 %v3109_v27  ;;  %v1226_v33 = vld [vmem:[%s6433_s24 + $0x1b8] sm:$0xff] }
 0x21a   : > { %5587 = vmatmul.msk.f32.gmra.mxu3 %vm2852_vm2, %v2594_v48  ;;  %5591 = vmatmul.msk.f32.gmra.mxu1 %vm2852_vm2, %v2578_v36  ;;  %v2846_v36 = vld [vmem:[%s8777_s4 + $0x70] sm:$0xff] }
 0x21b   : > { %3177 = vmatpush.msrb.mxu2 %v2846_v36  ;;  %3137 = vmatpush.msrb.mxu1 %v3108_v54  ;;  %v1212_v36 = vld [vmem:[%s6433_s24 + $0x148] sm:$0xff] }
 0x21d   : > { %v2053_v1 = vpop.f32.mrf.mxu0  ;;  %3138 = vmatpush.msrb.mxu1 %v3107_v46 }
 0x21e   : > { %v2054_v8 = vadd.f32 %v6778_v2, %v2053_v1  ;;  %v6959_v1 = vpop.f32.mrf.mxu2 }
 0x220   : > { %v2595_v7 = vmax.f32 %v2054_v8, 0.0  ;;  %5420 = vmatmul.msk.f32.gmra.mxu0 %vm1374_vm1, %v1210_v6  ;;  %v2845_v8 = vld [vmem:[%s8777_s4 + $0x68] sm:$0xff] }
 0x221   : > { %3178 = vmatpush.msrb.mxu2 %v2845_v8 }
 0x222   : > { %5588 = vmatmul.msk.f32.gmra.mxu3 %vm2852_vm2, %v2595_v7  ;;  %5592 = vmatmul.msk.f32.gmra.mxu1 %vm2852_vm2, %v2579_v16  ;;  %v2580_v16 = vmax.f32 %v2009_v12, 0.0  ;;  %v2012_v12 = vadd.f32 %v6778_v2, %v6673_v62  ;;  %v2015_v62 = vadd.f32 %v6778_v2, %v6687_v5 }
 0x223   : > { %3179 = vmatpush.msrb.mxu2 %v2844_v32 }
 0x224   : > { %v2582_v32 = vmax.f32 %v2015_v62, 0.0 }
 0x225   : > { %v2056_v48 = vpop.f32.mrf.mxu0 }
 0x226   : > { %v2057_v6 = vadd.f32 %v6778_v2, %v2056_v48  ;;  %v6980_v48 = vpop.f32.mrf.mxu3  ;;  %v6983_v54 = vpop.f32.mrf.mxu2 }
 0x227   : > { %8801 = vst [vmem:[#allocation22_spill] sm:$0xff] %v6980_v48 }
 0x228   : > { %v2596_v7 = vmax.f32 %v2057_v6, 0.0  ;;  %5421 = vmatmul.msk.f32.gmra.mxu0 %vm1374_vm1, %v1211_v0  ;;  %v2581_v6 = vmax.f32 %v2012_v12, 0.0 }
 0x22a   : > { %5593 = vmatmul.msk.f32.vlgmr.msra.gmra.mxu2 %vm2852_vm2, %v2596_v7  ;;  %5597 = vmatmul.msk.f32.vlgmr.msra.gmra.mxu3 %vm2852_vm2, %v2580_v16  ;;  %v1213_v7 = vld [vmem:[%s6433_s24 + $0x150] sm:$0xff] }
 0x22d   : > { %v2059_v27 = vpop.f32.mrf.mxu0 }
 0x22e   : > { %v2060_v0 = vadd.f32 %v6778_v2, %v2059_v27  ;;  %v6992_v27 = vpop.f32.mrf.mxu3 }
 0x22f   : > { %8802 = vst [vmem:[#allocation23_spill] sm:$0xff] %v6992_v27 }
 0x230   : > { %v2597_v8 = vmax.f32 %v2060_v0, 0.0  ;;  %5422 = vmatmul.msk.f32.gmra.mxu0 %vm1374_vm1, %v1212_v36  ;;  %v6995_v0 = vpop.f32.mrf.mxu2  ;;  %v2018_v36 = vadd.f32 %v6778_v2, %v6710_v18  ;;  %v2021_v18 = vadd.f32 %v6778_v2, %v6733_v30 }
 0x232   : > { %5594 = vmatmul.msk.f32.gmra.mxu2 %vm2852_vm2, %v2597_v8  ;;  %5598 = vmatmul.msk.f32.gmra.mxu3 %vm2852_vm2, %v2581_v6  ;;  %v1214_v6 = vld [vmem:[%s6433_s24 + $0x158] sm:$0xff]  ;;  %v2583_v62 = vmax.f32 %v2018_v36, 0.0  ;;  %v3195_v36 = vld [vmem:[%s8777_s4 + $0x110] sm:$0xff]  ;;  %v2584_v30 = vmax.f32 %v2021_v18, 0.0 }
 0x235   : > { %v2062_v16 = vpop.f32.mrf.mxu0 }
 0x236   : > { %v2063_v46 = vadd.f32 %v6778_v2, %v2062_v16 }
 0x238   : > { %v2598_v12 = vmax.f32 %v2063_v46, 0.0  ;;  %5423 = vmatmul.msk.f32.gmra.mxu0 %vm1374_vm1, %v1213_v7  ;;  %v7004_v46 = vpop.f32.mrf.mxu3  ;;  %v3196_v7 = vld [vmem:[%s8777_s4 + $0x118] sm:$0xff] }
 0x239   : > { %8803 = vst [vmem:[#allocation24_spill] sm:$0xff] %v7004_v46  ;;  %3221 = vmatpush.msrb.mxu3 %v3196_v7  ;;  %v3193_v7 = vld [vmem:[%s8777_s4 + $0x100] sm:$0xff]  ;;  %v1216_v46 = vld [vmem:[%s6433_s24 + $0x168] sm:$0xff] }
 0x23a   : > { %5595 = vmatmul.msk.f32.gmra.mxu2 %vm2852_vm2, %v2598_v12  ;;  %5599 = vmatmul.msk.f32.gmra.mxu3 %vm2852_vm2, %v2582_v32  ;;  %v7013_v32 = vpop.f32.mrf.mxu2  ;;  %v7015_v12 = vpop.f32.mrf.mxu1 }
 0x23b   : > { %8804 = vst [vmem:[#allocation25_spill] sm:$0xff] %v7013_v32  ;;  %3222 = vmatpush.msrb.mxu3 %v3195_v36  ;;  %v2024_v36 = vadd.f32 %v6778_v2, %v6755_v47  ;;  %v2027_v47 = vadd.f32 %v6778_v2, %v6771_v63 }
 0x23d   : > { %v2065_v5 = vpop.f32.mrf.mxu0  ;;  %v2586_v27 = vmax.f32 %v2027_v47, 0.0 }
 0x23e   : > { %v2066_v8 = vadd.f32 %v6778_v2, %v2065_v5 }
 0x240   : > { %v2599_v16 = vmax.f32 %v2066_v8, 0.0  ;;  %5424 = vmatmul.msk.f32.gmra.mxu0 %vm1374_vm1, %v1214_v6  ;;  %v1215_v6 = vld [vmem:[%s6433_s24 + $0x160] sm:$0xff] }
 0x242   : > { %5596 = vmatmul.msk.f32.gmra.mxu2 %vm2852_vm2, %v2599_v16  ;;  %5600 = vmatmul.msk.f32.gmra.mxu3 %vm2852_vm2, %v2583_v62  ;;  %v3194_v62 = vld [vmem:[%s8777_s4 + $0x108] sm:$0xff]  ;;  %v7036_v18 = vpop.f32.mrf.mxu1 }
 0x243   : > { %3223 = vmatpush.msrb.mxu3 %v3194_v62  ;;  %v7034_v62 = vpop.f32.mrf.mxu2 }
 0x244   : > { %8805 = vst [vmem:[#allocation26_spill] sm:$0xff] %v7034_v62  ;;  %v1250_v62 = vld [vmem:[%s6433_s24 + $0x278] sm:$0xff] }
 0x245   : > { %v2068_v5 = vpop.f32.mrf.mxu0  ;;  %3224 = vmatpush.msrb.mxu3 %v3193_v7 }
 0x246   : > { %v2069_v8 = vadd.f32 %v6778_v2, %v2068_v5 }
 0x248   : > { %v2600_v16 = vmax.f32 %v2069_v8, 0.0  ;;  %5425 = vmatmul.msk.f32.gmra.mxu0 %vm1374_vm1, %v1215_v6  ;;  %v2585_v8 = vmax.f32 %v2024_v36, 0.0 }
 0x24a   : > { %5601 = vmatmul.msk.f32.vlgmr.msrb.gmra.mxu1 %vm2852_vm2, %v2600_v16  ;;  %5605 = vmatmul.msk.f32.vlgmr.msrb.gmra.mxu2 %vm2852_vm2, %v2584_v30  ;;  %v1217_v16 = vld [vmem:[%s6433_s24 + $0x170] sm:$0xff] }
 0x24b   : > { %v7046_v51 = vpop.f32.mrf.mxu2 }
 0x24c   : > { %8806 = vst [vmem:[#allocation27_spill] sm:$0xff] %v7046_v51 }
 0x24d   : > { %v2071_v5 = vpop.f32.mrf.mxu0 }
 0x24e   : > { %v2072_v6 = vadd.f32 %v6778_v2, %v2071_v5  ;;  %v7048_v5 = vpop.f32.mrf.mxu1 }
 0x250   : > { %v2601_v29 = vmax.f32 %v2072_v6, 0.0  ;;  %5426 = vmatmul.msk.f32.gmra.mxu0 %vm1374_vm1, %v1216_v46  ;;  %v1218_v46 = vld [vmem:[%s6433_s24 + $0x178] sm:$0xff] }
 0x252   : > { %5602 = vmatmul.msk.f32.gmra.mxu1 %vm2852_vm2, %v2601_v29  ;;  %5606 = vmatmul.msk.f32.gmra.mxu2 %vm2852_vm2, %v2585_v8  ;;  %v2030_v29 = vadd.f32 %v6778_v2, %v6792_v14  ;;  %v3245_v14 = vld [vmem:[%s8777_s4 + $0x138] sm:$0xff] }
 0x253   : > { %3270 = vmatpush.msra.mxu1 %v3245_v14  ;;  %v1220_v14 = vld [vmem:[%s6433_s24 + $0x188] sm:$0xff] }
 0x254   : > { %v2587_v8 = vmax.f32 %v2030_v29, 0.0  ;;  %v1219_v29 = vld [vmem:[%s6433_s24 + $0x180] sm:$0xff] }
 0x255   : > { %v2074_v30 = vpop.f32.mrf.mxu0 }
 0x256   : > { %v2075_v7 = vadd.f32 %v6778_v2, %v2074_v30  ;;  %v7058_v30 = vpop.f32.mrf.mxu2 }
 0x258   : > { %v2602_v36 = vmax.f32 %v2075_v7, 0.0  ;;  %5427 = vmatmul.msk.f32.gmra.mxu0 %vm1374_vm1, %v1217_v16  ;;  %v7060_v7 = vpop.f32.mrf.mxu1  ;;  %v3244_v16 = vld [vmem:[%s8777_s4 + $0x130] sm:$0xff] }
 0x259   : > { %3271 = vmatpush.msra.mxu1 %v3244_v16 }
 0x25a   : > { %5603 = vmatmul.msk.f32.gmra.mxu1 %vm2852_vm2, %v2602_v36  ;;  %5607 = vmatmul.msk.f32.gmra.mxu2 %vm2852_vm2, %v2586_v27  ;;  %v7067_v27 = vpop.f32.mrf.mxu3 }
 0x25b   : > { %8807 = vst [vmem:[#allocation28_spill] sm:$0xff] %v7067_v27 }
 0x25d   : > { %v2077_v63 = vpop.f32.mrf.mxu0 }
 0x25e   : > { %v2078_v6 = vadd.f32 %v6778_v2, %v2077_v63 }
 0x260   : > { %v2603_v47 = vmax.f32 %v2078_v6, 0.0  ;;  %5428 = vmatmul.msk.f32.gmra.mxu0 %vm1374_vm1, %v1218_v46  ;;  %v3243_v46 = vld [vmem:[%s8777_s4 + $0x128] sm:$0xff] }
 0x261   : > { %3272 = vmatpush.msra.mxu1 %v3243_v46 }
 0x262   : > { %5604 = vmatmul.msk.f32.gmra.mxu1 %vm2852_vm2, %v2603_v47  ;;  %5608 = vmatmul.msk.f32.gmra.mxu2 %vm2852_vm2, %v2587_v8  ;;  %v3242_v8 = vld [vmem:[%s8777_s4 + $0x120] sm:$0xff]  ;;  %v7083_v16 = vpop.f32.mrf.mxu3 }
 0x263   : > { %3273 = vmatpush.msra.mxu1 %v3242_v8  ;;  %8808 = vst [vmem:[#allocation29_spill] sm:$0xff] %v7083_v16  ;;  %v1222_v16 = vld [vmem:[%s6433_s24 + $0x198] sm:$0xff] }
 0x265   : > { %v2080_v36 = vpop.f32.mrf.mxu0 }
 0x266   : > { %v2081_v63 = vadd.f32 %v6778_v2, %v2080_v36 }
 0x268   : > { %v2604_v6 = vmax.f32 %v2081_v63, 0.0  ;;  %5429 = vmatmul.msk.f32.gmra.mxu0 %vm1374_vm1, %v1219_v29  ;;  %v1221_v63 = vld [vmem:[%s6433_s24 + $0x190] sm:$0xff] }
 0x26a   : > { %5609 = vmatmul.msk.f32.vlgmr.msrb.gmra.mxu3 %vm2852_vm2, %v2604_v6  ;;  %v7090_v48 = vpop.f32.mrf.mxu3 }
 0x26b   : > { %8809 = vst [vmem:[#allocation30_spill] sm:$0xff] %v7090_v48 }
 0x26d   : > { %v2083_v47 = vpop.f32.mrf.mxu0 }
 0x26e   : > { %v2084_v36 = vadd.f32 %v6778_v2, %v2083_v47 }
 0x270   : > { %v2605_v27 = vmax.f32 %v2084_v36, 0.0  ;;  %5430 = vmatmul.msk.f32.gmra.mxu0 %vm1374_vm1, %v1220_v14  ;;  %v3294_v14 = vld [vmem:[%s8777_s4 + $0x158] sm:$0xff] }
 0x271   : > { %3319 = vmatpush.msra.mxu2 %v3294_v14 }
 0x272   : > { %5610 = vmatmul.msk.f32.gmra.mxu3 %vm2852_vm2, %v2605_v27  ;;  %v7097_v27 = vpop.f32.mrf.mxu3 }
 0x273   : > { %8810 = vst [vmem:[#allocation31_spill] sm:$0xff] %v7097_v27 }
 0x275   : > { %v2086_v29 = vpop.f32.mrf.mxu0 }
 0x276   : > { %v2087_v46 = vadd.f32 %v6778_v2, %v2086_v29  ;;  %v7103_v29 = vpop.f32.mrf.mxu1 }
 0x278   : > { %v2606_v6 = vmax.f32 %v2087_v46, 0.0  ;;  %5431 = vmatmul.msk.f32.gmra.mxu0 %vm1374_vm1, %v1221_v63  ;;  %v3293_v63 = vld [vmem:[%s8777_s4 + $0x150] sm:$0xff] }
 0x279   : > { %3320 = vmatpush.msra.mxu2 %v3293_v63  ;;  %v1224_v63 = vld [vmem:[%s6433_s24 + $0x1a8] sm:$0xff] }
 0x27a   : > { %5611 = vmatmul.msk.f32.gmra.mxu3 %vm2852_vm2, %v2606_v6  ;;  %v1223_v6 = vld [vmem:[%s6433_s24 + $0x1a0] sm:$0xff] }
 0x27d   : > { %v2089_v8 = vpop.f32.mrf.mxu0 }
 0x27e   : > { %v2090_v47 = vadd.f32 %v6778_v2, %v2089_v8  ;;  %v3292_v8 = vld [vmem:[%s8777_s4 + $0x148] sm:$0xff] }
 0x27f   : > { %3321 = vmatpush.msra.mxu2 %v3292_v8 }
 0x280   : > { %v2607_v36 = vmax.f32 %v2090_v47, 0.0  ;;  %5432 = vmatmul.msk.f32.gmra.mxu0 %vm1374_vm1, %v1222_v16 }
 0x282   : > { %5612 = vmatmul.msk.f32.gmra.mxu3 %vm2852_vm2, %v2607_v36  ;;  %v3291_v36 = vld [vmem:[%s8777_s4 + $0x140] sm:$0xff] }
 0x283   : > { %3322 = vmatpush.msra.mxu2 %v3291_v36 }
 0x285   : > { %v2092_v46 = vpop.f32.mrf.mxu0 }
 0x286   : > { %v2093_v16 = vadd.f32 %v6778_v2, %v2092_v46  ;;  %v7119_v46 = vpop.f32.mrf.mxu1 }
 0x288   : > { %v2608_v47 = vmax.f32 %v2093_v16, 0.0  ;;  %5433 = vmatmul.msk.f32.gmra.mxu0 %vm1374_vm1, %v1223_v6  ;;  %v1225_v16 = vld [vmem:[%s6433_s24 + $0x1b0] sm:$0xff] }
 0x28a   : > { %5613 = vmatmul.msk.f32.vlgmr.msra.gmra.mxu1 %vm2852_vm2, %v2608_v47 }
 0x28d   : > { %v2095_v14 = vpop.f32.mrf.mxu0 }
 0x28e   : > { %v2096_v27 = vadd.f32 %v6778_v2, %v2095_v14  ;;  %v7126_v36 = vpop.f32.mrf.mxu1 }
 0x290   : > { %v2609_v48 = vmax.f32 %v2096_v27, 0.0  ;;  %5434 = vmatmul.msk.f32.gmra.mxu0 %vm1374_vm1, %v1224_v63  ;;  %v3343_v63 = vld [vmem:[%s8777_s4 + $0x178] sm:$0xff] }
 0x291   : > { %3368 = vmatpush.msra.mxu3 %v3343_v63 }
 0x292   : > { %5614 = vmatmul.msk.f32.gmra.mxu1 %vm2852_vm2, %v2609_v48 }
 0x295   : > { %v2098_v6 = vpop.f32.mrf.mxu0 }
 0x296   : > { %v2099_v8 = vadd.f32 %v6778_v2, %v2098_v6  ;;  %v7133_v48 = vpop.f32.mrf.mxu1  ;;  %v7139_v6 = vpop.f32.mrf.mxu2 }
 0x298   : > { %v2610_v47 = vmax.f32 %v2099_v8, 0.0  ;;  %5435 = vmatmul.msk.f32.gmra.mxu0 %vm1374_vm1, %v1225_v16  ;;  %v1227_v8 = vld [vmem:[%s6433_s24 + $0x1c0] sm:$0xff] }
 0x29a   : > { %5615 = vmatmul.msk.f32.gmra.mxu1 %vm2852_vm2, %v2610_v47  ;;  %v3341_v47 = vld [vmem:[%s8777_s4 + $0x168] sm:$0xff] }
 0x29d   : > { %v2101_v20 = vpop.f32.mrf.mxu0 }
 0x29e   : > { %v2102_v27 = vadd.f32 %v6778_v2, %v2101_v20  ;;  %v3342_v20 = vld [vmem:[%s8777_s4 + $0x170] sm:$0xff] }
 0x29f   : > { %3369 = vmatpush.msra.mxu3 %v3342_v20  ;;  %v7155_v20 = vpop.f32.mrf.mxu2 }
 0x2a0   : > { %v2611_v14 = vmax.f32 %v2102_v27, 0.0  ;;  %5436 = vmatmul.msk.f32.gmra.mxu0 %vm1374_vm1, %v1226_v33 }
 0x2a1   : > { %3370 = vmatpush.msra.mxu3 %v3341_v47 }
 0x2a2   : > { %5616 = vmatmul.msk.f32.gmra.mxu1 %vm2852_vm2, %v2611_v14  ;;  %v3340_v14 = vld [vmem:[%s8777_s4 + $0x160] sm:$0xff] }
 0x2a3   : > { %3371 = vmatpush.msra.mxu3 %v3340_v14 }
 0x2a5   : > { %v2104_v16 = vpop.f32.mrf.mxu0 }
 0x2a6   : > { %v2105_v33 = vadd.f32 %v6778_v2, %v2104_v16  ;;  %v1228_v16 = vld [vmem:[%s6433_s24 + $0x1c8] sm:$0xff] }
 0x2a7   : > { %v7162_v44 = vpop.f32.mrf.mxu2 }
 0x2a8   : > { %v2612_v27 = vmax.f32 %v2105_v33, 0.0  ;;  %5437 = vmatmul.msk.f32.gmra.mxu0 %vm1374_vm1, %v1227_v8  ;;  %v1229_v33 = vld [vmem:[%s6433_s24 + $0x1d0] sm:$0xff] }
 0x2aa   : > { %5617 = vmatmul.msk.f32.vlgmr.msra.gmra.mxu2 %vm2852_vm2, %v2612_v27 }
 0x2ad   : > { %v2107_v63 = vpop.f32.mrf.mxu0 }
 0x2ae   : > { %v2108_v58 = vadd.f32 %v6778_v2, %v2107_v63 }
 0x2b0   : > { %v2613_v55 = vmax.f32 %v2108_v58, 0.0  ;;  %5438 = vmatmul.msk.f32.gmra.mxu0 %vm1374_vm1, %v1228_v16  ;;  %v3392_v16 = vld [vmem:[%s8777_s4 + $0x198] sm:$0xff] }
 0x2b1   : > { %3417 = vmatpush.msrb.mxu1 %v3392_v16 }
 0x2b2   : > { %5618 = vmatmul.msk.f32.gmra.mxu2 %vm2852_vm2, %v2613_v55  ;;  %v7169_v55 = vpop.f32.mrf.mxu2 }
 0x2b5   : > { %v2110_v8 = vpop.f32.mrf.mxu0 }
 0x2b6   : > { %v2111_v47 = vadd.f32 %v6778_v2, %v2110_v8  ;;  %v7175_v8 = vpop.f32.mrf.mxu3 }
 0x2b7   : > { %8811 = vst [vmem:[#allocation32_spill] sm:$0xff] %v7175_v8 }
 0x2b8   : > { %v2614_v27 = vmax.f32 %v2111_v47, 0.0  ;;  %5439 = vmatmul.msk.f32.gmra.mxu0 %vm1374_vm1, %v1229_v33  ;;  %v1231_v47 = vld [vmem:[%s6433_s24 + $0x1e0] sm:$0xff] }
 0x2ba   : > { %5619 = vmatmul.msk.f32.gmra.mxu2 %vm2852_vm2, %v2614_v27  ;;  %v3391_v27 = vld [vmem:[%s8777_s4 + $0x190] sm:$0xff] }
 0x2bb   : > { %3418 = vmatpush.msrb.mxu1 %v3391_v27 }
 0x2bd   : > { %v2113_v14 = vpop.f32.mrf.mxu0 }
 0x2be   : > { %v2114_v58 = vadd.f32 %v6778_v2, %v2113_v14  ;;  %v3390_v14 = vld [vmem:[%s8777_s4 + $0x188] sm:$0xff]  ;;  %v7191_v27 = vpop.f32.mrf.mxu3 }
 0x2bf   : > { %3419 = vmatpush.msrb.mxu1 %v3390_v14  ;;  %8812 = vst [vmem:[#allocation33_spill] sm:$0xff] %v7191_v27  ;;  %v1234_v27 = vld [vmem:[%s6433_s24 + $0x1f8] sm:$0xff] }
 0x2c0   : > { %v2615_v63 = vmax.f32 %v2114_v58, 0.0  ;;  %5440 = vmatmul.msk.f32.gmra.mxu0 %vm1374_vm1, %v1230_v25 }
 0x2c2   : > { %5620 = vmatmul.msk.f32.gmra.mxu2 %vm2852_vm2, %v2615_v63  ;;  %v3389_v63 = vld [vmem:[%s8777_s4 + $0x180] sm:$0xff] }
 0x2c3   : > { %3420 = vmatpush.msrb.mxu1 %v3389_v63 }
 0x2c5   : > { %v2116_v33 = vpop.f32.mrf.mxu0 }
 0x2c6   : > { %v2117_v25 = vadd.f32 %v6778_v2, %v2116_v33  ;;  %v1232_v33 = vld [vmem:[%s6433_s24 + $0x1e8] sm:$0xff]  ;;  %v7198_v31 = vpop.f32.mrf.mxu3 }
 0x2c7   : > { %8813 = vst [vmem:[#allocation34_spill] sm:$0xff] %v7198_v31 }
 0x2c8   : > { %v2616_v58 = vmax.f32 %v2117_v25, 0.0  ;;  %5441 = vmatmul.msk.f32.gmra.mxu0 %vm1374_vm1, %v1231_v47  ;;  %v1233_v25 = vld [vmem:[%s6433_s24 + $0x1f0] sm:$0xff] }
 0x2ca   : > { %5621 = vmatmul.msk.f32.vlgmr.msra.gmra.mxu3 %vm2852_vm2, %v2616_v58 }
 0x2cd   : > { %v2119_v16 = vpop.f32.mrf.mxu0 }
 0x2ce   : > { %v2120_v8 = vadd.f32 %v6778_v2, %v2119_v16 }
 0x2d0   : > { %v2617_v26 = vmax.f32 %v2120_v8, 0.0  ;;  %5442 = vmatmul.msk.f32.gmra.mxu0 %vm1374_vm1, %v1232_v33  ;;  %v3441_v33 = vld [vmem:[%s8777_s4 + $0x1b8] sm:$0xff] }
 0x2d1   : > { %3466 = vmatpush.msrb.mxu2 %v3441_v33 }
 0x2d2   : > { %5622 = vmatmul.msk.f32.gmra.mxu3 %vm2852_vm2, %v2617_v26  ;;  %v7205_v26 = vpop.f32.mrf.mxu3 }
 0x2d3   : > { %8814 = vst [vmem:[#allocation35_spill] sm:$0xff] %v7205_v26 }
 0x2d5   : > { %v2122_v47 = vpop.f32.mrf.mxu0 }
 0x2d6   : > { %v2123_v14 = vadd.f32 %v6778_v2, %v2122_v47  ;;  %v7211_v47 = vpop.f32.mrf.mxu1 }
 0x2d8   : > { %v2618_v58 = vmax.f32 %v2123_v14, 0.0  ;;  %5443 = vmatmul.msk.f32.gmra.mxu0 %vm1374_vm1, %v1233_v25  ;;  %v1235_v14 = vld [vmem:[%s6433_s24 + $0x200] sm:$0xff] }
 0x2da   : > { %5623 = vmatmul.msk.f32.gmra.mxu3 %vm2852_vm2, %v2618_v58  ;;  %v3440_v58 = vld [vmem:[%s8777_s4 + $0x1b0] sm:$0xff] }
 0x2db   : > { %3467 = vmatpush.msrb.mxu2 %v3440_v58 }
 0x2dd   : > { %v2125_v63 = vpop.f32.mrf.mxu0 }
 0x2de   : > { %v2126_v8 = vadd.f32 %v6778_v2, %v2125_v63  ;;  %v3439_v63 = vld [vmem:[%s8777_s4 + $0x1a8] sm:$0xff]  ;;  %v7227_v58 = vpop.f32.mrf.mxu1 }
 0x2df   : > { %3468 = vmatpush.msrb.mxu2 %v3439_v63 }
 0x2e0   : > { %v2619_v16 = vmax.f32 %v2126_v8, 0.0  ;;  %5444 = vmatmul.msk.f32.gmra.mxu0 %vm1374_vm1, %v1234_v27 }
 0x2e2   : > { %5624 = vmatmul.msk.f32.gmra.mxu3 %vm2852_vm2, %v2619_v16  ;;  %v3438_v16 = vld [vmem:[%s8777_s4 + $0x1a0] sm:$0xff] }
 0x2e3   : > { %3469 = vmatpush.msrb.mxu2 %v3438_v16 }
 0x2e5   : > { %v2128_v25 = vpop.f32.mrf.mxu0 }
 0x2e6   : > { %v2129_v27 = vadd.f32 %v6778_v2, %v2128_v25  ;;  %v1236_v25 = vld [vmem:[%s6433_s24 + $0x208] sm:$0xff]  ;;  %v7234_v9 = vpop.f32.mrf.mxu1 }
 0x2e8   : > { %v2620_v8 = vmax.f32 %v2129_v27, 0.0  ;;  %5445 = vmatmul.msk.f32.gmra.mxu0 %vm1374_vm1, %v1235_v14  ;;  %v1237_v27 = vld [vmem:[%s6433_s24 + $0x210] sm:$0xff] }
 0x2ea   : > { %5625 = vmatmul.msk.f32.vlgmr.msrb.gmra.mxu1 %vm2852_vm2, %v2620_v8 }
 0x2ed   : > { %v2131_v33 = vpop.f32.mrf.mxu0 }
 0x2ee   : > { %v2132_v26 = vadd.f32 %v6778_v2, %v2131_v33 }
 0x2f0   : > { %v2621_v31 = vmax.f32 %v2132_v26, 0.0  ;;  %5446 = vmatmul.msk.f32.gmra.mxu0 %vm1374_vm1, %v1236_v25  ;;  %v3490_v25 = vld [vmem:[%s8777_s4 + $0x1d8] sm:$0xff] }
 0x2f1   : > { %3515 = vmatpush.msrb.mxu3 %v3490_v25 }
 0x2f2   : > { %5626 = vmatmul.msk.f32.gmra.mxu1 %vm2852_vm2, %v2621_v31  ;;  %v7241_v31 = vpop.f32.mrf.mxu1 }
 0x2f5   : > { %v2134_v14 = vpop.f32.mrf.mxu0 }
 0x2f6   : > { %v2135_v63 = vadd.f32 %v6778_v2, %v2134_v14  ;;  %v7247_v14 = vpop.f32.mrf.mxu2 }
 0x2f7   : > { %8815 = vst [vmem:[#allocation36_spill] sm:$0xff] %v7247_v14 }
 0x2f8   : > { %v2622_v8 = vmax.f32 %v2135_v63, 0.0  ;;  %5447 = vmatmul.msk.f32.gmra.mxu0 %vm1374_vm1, %v1237_v27  ;;  %v1239_v63 = vld [vmem:[%s6433_s24 + $0x220] sm:$0xff] }
 0x2fa   : > { %5627 = vmatmul.msk.f32.gmra.mxu1 %vm2852_vm2, %v2622_v8  ;;  %v3489_v8 = vld [vmem:[%s8777_s4 + $0x1d0] sm:$0xff] }
 0x2fb   : > { %3516 = vmatpush.msrb.mxu3 %v3489_v8 }
 0x2fd   : > { %v2137_v16 = vpop.f32.mrf.mxu0 }
 0x2fe   : > { %v2138_v26 = vadd.f32 %v6778_v2, %v2137_v16  ;;  %v3488_v16 = vld [vmem:[%s8777_s4 + $0x1c8] sm:$0xff]  ;;  %v7263_v8 = vpop.f32.mrf.mxu2 }
 0x2ff   : > { %3517 = vmatpush.msrb.mxu3 %v3488_v16  ;;  %8816 = vst [vmem:[#allocation37_spill] sm:$0xff] %v7263_v8 }
 0x300   : > { %v2623_v33 = vmax.f32 %v2138_v26, 0.0  ;;  %5448 = vmatmul.msk.f32.gmra.mxu0 %vm1374_vm1, %v1238_v50 }
 0x302   : > { %5628 = vmatmul.msk.f32.gmra.mxu1 %vm2852_vm2, %v2623_v33  ;;  %v3487_v33 = vld [vmem:[%s8777_s4 + $0x1c0] sm:$0xff] }
 0x303   : > { %3518 = vmatpush.msrb.mxu3 %v3487_v33 }
 0x305   : > { %v2140_v27 = vpop.f32.mrf.mxu0 }
 0x306   : > { %v2141_v50 = vadd.f32 %v6778_v2, %v2140_v27  ;;  %v1240_v27 = vld [vmem:[%s6433_s24 + $0x228] sm:$0xff]  ;;  %v7270_v51 = vpop.f32.mrf.mxu2 }
 0x307   : > { %8817 = vst [vmem:[#allocation38_spill] sm:$0xff] %v7270_v51 }
 0x308   : > { %v2624_v26 = vmax.f32 %v2141_v50, 0.0  ;;  %5449 = vmatmul.msk.f32.gmra.mxu0 %vm1374_vm1, %v1239_v63  ;;  %v1241_v50 = vld [vmem:[%s6433_s24 + $0x230] sm:$0xff] }
 0x30a   : > { %5629 = vmatmul.msk.f32.vlgmr.msrb.gmra.mxu2 %vm2852_vm2, %v2624_v26 }
 0x30d   : > { %v2143_v25 = vpop.f32.mrf.mxu0 }
 0x30e   : > { %v2144_v61 = vadd.f32 %v6778_v2, %v2143_v25 }
 0x310   : > { %v2625_v53 = vmax.f32 %v2144_v61, 0.0  ;;  %5450 = vmatmul.msk.f32.gmra.mxu0 %vm1374_vm1, %v1240_v27  ;;  %v3539_v27 = vld [vmem:[%s8777_s4 + $0x1f8] sm:$0xff] }
 0x311   : > { %3564 = vmatpush.msra.mxu1 %v3539_v27 }
 0x312   : > { %5630 = vmatmul.msk.f32.gmra.mxu2 %vm2852_vm2, %v2625_v53  ;;  %v7277_v53 = vpop.f32.mrf.mxu2 }
 0x313   : > { %8818 = vst [vmem:[#allocation39_spill] sm:$0xff] %v7277_v53 }
 0x315   : > { %v2146_v63 = vpop.f32.mrf.mxu0 }
 0x316   : > { %v2147_v16 = vadd.f32 %v6778_v2, %v2146_v63  ;;  %v7283_v63 = vpop.f32.mrf.mxu3 }
 0x317   : > { %8819 = vst [vmem:[#allocation40_spill] sm:$0xff] %v7283_v63 }
 0x318   : > { %v2626_v26 = vmax.f32 %v2147_v16, 0.0  ;;  %5451 = vmatmul.msk.f32.gmra.mxu0 %vm1374_vm1, %v1241_v50  ;;  %v1243_v16 = vld [vmem:[%s6433_s24 + $0x240] sm:$0xff] }
 0x31a   : > { %5631 = vmatmul.msk.f32.gmra.mxu2 %vm2852_vm2, %v2626_v26  ;;  %v3538_v26 = vld [vmem:[%s8777_s4 + $0x1f0] sm:$0xff] }
 0x31b   : > { %3565 = vmatpush.msra.mxu1 %v3538_v26 }
 0x31d   : > { %v2149_v33 = vpop.f32.mrf.mxu0 }
 0x31e   : > { %v2150_v61 = vadd.f32 %v6778_v2, %v2149_v33  ;;  %v3537_v33 = vld [vmem:[%s8777_s4 + $0x1e8] sm:$0xff]  ;;  %v7299_v26 = vpop.f32.mrf.mxu3 }
 0x31f   : > { %3566 = vmatpush.msra.mxu1 %v3537_v33  ;;  %8820 = vst [vmem:[#allocation41_spill] sm:$0xff] %v7299_v26  ;;  %v1246_v26 = vld [vmem:[%s6433_s24 + $0x258] sm:$0xff] }
 0x320   : > { %v2627_v25 = vmax.f32 %v2150_v61, 0.0  ;;  %5452 = vmatmul.msk.f32.gmra.mxu0 %vm1374_vm1, %v1242_v45 }
 0x322   : > { %5632 = vmatmul.msk.f32.gmra.mxu2 %vm2852_vm2, %v2627_v25  ;;  %v3536_v25 = vld [vmem:[%s8777_s4 + $0x1e0] sm:$0xff] }
 0x323   : > { %3567 = vmatpush.msra.mxu1 %v3536_v25 }
 0x325   : > { %v2152_v50 = vpop.f32.mrf.mxu0 }
 0x326   : > { %v2153_v45 = vadd.f32 %v6778_v2, %v2152_v50  ;;  %v1244_v50 = vld [vmem:[%s6433_s24 + $0x248] sm:$0xff]  ;;  %v7306_v51 = vpop.f32.mrf.mxu3 }
 0x327   : > { %8821 = vst [vmem:[#allocation42_spill] sm:$0xff] %v7306_v51 }
 0x328   : > { %v2628_v61 = vmax.f32 %v2153_v45, 0.0  ;;  %5453 = vmatmul.msk.f32.gmra.mxu0 %vm1374_vm1, %v1243_v16  ;;  %v1245_v45 = vld [vmem:[%s6433_s24 + $0x250] sm:$0xff] }
 0x32a   : > { %5633 = vmatmul.msk.f32.vlgmr.msrb.gmra.mxu3 %vm2852_vm2, %v2628_v61 }
 0x32d   : > { %v2155_v27 = vpop.f32.mrf.mxu0 }
 0x32e   : > { %v2156_v63 = vadd.f32 %v6778_v2, %v2155_v27 }
 0x330   : > { %v2629_v53 = vmax.f32 %v2156_v63, 0.0  ;;  %5454 = vmatmul.msk.f32.gmra.mxu0 %vm1374_vm1, %v1244_v50  ;;  %v3588_v50 = vld [vmem:[%s8777_s4 + $0x218] sm:$0xff] }
 0x331   : > { %3613 = vmatpush.msra.mxu2 %v3588_v50 }
 0x332   : > { %5634 = vmatmul.msk.f32.gmra.mxu3 %vm2852_vm2, %v2629_v53  ;;  %v7313_v53 = vpop.f32.mrf.mxu3 }
 0x333   : > { %8822 = vst [vmem:[#allocation43_spill] sm:$0xff] %v7313_v53 }
 0x335   : > { %v2158_v16 = vpop.f32.mrf.mxu0 }
 0x336   : > { %v2159_v33 = vadd.f32 %v6778_v2, %v2158_v16  ;;  %v7319_v16 = vpop.f32.mrf.mxu1 }
 0x338   : > { %v2630_v61 = vmax.f32 %v2159_v33, 0.0  ;;  %5455 = vmatmul.msk.f32.gmra.mxu0 %vm1374_vm1, %v1245_v45  ;;  %v1247_v33 = vld [vmem:[%s6433_s24 + $0x260] sm:$0xff] }
 0x33a   : > { %5635 = vmatmul.msk.f32.gmra.mxu3 %vm2852_vm2, %v2630_v61 }
 0x33d   : > { %v2161_v25 = vpop.f32.mrf.mxu0 }
 0x33e   : > { %v2162_v63 = vadd.f32 %v6778_v2, %v2161_v25  ;;  %v3587_v2 = vld [vmem:[%s8777_s4 + $0x210] sm:$0xff]  ;;  %v3586_v25 = vld [vmem:[%s8777_s4 + $0x208] sm:$0xff] }
 0x33f   : > { %3614 = vmatpush.msra.mxu2 %v3587_v2  ;;  %v7340_v2 = vpop.f32.mrf.mxu1 }
 0x340   : > { %v2631_v27 = vmax.f32 %v2162_v63, 0.0  ;;  %5456 = vmatmul.msk.f32.gmra.mxu0 %vm1374_vm1, %v1246_v26  ;;  %v7328_v26 = vld [vmem:[%s8776_s3] ss:$0 sm:$0xff] }
 0x341   : > { %3615 = vmatpush.msra.mxu2 %v3586_v25 }
 0x342   : > { %5636 = vmatmul.msk.f32.gmra.mxu3 %vm2852_vm2, %v2631_v27  ;;  %v3585_v27 = vld [vmem:[%s8777_s4 + $0x200] sm:$0xff] }
 0x343   : > { %3616 = vmatpush.msra.mxu2 %v3585_v27 }
 0x345   : > { %v2164_v45 = vpop.f32.mrf.mxu0 }
 0x346   : > { %v2165_v61 = vadd.f32 %v7328_v26, %v2164_v45  ;;  %v1248_v45 = vld [vmem:[%s6433_s24 + $0x268] sm:$0xff] }
 0x347   : > { %v7347_v8 = vpop.f32.mrf.mxu1 }
 0x348   : > { %v2632_v63 = vmax.f32 %v2165_v61, 0.0  ;;  %5457 = vmatmul.msk.f32.gmra.mxu0 %vm1374_vm1, %v1247_v33  ;;  %v1249_v61 = vld [vmem:[%s6433_s24 + $0x270] sm:$0xff] }
 0x34a   : > { %5637 = vmatmul.msk.f32.vlgmr.msra.gmra.mxu1 %vm2852_vm2, %v2632_v63 }
 0x34d   : > { %v2167_v50 = vpop.f32.mrf.mxu0 }
 0x34e   : > { %v2168_v53 = vadd.f32 %v7328_v26, %v2167_v50 }
 0x350   : > { %v2633_v51 = vmax.f32 %v2168_v53, 0.0  ;;  %5458 = vmatmul.msk.f32.gmra.mxu0 %vm1374_vm1, %v1248_v45  ;;  %v3637_v45 = vld [vmem:[%s8777_s4 + $0x238] sm:$0xff] }
 0x351   : > { %3662 = vmatpush.msra.mxu3 %v3637_v45 }
 0x352   : > { %5638 = vmatmul.msk.f32.gmra.mxu1 %vm2852_vm2, %v2633_v51  ;;  %v7354_v51 = vpop.f32.mrf.mxu1 }
 0x355   : > { %v2170_v33 = vpop.f32.mrf.mxu0 }
 0x356   : > { %v2171_v25 = vadd.f32 %v7328_v26, %v2170_v33  ;;  %v7360_v33 = vpop.f32.mrf.mxu2 }
 0x357   : > { %8823 = vst [vmem:[#allocation44_spill] sm:$0xff] %v7360_v33 }
 0x358   : > { %v2634_v63 = vmax.f32 %v2171_v25, 0.0  ;;  %5459 = vmatmul.msk.f32.gmra.mxu0 %vm1374_vm1, %v1249_v61  ;;  %v1251_v25 = vld [vmem:[%s6433_s24 + $0x280] sm:$0xff] }
 0x35a   : > { %5639 = vmatmul.msk.f32.gmra.mxu1 %vm2852_vm2, %v2634_v63  ;;  %v3636_v63 = vld [vmem:[%s8777_s4 + $0x230] sm:$0xff] }
 0x35b   : > { %3663 = vmatpush.msra.mxu3 %v3636_v63 }
 0x35d   : > { %v2173_v27 = vpop.f32.mrf.mxu0 }
 0x35e   : > { %v2174_v53 = vadd.f32 %v7328_v26, %v2173_v27  ;;  %v3635_v27 = vld [vmem:[%s8777_s4 + $0x228] sm:$0xff]  ;;  %v7376_v63 = vpop.f32.mrf.mxu2 }
 0x35f   : > { %3664 = vmatpush.msra.mxu3 %v3635_v27  ;;  %8824 = vst [vmem:[#allocation45_spill] sm:$0xff] %v7376_v63  ;;  %v1254_v63 = vld [vmem:[%s6433_s24 + $0x298] sm:$0xff] }
 0x360   : > { %v2635_v50 = vmax.f32 %v2174_v53, 0.0  ;;  %5460 = vmatmul.msk.f32.gmra.mxu0 %vm1374_vm1, %v1250_v62 }
 0x362   : > { %5640 = vmatmul.msk.f32.gmra.mxu1 %vm2852_vm2, %v2635_v50  ;;  %v3634_v50 = vld [vmem:[%s8777_s4 + $0x220] sm:$0xff] }
 0x363   : > { %3665 = vmatpush.msra.mxu3 %v3634_v50 }
 0x365   : > { %v2176_v61 = vpop.f32.mrf.mxu0 }
 0x366   : > { %v2177_v62 = vadd.f32 %v7328_v26, %v2176_v61  ;;  %v1252_v61 = vld [vmem:[%s6433_s24 + $0x288] sm:$0xff]  ;;  %v7383_v14 = vpop.f32.mrf.mxu2 }
 0x367   : > { %8825 = vst [vmem:[#allocation46_spill] sm:$0xff] %v7383_v14 }
 0x368   : > { %v2636_v53 = vmax.f32 %v2177_v62, 0.0  ;;  %5461 = vmatmul.msk.f32.gmra.mxu0 %vm1374_vm1, %v1251_v25  ;;  %v1253_v62 = vld [vmem:[%s6433_s24 + $0x290] sm:$0xff] }
 0x36a   : > { %5641 = vmatmul.msk.f32.vlgmr.msra.gmra.mxu2 %vm2852_vm2, %v2636_v53 }
 0x36d   : > { %v2179_v45 = vpop.f32.mrf.mxu0 }
 0x36e   : > { %v2180_v33 = vadd.f32 %v7328_v26, %v2179_v45 }
 0x370   : > { %v2637_v35 = vmax.f32 %v2180_v33, 0.0  ;;  %5462 = vmatmul.msk.f32.gmra.mxu0 %vm1374_vm1, %v1252_v61  ;;  %v3686_v61 = vld [vmem:[%s8777_s4 + $0x258] sm:$0xff] }
 0x371   : > { %3711 = vmatpush.msrb.mxu1 %v3686_v61 }
 0x372   : > { %5642 = vmatmul.msk.f32.gmra.mxu2 %vm2852_vm2, %v2637_v35  ;;  %v7390_v35 = vpop.f32.mrf.mxu2 }
 0x373   : > { %8826 = vst [vmem:[#allocation47_spill] sm:$0xff] %v7390_v35  ;;  %v1265_v35 = vld [vmem:[%s6433_s24 + $0x2f0] sm:$0xff] }
 0x375   : > { %v2182_v25 = vpop.f32.mrf.mxu0 }
 0x376   : > { %v2183_v27 = vadd.f32 %v7328_v26, %v2182_v25  ;;  %v7396_v25 = vpop.f32.mrf.mxu3 }
 0x377   : > { %8827 = vst [vmem:[#allocation48_spill] sm:$0xff] %v7396_v25 }
 0x378   : > { %v2638_v53 = vmax.f32 %v2183_v27, 0.0  ;;  %5463 = vmatmul.msk.f32.gmra.mxu0 %vm1374_vm1, %v1253_v62  ;;  %v1255_v27 = vld [vmem:[%s6433_s24 + $0x2a0] sm:$0xff] }
 0x37a   : > { %5643 = vmatmul.msk.f32.gmra.mxu2 %vm2852_vm2, %v2638_v53  ;;  %v3685_v53 = vld [vmem:[%s8777_s4 + $0x250] sm:$0xff] }
 0x37b   : > { %3712 = vmatpush.msrb.mxu1 %v3685_v53 }
 0x37d   : > { %v2185_v50 = vpop.f32.mrf.mxu0 }
 0x37e   : > { %v2186_v33 = vadd.f32 %v7328_v26, %v2185_v50  ;;  %v3684_v50 = vld [vmem:[%s8777_s4 + $0x248] sm:$0xff]  ;;  %v7412_v53 = vpop.f32.mrf.mxu3 }
 0x37f   : > { %3713 = vmatpush.msrb.mxu1 %v3684_v50  ;;  %8828 = vst [vmem:[#allocation49_spill] sm:$0xff] %v7412_v53  ;;  %v1258_v53 = vld [vmem:[%s6433_s24 + $0x2b8] sm:$0xff] }
 0x380   : > { %v2639_v45 = vmax.f32 %v2186_v33, 0.0  ;;  %5464 = vmatmul.msk.f32.gmra.mxu0 %vm1374_vm1, %v1254_v63 }
 0x382   : > { %5644 = vmatmul.msk.f32.gmra.mxu2 %vm2852_vm2, %v2639_v45  ;;  %v3683_v45 = vld [vmem:[%s8777_s4 + $0x240] sm:$0xff] }
 0x383   : > { %3714 = vmatpush.msrb.mxu1 %v3683_v45 }
 0x385   : > { %v2188_v62 = vpop.f32.mrf.mxu0 }
 0x386   : > { %v2189_v63 = vadd.f32 %v7328_v26, %v2188_v62  ;;  %v1256_v62 = vld [vmem:[%s6433_s24 + $0x2a8] sm:$0xff]  ;;  %v7419_v32 = vpop.f32.mrf.mxu3 }
 0x387   : > { %8829 = vst [vmem:[#allocation50_spill] sm:$0xff] %v7419_v32 }
 0x388   : > { %v2640_v33 = vmax.f32 %v2189_v63, 0.0  ;;  %5465 = vmatmul.msk.f32.gmra.mxu0 %vm1374_vm1, %v1255_v27  ;;  %v1257_v63 = vld [vmem:[%s6433_s24 + $0x2b0] sm:$0xff] }
 0x38a   : > { %5645 = vmatmul.msk.f32.vlgmr.msra.gmra.mxu3 %vm2852_vm2, %v2640_v33 }
 0x38d   : > { %v2191_v61 = vpop.f32.mrf.mxu0 }
 0x38e   : > { %v2192_v25 = vadd.f32 %v7328_v26, %v2191_v61 }
 0x390   : > { %v2641_v14 = vmax.f32 %v2192_v25, 0.0  ;;  %5466 = vmatmul.msk.f32.gmra.mxu0 %vm1374_vm1, %v1256_v62  ;;  %v7428_v62 = vpop.f32.mrf.mxu3 }
 0x391   : > { %8831 = vst [vmem:[#allocation52_spill] sm:$0xff] %v7428_v62 }
 0x392   : > { %5646 = vmatmul.msk.f32.gmra.mxu3 %vm2852_vm2, %v2641_v14  ;;  %v7426_v14 = vpop.f32.mrf.mxu2 }
 0x393   : > { %8830 = vst [vmem:[#allocation51_spill] sm:$0xff] %v7426_v14 }
 0x395   : > { %v2194_v27 = vpop.f32.mrf.mxu0 }
 0x396   : > { %v2195_v50 = vadd.f32 %v7328_v26, %v2194_v27  ;;  %v3735_v27 = vld [vmem:[%s8777_s4 + $0x278] sm:$0xff] }
 0x397   : > { %3760 = vmatpush.msrb.mxu2 %v3735_v27  ;;  %v3732_v27 = vld [vmem:[%s8777_s4 + $0x260] sm:$0xff] }
 0x398   : > { %v2642_v33 = vmax.f32 %v2195_v50, 0.0  ;;  %5467 = vmatmul.msk.f32.gmra.mxu0 %vm1374_vm1, %v1257_v63  ;;  %v7434_v63 = vpop.f32.mrf.mxu1 }
 0x399   : > { %8832 = vst [vmem:[#allocation53_spill] sm:$0xff] %v7434_v63  ;;  %v1261_v63 = vld [vmem:[%s6433_s24 + $0x2d0] sm:$0xff] }
 0x39a   : > { %5647 = vmatmul.msk.f32.gmra.mxu3 %vm2852_vm2, %v2642_v33  ;;  %v1259_v33 = vld [vmem:[%s6433_s24 + $0x2c0] sm:$0xff]  ;;  %v7449_v62 = vpop.f32.mrf.mxu2 }
 0x39b   : > { %8833 = vst [vmem:[#allocation54_spill] sm:$0xff] %v7449_v62 }
 0x39d   : > { %v2197_v45 = vpop.f32.mrf.mxu0 }
 0x39e   : > { %v2198_v25 = vadd.f32 %v7328_v26, %v2197_v45 }
 0x3a0   : > { %v2643_v61 = vmax.f32 %v2198_v25, 0.0  ;;  %5468 = vmatmul.msk.f32.gmra.mxu0 %vm1374_vm1, %v1258_v53  ;;  %v3734_v53 = vld [vmem:[%s8777_s4 + $0x270] sm:$0xff]  ;;  %v3733_v25 = vld [vmem:[%s8777_s4 + $0x268] sm:$0xff]  ;;  %v7452_v32 = vpop.f32.mrf.mxu1 }
 0x3a1   : > { %3761 = vmatpush.msrb.mxu2 %v3734_v53  ;;  %v1260_v53 = vld [vmem:[%s6433_s24 + $0x2c8] sm:$0xff]  ;;  %8834 = vst [vmem:[#allocation55_spill] sm:$0xff] %v7452_v32 }
 0x3a2   : > { %5648 = vmatmul.msk.f32.gmra.mxu3 %vm2852_vm2, %v2643_v61 }
 0x3a3   : > { %3762 = vmatpush.msrb.mxu2 %v3733_v25 }
 0x3a5   : > { %v2200_v50 = vpop.f32.mrf.mxu0  ;;  %3763 = vmatpush.msrb.mxu2 %v3732_v27 }
 0x3a6   : > { %v2201_v45 = vadd.f32 %v7328_v26, %v2200_v50 }
 0x3a8   : > { %v2644_v61 = vmax.f32 %v2201_v45, 0.0  ;;  %5469 = vmatmul.msk.f32.gmra.mxu0 %vm1374_vm1, %v1259_v33  ;;  %v7457_v33 = vpop.f32.mrf.mxu2  ;;  %v7461_v27 = vpop.f32.mrf.mxu1 }
 0x3a9   : > { %8835 = vst [vmem:[#allocation56_spill] sm:$0xff] %v7457_v33  ;;  %v7470_v33 = vpop.f32.mrf.mxu3 }
 0x3aa   : > { %5649 = vmatmul.msk.f32.vlgmr.msrb.gmra.mxu1 %vm2852_vm2, %v2644_v61  ;;  %8836 = vst [vmem:[#allocation57_spill] sm:$0xff] %v7461_v27 }
 0x3ab   : > { %8838 = vst [vmem:[#allocation59_spill] sm:$0xff] %v7470_v33 }
 0x3ad   : > { %v2203_v50 = vpop.f32.mrf.mxu0 }
 0x3ae   : > { %v2204_v45 = vadd.f32 %v7328_v26, %v2203_v50 }
 0x3b0   : > { %v2645_v14 = vmax.f32 %v2204_v45, 0.0  ;;  %5470 = vmatmul.msk.f32.gmra.mxu0 %vm1374_vm1, %v1260_v53  ;;  %v1262_v45 = vld [vmem:[%s6433_s24 + $0x2d8] sm:$0xff]  ;;  %v7467_v32 = vpop.f32.mrf.mxu2 }
 0x3b1   : > { %8837 = vst [vmem:[#allocation58_spill] sm:$0xff] %v7467_v32 }
 0x3b2   : > { %5650 = vmatmul.msk.f32.gmra.mxu1 %vm2852_vm2, %v2645_v14 }
 0x3b5   : > { %v2206_v25 = vpop.f32.mrf.mxu0 }
 0x3b6   : > { %v2207_v61 = vadd.f32 %v7328_v26, %v2206_v25  ;;  %v7472_v25 = vpop.f32.mrf.mxu1 }
 0x3b7   : > { %8839 = vst [vmem:[#allocation60_spill] sm:$0xff] %v7472_v25  ;;  %v1264_v25 = vld [vmem:[%s6433_s24 + $0x2e8] sm:$0xff] }
 0x3b8   : > { %v2646_v62 = vmax.f32 %v2207_v61, 0.0  ;;  %5471 = vmatmul.msk.f32.gmra.mxu0 %vm1374_vm1, %v1261_v63  ;;  %v3784_v63 = vld [vmem:[%s8777_s4 + $0x298] sm:$0xff]  ;;  %v1263_v61 = vld [vmem:[%s6433_s24 + $0x2e0] sm:$0xff] }
 0x3b9   : > { %3809 = vmatpush.msrb.mxu3 %v3784_v63  ;;  %v3781_v63 = vld [vmem:[%s8777_s4 + $0x280] sm:$0xff] }
 0x3ba   : > { %5651 = vmatmul.msk.f32.gmra.mxu1 %vm2852_vm2, %v2646_v62 }
 0x3bd   : > { %v2209_v50 = vpop.f32.mrf.mxu0 }
 0x3be   : > { %v2210_v53 = vadd.f32 %v7328_v26, %v2209_v50  ;;  %v3783_v50 = vld [vmem:[%s8777_s4 + $0x290] sm:$0xff] }
 0x3bf   : > { %3810 = vmatpush.msrb.mxu3 %v3783_v50 }
 0x3c0   : > { %v2647_v14 = vmax.f32 %v2210_v53, 0.0  ;;  %5472 = vmatmul.msk.f32.gmra.mxu0 %vm1374_vm1, %v1262_v45  ;;  %v7483_v53 = vpop.f32.mrf.mxu2 }
 0x3c1   : > { %8840 = vst [vmem:[#allocation61_spill] sm:$0xff] %v7483_v53 }
 0x3c2   : > { %5652 = vmatmul.msk.f32.gmra.mxu1 %vm2852_vm2, %v2647_v14  ;;  %v3782_v14 = vld [vmem:[%s8777_s4 + $0x288] sm:$0xff] }
 0x3c3   : > { %3811 = vmatpush.msrb.mxu3 %v3782_v14 }
 0x3c5   : > { %v2212_v62 = vpop.f32.mrf.mxu0  ;;  %3812 = vmatpush.msrb.mxu3 %v3781_v63 }
 0x3c6   : > { %v2213_v45 = vadd.f32 %v7328_v26, %v2212_v62  ;;  %v7493_v62 = vpop.f32.mrf.mxu3 }
 0x3c7   : > { %8841 = vst [vmem:[#allocation62_spill] sm:$0xff] %v7493_v62  ;;  %v1266_v62 = vld [vmem:[%s6433_s24 + $0x2f8] sm:$0xff] }
 0x3c8   : > { %v2648_v32 = vmax.f32 %v2213_v45, 0.0  ;;  %5473 = vmatmul.msk.f32.gmra.mxu0 %vm1374_vm1, %v1263_v61  ;;  %v7498_v45 = vpop.f32.mrf.mxu2 }
 0x3c9   : > { %8842 = vst [vmem:[#allocation63_spill] sm:$0xff] %v7498_v45 }
 0x3ca   : > { %5653 = vmatmul.msk.f32.vlgmr.msrb.gmra.mxu2 %vm2852_vm2, %v2648_v32 }
 0x3cd   : > { %v2215_v50 = vpop.f32.mrf.mxu0 }
 0x3ce   : > { %v2216_v27 = vadd.f32 %v7328_v26, %v2215_v50  ;;  %v7501_v61 = vpop.f32.mrf.mxu3 }
 0x3cf   : > { %8843 = vst [vmem:[#allocation64_spill] sm:$0xff] %v7501_v61 }
 0x3d0   : > { %v2649_v33 = vmax.f32 %v2216_v27, 0.0  ;;  %5474 = vmatmul.msk.f32.gmra.mxu0 %vm1374_vm1, %v1264_v25  ;;  %v7507_v50 = vpop.f32.mrf.mxu2  ;;  %v7509_v27 = vpop.f32.mrf.mxu1 }
 0x3d1   : > { %8844 = vst [vmem:[#allocation65_spill] sm:$0xff] %v7507_v50 }
 0x3d2   : > { %5654 = vmatmul.msk.f32.gmra.mxu2 %vm2852_vm2, %v2649_v33  ;;  %8845 = vst [vmem:[#allocation66_spill] sm:$0xff] %v7509_v27 }
 0x3d5   : > { %v2218_v14 = vpop.f32.mrf.mxu0 }
 0x3d6   : > { %v2219_v32 = vadd.f32 %v7328_v26, %v2218_v14  ;;  %v7513_v45 = vpop.f32.mrf.mxu3 }
 0x3d7   : > { %8846 = vst [vmem:[#allocation67_spill] sm:$0xff] %v7513_v45 }
 0x3d8   : > { %v2650_v63 = vmax.f32 %v2219_v32, 0.0  ;;  %5475 = vmatmul.msk.f32.gmra.mxu0 %vm1374_vm1, %v1265_v35  ;;  %v3833_v35 = vld [vmem:[%s8777_s4 + $0x2b8] sm:$0xff]  ;;  %v7520_v14 = vpop.f32.mrf.mxu2  ;;  %v7526_v45 = vpop.f32.mrf.mxu1 }
 0x3d9   : > { %3858 = vmatpush.msra.mxu1 %v3833_v35  ;;  %8847 = vst [vmem:[#allocation68_spill] sm:$0xff] %v7520_v14  ;;  %v3830_v35 = vld [vmem:[%s8777_s4 + $0x2a0] sm:$0xff] }
 0x3da   : > { %5655 = vmatmul.msk.f32.gmra.mxu2 %vm2852_vm2, %v2650_v63  ;;  %v1267_v63 = vld [vmem:[%s6433_s24 + $0x300] sm:$0xff]  ;;  %8848 = vst [vmem:[#allocation69_spill] sm:$0xff] %v7526_v45 }
 0x3dd   : > { %v2221_v25 = vpop.f32.mrf.mxu0 }
 0x3de   : > { %v2222_v33 = vadd.f32 %v7328_v26, %v2221_v25  ;;  %v3832_v25 = vld [vmem:[%s8777_s4 + $0x2b0] sm:$0xff]  ;;  %v7536_v27 = vpop.f32.mrf.mxu3 }
 0x3df   : > { %3859 = vmatpush.msra.mxu1 %v3832_v25  ;;  %8849 = vst [vmem:[#allocation70_spill] sm:$0xff] %v7536_v27  ;;  %v1268_v25 = vld [vmem:[%s6433_s24 + $0x308] sm:$0xff]  ;;  %v1269_v27 = vld [vmem:[%s6433_s24 + $0x310] sm:$0xff]  ;;  %s8467_s24 = scalar_lea.vmem %s8774_s1, %s5379_s21  ;;  %s5290_s21 = sshll.u32 %s5287_s14, 4  ;;  %s5291_s21 = int_to_ptr.hbm [resolvable:$true] %s5290_s21 }
 0x3e0   : > { %v2651_v61 = vmax.f32 %v2222_v33, 0.0  ;;  %5476 = vmatmul.msk.f32.gmra.mxu0 %vm1374_vm1, %v1266_v62  ;;  %v7541_v14 = vpop.f32.mrf.mxu2  ;;  %s5863_s23 = sshra.s32 %s5291_s21, 4  ;;  %s5864_s23 = int_to_ptr.hbm [resolvable:$true] %s5863_s23 }
 0x3e1   : > { %8850 = vst [vmem:[#allocation71_spill] sm:$0xff] %v7541_v14  ;;  %p5870_p3 = scmp.lt.s32.totalorder %s5864_s23, %s8782_s9 }
 0x3e2   : > { %5656 = vmatmul.msk.f32.gmra.mxu2 %vm2852_vm2, %v2651_v61  ;;  %v3831_v61 = vld [vmem:[%s8777_s4 + $0x2a8] sm:$0xff] }
 0x3e3   : > { %3860 = vmatpush.msra.mxu1 %v3831_v61 }
 0x3e5   : > { %v2224_v32 = vpop.f32.mrf.mxu0  ;;  %3861 = vmatpush.msra.mxu1 %v3830_v35 }
 0x3e6   : > { %v2225_v62 = vadd.f32 %v7328_v26, %v2224_v32  ;;  %v7547_v61 = vpop.f32.mrf.mxu3 }
 0x3e7   : > { %8852 = vst [vmem:[#allocation73_spill] sm:$0xff] %v7547_v61 }
 0x3e8   : > { %v2652_v33 = vmax.f32 %v2225_v62, 0.0  ;;  %5477 = vmatmul.msk.f32.gmra.mxu0 %vm1374_vm1, %v1267_v63  ;;  %v7543_v62 = vpop.f32.mrf.mxu1  ;;  %v7552_v53 = vpop.f32.mrf.mxu2 }
 0x3e9   : > { %8851 = vst [vmem:[#allocation72_spill] sm:$0xff] %v7543_v62 }
 0x3ea   : > { %5657 = vmatmul.msk.f32.vlgmr.msrb.gmra.mxu3 %vm2852_vm2, %v2652_v33  ;;  %8853 = vst [vmem:[#allocation74_spill] sm:$0xff] %v7552_v53 }
 0x3ed   : > { %v2227_v32 = vpop.f32.mrf.mxu0 }
 0x3ee   : > { %v2228_v45 = vadd.f32 %v7328_v26, %v2227_v32 }
 0x3f0   : > { %v2653_v63 = vmax.f32 %v2228_v45, 0.0  ;;  %5478 = vmatmul.msk.f32.gmra.mxu0 %vm1374_vm1, %v1268_v25  ;;  %v7554_v32 = vpop.f32.mrf.mxu1  ;;  %v7557_v45 = vpop.f32.mrf.mxu3 }
 0x3f1   : > { %8854 = vst [vmem:[#allocation75_spill] sm:$0xff] %v7554_v32 }
 0x3f2   : > { %5658 = vmatmul.msk.f32.gmra.mxu3 %vm2852_vm2, %v2653_v63  ;;  %8855 = vst [vmem:[#allocation76_spill] sm:$0xff] %v7557_v45 }
 0x3f5   : > { %v2230_v50 = vpop.f32.mrf.mxu0 }
 0x3f6   : > { %v2231_v33 = vadd.f32 %v7328_v26, %v2230_v50  ;;  %v3882_v50 = vld [vmem:[%s8777_s4 + $0x2d8] sm:$0xff] }
 0x3f7   : > { %3907 = vmatpush.msra.mxu2 %v3882_v50  ;;  %v3879_v50 = vld [vmem:[%s8777_s4 + $0x2c0] sm:$0xff] }
 0x3f8   : > { %v2654_v35 = vmax.f32 %v2231_v33, 0.0  ;;  %5479 = vmatmul.msk.f32.gmra.mxu0 %vm1374_vm1, %v1269_v27  ;;  %v7560_v62 = vpop.f32.mrf.mxu1  ;;  %v7566_v27 = vpop.f32.mrf.mxu2 }
 0x3f9   : > { %8856 = vst [vmem:[#allocation77_spill] sm:$0xff] %v7560_v62 }
 0x3fa   : > { %5659 = vmatmul.msk.f32.gmra.mxu3 %vm2852_vm2, %v2654_v35  ;;  %8857 = vst [vmem:[#allocation78_spill] sm:$0xff] %v7566_v27  ;;  %v3881_v35 = vld [vmem:[%s8777_s4 + $0x2d0] sm:$0xff] }
 0x3fb   : > { %3908 = vmatpush.msra.mxu2 %v3881_v35 }
 0x3fd   : > { %v2233_v25 = vpop.f32.mrf.mxu0 }
 0x3fe   : > { %v2234_v63 = vadd.f32 %v7328_v26, %v2233_v25  ;;  %v7572_v25 = vpop.f32.mrf.mxu3 }
 0x3ff   : > { %8858 = vst [vmem:[#allocation79_spill] sm:$0xff] %v7572_v25 }
 0x400   : > { %v2655_v14 = vmax.f32 %v2234_v63, 0.0  ;;  %v7581_v27 = vpop.f32.mrf.mxu1  ;;  %v7583_v62 = vpop.f32.mrf.mxu2 }
 0x401   : > { %8859 = vst [vmem:[#allocation80_spill] sm:$0xff] %v7581_v27 }
 0x402   : > { %5660 = vmatmul.msk.f32.gmra.mxu3 %vm2852_vm2, %v2655_v14  ;;  %v3880_v14 = vld [vmem:[%s8777_s4 + $0x2c8] sm:$0xff]  ;;  %8860 = vst [vmem:[#allocation81_spill] sm:$0xff] %v7583_v62 }
 0x403   : > { %3909 = vmatpush.msra.mxu2 %v3880_v14 }
 0x405   : > { %v2236_v33 = vpop.f32.mrf.mxu0  ;;  %3910 = vmatpush.msra.mxu2 %v3879_v50 }
 0x406   : > { %v2237_v53 = vadd.f32 %v7328_v26, %v2236_v33  ;;  %v7586_v32 = vpop.f32.mrf.mxu3 }
 0x407   : > { %8861 = vst [vmem:[#allocation82_spill] sm:$0xff] %v7586_v32 }
 0x408   : > { %v2656_v63 = vmax.f32 %v2237_v53, 0.0  ;;  %v7589_v53 = vpop.f32.mrf.mxu2  ;;  %v7591_v45 = vpop.f32.mrf.mxu1 }
 0x409   : > { %8862 = vst [vmem:[#allocation83_spill] sm:$0xff] %v7591_v45  ;;  %v3931_v45 = vld [vmem:[%s8777_s4 + $0x2f8] sm:$0xff] }
 0x40a   : > { %5661 = vmatmul.msk.f32.vlgmr.msra.gmra.mxu1 %vm2852_vm2, %v2656_v63  ;;  %3956 = vmatpush.msra.mxu3 %v3931_v45  ;;  %v4027_v45 = vld [vmem:[%s8777_s4 + $0x328] sm:$0xff] }
 0x40d   : > { %v2239_v33 = vpop.f32.mrf.mxu0 }
 0x40e   : > { %v2240_v35 = vadd.f32 %v7328_v26, %v2239_v33  ;;  %v7594_v61 = vpop.f32.mrf.mxu3 }
 0x40f   : > { %8863 = vst [vmem:[#allocation84_spill] sm:$0xff] %v7594_v61  ;;  %v3928_v61 = vld [vmem:[%s8777_s4 + $0x2e0] sm:$0xff] }
 0x410   : > { %v2657_v25 = vmax.f32 %v2240_v35, 0.0  ;;  %v7598_v27 = vpop.f32.mrf.mxu2  ;;  %v7600_v35 = vpop.f32.mrf.mxu1 }
 0x411   : > { %8864 = vst [vmem:[#allocation85_spill] sm:$0xff] %v7600_v35  ;;  %v3929_v35 = vld [vmem:[%s8777_s4 + $0x2e8] sm:$0xff] }
 0x412   : > { %5662 = vmatmul.msk.f32.gmra.mxu1 %vm2852_vm2, %v2657_v25 }
 0x415   : > { %v2242_v14 = vpop.f32.mrf.mxu0 }
 0x416   : > { %v2243_v63 = vadd.f32 %v7328_v26, %v2242_v14  ;;  %v4029_v14 = vld [vmem:[%s8777_s4 + $0x338] sm:$0xff] }
 0x417   : > { %4054 = vmatpush.msrb.mxu2 %v4029_v14 }
 0x418   : > { %v2658_v50 = vmax.f32 %v2243_v63, 0.0  ;;  %v7609_v63 = vpop.f32.mrf.mxu3  ;;  %v7624_v14 = vpop.f32.mrf.mxu1 }
 0x419   : > { %8865 = vst [vmem:[#allocation86_spill] sm:$0xff] %v7609_v63 }
 0x41a   : > { %5663 = vmatmul.msk.f32.gmra.mxu1 %vm2852_vm2, %v2658_v50  ;;  %v3930_v50 = vld [vmem:[%s8777_s4 + $0x2f0] sm:$0xff]  ;;  %8866 = vst [vmem:[#allocation87_spill] sm:$0xff] %v7624_v14 }
 0x41b   : > { %3957 = vmatpush.msra.mxu3 %v3930_v50  ;;  %v7632_v50 = vpop.f32.mrf.mxu2 }
 0x41c   : > { %8867 = vst [vmem:[#allocation88_spill] sm:$0xff] %v7632_v50 }
 0x41d   : > { %v2245_v62 = vpop.f32.mrf.mxu0  ;;  %3958 = vmatpush.msra.mxu3 %v3929_v35 }
 0x41e   : > { %v2246_v33 = vadd.f32 %v7328_v26, %v2245_v62 }
 0x41f   : > { %3959 = vmatpush.msra.mxu3 %v3928_v61  ;;  %v3979_v61 = vld [vmem:[%s8777_s4 + $0x310] sm:$0xff] }
 0x420   : > { %v2659_v25 = vmax.f32 %v2246_v33, 0.0  ;;  %v4028_v33 = vld [vmem:[%s8777_s4 + $0x330] sm:$0xff]  ;;  %v7638_v35 = vpop.f32.mrf.mxu3  ;;  %v7641_v14 = vpop.f32.mrf.mxu1 }
 0x421   : > { %4055 = vmatpush.msrb.mxu2 %v4028_v33  ;;  %v3980_v33 = vld [vmem:[%s8777_s4 + $0x318] sm:$0xff]  ;;  %8868 = vst [vmem:[#allocation89_spill] sm:$0xff] %v7638_v35 }
 0x422   : > { %5664 = vmatmul.msk.f32.gmra.mxu1 %vm2852_vm2, %v2659_v25  ;;  %8869 = vst [vmem:[#allocation90_spill] sm:$0xff] %v7641_v14 }
 0x423   : > { %4056 = vmatpush.msrb.mxu2 %v4027_v45  ;;  %4005 = vmatpush.msrb.mxu1 %v3980_v33 }
 0x425   : > { %v2248_v62 = vpop.f32.mrf.mxu0  ;;  %4006 = vmatpush.msrb.mxu1 %v3979_v61 }
 0x426   : > { %v2249_v25 = vadd.f32 %v7328_v26, %v2248_v62  ;;  %v4026_v62 = vld [vmem:[%s8777_s4 + $0x320] sm:$0xff] }
 0x427   : > { %4057 = vmatpush.msrb.mxu2 %v4026_v62 }
 0x428   : > { %v2660_v63 = vmax.f32 %v2249_v25, 0.0  ;;  %v7649_v50 = vpop.f32.mrf.mxu3 }
 0x429   : > { %8871 = vst [vmem:[#allocation92_spill] sm:$0xff] %v7649_v50 }
 0x42a   : > { %5665 = vmatmul.msk.f32.vlgmr.msra.gmra.mxu2 %vm2852_vm2, %v2660_v63  ;;  %v7647_v63 = vpop.f32.mrf.mxu2 }
 0x42b   : > { %8870 = vst [vmem:[#allocation91_spill] sm:$0xff] %v7647_v63 }
 0x42d   : > { %v2251_v25 = vpop.f32.mrf.mxu0 }
 0x42e   : > { %v2252_v45 = vadd.f32 %v7328_v26, %v2251_v25  ;;  %v3978_v25 = vld [vmem:[%s8777_s4 + $0x308] sm:$0xff] }
 0x42f   : > { %4007 = vmatpush.msrb.mxu1 %v3978_v25 }
 0x430   : > { %v2661_v32 = vmax.f32 %v2252_v45, 0.0  ;;  %v7658_v45 = vpop.f32.mrf.mxu1  ;;  %v7661_v63 = vpop.f32.mrf.mxu3 }
 0x431   : > { %8873 = vst [vmem:[#allocation94_spill] sm:$0xff] %v7658_v45 }
 0x432   : > { %5666 = vmatmul.msk.f32.gmra.mxu2 %vm2852_vm2, %v2661_v32  ;;  %v7656_v32 = vpop.f32.mrf.mxu2  ;;  %8874 = vst [vmem:[#allocation95_spill] sm:$0xff] %v7661_v63  ;;  %v4175_v63 = vld [vmem:[%s8777_s4 + $0x390] sm:$0xff] }
 0x433   : > { %8872 = vst [vmem:[#allocation93_spill] sm:$0xff] %v7656_v32 }
 0x435   : > { %v2254_v62 = vpop.f32.mrf.mxu0 }
 0x436   : > { %v2255_v33 = vadd.f32 %v7328_v26, %v2254_v62  ;;  %v4078_v62 = vld [vmem:[%s8777_s4 + $0x358] sm:$0xff] }
 0x437   : > { %4103 = vmatpush.msrb.mxu3 %v4078_v62  ;;  %v4174_v62 = vld [vmem:[%s8777_s4 + $0x388] sm:$0xff] }
 0x438   : > { %v2662_v35 = vmax.f32 %v2255_v33, 0.0  ;;  %v4176_v33 = vld [vmem:[%s8777_s4 + $0x398] sm:$0xff]  ;;  %v7683_v45 = vpop.f32.mrf.mxu1 }
 0x439   : > { %4201 = vmatpush.msra.mxu2 %v4176_v33  ;;  %8876 = vst [vmem:[#allocation97_spill] sm:$0xff] %v7683_v45  ;;  %v4075_v45 = vld [vmem:[%s8777_s4 + $0x340] sm:$0xff] }
 0x43a   : > { %5667 = vmatmul.msk.f32.gmra.mxu2 %vm2852_vm2, %v2662_v35  ;;  %v3977_v35 = vld [vmem:[%s8777_s4 + $0x300] sm:$0xff]  ;;  %v7675_v25 = vpop.f32.mrf.mxu2 }
 0x43b   : > { %4008 = vmatpush.msrb.mxu1 %v3977_v35  ;;  %8875 = vst [vmem:[#allocation96_spill] sm:$0xff] %v7675_v25  ;;  %4202 = vmatpush.msra.mxu2 %v4175_v63  ;;  %v4173_v63 = vld [vmem:[%s8777_s4 + $0x380] sm:$0xff] }
 0x43d   : > { %v2257_v14 = vpop.f32.mrf.mxu0  ;;  %4203 = vmatpush.msra.mxu2 %v4174_v62 }
 0x43e   : > { %v2258_v61 = vadd.f32 %v7328_v26, %v2257_v14  ;;  %v2285_v14 = vadd.f32 %v7328_v26, %v6649_v52  ;;  %v4076_v52 = vld [vmem:[%s8777_s4 + $0x348] sm:$0xff] }
 0x43f   : > { %4204 = vmatpush.msra.mxu2 %v4173_v63 }
 0x440   : > { %v2663_v50 = vmax.f32 %v2258_v61, 0.0  ;;  %v4077_v61 = vld [vmem:[%s8777_s4 + $0x350] sm:$0xff]  ;;  %v2672_v33 = vmax.f32 %v2285_v14, 0.0  ;;  %v4127_v14 = vld [vmem:[%s8777_s4 + $0x378] sm:$0xff] }
 0x441   : > { %4104 = vmatpush.msrb.mxu3 %v4077_v61  ;;  %v2288_v61 = vadd.f32 %v7328_v26, %v6667_v60  ;;  %4152 = vmatpush.msra.mxu1 %v4127_v14  ;;  %v2291_v60 = vadd.f32 %v7328_v26, %v6685_v4  ;;  %v2294_v4 = vadd.f32 %v7328_v26, %v6714_v21  ;;  %v4225_v21 = vld [vmem:[%s8777_s4 + $0x3b8] sm:$0xff] }
 0x442   : > { %5668 = vmatmul.msk.f32.gmra.mxu2 %vm2852_vm2, %v2663_v50 }
 0x443   : > { %4105 = vmatpush.msrb.mxu3 %v4076_v52  ;;  %v7707_v52 = vpop.f32.mrf.mxu1 }
 0x444   : > { %8878 = vst [vmem:[#allocation99_spill] sm:$0xff] %v7707_v52 }
 0x445   : > { %v2260_v50 = vpop.f32.mrf.mxu0  ;;  %4106 = vmatpush.msrb.mxu3 %v4075_v45  ;;  %v4126_v45 = vld [vmem:[%s8777_s4 + $0x370] sm:$0xff] }
 0x446   : > { %v2261_v35 = vadd.f32 %v7328_v26, %v2260_v50  ;;  %v7698_v50 = vpop.f32.mrf.mxu3  ;;  %4153 = vmatpush.msra.mxu1 %v4126_v45 }
 0x447   : > { %8877 = vst [vmem:[#allocation98_spill] sm:$0xff] %v7698_v50  ;;  %v7710_v50 = vpop.f32.mrf.mxu2 }
 0x448   : > { %v2664_v25 = vmax.f32 %v2261_v35, 0.0 }
 0x44a   : > { %5669 = vmatmul.msk.f32.vlgmr.msra.gmra.mxu3 %vm2852_vm2, %v2664_v25  ;;  %5677 = vmatmul.msk.f32.vlgmr.msrb.gmra.mxu2 %vm2852_vm2, %v2672_v33  ;;  %v2673_v25 = vmax.f32 %v2288_v61, 0.0 }
 0x44b   : > { %v7722_v61 = vpop.f32.mrf.mxu1  ;;  %4250 = vmatpush.msra.mxu3 %v4225_v21 }
 0x44c   : > { %8880 = vst [vmem:[#allocation101_spill] sm:$0xff] %v7722_v61 }
 0x44d   : > { %v2263_v35 = vpop.f32.mrf.mxu0 }
 0x44e   : > { %v2264_v62 = vadd.f32 %v7328_v26, %v2263_v35  ;;  %v7717_v33 = vpop.f32.mrf.mxu3  ;;  %v2674_v35 = vmax.f32 %v2291_v60, 0.0 }
 0x44f   : > { %8879 = vst [vmem:[#allocation100_spill] sm:$0xff] %v7717_v33 }
 0x450   : > { %v2665_v32 = vmax.f32 %v2264_v62, 0.0 }
 0x452   : > { %5670 = vmatmul.msk.f32.gmra.mxu3 %vm2852_vm2, %v2665_v32  ;;  %5678 = vmatmul.msk.f32.gmra.mxu2 %vm2852_vm2, %v2673_v25  ;;  %v7724_v32 = vpop.f32.mrf.mxu2  ;;  %v4125_v25 = vld [vmem:[%s8777_s4 + $0x368] sm:$0xff] }
 0x453   : > { %8881 = vst [vmem:[#allocation102_spill] sm:$0xff] %v7724_v32  ;;  %4154 = vmatpush.msra.mxu1 %v4125_v25  ;;  %v4323_v25 = vld [vmem:[%s8777_s4 + $0x3f8] sm:$0xff] }
 0x454   : > { %4348 = vmatpush.msrb.mxu2 %v4323_v25 }
 0x455   : > { %v2266_v63 = vpop.f32.mrf.mxu0 }
 0x456   : > { %v2267_v14 = vadd.f32 %v7328_v26, %v2266_v63  ;;  %v7731_v45 = vpop.f32.mrf.mxu3 }
 0x458   : > { %v2666_v62 = vmax.f32 %v2267_v14, 0.0  ;;  %v2675_v14 = vmax.f32 %v2294_v4, 0.0  ;;  %v2297_v4 = vadd.f32 %v7328_v26, %v6744_v41  ;;  %v4223_v41 = vld [vmem:[%s8777_s4 + $0x3a8] sm:$0xff] }
 0x45a   : > { %5671 = vmatmul.msk.f32.gmra.mxu3 %vm2852_vm2, %v2666_v62  ;;  %5679 = vmatmul.msk.f32.gmra.mxu2 %vm2852_vm2, %v2674_v35  ;;  %v7736_v61 = vpop.f32.mrf.mxu2  ;;  %v7738_v62 = vpop.f32.mrf.mxu1  ;;  %v4124_v35 = vld [vmem:[%s8777_s4 + $0x360] sm:$0xff]  ;;  %v2676_v21 = vmax.f32 %v2297_v4, 0.0  ;;  %v4274_v4 = vld [vmem:[%s8777_s4 + $0x3d8] sm:$0xff] }
 0x45b   : > { %8882 = vst [vmem:[#allocation103_spill] sm:$0xff] %v7736_v61  ;;  %4155 = vmatpush.msra.mxu1 %v4124_v35  ;;  %v4322_v35 = vld [vmem:[%s8777_s4 + $0x3f0] sm:$0xff]  ;;  %v4222_v61 = vld [vmem:[%s8777_s4 + $0x3a0] sm:$0xff] }
 0x45c   : > { %8883 = vst [vmem:[#allocation104_spill] sm:$0xff] %v7738_v62  ;;  %4349 = vmatpush.msrb.mxu2 %v4322_v35  ;;  %v2324_v35 = vadd.f32 %v7328_v26, %v6938_v17  ;;  %v2303_v17 = vadd.f32 %v7328_v26, %v6790_v13  ;;  %v4272_v13 = vld [vmem:[%s8777_s4 + $0x3c8] sm:$0xff] }
 0x45d   : > { %v2269_v60 = vpop.f32.mrf.mxu0 }
 0x45e   : > { %v2270_v63 = vadd.f32 %v7328_v26, %v2269_v60  ;;  %v7755_v60 = vpop.f32.mrf.mxu3  ;;  %v2685_v32 = vmax.f32 %v2324_v35, 0.0 }
 0x460   : > { %v2667_v33 = vmax.f32 %v2270_v63, 0.0 }
 0x462   : > { %5672 = vmatmul.msk.f32.gmra.mxu3 %vm2852_vm2, %v2667_v33  ;;  %5680 = vmatmul.msk.f32.gmra.mxu2 %vm2852_vm2, %v2675_v14  ;;  %v2321_v33 = vadd.f32 %v7328_v26, %v6924_v40  ;;  %v4224_v14 = vld [vmem:[%s8777_s4 + $0x3b0] sm:$0xff]  ;;  %v4321_v40 = vld [vmem:[%s8777_s4 + $0x3e8] sm:$0xff] }
 0x463   : > { %4251 = vmatpush.msra.mxu3 %v4224_v14  ;;  %4350 = vmatpush.msrb.mxu2 %v4321_v40  ;;  %v7786_v14 = vpop.f32.mrf.mxu1 }
 0x464   : > { %v2684_v52 = vmax.f32 %v2321_v33, 0.0  ;;  %v2300_v33 = vadd.f32 %v7328_v26, %v6765_v57  ;;  %v4273_v57 = vld [vmem:[%s8777_s4 + $0x3d0] sm:$0xff] }
 0x465   : > { %v2272_v63 = vpop.f32.mrf.mxu0  ;;  %4252 = vmatpush.msra.mxu3 %v4223_v41 }
 0x466   : > { %v2273_v62 = vadd.f32 %v7328_v26, %v2272_v63  ;;  %v4320_v63 = vld [vmem:[%s8777_s4 + $0x3e0] sm:$0xff] }
 0x467   : > { %4253 = vmatpush.msra.mxu3 %v4222_v61  ;;  %4351 = vmatpush.msrb.mxu2 %v4320_v63  ;;  %v2327_v61 = vadd.f32 %v7328_v26, %v7015_v12  ;;  %v2282_v12 = vadd.f32 %v7328_v26, %v6631_v42  ;;  %v4271_v42 = vld [vmem:[%s8777_s4 + $0x3c0] sm:$0xff] }
 0x468   : > { %v2668_v25 = vmax.f32 %v2273_v62, 0.0  ;;  %v7781_v62 = vpop.f32.mrf.mxu2 }
 0x469   : > { %8884 = vst [vmem:[#allocation105_spill] sm:$0xff] %v7781_v62 }
 0x46a   : > { %5673 = vmatmul.msk.f32.vlgmr.msrb.gmra.mxu1 %vm2852_vm2, %v2668_v25  ;;  %5681 = vmatmul.msk.f32.vlgmr.msrb.gmra.mxu3 %vm2852_vm2, %v2676_v21  ;;  %v7791_v21 = vpop.f32.mrf.mxu3  ;;  %v2677_v25 = vmax.f32 %v2300_v33, 0.0  ;;  %v2678_v33 = vmax.f32 %v2303_v17, 0.0 }
 0x46b   : > { %5689 = vmatmul.msk.f32.vlgmr.msra.gmra.mxu2 %vm2852_vm2, %v2684_v52  ;;  %4299 = vmatpush.msrb.mxu1 %v4274_v4  ;;  %v7801_v52 = vpop.f32.mrf.mxu1 }
 0x46d   : > { %v2275_v41 = vpop.f32.mrf.mxu0  ;;  %4300 = vmatpush.msrb.mxu1 %v4273_v57 }
 0x46e   : > { %v2276_v40 = vadd.f32 %v7328_v26, %v2275_v41  ;;  %v2686_v41 = vmax.f32 %v2327_v61, 0.0  ;;  %v2671_v61 = vmax.f32 %v2282_v12, 0.0  ;;  %v4469_v12 = vld [vmem:[%s8777_s4 + $0x450] sm:$0xff] }
 0x46f   : > { %4301 = vmatpush.msrb.mxu1 %v4272_v13  ;;  %v2333_v13 = vadd.f32 %v7328_v26, %v7048_v5 }
 0x470   : > { %v2669_v62 = vmax.f32 %v2276_v40, 0.0  ;;  %v7805_v63 = vpop.f32.mrf.mxu2 }
 0x471   : > { %4302 = vmatpush.msrb.mxu1 %v4271_v42 }
 0x472   : > { %5674 = vmatmul.msk.f32.gmra.mxu1 %vm2852_vm2, %v2669_v62  ;;  %5682 = vmatmul.msk.f32.gmra.mxu3 %vm2852_vm2, %v2677_v25  ;;  %v7808_v40 = vpop.f32.mrf.mxu3  ;;  %v2330_v25 = vadd.f32 %v7328_v26, %v7036_v18  ;;  %v4470_v18 = vld [vmem:[%s8777_s4 + $0x458] sm:$0xff] }
 0x473   : > { %5690 = vmatmul.msk.f32.gmra.mxu2 %vm2852_vm2, %v2685_v32  ;;  %v2306_v32 = vadd.f32 %v7328_v26, %v6818_v37  ;;  %v7822_v57 = vpop.f32.mrf.mxu1  ;;  %v4372_v37 = vld [vmem:[%s8777_s4 + $0x418] sm:$0xff] }
 0x474   : > { %4397 = vmatpush.msrb.mxu3 %v4372_v37  ;;  %4495 = vmatpush.msra.mxu2 %v4470_v18  ;;  %v4467_v37 = vld [vmem:[%s8777_s4 + $0x440] sm:$0xff]  ;;  %v4421_v18 = vld [vmem:[%s8777_s4 + $0x438] sm:$0xff] }
 0x475   : > { %v2278_v4 = vpop.f32.mrf.mxu0 }
 0x476   : > { %v2279_v62 = vadd.f32 %v7328_v26, %v2278_v4  ;;  %v2679_v4 = vmax.f32 %v2306_v32, 0.0  ;;  %v2357_v32 = vadd.f32 %v7328_v26, %v7234_v9  ;;  %4496 = vmatpush.msra.mxu2 %v4469_v12  ;;  %v4369_v9 = vld [vmem:[%s8777_s4 + $0x400] sm:$0xff]  ;;  %v2360_v12 = vadd.f32 %v7328_v26, %v7241_v31 }
 0x477   : > { %v2339_v31 = vadd.f32 %v7328_v26, %v7103_v29  ;;  %v2318_v29 = vadd.f32 %v7328_v26, %v6912_v10  ;;  %v4519_v10 = vld [vmem:[%s8777_s4 + $0x478] sm:$0xff] }
 0x478   : > { %v2670_v35 = vmax.f32 %v2279_v62, 0.0  ;;  %v7824_v17 = vpop.f32.mrf.mxu2  ;;  %v2687_v62 = vmax.f32 %v2330_v25, 0.0  ;;  %v4370_v25 = vld [vmem:[%s8777_s4 + $0x408] sm:$0xff]  ;;  %v2696_v42 = vmax.f32 %v2357_v32, 0.0 }
 0x47a   : > { %5675 = vmatmul.msk.f32.gmra.mxu1 %vm2852_vm2, %v2670_v35  ;;  %5683 = vmatmul.msk.f32.gmra.mxu3 %vm2852_vm2, %v2678_v33  ;;  %v7826_v33 = vpop.f32.mrf.mxu3  ;;  %v4371_v35 = vld [vmem:[%s8777_s4 + $0x410] sm:$0xff] }
 0x47b   : > { %5691 = vmatmul.msk.f32.gmra.mxu2 %vm2852_vm2, %v2686_v41  ;;  %v2309_v41 = vadd.f32 %v7328_v26, %v6847_v24  ;;  %v4468_v24 = vld [vmem:[%s8777_s4 + $0x448] sm:$0xff]  ;;  %4398 = vmatpush.msrb.mxu3 %v4371_v35 }
 0x47c   : > { %4497 = vmatpush.msra.mxu2 %v4468_v24  ;;  %v2697_v24 = vmax.f32 %v2360_v12, 0.0 }
 0x47d   : > { %4399 = vmatpush.msrb.mxu3 %v4370_v25 }
 0x47e   : > { %4498 = vmatpush.msra.mxu2 %v4467_v37 }
 0x47f   : > { %4400 = vmatpush.msrb.mxu3 %v4369_v9  ;;  %v2363_v9 = vadd.f32 %v7328_v26, %v7319_v16  ;;  %v2342_v16 = vadd.f32 %v7328_v26, %v7119_v46  ;;  %v4617_v46 = vld [vmem:[%s8777_s4 + $0x4b8] sm:$0xff] }
 0x480   : > { %v7858_v5 = vpop.f32.mrf.mxu2 }
 0x482   : > { %5676 = vmatmul.msk.f32.gmra.mxu1 %vm2852_vm2, %v2671_v61  ;;  %5684 = vmatmul.msk.f32.gmra.mxu3 %vm2852_vm2, %v2679_v4  ;;  %v2680_v61 = vmax.f32 %v2309_v41, 0.0  ;;  %v2688_v4 = vmax.f32 %v2333_v13, 0.0  ;;  %v7873_v35 = vpop.f32.mrf.mxu3  ;;  %v2312_v41 = vadd.f32 %v7328_v26, %v6864_v22  ;;  %v2336_v13 = vadd.f32 %v7328_v26, %v7060_v7  ;;  %v4420_v22 = vld [vmem:[%s8777_s4 + $0x430] sm:$0xff] }
 0x483   : > { %5692 = vmatmul.msk.f32.gmra.mxu2 %vm2852_vm2, %v2687_v62  ;;  %v7860_v62 = vpop.f32.mrf.mxu1  ;;  %v2315_v7 = vadd.f32 %v7328_v26, %v6882_v23  ;;  %v4419_v23 = vld [vmem:[%s8777_s4 + $0x428] sm:$0xff] }
 0x484   : > { %v2681_v32 = vmax.f32 %v2312_v41, 0.0  ;;  %v2689_v25 = vmax.f32 %v2336_v13, 0.0  ;;  %v2698_v41 = vmax.f32 %v2363_v9, 0.0 }
 0x485   : > { %v2682_v37 = vmax.f32 %v2315_v7, 0.0 }
 0x48a   : > { %5685 = vmatmul.msk.f32.vlgmr.msra.gmra.mxu1 %vm2852_vm2, %v2680_v61  ;;  %5693 = vmatmul.msk.f32.vlgmr.msra.gmra.mxu3 %vm2852_vm2, %v2688_v4  ;;  %v7882_v61 = vpop.f32.mrf.mxu2 }
 0x48b   : > { %5701 = vmatmul.msk.f32.vlgmr.msrb.gmra.mxu2 %vm2852_vm2, %v2696_v42  ;;  %4446 = vmatpush.msra.mxu1 %v4421_v18  ;;  %v7884_v4 = vpop.f32.mrf.mxu1  ;;  %v7898_v42 = vpop.f32.mrf.mxu3  ;;  %v2690_v18 = vmax.f32 %v2339_v31, 0.0  ;;  %v4418_v31 = vld [vmem:[%s8777_s4 + $0x420] sm:$0xff] }
 0x48c   : > { %4544 = vmatpush.msra.mxu3 %v4519_v10  ;;  %4642 = vmatpush.msrb.mxu2 %v4617_v46 }
 0x48d   : > { %4447 = vmatpush.msra.mxu1 %v4420_v22  ;;  %v2691_v22 = vmax.f32 %v2342_v16, 0.0 }
 0x48f   : > { %4448 = vmatpush.msra.mxu1 %v4419_v23  ;;  %v4518_v23 = vld [vmem:[%s8777_s4 + $0x470] sm:$0xff] }
 0x490   : > { %4545 = vmatpush.msra.mxu3 %v4518_v23 }
 0x491   : > { %4449 = vmatpush.msra.mxu1 %v4418_v31  ;;  %v4568_v31 = vld [vmem:[%s8777_s4 + $0x498] sm:$0xff] }
 0x492   : > { %5686 = vmatmul.msk.f32.gmra.mxu1 %vm2852_vm2, %v2681_v32  ;;  %5694 = vmatmul.msk.f32.gmra.mxu3 %vm2852_vm2, %v2689_v25  ;;  %v7907_v12 = vpop.f32.mrf.mxu2  ;;  %v2366_v32 = vadd.f32 %v7328_v26, %v7340_v2  ;;  %v7933_v26 = vld [vmem:[%s8776_s3] ss:$0 sm:$0xff] }
 0x493   : > { %5702 = vmatmul.msk.f32.gmra.mxu2 %vm2852_vm2, %v2697_v24  ;;  %v7900_v13 = vpop.f32.mrf.mxu1  ;;  %v7916_v25 = vpop.f32.mrf.mxu3  ;;  %v2683_v24 = vmax.f32 %v2318_v29, 0.0  ;;  %v2345_v2 = vadd.f32 %v7933_v26, %v7126_v36  ;;  %v2369_v9 = vadd.f32 %v7933_v26, %v7347_v8  ;;  %v4616_v36 = vld [vmem:[%s8777_s4 + $0x4b0] sm:$0xff]  ;;  %v4517_v8 = vld [vmem:[%s8777_s4 + $0x468] sm:$0xff]  ;;  %v2348_v10 = vadd.f32 %v7933_v26, %v7133_v48 }
 0x494   : > { %v2699_v7 = vmax.f32 %v2366_v32, 0.0  ;;  %4643 = vmatpush.msrb.mxu2 %v4616_v36  ;;  %4546 = vmatpush.msra.mxu3 %v4517_v8  ;;  %v2372_v46 = vadd.f32 %v7933_v26, %v7354_v51  ;;  %v4567_v48 = vld [vmem:[%s8777_s4 + $0x490] sm:$0xff]  ;;  %v2351_v51 = vadd.f32 %v7933_v26, %v7211_v47  ;;  %v2354_v47 = vadd.f32 %v7933_v26, %v7227_v58  ;;  %v4764_v58 = vld [vmem:[%s8777_s4 + $0x518] sm:$0xff] }
 0x495   : > { %v2692_v16 = vmax.f32 %v2345_v2, 0.0  ;;  %v2700_v32 = vmax.f32 %v2369_v9, 0.0  ;;  %v2396_v2 = vadd.f32 %v7933_v26, %v6786_v11  ;;  %v2693_v23 = vmax.f32 %v2348_v10, 0.0 }
 0x496   : > { %v2701_v36 = vmax.f32 %v2372_v46, 0.0  ;;  %v2375_v11 = vadd.f32 %v7933_v26, %v6625_v38  ;;  %v4566_v38 = vld [vmem:[%s8777_s4 + $0x488] sm:$0xff]  ;;  %v2402_v46 = vadd.f32 %v7933_v26, %v6843_v19  ;;  %v4666_v19 = vld [vmem:[%s8777_s4 + $0x4d8] sm:$0xff] }
 0x497   : > { %v2709_v8 = vmax.f32 %v2396_v2, 0.0 }
 0x49a   : > { %5687 = vmatmul.msk.f32.gmra.mxu1 %vm2852_vm2, %v2682_v37  ;;  %5695 = vmatmul.msk.f32.gmra.mxu3 %vm2852_vm2, %v2690_v18  ;;  %v2393_v18 = vadd.f32 %v7933_v26, %v6761_v56  ;;  %v4615_v56 = vld [vmem:[%s8777_s4 + $0x4a8] sm:$0xff] }
 0x49b   : > { %5703 = vmatmul.msk.f32.gmra.mxu2 %vm2852_vm2, %v2698_v41  ;;  %v7939_v37 = vpop.f32.mrf.mxu1  ;;  %v7943_v41 = vpop.f32.mrf.mxu2 }
 0x49c   : > { %v7957_v29 = vpop.f32.mrf.mxu3  ;;  %4644 = vmatpush.msrb.mxu2 %v4615_v56 }
 0x4a2   : > { %5688 = vmatmul.msk.f32.gmra.mxu1 %vm2852_vm2, %v2683_v24  ;;  %5696 = vmatmul.msk.f32.gmra.mxu3 %vm2852_vm2, %v2691_v22  ;;  %v4516_v24 = vld [vmem:[%s8777_s4 + $0x460] sm:$0xff]  ;;  %v2708_v22 = vmax.f32 %v2393_v18, 0.0 }
 0x4a3   : > { %5704 = vmatmul.msk.f32.gmra.mxu2 %vm2852_vm2, %v2699_v7  ;;  %v4614_v7 = vld [vmem:[%s8777_s4 + $0x4a0] sm:$0xff]  ;;  %4547 = vmatpush.msra.mxu3 %v4516_v24  ;;  %v7979_v18 = vpop.f32.mrf.mxu1  ;;  %v2702_v24 = vmax.f32 %v2375_v11, 0.0  ;;  %v2381_v11 = vadd.f32 %v7933_v26, %v6663_v59  ;;  %v4763_v59 = vld [vmem:[%s8777_s4 + $0x510] sm:$0xff] }
 0x4a4   : > { %4645 = vmatpush.msrb.mxu2 %v4614_v7  ;;  %v7981_v56 = vpop.f32.mrf.mxu3 }
 0x4aa   : > { %5697 = vmatmul.msk.f32.vlgmr.msrb.gmra.mxu1 %vm2852_vm2, %v2692_v16  ;;  %5705 = vmatmul.msk.f32.vlgmr.msrb.gmra.mxu3 %vm2852_vm2, %v2700_v32  ;;  %v2399_v16 = vadd.f32 %v7933_v26, %v6809_v28  ;;  %v2378_v28 = vadd.f32 %v7933_v26, %v6645_v49  ;;  %v4565_v49 = vld [vmem:[%s8777_s4 + $0x480] sm:$0xff] }
 0x4ab   : > { %5713 = vmatmul.msk.f32.vlgmr.msra.gmra.mxu2 %vm2852_vm2, %v2708_v22  ;;  %4593 = vmatpush.msrb.mxu1 %v4568_v31  ;;  %v2694_v22 = vmax.f32 %v2351_v51, 0.0  ;;  %v7997_v7 = vpop.f32.mrf.mxu1  ;;  %v2405_v51 = vadd.f32 %v7933_v26, %v6860_v43  ;;  %v4664_v43 = vld [vmem:[%s8777_s4 + $0x4c8] sm:$0xff] }
 0x4ac   : > { %v2710_v31 = vmax.f32 %v2399_v16, 0.0  ;;  %v8004_v10 = vpop.f32.mrf.mxu3  ;;  %4691 = vmatpush.msrb.mxu3 %v4666_v19  ;;  %4789 = vmatpush.msra.mxu2 %v4764_v58  ;;  %v2429_v16 = vadd.f32 %v7933_v26, %v7058_v30  ;;  %v4762_v30 = vld [vmem:[%s8777_s4 + $0x508] sm:$0xff]  ;;  %v2408_v19 = vadd.f32 %v7933_v26, %v6933_v39  ;;  %v2432_v58 = vadd.f32 %v7933_v26, %v7139_v6 }
 0x4ad   : > { %v7977_v9 = vpop.f32.mrf.mxu2  ;;  %4594 = vmatpush.msrb.mxu1 %v4567_v48  ;;  %v2711_v48 = vmax.f32 %v2402_v46, 0.0  ;;  %v2387_v39 = vadd.f32 %v7933_v26, %v6705_v15  ;;  %v2411_v6 = vadd.f32 %v7933_v26, %v6959_v1  ;;  %v4713_v15 = vld [vmem:[%s8777_s4 + $0x4e8] sm:$0xff]  ;;  %v2390_v1 = vadd.f32 %v7933_v26, %v6737_v34  ;;  %v4712_v34 = vld [vmem:[%s8777_s4 + $0x4e0] sm:$0xff] }
 0x4ae   : > { %4790 = vmatpush.msra.mxu2 %v4763_v59  ;;  %v2720_v46 = vmax.f32 %v2429_v16, 0.0  ;;  %v2721_v59 = vmax.f32 %v2432_v58, 0.0 }
 0x4af   : > { %4595 = vmatpush.msrb.mxu1 %v4566_v38  ;;  %v2704_v38 = vmax.f32 %v2381_v11, 0.0 }
 0x4b0   : > { %4791 = vmatpush.msra.mxu2 %v4762_v30  ;;  %v2435_v30 = vadd.f32 %v7933_v26, %v7155_v20  ;;  %v2414_v20 = vadd.f32 %v7933_v26, %v6983_v54  ;;  %v4911_v54 = vld [vmem:[%s8777_s4 + $0x578] sm:$0xff] }
 0x4b1   : > { %4596 = vmatpush.msrb.mxu1 %v4565_v49  ;;  %v2384_v49 = vadd.f32 %v7933_v26, %v6681_v3  ;;  %v4714_v3 = vld [vmem:[%s8777_s4 + $0x4f0] sm:$0xff] }
 0x4b2   : > { %5698 = vmatmul.msk.f32.gmra.mxu1 %vm2852_vm2, %v2693_v23  ;;  %5706 = vmatmul.msk.f32.gmra.mxu3 %vm2852_vm2, %v2701_v36  ;;  %v2703_v23 = vmax.f32 %v2378_v28, 0.0  ;;  %v2695_v36 = vmax.f32 %v2354_v47, 0.0  ;;  %v2712_v28 = vmax.f32 %v2405_v51, 0.0  ;;  %v4663_v47 = vld [vmem:[%s8777_s4 + $0x4c0] sm:$0xff] }
 0x4b3   : > { %5714 = vmatmul.msk.f32.gmra.mxu2 %vm2852_vm2, %v2709_v8  ;;  %v8015_v8 = vpop.f32.mrf.mxu1  ;;  %v2705_v16 = vmax.f32 %v2384_v49, 0.0 }
 0x4b5   : > { %v7995_v32 = vpop.f32.mrf.mxu2 }
 0x4ba   : > { %5699 = vmatmul.msk.f32.gmra.mxu1 %vm2852_vm2, %v2694_v22  ;;  %5707 = vmatmul.msk.f32.gmra.mxu3 %vm2852_vm2, %v2702_v24  ;;  %v8035_v24 = vpop.f32.mrf.mxu3 }
 0x4bb   : > { %5715 = vmatmul.msk.f32.gmra.mxu2 %vm2852_vm2, %v2710_v31  ;;  %v4665_v31 = vld [vmem:[%s8777_s4 + $0x4d0] sm:$0xff] }
 0x4bc   : > { %4692 = vmatpush.msrb.mxu3 %v4665_v31  ;;  %v2713_v31 = vmax.f32 %v2408_v19, 0.0 }
 0x4bd   : > { %v8013_v2 = vpop.f32.mrf.mxu2 }
 0x4be   : > { %4693 = vmatpush.msrb.mxu3 %v4664_v43 }
 0x4c0   : > { %4694 = vmatpush.msrb.mxu3 %v4663_v47  ;;  %v2706_v47 = vmax.f32 %v2387_v39, 0.0  ;;  %v2441_v39 = vadd.f32 %v7933_v26, %v7169_v55 }
 0x4c2   : > { %5700 = vmatmul.msk.f32.gmra.mxu1 %vm2852_vm2, %v2695_v36  ;;  %5708 = vmatmul.msk.f32.gmra.mxu3 %vm2852_vm2, %v2703_v23  ;;  %v4761_v23 = vld [vmem:[%s8777_s4 + $0x500] sm:$0xff]  ;;  %v8057_v36 = vpop.f32.mrf.mxu1 }
 0x4c3   : > { %5716 = vmatmul.msk.f32.gmra.mxu2 %vm2852_vm2, %v2711_v48  ;;  %v4715_v48 = vld [vmem:[%s8777_s4 + $0x4f8] sm:$0xff] }
 0x4c4   : > { %4792 = vmatpush.msra.mxu2 %v4761_v23  ;;  %v2722_v23 = vmax.f32 %v2435_v30, 0.0  ;;  %v8886_v30 = vld [vmem:[#allocation70_spill] sm:$0xff] }
 0x4c5   : > { %v8037_v22 = vpop.f32.mrf.mxu2 }
 0x4ca   : > { %5709 = vmatmul.msk.f32.vlgmr.msra.gmra.mxu1 %vm2852_vm2, %v2704_v38  ;;  %5717 = vmatmul.msk.f32.vlgmr.msra.gmra.mxu3 %vm2852_vm2, %v2712_v28  ;;  %v8085_v43 = vpop.f32.mrf.mxu1 }
 0x4cb   : > { %5725 = vmatmul.msk.f32.vlgmr.msrb.gmra.mxu2 %vm2852_vm2, %v2720_v46  ;;  %4740 = vmatpush.msra.mxu1 %v4715_v48  ;;  %v2714_v46 = vmax.f32 %v2411_v6, 0.0  ;;  %v2438_v48 = vadd.f32 %v7933_v26, %v7162_v44  ;;  %v4813_v44 = vld [vmem:[%s8777_s4 + $0x538] sm:$0xff] }
 0x4cc   : > { %v8885_v6 = vld [vmem:[#allocation61_spill] sm:$0xff]  ;;  %4838 = vmatpush.msra.mxu3 %v4813_v44  ;;  %4936 = vmatpush.msrb.mxu2 %v4911_v54 }
 0x4cd   : > { %v8071_v11 = vpop.f32.mrf.mxu3  ;;  %v8073_v51 = vpop.f32.mrf.mxu2  ;;  %4741 = vmatpush.msra.mxu1 %v4714_v3  ;;  %v2417_v3 = vadd.f32 %v7933_v26, %v6995_v0  ;;  %v4910_v0 = vld [vmem:[%s8777_s4 + $0x570] sm:$0xff] }
 0x4ce   : > { %4937 = vmatpush.msrb.mxu2 %v4910_v0 }
 0x4cf   : > { %4742 = vmatpush.msra.mxu1 %v4713_v15 }
 0x4d1   : > { %4743 = vmatpush.msra.mxu1 %v4712_v34  ;;  %v2724_v34 = vmax.f32 %v2441_v39, 0.0 }
 0x4d2   : > { %5710 = vmatmul.msk.f32.gmra.mxu1 %vm2852_vm2, %v2705_v16  ;;  %5718 = vmatmul.msk.f32.gmra.mxu3 %vm2852_vm2, %v2713_v31  ;;  %v8109_v58 = vpop.f32.mrf.mxu1  ;;  %v2707_v16 = vmax.f32 %v2390_v1, 0.0  ;;  %v2715_v31 = vmax.f32 %v2414_v20, 0.0  ;;  %v4812_v20 = vld [vmem:[%s8777_s4 + $0x530] sm:$0xff] }
 0x4d3   : > { %5726 = vmatmul.msk.f32.gmra.mxu2 %vm2852_vm2, %v2721_v59  ;;  %v2723_v59 = vmax.f32 %v2438_v48, 0.0  ;;  %4839 = vmatpush.msra.mxu3 %v4812_v20  ;;  %v8891_v20 = vld [vmem:[#allocation73_spill] sm:$0xff] }
 0x4d5   : > { %v8089_v38 = vpop.f32.mrf.mxu3  ;;  %v8091_v28 = vpop.f32.mrf.mxu2 }
 0x4da   : > { %5711 = vmatmul.msk.f32.gmra.mxu1 %vm2852_vm2, %v2706_v47  ;;  %5719 = vmatmul.msk.f32.gmra.mxu3 %vm2852_vm2, %v2714_v46  ;;  %v3096_v47 = vadd.f32 %v8886_v30, %v8885_v6  ;;  %v8887_v46 = vld [vmem:[#allocation47_spill] sm:$0xff]  ;;  %v4908_v6 = vld [vmem:[%s8777_s4 + $0x560] sm:$0xff] }
 0x4db   : > { %5727 = vmatmul.msk.f32.gmra.mxu2 %vm2852_vm2, %v2722_v23  ;;  %v2465_v23 = vadd.f32 %v7933_v26, %v8887_v46 }
 0x4dc   : > { %v3336_v55 = vadd.f32 %v7589_v53, %v3096_v47  ;;  %v4810_v53 = vld [vmem:[%s8777_s4 + $0x520] sm:$0xff]  ;;  %v8889_v47 = vld [vmem:[#allocation36_spill] sm:$0xff] }
 0x4dd   : > { %v8105_v49 = vpop.f32.mrf.mxu3  ;;  %v8107_v19 = vpop.f32.mrf.mxu2  ;;  %v2732_v54 = vmax.f32 %v2465_v23, 0.0  ;;  %v2444_v46 = vadd.f32 %v7933_v26, %v8889_v47  ;;  %v8890_v23 = vld [vmem:[#allocation63_spill] sm:$0xff] }
 0x4de   : > { %v3532_v44 = vadd.f32 %v7731_v45, %v3336_v55  ;;  %v4862_v45 = vld [vmem:[%s8777_s4 + $0x558] sm:$0xff]  ;;  %v8892_v55 = vld [vmem:[#allocation6_spill] sm:$0xff] }
 0x4e0   : > { %v3728_v30 = vadd.f32 %v7900_v13, %v3532_v44  ;;  %v3099_v13 = vadd.f32 %v8891_v20, %v8890_v23 }
 0x4e2   : > { %5712 = vmatmul.msk.f32.gmra.mxu1 %vm2852_vm2, %v2707_v16  ;;  %5720 = vmatmul.msk.f32.gmra.mxu3 %vm2852_vm2, %v2715_v31  ;;  %v4811_v16 = vld [vmem:[%s8777_s4 + $0x528] sm:$0xff]  ;;  %v3924_v0 = vadd.f32 %v7977_v9, %v3728_v30 }
 0x4e3   : > { %5728 = vmatmul.msk.f32.gmra.mxu2 %vm2852_vm2, %v2723_v59  ;;  %v4909_v31 = vld [vmem:[%s8777_s4 + $0x568] sm:$0xff]  ;;  %v2716_v59 = vmax.f32 %v2417_v3, 0.0  ;;  %4840 = vmatpush.msra.mxu3 %v4811_v16  ;;  %v8888_v3 = vld [vmem:[#allocation25_spill] sm:$0xff]  ;;  %v2468_v16 = vadd.f32 %v7933_v26, %v8892_v55 }
 0x4e4   : > { %4938 = vmatpush.msrb.mxu2 %v4909_v31  ;;  %v2420_v39 = vadd.f32 %v7933_v26, %v8888_v3  ;;  %v2725_v3 = vmax.f32 %v2444_v46, 0.0  ;;  %v8896_v46 = vld [vmem:[#allocation76_spill] sm:$0xff] }
 0x4e5   : > { %v8131_v15 = vpop.f32.mrf.mxu3  ;;  %v8133_v1 = vpop.f32.mrf.mxu2  ;;  %4841 = vmatpush.msra.mxu3 %v4810_v53  ;;  %v2733_v23 = vmax.f32 %v2468_v16, 0.0  ;;  %v8898_v16 = vld [vmem:[#allocation88_spill] sm:$0xff] }
 0x4e6   : > { %4939 = vmatpush.msrb.mxu2 %v4908_v6  ;;  %v8893_v6 = vld [vmem:[#allocation26_spill] sm:$0xff] }
 0x4e7   : > { %v8142_v48 = vpop.f32.mrf.mxu1  ;;  %v2423_v30 = vadd.f32 %v7933_v26, %v8893_v6 }
 0x4ea   : > { %5721 = vmatmul.msk.f32.vlgmr.msrb.gmra.mxu1 %vm2852_vm2, %v2716_v59  ;;  %5729 = vmatmul.msk.f32.vlgmr.msrb.gmra.mxu3 %vm2852_vm2, %v2724_v34  ;;  %v3337_v59 = vadd.f32 %v7598_v27, %v3099_v13  ;;  %v4861_v27 = vld [vmem:[%s8777_s4 + $0x550] sm:$0xff]  ;;  %v8897_v13 = vld [vmem:[#allocation7_spill] sm:$0xff] }
 0x4eb   : > { %5737 = vmatmul.msk.f32.vlgmr.msra.gmra.mxu2 %vm2852_vm2, %v2732_v54  ;;  %4887 = vmatpush.msrb.mxu1 %v4862_v45  ;;  %v2717_v54 = vmax.f32 %v2420_v39, 0.0  ;;  %v8894_v45 = vld [vmem:[#allocation37_spill] sm:$0xff] }
 0x4ec   : > { %v3533_v47 = vadd.f32 %v7755_v60, %v3337_v59  ;;  %v2447_v60 = vadd.f32 %v7933_v26, %v8894_v45  ;;  %v8895_v39 = vld [vmem:[#allocation65_spill] sm:$0xff] }
 0x4ed   : > { %v4108_v31 = vpop.f32.mrf.mxu3  ;;  %4888 = vmatpush.msrb.mxu1 %v4861_v27 }
 0x4ee   : > { %v8174_v34 = vadd.f32 %v4108_v31, %v3924_v0  ;;  %v8176_v44 = vpop.f32.mrf.mxu2  ;;  %v3729_v9 = vadd.f32 %v7939_v37, %v3533_v47  ;;  %v3102_v37 = vadd.f32 %v8896_v46, %v8895_v39  ;;  %v2471_v0 = vadd.f32 %v7933_v26, %v8897_v13  ;;  %v8901_v39 = vld [vmem:[#allocation68_spill] sm:$0xff]  ;;  %v8902_v46 = vld [vmem:[#allocation79_spill] sm:$0xff] }
 0x4ef   : > { %v8178_v53 = vpop.f32.mrf.mxu1  ;;  %v2718_v47 = vmax.f32 %v2423_v30, 0.0 }
 0x4f0   : > { %v3925_v20 = vadd.f32 %v7995_v32, %v3729_v9  ;;  %v3338_v31 = vadd.f32 %v8898_v16, %v3102_v37  ;;  %v2734_v6 = vmax.f32 %v2471_v0, 0.0  ;;  %v4860_v32 = vld [vmem:[%s8777_s4 + $0x548] sm:$0xff] }
 0x4f1   : > { %4889 = vmatpush.msrb.mxu1 %v4860_v32  ;;  %v8899_v9 = vld [vmem:[#allocation27_spill] sm:$0xff] }
 0x4f2   : > { %5722 = vmatmul.msk.f32.gmra.mxu1 %vm2852_vm2, %v2717_v54  ;;  %5730 = vmatmul.msk.f32.gmra.mxu3 %vm2852_vm2, %v2725_v3  ;;  %v3534_v27 = vadd.f32 %v7791_v21, %v3338_v31  ;;  %v2426_v30 = vadd.f32 %v7933_v26, %v8899_v9 }
 0x4f3   : > { %5738 = vmatmul.msk.f32.gmra.mxu2 %vm2852_vm2, %v2733_v23  ;;  %v2726_v23 = vmax.f32 %v2447_v60, 0.0  ;;  %v8900_v60 = vld [vmem:[#allocation38_spill] sm:$0xff] }
 0x4f4   : > { %v3730_v45 = vadd.f32 %v7979_v18, %v3534_v27  ;;  %v2450_v21 = vadd.f32 %v7933_v26, %v8900_v60  ;;  %v3105_v18 = vadd.f32 %v8902_v46, %v8901_v39  ;;  %v2719_v27 = vmax.f32 %v2426_v30, 0.0  ;;  %v8905_v60 = vld [vmem:[#allocation59_spill] sm:$0xff]  ;;  %v8906_v39 = vld [vmem:[#allocation66_spill] sm:$0xff] }
 0x4f5   : > { %v4111_v55 = vpop.f32.mrf.mxu3  ;;  %v4859_v46 = vld [vmem:[%s8777_s4 + $0x540] sm:$0xff] }
 0x4f6   : > { %v8198_v59 = vadd.f32 %v4111_v55, %v3925_v20  ;;  %v8200_v54 = vpop.f32.mrf.mxu2  ;;  %v3926_v37 = vadd.f32 %v8013_v2, %v3730_v45  ;;  %v8903_v20 = vld [vmem:[#allocation8_spill] sm:$0xff]  ;;  %v8904_v55 = vld [vmem:[#allocation91_spill] sm:$0xff]  ;;  %v3010_v2 = vadd.f32 %v8906_v39, %v8905_v60  ;;  %4890 = vmatpush.msrb.mxu1 %v4859_v46 }
 0x4f7   : > { %v8202_v3 = vpop.f32.mrf.mxu1  ;;  %v2474_v13 = vadd.f32 %v7933_v26, %v8903_v20  ;;  %v3339_v16 = vadd.f32 %v8904_v55, %v3105_v18  ;;  %v8907_v18 = vld [vmem:[#allocation9_spill] sm:$0xff]  ;;  %v8909_v20 = vld [vmem:[#allocation87_spill] sm:$0xff] }
 0x4f8   : > { %v2477_v30 = vadd.f32 %v7933_v26, %v8907_v18  ;;  %v8910_v55 = vld [vmem:[#allocation17_spill] sm:$0xff]  ;;  %v5056_v46 = vld [vmem:[%s8777_s4 + $0x5c8] sm:$0xff] }
 0x4f9   : > { %v3535_v32 = vadd.f32 %v7808_v40, %v3339_v16  ;;  %v2735_v9 = vmax.f32 %v2474_v13, 0.0  ;;  %v4960_v40 = vld [vmem:[%s8777_s4 + $0x598] sm:$0xff]  ;;  %v3287_v13 = vadd.f32 %v8909_v20, %v3010_v2  ;;  %v2501_v16 = vadd.f32 %v7933_v26, %v8910_v55 }
 0x4fa   : > { %5723 = vmatmul.msk.f32.gmra.mxu1 %vm2852_vm2, %v2718_v47  ;;  %5731 = vmatmul.msk.f32.gmra.mxu3 %vm2852_vm2, %v2726_v23  ;;  %v2736_v18 = vmax.f32 %v2477_v30, 0.0  ;;  %v8913_v55 = vld [vmem:[#allocation69_spill] sm:$0xff]  ;;  %v8914_v30 = vld [vmem:[#allocation10_spill] sm:$0xff] }
 0x4fb   : > { %5739 = vmatmul.msk.f32.gmra.mxu2 %vm2852_vm2, %v2734_v6  ;;  %v2727_v6 = vmax.f32 %v2450_v21, 0.0  ;;  %v3731_v45 = vadd.f32 %v7997_v7, %v3535_v32  ;;  %v5058_v7 = vld [vmem:[%s8777_s4 + $0x5d8] sm:$0xff]  ;;  %v8908_v21 = vld [vmem:[#allocation39_spill] sm:$0xff]  ;;  %4985 = vmatpush.msrb.mxu3 %v4960_v40  ;;  %v5057_v32 = vld [vmem:[%s8777_s4 + $0x5d0] sm:$0xff]  ;;  %v2744_v20 = vmax.f32 %v2501_v16, 0.0 }
 0x4fc   : > { %5083 = vmatpush.msra.mxu2 %v5058_v7  ;;  %v8915_v16 = vld [vmem:[#allocation44_spill] sm:$0xff] }
 0x4fd   : > { %v4114_v0 = vpop.f32.mrf.mxu3 }
 0x4fe   : > { %v8222_v31 = vadd.f32 %v4114_v0, %v3926_v37  ;;  %v8224_v47 = vpop.f32.mrf.mxu2  ;;  %v2453_v37 = vadd.f32 %v7933_v26, %v8908_v21  ;;  %v3927_v0 = vadd.f32 %v8037_v22, %v3731_v45  ;;  %5084 = vmatpush.msra.mxu2 %v5057_v32  ;;  %v4958_v45 = vld [vmem:[%s8777_s4 + $0x588] sm:$0xff]  ;;  %v4957_v21 = vld [vmem:[%s8777_s4 + $0x580] sm:$0xff]  ;;  %v2456_v32 = vadd.f32 %v7933_v26, %v8915_v16 }
 0x4ff   : > { %v8226_v23 = vpop.f32.mrf.mxu1 }
 0x500   : > { %v2728_v40 = vmax.f32 %v2453_v37, 0.0  ;;  %5085 = vmatpush.msra.mxu2 %v5056_v46  ;;  %v2480_v37 = vadd.f32 %v7933_v26, %v8914_v30  ;;  %v2729_v30 = vmax.f32 %v2456_v32, 0.0  ;;  %v8922_v32 = vld [vmem:[#allocation45_spill] sm:$0xff] }
 0x502   : > { %5724 = vmatmul.msk.f32.gmra.mxu1 %vm2852_vm2, %v2719_v27  ;;  %5732 = vmatmul.msk.f32.gmra.mxu3 %vm2852_vm2, %v2727_v6  ;;  %v4959_v6 = vld [vmem:[%s8777_s4 + $0x590] sm:$0xff] }
 0x503   : > { %5740 = vmatmul.msk.f32.gmra.mxu2 %vm2852_vm2, %v2735_v9  ;;  %v8911_v9 = vld [vmem:[#allocation93_spill] sm:$0xff]  ;;  %4986 = vmatpush.msrb.mxu3 %v4959_v6 }
 0x504   : > { %v3483_v60 = vadd.f32 %v8911_v9, %v3287_v13  ;;  %v5055_v13 = vld [vmem:[%s8777_s4 + $0x5c0] sm:$0xff] }
 0x505   : > { %v4117_v27 = vpop.f32.mrf.mxu3  ;;  %4987 = vmatpush.msrb.mxu3 %v4958_v45  ;;  %v8916_v9 = vld [vmem:[#allocation90_spill] sm:$0xff]  ;;  %5086 = vmatpush.msra.mxu2 %v5055_v13  ;;  %v8920_v13 = vld [vmem:[#allocation72_spill] sm:$0xff] }
 0x506   : > { %v8259_v39 = vadd.f32 %v4117_v27, %v3927_v0  ;;  %v8261_v2 = vpop.f32.mrf.mxu2  ;;  %v3679_v7 = vadd.f32 %v7826_v33, %v3483_v60  ;;  %v8912_v0 = vld [vmem:[#allocation62_spill] sm:$0xff]  ;;  %v5009_v33 = vld [vmem:[%s8777_s4 + $0x5b8] sm:$0xff] }
 0x507   : > { %v8263_v22 = vpop.f32.mrf.mxu1  ;;  %v3013_v27 = vadd.f32 %v8913_v55, %v8912_v0  ;;  %4988 = vmatpush.msrb.mxu3 %v4957_v21  ;;  %v8917_v45 = vld [vmem:[#allocation18_spill] sm:$0xff] }
 0x508   : > { %v3875_v6 = vadd.f32 %v8015_v8, %v3679_v7  ;;  %v2504_v46 = vadd.f32 %v7933_v26, %v8917_v45 }
 0x509   : > { %v3288_v60 = vadd.f32 %v8916_v9, %v3013_v27  ;;  %v5008_v9 = vld [vmem:[%s8777_s4 + $0x5b0] sm:$0xff] }
 0x50a   : > { %5733 = vmatmul.msk.f32.vlgmr.msra.gmra.mxu1 %vm2852_vm2, %v2728_v40  ;;  %5741 = vmatmul.msk.f32.vlgmr.msra.gmra.mxu3 %vm2852_vm2, %v2736_v18  ;;  %v4071_v8 = vadd.f32 %v8073_v51, %v3875_v6  ;;  %v8918_v40 = vld [vmem:[#allocation96_spill] sm:$0xff]  ;;  %v2745_v16 = vmax.f32 %v2504_v46, 0.0  ;;  %v8924_v46 = vld [vmem:[#allocation19_spill] sm:$0xff] }
 0x50b   : > { %5749 = vmatmul.msk.f32.vlgmr.msrb.gmra.mxu2 %vm2852_vm2, %v2744_v20  ;;  %5034 = vmatpush.msra.mxu1 %v5009_v33  ;;  %v3484_v7 = vadd.f32 %v8918_v40, %v3288_v60  ;;  %v2737_v20 = vmax.f32 %v2480_v37, 0.0  ;;  %v8919_v51 = vld [vmem:[#allocation64_spill] sm:$0xff]  ;;  %v8921_v37 = vld [vmem:[#allocation11_spill] sm:$0xff]  ;;  %v2459_v60 = vadd.f32 %v7933_v26, %v8922_v32  ;;  %v8928_v32 = vld [vmem:[#allocation46_spill] sm:$0xff] }
 0x50c   : > { %v3016_v6 = vadd.f32 %v8920_v13, %v8919_v51 }
 0x50d   : > { %v4255_v18 = vpop.f32.mrf.mxu3  ;;  %v3680_v27 = vadd.f32 %v7873_v35, %v3484_v7  ;;  %5035 = vmatpush.msra.mxu1 %v5008_v9  ;;  %v2483_v35 = vadd.f32 %v7933_v26, %v8921_v37  ;;  %v2730_v51 = vmax.f32 %v2459_v60, 0.0  ;;  %v8926_v37 = vld [vmem:[#allocation75_spill] sm:$0xff]  ;;  %v2462_v60 = vadd.f32 %v7933_v26, %v8928_v32 }
 0x50e   : > { %v8296_v0 = vadd.f32 %v4255_v18, %v4071_v8  ;;  %v8298_v55 = vpop.f32.mrf.mxu2  ;;  %v8923_v8 = vld [vmem:[#allocation94_spill] sm:$0xff]  ;;  %v2507_v18 = vadd.f32 %v7933_v26, %v8924_v46 }
 0x50f   : > { %v8300_v21 = vpop.f32.mrf.mxu1  ;;  %v3876_v33 = vadd.f32 %v8057_v36, %v3680_v27  ;;  %v3289_v45 = vadd.f32 %v8923_v8, %v3016_v6  ;;  %v8925_v6 = vld [vmem:[#allocation67_spill] sm:$0xff]  ;;  %v8929_v8 = vld [vmem:[#allocation97_spill] sm:$0xff] }
 0x510   : > { %v2746_v9 = vmax.f32 %v2507_v18, 0.0 }
 0x511   : > { %v4072_v36 = vadd.f32 %v8091_v28, %v3876_v33  ;;  %v3485_v7 = vadd.f32 %v7710_v50, %v3289_v45  ;;  %v3019_v28 = vadd.f32 %v8926_v37, %v8925_v6  ;;  %v5007_v50 = vld [vmem:[%s8777_s4 + $0x5a8] sm:$0xff]  ;;  %v2731_v6 = vmax.f32 %v2462_v60, 0.0  ;;  %v8932_v37 = vld [vmem:[#allocation53_spill] sm:$0xff] }
 0x512   : > { %5734 = vmatmul.msk.f32.gmra.mxu1 %vm2852_vm2, %v2729_v30  ;;  %5742 = vmatmul.msk.f32.gmra.mxu3 %vm2852_vm2, %v2737_v20 }
 0x513   : > { %5750 = vmatmul.msk.f32.gmra.mxu2 %vm2852_vm2, %v2745_v16  ;;  %v2738_v16 = vmax.f32 %v2483_v35, 0.0  ;;  %v3681_v13 = vadd.f32 %v7898_v42, %v3485_v7  ;;  %5036 = vmatpush.msra.mxu1 %v5007_v50  ;;  %v8927_v35 = vld [vmem:[#allocation12_spill] sm:$0xff]  ;;  %v3290_v45 = vadd.f32 %v8929_v8, %v3019_v28  ;;  %v8933_v50 = vld [vmem:[#allocation51_spill] sm:$0xff] }
 0x514   : > { %v2486_v42 = vadd.f32 %v7933_v26, %v8927_v35  ;;  %v2924_v35 = vadd.f32 %v8933_v50, %v8932_v37  ;;  %v8939_v37 = vld [vmem:[#allocation103_spill] sm:$0xff] }
 0x515   : > { %v4258_v40 = vpop.f32.mrf.mxu3  ;;  %v3877_v33 = vadd.f32 %v8085_v43, %v3681_v13 }
 0x516   : > { %v8321_v20 = vadd.f32 %v4258_v40, %v4072_v36  ;;  %v8323_v30 = vpop.f32.mrf.mxu2  ;;  %v8930_v36 = vld [vmem:[#allocation20_spill] sm:$0xff]  ;;  %v8931_v40 = vld [vmem:[#allocation102_spill] sm:$0xff] }
 0x517   : > { %v8325_v27 = vpop.f32.mrf.mxu1  ;;  %v4073_v43 = vadd.f32 %v8107_v19, %v3877_v33  ;;  %v2510_v46 = vadd.f32 %v7933_v26, %v8930_v36  ;;  %v3486_v7 = vadd.f32 %v8931_v40, %v3290_v45  ;;  %v8934_v33 = vld [vmem:[#allocation82_spill] sm:$0xff]  ;;  %v8937_v36 = vld [vmem:[#allocation99_spill] sm:$0xff]  ;;  %v8938_v40 = vld [vmem:[#allocation32_spill] sm:$0xff] }
 0x518   : > { %v3238_v32 = vadd.f32 %v8934_v33, %v2924_v35  ;;  %v5006_v45 = vld [vmem:[%s8777_s4 + $0x5a0] sm:$0xff] }
 0x519   : > { %v3682_v28 = vadd.f32 %v7916_v25, %v3486_v7  ;;  %v2747_v19 = vmax.f32 %v2510_v46, 0.0  ;;  %5037 = vmatpush.msra.mxu1 %v5006_v45  ;;  %v5107_v25 = vld [vmem:[%s8777_s4 + $0x5f8] sm:$0xff]  ;;  %v2537_v7 = vadd.f32 %v7933_v26, %v8938_v40  ;;  %v8941_v45 = vld [vmem:[#allocation54_spill] sm:$0xff] }
 0x51a   : > { %5735 = vmatmul.msk.f32.gmra.mxu1 %vm2852_vm2, %v2730_v51  ;;  %5743 = vmatmul.msk.f32.gmra.mxu3 %vm2852_vm2, %v2738_v16  ;;  %v3434_v46 = vadd.f32 %v8937_v36, %v3238_v32 }
 0x51b   : > { %5751 = vmatmul.msk.f32.gmra.mxu2 %vm2852_vm2, %v2746_v9  ;;  %v2739_v9 = vmax.f32 %v2486_v42, 0.0  ;;  %v3878_v8 = vadd.f32 %v8109_v58, %v3682_v28  ;;  %v8935_v42 = vld [vmem:[#allocation13_spill] sm:$0xff]  ;;  %5132 = vmatpush.msra.mxu3 %v5107_v25  ;;  %v2756_v36 = vmax.f32 %v2537_v7, 0.0 }
 0x51c   : > { %v2489_v60 = vadd.f32 %v7933_v26, %v8935_v42  ;;  %v3630_v50 = vadd.f32 %v8939_v37, %v3434_v46  ;;  %v8942_v46 = vld [vmem:[#allocation84_spill] sm:$0xff] }
 0x51d   : > { %v4261_v18 = vpop.f32.mrf.mxu3 }
 0x51e   : > { %v8346_v16 = vadd.f32 %v4261_v18, %v4073_v43  ;;  %v8348_v51 = vpop.f32.mrf.mxu2  ;;  %v8936_v43 = vld [vmem:[#allocation21_spill] sm:$0xff]  ;;  %v4074_v18 = vadd.f32 %v8133_v1, %v3878_v8  ;;  %v5105_v1 = vld [vmem:[%s8777_s4 + $0x5e8] sm:$0xff]  ;;  %v2740_v33 = vmax.f32 %v2489_v60, 0.0  ;;  %v3826_v42 = vadd.f32 %v7957_v29, %v3630_v50  ;;  %v8943_v29 = vld [vmem:[#allocation14_spill] sm:$0xff] }
 0x51f   : > { %v8350_v13 = vpop.f32.mrf.mxu1  ;;  %v2513_v58 = vadd.f32 %v7933_v26, %v8936_v43  ;;  %v8940_v8 = vld [vmem:[#allocation55_spill] sm:$0xff]  ;;  %v5104_v43 = vld [vmem:[%s8777_s4 + $0x5e0] sm:$0xff]  ;;  %v5156_v60 = vld [vmem:[%s8777_s4 + $0x618] sm:$0xff] }
 0x520   : > { %v2927_v25 = vadd.f32 %v8941_v45, %v8940_v8  ;;  %v4022_v40 = vadd.f32 %v8142_v48, %v3826_v42  ;;  %v8946_v50 = vld [vmem:[#allocation33_spill] sm:$0xff] }
 0x521   : > { %v2748_v32 = vmax.f32 %v2513_v58, 0.0  ;;  %v2492_v58 = vadd.f32 %v7933_v26, %v8943_v29  ;;  %v8947_v8 = vld [vmem:[#allocation105_spill] sm:$0xff] }
 0x522   : > { %5736 = vmatmul.msk.f32.gmra.mxu1 %vm2852_vm2, %v2731_v6  ;;  %5744 = vmatmul.msk.f32.gmra.mxu3 %vm2852_vm2, %v2739_v9  ;;  %v5106_v6 = vld [vmem:[%s8777_s4 + $0x5f0] sm:$0xff]  ;;  %v4218_v48 = vadd.f32 %v8176_v44, %v4022_v40  ;;  %v8948_v29 = vld [vmem:[#allocation57_spill] sm:$0xff] }
 0x523   : > { %5752 = vmatmul.msk.f32.gmra.mxu2 %vm2852_vm2, %v2747_v19  ;;  %5133 = vmatpush.msra.mxu3 %v5106_v6  ;;  %v8945_v6 = vld [vmem:[#allocation101_spill] sm:$0xff] }
 0x525   : > { %v4264_v9 = vpop.f32.mrf.mxu3  ;;  %5134 = vmatpush.msra.mxu3 %v5105_v1  ;;  %v2540_v1 = vadd.f32 %v7933_v26, %v8946_v50  ;;  %v8953_v50 = vld [vmem:[#allocation104_spill] sm:$0xff] }
 0x526   : > { %v8378_v35 = vadd.f32 %v4264_v9, %v4074_v18  ;;  %v8380_v28 = vpop.f32.mrf.mxu2  ;;  %v3239_v18 = vadd.f32 %v8942_v46, %v2927_v25  ;;  %v8944_v9 = vld [vmem:[#allocation22_spill] sm:$0xff]  ;;  %v2741_v46 = vmax.f32 %v2492_v58, 0.0  ;;  %v5155_v58 = vld [vmem:[%s8777_s4 + $0x610] sm:$0xff] }
 0x527   : > { %v4304_v19 = vpop.f32.mrf.mxu1  ;;  %5135 = vmatpush.msra.mxu3 %v5104_v43  ;;  %v2516_v7 = vadd.f32 %v7933_v26, %v8944_v9  ;;  %v8949_v9 = vld [vmem:[#allocation56_spill] sm:$0xff] }
 0x528   : > { %v3435_v37 = vadd.f32 %v8945_v6, %v3239_v18  ;;  %v2930_v44 = vadd.f32 %v8949_v9, %v8948_v29  ;;  %v8950_v6 = vld [vmem:[#allocation86_spill] sm:$0xff] }
 0x529   : > { %v2749_v18 = vmax.f32 %v2516_v7, 0.0  ;;  %v8951_v7 = vld [vmem:[#allocation15_spill] sm:$0xff] }
 0x52a   : > { %5745 = vmatmul.msk.f32.vlgmr.msrb.gmra.mxu1 %vm2852_vm2, %v2740_v33  ;;  %5753 = vmatmul.msk.f32.vlgmr.msrb.gmra.mxu3 %vm2852_vm2, %v2748_v32  ;;  %v4316_v33 = vadd.f32 %v4304_v19, %v8174_v34  ;;  %v3631_v45 = vadd.f32 %v8947_v8, %v3435_v37  ;;  %v3240_v34 = vadd.f32 %v8950_v6, %v2930_v44  ;;  %v8952_v37 = vld [vmem:[#allocation23_spill] sm:$0xff]  ;;  %v8956_v6 = vld [vmem:[#allocation58_spill] sm:$0xff] }
 0x52b   : > { %5761 = vmatmul.msk.f32.vlgmr.msra.gmra.mxu2 %vm2852_vm2, %v2756_v36  ;;  %5181 = vmatpush.msrb.mxu1 %v5156_v60  ;;  %v2757_v60 = vmax.f32 %v2540_v1, 0.0 }
 0x52c   : > { %v3827_v40 = vadd.f32 %v7981_v56, %v3631_v45  ;;  %v2495_v56 = vadd.f32 %v7933_v26, %v8951_v7  ;;  %v3436_v1 = vadd.f32 %v8953_v50, %v3240_v34  ;;  %v8958_v7 = vld [vmem:[#allocation16_spill] sm:$0xff]  ;;  %v8960_v50 = vld [vmem:[#allocation35_spill] sm:$0xff] }
 0x52d   : > { %v4402_v32 = vpop.f32.mrf.mxu3  ;;  %5182 = vmatpush.msrb.mxu1 %v5155_v58  ;;  %v8957_v58 = vld [vmem:[#allocation89_spill] sm:$0xff] }
 0x52e   : > { %v8409_v25 = vadd.f32 %v4402_v32, %v4218_v48  ;;  %v4500_v42 = vpop.f32.mrf.mxu2  ;;  %v4023_v19 = vadd.f32 %v8178_v53, %v3827_v40  ;;  %v2519_v48 = vadd.f32 %v7933_v26, %v8952_v37  ;;  %v2742_v44 = vmax.f32 %v2495_v56, 0.0 }
 0x52f   : > { %v8411_v43 = vadd.f32 %v4500_v42, %v4316_v33  ;;  %v4307_v36 = vpop.f32.mrf.mxu1  ;;  %v8954_v33 = vld [vmem:[#allocation34_spill] sm:$0xff]  ;;  %v3632_v42 = vadd.f32 %v7805_v63, %v3436_v1  ;;  %v5154_v63 = vld [vmem:[%s8777_s4 + $0x608] sm:$0xff]  ;;  %v2498_v56 = vadd.f32 %v7933_v26, %v8958_v7  ;;  %v2546_v1 = vadd.f32 %v7933_v26, %v8960_v50 }
 0x530   : > { %v4219_v53 = vadd.f32 %v8200_v54, %v4023_v19  ;;  %v2543_v32 = vadd.f32 %v7933_v26, %v8954_v33  ;;  %v4317_v8 = vadd.f32 %v4307_v36, %v8198_v59  ;;  %v2750_v40 = vmax.f32 %v2519_v48, 0.0  ;;  %5183 = vmatpush.msrb.mxu1 %v5154_v63 }
 0x531   : > { %v3828_v34 = vadd.f32 %v8004_v10, %v3632_v42  ;;  %v8959_v10 = vld [vmem:[#allocation24_spill] sm:$0xff]  ;;  %v2743_v42 = vmax.f32 %v2498_v56, 0.0 }
 0x532   : > { %5746 = vmatmul.msk.f32.gmra.mxu1 %vm2852_vm2, %v2741_v46  ;;  %5754 = vmatmul.msk.f32.gmra.mxu3 %vm2852_vm2, %v2749_v18  ;;  %v2758_v19 = vmax.f32 %v2543_v32, 0.0  ;;  %v2522_v37 = vadd.f32 %v7933_v26, %v8959_v10 }
 0x533   : > { %5762 = vmatmul.msk.f32.gmra.mxu2 %vm2852_vm2, %v2757_v60  ;;  %v8955_v60 = vld [vmem:[#allocation60_spill] sm:$0xff]  ;;  %v4024_v36 = vadd.f32 %v8202_v3, %v3828_v34 }
 0x534   : > { %v2933_v54 = vadd.f32 %v8956_v6, %v8955_v60  ;;  %v5913_v60 = vmov 0   ;;  %v8963_v6 = vld [vmem:[#allocation92_spill] sm:$0xff] }
 0x535   : > { %v4405_v45 = vpop.f32.mrf.mxu3  ;;  %v4220_v3 = vadd.f32 %v8224_v47, %v4024_v36  ;;  %v8961_v47 = vld [vmem:[#allocation77_spill] sm:$0xff]  ;;  %5834 = vset.pattern.permute.xlu0 %v5913_v60  ;;  %5836 = vset.pattern.permute.xlu1 %v5913_v60  ;;  %v8965_v36 = vld [vmem:[#allocation40_spill] sm:$0xff] }
 0x536   : > { %v8435_v46 = vadd.f32 %v4405_v45, %v4219_v53  ;;  %v4503_v18 = vpop.f32.mrf.mxu2  ;;  %v3241_v59 = vadd.f32 %v8957_v58, %v2933_v54  ;;  %v2768_v58 = vld [vmem:[%s8467_s24] sm:$0xff]  ;;  %v2549_v63 = vadd.f32 %v7933_v26, %v8965_v36  ;;  %5838 = vset.pattern.permute.xlu2 %v5913_v60 }
 0x537   : > { %v8437_v29 = vadd.f32 %v4503_v18, %v4317_v8  ;;  %v4310_v9 = vpop.f32.mrf.mxu1  ;;  %2776 = vperm.xlu0 %5834, %v2768_v58  }
 0x538   : > { %v3437_v48 = vadd.f32 %v7786_v14, %v3241_v59  ;;  %v4318_v53 = vadd.f32 %v4310_v9, %v8222_v31  ;;  %v2751_v14 = vmax.f32 %v2522_v37, 0.0 }
 0x53a   : > { %5747 = vmatmul.msk.f32.gmra.mxu1 %vm2852_vm2, %v2742_v44  ;;  %5755 = vmatmul.msk.f32.gmra.mxu3 %vm2852_vm2, %v2750_v40  ;;  %v3633_v32 = vadd.f32 %v7824_v17, %v3437_v48  ;;  %v8962_v40 = vld [vmem:[#allocation71_spill] sm:$0xff]  ;;  %v2759_v17 = vmax.f32 %v2546_v1, 0.0 }
 0x53b   : > { %5763 = vmatmul.msk.f32.gmra.mxu2 %vm2852_vm2, %v2758_v19  ;;  %v3182_v31 = vadd.f32 %v8962_v40, %v8961_v47  ;;  %v5153_v19 = vld [vmem:[%s8777_s4 + $0x600] sm:$0xff]  ;;  %v8969_v47 = vld [vmem:[#allocation29_spill] sm:$0xff] }
 0x53c   : > { %v3829_v9 = vadd.f32 %v8035_v24, %v3633_v32  ;;  %v8964_v24 = vld [vmem:[#allocation28_spill] sm:$0xff]  ;;  %5184 = vmatpush.msrb.mxu1 %v5153_v19  ;;  %v8967_v32 = vld [vmem:[#allocation74_spill] sm:$0xff]  ;;  %v2528_v40 = vadd.f32 %v7933_v26, %v8969_v47 }
 0x53d   : > { %v4408_v33 = vpop.f32.mrf.mxu3  ;;  %v3385_v54 = vadd.f32 %v8963_v6, %v3182_v31  ;;  %v2525_v59 = vadd.f32 %v7933_v26, %v8964_v24  ;;  %v8970_v31 = vld [vmem:[#allocation41_spill] sm:$0xff] }
 0x53e   : > { %v8460_v8 = vadd.f32 %v4408_v33, %v4220_v3  ;;  %v4506_v45 = vpop.f32.mrf.mxu2  ;;  %v4025_v34 = vadd.f32 %v8226_v23, %v3829_v9  ;;  %v2760_v33 = vmax.f32 %v2549_v63, 0.0  ;;  %v2552_v9 = vadd.f32 %v7933_v26, %v8970_v31  ;;  %v8971_v63 = vld [vmem:[#allocation83_spill] sm:$0xff] }
 0x53f   : > { %v8462_v18 = vadd.f32 %v4506_v45, %v4318_v53  ;;  %v4313_v44 = vpop.f32.mrf.mxu1  ;;  %v3581_v23 = vadd.f32 %v7801_v52, %v3385_v54  ;;  %v2752_v50 = vmax.f32 %v2525_v59, 0.0  ;;  %v8966_v52 = vld [vmem:[#allocation80_spill] sm:$0xff]  ;;  %v2753_v19 = vmax.f32 %v2528_v40, 0.0  ;;  %v8979_v40 = vld [vmem:[#allocation31_spill] sm:$0xff] }
 0x540   : > { %v4221_v7 = vadd.f32 %v8261_v2, %v4025_v34  ;;  %v4319_v56 = vadd.f32 %v4313_v44, %v8259_v39  ;;  %v3185_v2 = vadd.f32 %v8967_v32, %v8966_v52  ;;  %v8968_v39 = vld [vmem:[#allocation95_spill] sm:$0xff]  ;;  %v2761_v36 = vmax.f32 %v2552_v9, 0.0 }
 0x541   : > { %v3777_v37 = vadd.f32 %v7858_v5, %v3581_v23  ;;  %v2769_v5 = vld [vmem:[%s8467_s24 + $0x8] sm:$0xff]  ;;  %v8972_v23 = vld [vmem:[#allocation78_spill] sm:$0xff] }
 0x542   : > { %5748 = vmatmul.msk.f32.gmra.mxu1 %vm2852_vm2, %v2743_v42  ;;  %5756 = vmatmul.msk.f32.gmra.mxu3 %vm2852_vm2, %v2751_v14  ;;  %v3386_v44 = vadd.f32 %v8968_v39, %v3185_v2  ;;  %v8976_v39 = vld [vmem:[#allocation85_spill] sm:$0xff]  ;;  %v8980_v9 = vld [vmem:[#allocation43_spill] sm:$0xff] }
 0x543   : > { %5764 = vmatmul.msk.f32.gmra.mxu2 %vm2852_vm2, %v2759_v17  ;;  %v3973_v45 = vadd.f32 %v8071_v11, %v3777_v37  ;;  %2781 = vperm.xlu1 %5836, %v2769_v5   ;;  %v5914_v17 = vmov 1  }
 0x544   : > { %v3582_v11 = vadd.f32 %v7822_v57, %v3386_v44  ;;  %5835 = vset.pattern.permute.xlu0 %v5914_v17  ;;  %v3188_v57 = vadd.f32 %v8972_v23, %v8971_v63  ;;  %v8977_v44 = vld [vmem:[#allocation81_spill] sm:$0xff] }
 0x545   : > { %v4411_v10 = vpop.f32.mrf.mxu3  ;;  %v4169_v14 = vadd.f32 %v8263_v22, %v3973_v45  ;;  %2808 = vperm.xlu0 %5835, %v2768_v58  }
 0x546   : > { %v8492_v48 = vadd.f32 %v4411_v10, %v4221_v7  ;;  %v4509_v3 = vpop.f32.mrf.mxu2  ;;  %v3778_v6 = vadd.f32 %v7882_v61, %v3582_v11  ;;  %v8974_v61 = vld [vmem:[#allocation30_spill] sm:$0xff] }
 0x547   : > { %v8494_v1 = vadd.f32 %v4509_v3, %v4319_v56  ;;  %v4451_v53 = vpop.f32.mrf.mxu1  ;;  %v8973_v56 = vld [vmem:[#allocation98_spill] sm:$0xff]  ;;  %v2531_v37 = vadd.f32 %v7933_v26, %v8974_v61  ;;  %v2770_v61 = vld [vmem:[%s8467_s24 + $0x10] sm:$0xff] }
 0x548   : > { %v4463_v42 = vadd.f32 %v4451_v53, %v8296_v0  ;;  %v4365_v0 = vadd.f32 %v8298_v55, %v4169_v14  ;;  %v3974_v55 = vadd.f32 %v8089_v38, %v3778_v6  ;;  %v3387_v10 = vadd.f32 %v8973_v56, %v3188_v57  ;;  %v8975_v3 = vld [vmem:[#allocation42_spill] sm:$0xff]  ;;  %2786 = vperm.xlu2 %5838, %v2770_v61  }
 0x549   : > { %v2754_v32 = vmax.f32 %v2531_v37, 0.0  ;;  %v3191_v14 = vadd.f32 %v8977_v44, %v8976_v39 }
 0x54a   : > { %5757 = vmatmul.msk.f32.vlgmr.msra.gmra.mxu1 %vm2852_vm2, %v2752_v50  ;;  %5765 = vmatmul.msk.f32.vlgmr.msra.gmra.mxu3 %vm2852_vm2, %v2760_v33  ;;  %v4170_v58 = vadd.f32 %v8300_v21, %v3974_v55  ;;  %v2555_v50 = vadd.f32 %v7933_v26, %v8975_v3  ;;  %v3583_v38 = vadd.f32 %v7860_v62, %v3387_v10 }
 0x54b   : > { %5837 = vset.pattern.permute.xlu1 %v5914_v17 }
 0x54c   : > { %2812 = vperm.xlu1 %5837, %v2769_v5   ;;  %v3779_v21 = vadd.f32 %v7907_v12, %v3583_v38  ;;  %v5848_v12 = vld [vmem:[%s8776_s3] ss:$0 sm:$0xff] }
 0x54d   : > { %v4549_v22 = vpop.f32.mrf.mxu3  ;;  %v2534_v31 = vadd.f32 %v5848_v12, %v8979_v40  ;;  %v2558_v11 = vadd.f32 %v5848_v12, %v8980_v9 }
 0x54e   : > { %v8513_v54 = vadd.f32 %v4549_v22, %v4365_v0  ;;  %v4647_v34 = vpop.f32.mrf.mxu2  ;;  %v3975_v26 = vadd.f32 %v8105_v49, %v3779_v21 }
 0x54f   : > { %v8515_v24 = vadd.f32 %v4647_v34, %v4463_v42  ;;  %v4454_v59 = vpop.f32.mrf.mxu1  ;;  %v2762_v42 = vmax.f32 %v2555_v50, 0.0 }
 0x550   : > { %v4464_v7 = vadd.f32 %v4454_v59, %v8321_v20  ;;  %v4366_v20 = vadd.f32 %v8323_v30, %v4170_v58  ;;  %v8978_v30 = vld [vmem:[#allocation100_spill] sm:$0xff]  ;;  %v4171_v47 = vadd.f32 %v8325_v27, %v3975_v26  ;;  %v2755_v59 = vmax.f32 %v2534_v31, 0.0  ;;  %5839 = vset.pattern.permute.xlu2 %v5914_v17 }
 0x551   : > { %v3388_v5 = vadd.f32 %v8978_v30, %v3191_v14  ;;  %2816 = vperm.xlu2 %5839, %v2770_v61  }
 0x552   : > { %5758 = vmatmul.msk.f32.gmra.mxu1 %vm2852_vm2, %v2753_v19  ;;  %5766 = vmatmul.msk.f32.gmra.mxu3 %vm2852_vm2, %v2761_v36  ;;  %v2763_v36 = vmax.f32 %v2558_v11, 0.0 }
 0x553   : > { %v3584_v49 = vadd.f32 %v7884_v4, %v3388_v5  ;;  %v2771_v4 = vld [vmem:[%s8467_s24 + $0x18] sm:$0xff]  ;;  %s5865_s24 = scalar_lea.hbm %s5864_s23, 32 }
 0x554   : > { %5840 = vset.pattern.permute.xlu1 %v5913_v60  ;;  %p5866_p0 = scmp.ne.s32.totalorder %s5864_s23, %s5865_s24  ;;  %p5871_p4 = scmp.lt.s32.totalorder %s5869_s27, %s5865_s24 }
 0x555   : > { %v4552_v53 = vpop.f32.mrf.mxu3  ;;  %v3780_v0 = vadd.f32 %v7943_v41, %v3584_v49  ;;  %2791 = vperm.xlu1 %5840, %v2771_v4   ;;  %v8981_v41 = vld [vmem:[#allocation48_spill] sm:$0xff] }
 0x556   : > { %v8533_v33 = vadd.f32 %v4552_v53, %v4366_v20  ;;  %v4650_v52 = vpop.f32.mrf.mxu2  ;;  %v2561_v60 = vadd.f32 %v5848_v12, %v8981_v41  ;;  %p5867_p1 = pnand %p5866_p0, %p6006_p6  ;;  %p5872_p5 = por %p5871_p4, %p5870_p3 }
 0x557   : > { %v8535_v2 = vadd.f32 %v4650_v52, %v4464_v7  ;;  %v4457_v45 = vpop.f32.mrf.mxu1  ;;  %v3976_v63 = vadd.f32 %v8131_v15, %v3780_v0 }
 0x558   : > { %v4465_v62 = vadd.f32 %v4457_v45, %v8346_v16  ;;  %v4367_v16 = vadd.f32 %v8348_v51, %v4171_v47  ;;  %v2764_v58 = vmax.f32 %v2561_v60, 0.0  ;;  %p5868_p2 = pneg %p5867_p1 }
 0x559   : > { %v4172_v51 = vadd.f32 %v8350_v13, %v3976_v63  ;;  %v8982_v13 = vld [vmem:[#allocation49_spill] sm:$0xff]  ;;  %2820 = vperm.xlu2 %5839, %v2771_v4   ;;  %v5234_v4 = vld [vmem:[%s8780_s7 + $0x60] sm:$0xff] }
 0x55a   : > { %5759 = vmatmul.msk.f32.gmra.mxu1 %vm2852_vm2, %v2754_v32  ;;  %5767 = vmatmul.msk.f32.gmra.mxu3 %vm2852_vm2, %v2762_v42  ;;  %v2564_v37 = vadd.f32 %v5848_v12, %v8982_v13  ;;  %v5228_v13 = vld [vmem:[%s8780_s7 + $0x30] sm:$0xff]  ;;  %p5873_p7 = pnand %p5872_p5, %p5868_p2 }
 0x55b   : > { %v4368_v57 = vadd.f32 %v8380_v28, %v4172_v51  ;;  %v5233_v51 = vld [vmem:[%s8780_s7 + $0x58] sm:$0xff] }
 0x55c   : > { %v2765_v38 = vmax.f32 %v2564_v37, 0.0 }
 0x55d   : > { %v4555_v27 = vpop.f32.mrf.mxu3 }
 0x55e   : > { %v4563_v22 = vadd.f32 %v4555_v27, %v4367_v16  ;;  %v4653_v6 = vpop.f32.mrf.mxu2 }
 0x55f   : > { %v8554_v34 = vadd.f32 %v4653_v6, %v4465_v62  ;;  %v4460_v19 = vpop.f32.mrf.mxu1 }
 0x560   : > { %v4466_v23 = vadd.f32 %v4460_v19, %v8378_v35 }
 0x562   : > { %5760 = vmatmul.msk.f32.gmra.mxu1 %vm2852_vm2, %v2755_v59  ;;  %5768 = vmatmul.msk.f32.gmra.mxu3 %vm2852_vm2, %v2763_v36  ;;  %v5236_v59 = vld [vmem:[%s8780_s7 + $0x70] sm:$0xff] }
 0x565   : > { %v4558_v55 = vpop.f32.mrf.mxu3 }
 0x566   : > { %v4564_v7 = vadd.f32 %v4558_v55, %v4368_v57  ;;  %v4656_v56 = vpop.f32.mrf.mxu2  ;;  %v5232_v57 = vld [vmem:[%s8780_s7 + $0x50] sm:$0xff] }
 0x567   : > { %v8564_v10 = vadd.f32 %v4656_v56, %v4466_v23  ;;  %v4598_v15 = vpop.f32.mrf.mxu1  ;;  %v5235_v23 = vld [vmem:[%s8780_s7 + $0x68] sm:$0xff] }
 0x568   : > { %v8567_v35 = vadd.f32 %v4598_v15, %v8409_v25  ;;  %v8983_v25 = vld [vmem:[#allocation50_spill] sm:$0xff]  ;;  %v5231_v56 = vld [vmem:[%s8780_s7 + $0x48] sm:$0xff] }
 0x569   : > { %v2567_v53 = vadd.f32 %v5848_v12, %v8983_v25  ;;  %v5230_v15 = vld [vmem:[%s8780_s7 + $0x40] sm:$0xff] }
 0x56a   : > { %5769 = vmatmul.msk.f32.vlgmr.msrb.gmra.mxu1 %vm2852_vm2, %v2764_v58  ;;  %v5229_v58 = vld [vmem:[%s8780_s7 + $0x38] sm:$0xff] }
 0x56b   : > { %v2766_v45 = vmax.f32 %v2567_v53, 0.0 }
 0x56d   : > { %v4696_v3 = vpop.f32.mrf.mxu3 }
 0x56e   : > { %v4708_v50 = vadd.f32 %v4696_v3, %v8411_v43  ;;  %v8984_v43 = vld [vmem:[#allocation52_spill] sm:$0xff] }
 0x56f   : > { %v4601_v28 = vpop.f32.mrf.mxu1 }
 0x570   : > { %v8574_v20 = vadd.f32 %v4601_v28, %v8435_v46  ;;  %v2570_v46 = vadd.f32 %v5848_v12, %v8984_v43  ;;  %v8597_v12 = vpop.f32.mrf.mxu2  ;;  %v5226_v28 = vld [vmem:[%s8780_s7 + $0x20] sm:$0xff] }
 0x572   : > { %5770 = vmatmul.msk.f32.gmra.mxu1 %vm2852_vm2, %v2765_v38  ;;  %v2767_v14 = vmax.f32 %v2570_v46, 0.0  ;;  %v5225_v38 = vld [vmem:[%s8780_s7 + $0x18] sm:$0xff] }
 0x575   : > { %v4699_v21 = vpop.f32.mrf.mxu3 }
 0x576   : > { %v4709_v52 = vadd.f32 %v4699_v21, %v8437_v29  ;;  %v5224_v21 = vld [vmem:[%s8780_s7 + $0x10] sm:$0xff] }
 0x577   : > { %v4604_v32 = vpop.f32.mrf.mxu1 }
 0x578   : > { %v8581_v42 = vadd.f32 %v4604_v32, %v8460_v8  ;;  %v8603_v31 = vpop.f32.mrf.mxu2  ;;  %v5223_v32 = vld [vmem:[%s8780_s7 + $0x8] sm:$0xff] }
 0x57a   : > { %5771 = vmatmul.msk.f32.gmra.mxu1 %vm2852_vm2, %v2766_v45  ;;  %v5222_v45 = vld [vmem:[%s8780_s7] sm:$0xff] }
 0x57d   : > { %v4702_v39 = vpop.f32.mrf.mxu3 }
 0x57e   : > { %v4710_v17 = vadd.f32 %v4702_v39, %v8462_v18 }
 0x57f   : > { %v4607_v44 = vpop.f32.mrf.mxu1 }
 0x580   : > { %v8587_v26 = vadd.f32 %v4607_v44, %v8492_v48  ;;  %v5842_v44 = vld [vmem:[%s8778_s5] ss:$0 sm:$0xff] }
 0x582   : > { %5772 = vmatmul.msk.f32.gmra.mxu1 %vm2852_vm2, %v2767_v14 }
 0x585   : > { %v4705_v29 = vpop.f32.mrf.mxu3 }
 0x586   : > { %v4711_v62 = vadd.f32 %v4705_v29, %v8494_v1 }
 0x587   : > { %v4745_v8 = vpop.f32.mrf.mxu1 }
 0x588   : > { %v8592_v30 = vadd.f32 %v4745_v8, %v8513_v54  ;;  %v8609_v54 = vpop.f32.mrf.mxu2 }
 0x58d   : > { %v8599_v18 = vpop.f32.mrf.mxu3 }
 0x58f   : > { %v4748_v5 = vpop.f32.mrf.mxu1 }
 0x590   : > { %v8595_v47 = vadd.f32 %v4748_v5, %v8533_v33  ;;  %v8620_v6 = vpop.f32.mrf.mxu2  ;;  %v8696_v5 = vld [vmem:[%s8778_s5 + $0x1] ss:$0 sm:$0xff] }
 0x595   : > { %v8605_v9 = vpop.f32.mrf.mxu3 }
 0x597   : > { %v4751_v40 = vpop.f32.mrf.mxu1 }
 0x598   : > { %v8601_v48 = vadd.f32 %v4751_v40, %v4563_v22  ;;  %v5237_v22 = vld [vmem:[%s8780_s7 + $0x78] sm:$0xff]  ;;  %v4941_v41 = vpop.f32.mrf.mxu2 }
 0x599   : > { %5242 = vmatpush.msrb.mxu2 %v5237_v22 }
 0x59b   : > { %5243 = vmatpush.msrb.mxu2 %v5236_v59 }
 0x59d   : > { %v8613_v33 = vpop.f32.mrf.mxu3  ;;  %5244 = vmatpush.msrb.mxu2 %v5235_v23 }
 0x59f   : > { %v4754_v1 = vpop.f32.mrf.mxu1  ;;  %5245 = vmatpush.msrb.mxu2 %v5234_v4 }
 0x5a0   : > { %v8607_v11 = vadd.f32 %v4754_v1, %v4564_v7  ;;  %v8652_v61 = vpop.f32.mrf.mxu2 }
 0x5a1   : > { %5246 = vmatpush.msrb.mxu2 %v5233_v51  ;;  %v4855_v51 = vadd.f32 %v8599_v18, %v8515_v24 }
 0x5a2   : > { %v2787_v59 = vpop.permute.xlu2 %2786 }
 0x5a3   : > { %5247 = vmatpush.msrb.mxu2 %v5232_v57 }
 0x5a5   : > { %v8622_v19 = vpop.f32.mrf.mxu3  ;;  %5248 = vmatpush.msrb.mxu2 %v5231_v56 }
 0x5a7   : > { %v4892_v49 = vpop.f32.mrf.mxu1  ;;  %5249 = vmatpush.msrb.mxu2 %v5230_v15 }
 0x5a8   : > { %v8611_v16 = vadd.f32 %v4892_v49, %v4708_v50  ;;  %v5227_v50 = vld [vmem:[%s8780_s7 + $0x28] sm:$0xff]  ;;  %v8666_v25 = vpop.f32.mrf.mxu2  ;;  %v4806_v49 = vadd.f32 %v8597_v12, %v8567_v35  ;;  %v4807_v35 = vadd.f32 %v8603_v31, %v8574_v20  ;;  %v4953_v12 = vadd.f32 %v4941_v41, %v8592_v30 }
 0x5a9   : > { %5250 = vmatpush.msrb.mxu2 %v5229_v58  ;;  %v2777_v43 = vpop.permute.xlu0 %2776  ;;  %v2797_v20 = vmul.f32 %v5842_v44, %v2787_v59 }
 0x5aa   : > { %v2795_v8 = vmul.f32 %v5842_v44, %v2777_v43 }
 0x5ab   : > { %5251 = vmatpush.msrb.mxu2 %v5228_v13 }
 0x5ad   : > { %v4990_v60 = vpop.f32.mrf.mxu3  ;;  %5252 = vmatpush.msrb.mxu2 %v5227_v50 }
 0x5ae   : > { %v5002_v23 = vadd.f32 %v4990_v60, %v4806_v49 }
 0x5af   : > { %v4895_v27 = vpop.f32.mrf.mxu1  ;;  %5253 = vmatpush.msrb.mxu2 %v5226_v28 }
 0x5b0   : > { %v8615_v0 = vadd.f32 %v4895_v27, %v4709_v52  ;;  %v8679_v39 = vpop.f32.mrf.mxu2 }
 0x5b1   : > { %5254 = vmatpush.msrb.mxu2 %v5225_v38 }
 0x5b3   : > { %5255 = vmatpush.msrb.mxu2 %v5224_v21 }
 0x5b5   : > { %v4993_v37 = vpop.f32.mrf.mxu3  ;;  %5256 = vmatpush.msrb.mxu2 %v5223_v32  ;;  %v2782_v14 = vpop.permute.xlu1 %2781 }
 0x5b6   : > { %v2796_v57 = vmul.f32 %v5842_v44, %v2782_v14  ;;  %v5003_v24 = vadd.f32 %v4993_v37, %v4807_v35  ;;  %v4954_v37 = vadd.f32 %v8652_v61, %v8595_v47 }
 0x5b7   : > { %v4898_v36 = vpop.f32.mrf.mxu1  ;;  %5257 = vmatpush.msrb.mxu2 %v5222_v45  ;;  %v2809_v40 = vpop.permute.xlu0 %2808 }
 0x5b8   : > { %v8627_v63 = vadd.f32 %v4898_v36, %v4710_v17  ;;  %v5088_v1 = vpop.f32.mrf.mxu2  ;;  %v2824_v22 = vmul.f32 %v8696_v5, %v2809_v40  ;;  %v2817_v45 = vpop.permute.xlu2 %2816 }
 0x5b9   : > { %v5100_v50 = vadd.f32 %v5088_v1, %v8611_v16  ;;  %v4808_v1 = vadd.f32 %v8609_v54, %v8581_v42 }
 0x5bd   : > { %v4996_v52 = vpop.f32.mrf.mxu3 }
 0x5be   : > { %v2813_v15 = vpop.permute.xlu1 %2812  ;;  %v5004_v59 = vadd.f32 %v4996_v52, %v4808_v1  ;;  %v4809_v52 = vadd.f32 %v8620_v6, %v8587_v26 }
 0x5bf   : > { %v4901_v55 = vpop.f32.mrf.mxu1  ;;  %v2825_v60 = vmul.f32 %v8696_v5, %v2813_v15 }
 0x5c0   : > { %v8641_v7 = vadd.f32 %v4901_v55, %v4711_v62  ;;  %v8691_v62 = vld [vmem:[%s8779_s6] ss:$0 sm:$0xff]  ;;  %v5091_v21 = vpop.f32.mrf.mxu2 }
 0x5c1   : > { %v2802_v27 = vadd.f32 %v8691_v62, %v2795_v8  ;;  %v2803_v28 = vadd.f32 %v8691_v62, %v2796_v57  ;;  %v5101_v49 = vadd.f32 %v5091_v21, %v8615_v0  ;;  %v2821_v57 = vpop.permute.xlu2 %2820 }
 0x5c3   : > { %v2828_v55 = vadd.f32 %v2824_v22, %v2802_v27  ;;  %v2829_v31 = vadd.f32 %v2825_v60, %v2803_v28  ;;  %v2804_v27 = vadd.f32 %v8691_v62, %v2797_v20  ;;  %v4858_v28 = vadd.f32 %v8622_v19, %v8564_v10 }
 0x5c5   : > { %v8681_v17 = vpop.f32.mrf.mxu3 }
 0x5c6   : > { %v5005_v35 = vadd.f32 %v8681_v17, %v4809_v52 }
 0x5c7   : > { %v5039_v3 = vpop.f32.mrf.mxu1  ;;  %v2792_v22 = vpop.permute.xlu1 %2791 }
 0x5c8   : > { %v5051_v58 = vadd.f32 %v5039_v3, %v4855_v51  ;;  %v4856_v3 = vadd.f32 %v8605_v9, %v8535_v2  ;;  %v2826_v2 = vmul.f32 %v8696_v5, %v2817_v45  ;;  %v2798_v51 = vmul.f32 %v5842_v44, %v2792_v22 }
 0x5c9   : > { %v2827_v44 = vmul.f32 %v8696_v5, %v2821_v57 }
 0x5ca   : > { %v2830_v54 = vadd.f32 %v2826_v2, %v2804_v27 }
 0x5cd   : > { %v5137_v36 = vpop.f32.mrf.mxu3 }
 0x5ce   : > { %v5149_v18 = vadd.f32 %v5137_v36, %v4953_v12 }
 0x5cf   : > { %v5042_v53 = vpop.f32.mrf.mxu1 }
 0x5d0   : > { %v5052_v16 = vadd.f32 %v5042_v53, %v4856_v3 }
 0x5d5   : > { %v5140_v43 = vpop.f32.mrf.mxu3 }
 0x5d6   : > { %v5150_v36 = vadd.f32 %v5140_v43, %v4954_v37 }
 0x5d7   : > { %v8677_v46 = vpop.f32.mrf.mxu1 }
 0x5dd   : > { %v5143_v0 = vpop.f32.mrf.mxu3 }
 0x5df   : > { %v8686_v29 = vpop.f32.mrf.mxu1 }
 0x5e5   : > { %v5146_v5 = vpop.f32.mrf.mxu3 }
 0x5e7   : > { %v5186_v4 = vpop.f32.mrf.mxu1 }
 0x5e8   : > { %v5198_v56 = vadd.f32 %v5186_v4, %v5002_v23  ;;  %v4857_v23 = vadd.f32 %v8613_v33, %v8554_v34  ;;  %v5094_v4 = vpop.f32.mrf.mxu2  ;;  %v2805_v33 = vadd.f32 %v8691_v62, %v2798_v51 }
 0x5e9   : > { %v5102_v34 = vadd.f32 %v5094_v4, %v8627_v63  ;;  %v5054_v63 = vadd.f32 %v8686_v29, %v4858_v28  ;;  %v5845_v29 = vld [vmem:[%s8781_s8] ss:$0 sm:$0xff] }
 0x5ea   : > { %v5202_v13 = vadd.f32 %v5198_v56, %v2828_v55  ;;  %v5053_v55 = vadd.f32 %v8677_v46, %v4857_v23  ;;  %v2831_v26 = vadd.f32 %v2827_v44, %v2805_v33 }
 0x5ec   : > { %v5206_v38 = vadd.f32 %v5202_v13, %v5051_v58  ;;  %v4955_v58 = vadd.f32 %v8666_v25, %v8601_v48 }
 0x5ee   : > { %v5210_v32 = vadd.f32 %v5206_v38, %v5100_v50  ;;  %v5151_v12 = vadd.f32 %v5143_v0, %v4955_v58  ;;  %v4956_v38 = vadd.f32 %v8679_v39, %v8607_v11 }
 0x5ef   : > { %v5189_v14 = vpop.f32.mrf.mxu1 }
 0x5f0   : > { %v5214_v30 = vadd.f32 %v5210_v32, %v5149_v18  ;;  %v5199_v41 = vadd.f32 %v5189_v14, %v5003_v24  ;;  %v5097_v25 = vpop.f32.mrf.mxu2  ;;  %v5152_v24 = vadd.f32 %v5146_v5, %v4956_v38 }
 0x5f1   : > { %v5103_v17 = vadd.f32 %v5097_v25, %v8641_v7 }
 0x5f2   : > { %v5218_v8 = vmax.f32 %v5214_v30, 0.0  ;;  %v5203_v40 = vadd.f32 %v5199_v41, %v2829_v31 }
 0x5f4   : > { %v5207_v9 = vadd.f32 %v5203_v40, %v5052_v16  ;;  %5258 = vmatmul.f32.vlgmr.msrb.gmra.mxu2 %v5218_v8 }
 0x5f6   : > { %v5211_v53 = vadd.f32 %v5207_v9, %v5101_v49 }
 0x5f7   : > { %v5192_v42 = vpop.f32.mrf.mxu1 }
 0x5f8   : > { %v5200_v47 = vadd.f32 %v5192_v42, %v5004_v59  ;;  %v5215_v61 = vadd.f32 %v5211_v53, %v5150_v36 }
 0x5fa   : > { %v5204_v56 = vadd.f32 %v5200_v47, %v2830_v54  ;;  %v5219_v15 = vmax.f32 %v5215_v61, 0.0 }
 0x5fc   : > { %v5208_v13 = vadd.f32 %v5204_v56, %v5053_v55  ;;  %5261 = vmatmul.f32.gmra.mxu2 %v5219_v15 }
 0x5fe   : > { %v5212_v46 = vadd.f32 %v5208_v13, %v5102_v34 }
 0x5ff   : > { %v5195_v50 = vpop.f32.mrf.mxu1 }
 0x600   : > { %v5201_v6 = vadd.f32 %v5195_v50, %v5005_v35  ;;  %v5216_v48 = vadd.f32 %v5212_v46, %v5151_v12 }
 0x602   : > { %v5205_v62 = vadd.f32 %v5201_v6, %v2831_v26  ;;  %v5220_v60 = vmax.f32 %v5216_v48, 0.0 }
 0x604   : > { %v5209_v21 = vadd.f32 %v5205_v62, %v5054_v63  ;;  %5264 = vmatmul.f32.gmra.mxu2 %v5220_v60 }
 0x606   : > { %v5213_v10 = vadd.f32 %v5209_v21, %v5103_v17 }
 0x608   : > { %v5217_v19 = vadd.f32 %v5213_v10, %v5152_v24 }
 0x60a   : > { %v5221_v18 = vmax.f32 %v5217_v19, 0.0 }
 0x60c   : > { %5267 = vmatmul.f32.gmra.mxu2 %v5221_v18 }
 0x677   : > { %v5259_v32 = vpop.f32.mrf.mxu2 }
 0x678   : > { %v5260_v45 = vadd.f32 %v5845_v29, %v5259_v32 }
 0x67a   : > { %5271 = vst [vmem:[%s1162_s26] sm:$0xff] %v5260_v45 }
 0x67f   : > { %v5262_v11 = vpop.f32.mrf.mxu2 }
 0x680   : > { %v5263_v7 = vadd.f32 %v5845_v29, %v5262_v11 }
 0x682   : > { %5272 = vst [vmem:[%s1162_s26 + $0x8] sm:$0xff] %v5263_v7 }
 0x687   : > { %v5265_v39 = vpop.f32.mrf.mxu2 }
 0x688   : > { %v5266_v3 = vadd.f32 %v5845_v29, %v5265_v39 }
 0x68a   : > { %5273 = vst [vmem:[%s1162_s26 + $0x10] sm:$0xff] %v5266_v3 }
 0x68f   : > { %v5268_v43 = vpop.f32.mrf.mxu2 }
 0x690   : > { %v5269_v14 = vadd.f32 %v5845_v29, %v5268_v43 }
 0x692   : > { %5274 = vst [vmem:[%s1162_s26 + $0x18] sm:$0xff] %v5269_v14 }
 0x693   : > { %5876 = shalt.err (!%p5873_p7)
}
 0x694   : > { %s5915_s17 = smov 128   ;;  %s5916_s26 = smov 8  }
 0x695   : > { %5791 = dma.vmem_to_hbm [thread:$0]  (%p6006_p6), %s5289_s16, 512, %s5291_s21, %s5276_s22, %s5915_s17, %s5915_s17, %s5916_s26  }
 0x696 PF: > { %s5305_s14 = sand.u32 1, %s5899_s30   ;;  %p5794_p10 = pnand %p5373_p9, %p6010_p8 }
 0x697   : > { %s5306_s13 = scalar_lea.sflag [#allocation4], %s5305_s14 }
 0x698   : > { %p5795_p11 = pneg %p5794_p10 }
 0x69a   : > { %5894 = dma.done.wait (%p5795_p11), %s5306_s13, 512  }
 0x69b   : > { %5896 = vsyncadd (%p5795_p11), %s5306_s13, 4294966784  ;;  %p19_p12 = scmp.ge.s32.totalorder %s5992_s15, 4   ;;  %s8985_s30 = smov %s5903_s10 }
 0x69c   : > { %s8986_s10 = smov %s5907_s11  ;;  %s8987_s11 = smov %s6004_s18 }
 0x69d   : > { %s8988_s12 = smov %s5992_s15  ;;  %21 = sbr.rel (!%p19_p12) target bundleno = 3 (0x3), region = 137 }
 0x6a2   :  { %5312 = vsyncpa [#allocation4], 1 }
 0x6a3   :  { %5314 = vsyncpa [#allocation4 + $0x1], 1 }

// kernel: tpu_custom_call.1
= control target key start
LH: loop header
LB: loop body
LE: loop exit
PB: predicated region body
PF: predicated region fallthrough
CT: control target
= control target key end

     0   :  { %14 = vsyncpa [#allocation4], 0  ;;  %s8773_s0 = inlined_call_operand.vmem [shape: f32[49,64,18], index: 0, kind: input, shape index: {}]   ;;  %s8774_s1 = inlined_call_operand.vmem [shape: f32[64,2], index: 1, kind: input, shape index: {}]   ;;  %s8775_s2 = inlined_call_operand.vmem [shape: f32[18,32], index: 2, kind: input, shape index: {}]   ;;  %s8776_s3 = inlined_call_operand.vmem [shape: f32[1,32], index: 3, kind: input, shape index: {}]   ;;  %s8777_s4 = inlined_call_operand.vmem [shape: f32[1568,128], index: 4, kind: input, shape index: {}]   ;;  %s8778_s5 = inlined_call_operand.vmem [shape: f32[2,128], index: 5, kind: input, shape index: {}]   ;;  %s8779_s6 = inlined_call_operand.vmem [shape: f32[1,128], index: 6, kind: input, shape index: {}]   ;;  %s8780_s7 = inlined_call_operand.vmem [shape: f32[128,128], index: 7, kind: input, shape index: {}]   ;;  %s8781_s8 = inlined_call_operand.vmem [shape: f32[1,128], index: 8, kind: input, shape index: {}]   ;;  %s8782_s9 = inlined_call_operand.hbm [shape: f32[64,128], index: 9, kind: output, shape index: {}]  }
   0x1   :  { %16 = vsyncpa [#allocation4 + $0x1], 0  ;;  %s5967_s30 = smov 0   ;;  %s5969_s10 = smov 0  }
   0x2   :  { %s5971_s11 = smov 0   ;;  %s5973_s12 = smov 0  }
   0x3 LB: > { %s5988_s13 = sadd.s32 4294967295, %s5911_s12   ;;  %s5371_s14 = sadd.s32 4294967294, %s5911_s12   ;;  %s5911_s12 = sphi %s5973_s12, %s8988_s12   ;;  %s5907_s11 = sphi %s5971_s11, %s8987_s11   ;;  %s5903_s10 = sphi %s5969_s10, %s8986_s10   ;;  %s5899_s30 = sphi %s5967_s30, %s8985_s30  }
   0x4   : > { %s5992_s15 = sadd.s32 1, %s5911_s12   ;;  %s29_s16 = sadd.s32 1, %s5907_s11 }
   0x5   : > { %s26_s17 = ssub.s32 %s5911_s12, %s5992_s15  ;;  %p36_p0 = scmp.ne.s32.totalorder %s5907_s11, %s5903_s10 }
   0x6   : > { %p27_p1 = scmp.eq.s32.totalorder %s26_s17, 0  ;;  %p37_p2 = scmp.eq.s32.totalorder %s5911_s12, 0 }
   0x7   : > { %p239_p3 = scmp.eq.s32.totalorder %s5988_s13, 1  ;;  %p244_p4 = scmp.ne.s32.totalorder %s5903_s10, %s5899_s30 }
   0x8   : > { %s6004_s18 = scalar_select %p27_p1, %s5907_s11, %s29_s16  }
   0x9   : > { %p38_p5 = por %p37_p2, %p36_p0  ;;  %p6006_p6 = por %p239_p3, %p36_p0 }
   0xa   : > { %p245_p7 = scmp.eq.s32.totalorder %s5371_s14, 1  ;;  %p5373_p9 = scmp.ge.s32.totalorder %s5911_s12, 2 }
   0xc   : > { %p6010_p8 = por %p245_p7, %p244_p4  ;;  %282 = sbr.rel (%p5373_p9) target bundleno = 217 (0xd9), region = 44 }
  0x11   : > { %285 = sbr.rel (!%p38_p5) target bundleno = 217 (0xd9), region = 48  ;;  %s287_s21 = sand.u32 (%p38_p5), 1, %s5907_s11  }
  0x12   : > { %s5778_s22 = sshll.u32 (%p38_p5), %s5911_s12, 5  ;;  %s5789_s23 = smul.u32 (%p38_p5), 1568, %s287_s21 }
  0x13   : > { %s6022_s26 = scalar_lea.vmem (%p38_p5), %s8773_s0, %s5778_s22 }
  0x14   : > { %v711_v0 = vld [vmem:[%s6022_s26] sm:$0xff] (%p38_p5)  ;;  %v713_v1 = vld [vmem:[%s6022_s26 + $0x8] sm:$0xff] (%p38_p5)  ;;  %v715_v2 = vld [vmem:[%s6022_s26 + $0x10] sm:$0xff] (%p38_p5)  ;;  %s6027_s27 = scalar_lea.vmem (%p38_p5), [#allocation2], %s5789_s23 }
  0x15   : > { %712 = vst [vmem:[%s6027_s27] sm:$0xff] (%p38_p5), %v711_v0  ;;  %v717_v3 = vld [vmem:[%s6022_s26 + $0x18] sm:$0xff] (%p38_p5)  ;;  %v719_v4 = vld [vmem:[%s6022_s26 + $0x40] sm:$0xff] (%p38_p5)  ;;  %v721_v5 = vld [vmem:[%s6022_s26 + $0x48] sm:$0xff] (%p38_p5) }
  0x16   : > { %714 = vst [vmem:[%s6027_s27 + $0x8] sm:$0xff] %v713_v1  ;;  %v723_v6 = vld [vmem:[%s6022_s26 + $0x50] sm:$0xff]  ;;  %v725_v7 = vld [vmem:[%s6022_s26 + $0x58] sm:$0xff]  ;;  %v727_v8 = vld [vmem:[%s6022_s26 + $0x80] sm:$0xff] }
  0x17   : > { %716 = vst [vmem:[%s6027_s27 + $0x10] sm:$0xff] %v715_v2  ;;  %v729_v9 = vld [vmem:[%s6022_s26 + $0x88] sm:$0xff]  ;;  %v731_v10 = vld [vmem:[%s6022_s26 + $0x90] sm:$0xff]  ;;  %v733_v11 = vld [vmem:[%s6022_s26 + $0x98] sm:$0xff] }
  0x18   : > { %718 = vst [vmem:[%s6027_s27 + $0x18] sm:$0xff] %v717_v3  ;;  %v735_v12 = vld [vmem:[%s6022_s26 + $0xc0] sm:$0xff]  ;;  %v737_v13 = vld [vmem:[%s6022_s26 + $0xc8] sm:$0xff]  ;;  %v739_v14 = vld [vmem:[%s6022_s26 + $0xd0] sm:$0xff] }
  0x19   : > { %720 = vst [vmem:[%s6027_s27 + $0x20] sm:$0xff] %v719_v4  ;;  %v741_v15 = vld [vmem:[%s6022_s26 + $0xd8] sm:$0xff]  ;;  %v743_v16 = vld [vmem:[%s6022_s26 + $0x100] sm:$0xff]  ;;  %v745_v17 = vld [vmem:[%s6022_s26 + $0x108] sm:$0xff] }
  0x1a   : > { %722 = vst [vmem:[%s6027_s27 + $0x28] sm:$0xff] %v721_v5  ;;  %v747_v18 = vld [vmem:[%s6022_s26 + $0x110] sm:$0xff]  ;;  %v749_v19 = vld [vmem:[%s6022_s26 + $0x118] sm:$0xff]  ;;  %v751_v20 = vld [vmem:[%s6022_s26 + $0x140] sm:$0xff] }
  0x1b   : > { %724 = vst [vmem:[%s6027_s27 + $0x30] sm:$0xff] %v723_v6  ;;  %v753_v21 = vld [vmem:[%s6022_s26 + $0x148] sm:$0xff]  ;;  %v755_v22 = vld [vmem:[%s6022_s26 + $0x150] sm:$0xff]  ;;  %v757_v23 = vld [vmem:[%s6022_s26 + $0x158] sm:$0xff] }
  0x1c   : > { %726 = vst [vmem:[%s6027_s27 + $0x38] sm:$0xff] %v725_v7  ;;  %v759_v24 = vld [vmem:[%s6022_s26 + $0x180] sm:$0xff]  ;;  %v761_v25 = vld [vmem:[%s6022_s26 + $0x188] sm:$0xff]  ;;  %v763_v26 = vld [vmem:[%s6022_s26 + $0x190] sm:$0xff] }
  0x1d   : > { %728 = vst [vmem:[%s6027_s27 + $0x40] sm:$0xff] %v727_v8  ;;  %v765_v27 = vld [vmem:[%s6022_s26 + $0x198] sm:$0xff]  ;;  %v767_v28 = vld [vmem:[%s6022_s26 + $0x1c0] sm:$0xff]  ;;  %v769_v29 = vld [vmem:[%s6022_s26 + $0x1c8] sm:$0xff] }
  0x1e   : > { %730 = vst [vmem:[%s6027_s27 + $0x48] sm:$0xff] %v729_v9  ;;  %v771_v30 = vld [vmem:[%s6022_s26 + $0x1d0] sm:$0xff]  ;;  %v773_v31 = vld [vmem:[%s6022_s26 + $0x1d8] sm:$0xff]  ;;  %v775_v32 = vld [vmem:[%s6022_s26 + $0x200] sm:$0xff] }
  0x1f   : > { %732 = vst [vmem:[%s6027_s27 + $0x50] sm:$0xff] %v731_v10  ;;  %v777_v33 = vld [vmem:[%s6022_s26 + $0x208] sm:$0xff]  ;;  %v779_v34 = vld [vmem:[%s6022_s26 + $0x210] sm:$0xff]  ;;  %v781_v35 = vld [vmem:[%s6022_s26 + $0x218] sm:$0xff] }
  0x20   : > { %734 = vst [vmem:[%s6027_s27 + $0x58] sm:$0xff] %v733_v11  ;;  %v783_v36 = vld [vmem:[%s6022_s26 + $0x240] sm:$0xff]  ;;  %v785_v37 = vld [vmem:[%s6022_s26 + $0x248] sm:$0xff]  ;;  %v787_v38 = vld [vmem:[%s6022_s26 + $0x250] sm:$0xff] }
  0x21   : > { %736 = vst [vmem:[%s6027_s27 + $0x60] sm:$0xff] %v735_v12  ;;  %v789_v39 = vld [vmem:[%s6022_s26 + $0x258] sm:$0xff]  ;;  %v791_v40 = vld [vmem:[%s6022_s26 + $0x280] sm:$0xff]  ;;  %v793_v41 = vld [vmem:[%s6022_s26 + $0x288] sm:$0xff] }
  0x22   : > { %738 = vst [vmem:[%s6027_s27 + $0x68] sm:$0xff] %v737_v13  ;;  %v795_v42 = vld [vmem:[%s6022_s26 + $0x290] sm:$0xff]  ;;  %v797_v43 = vld [vmem:[%s6022_s26 + $0x298] sm:$0xff]  ;;  %v799_v44 = vld [vmem:[%s6022_s26 + $0x2c0] sm:$0xff] }
  0x23   : > { %740 = vst [vmem:[%s6027_s27 + $0x70] sm:$0xff] %v739_v14  ;;  %v801_v45 = vld [vmem:[%s6022_s26 + $0x2c8] sm:$0xff]  ;;  %v803_v46 = vld [vmem:[%s6022_s26 + $0x2d0] sm:$0xff]  ;;  %v805_v47 = vld [vmem:[%s6022_s26 + $0x2d8] sm:$0xff] }
  0x24   : > { %742 = vst [vmem:[%s6027_s27 + $0x78] sm:$0xff] %v741_v15  ;;  %v807_v48 = vld [vmem:[%s6022_s26 + $0x300] sm:$0xff]  ;;  %v809_v49 = vld [vmem:[%s6022_s26 + $0x308] sm:$0xff]  ;;  %v811_v50 = vld [vmem:[%s6022_s26 + $0x310] sm:$0xff] }
  0x25   : > { %744 = vst [vmem:[%s6027_s27 + $0x80] sm:$0xff] %v743_v16  ;;  %v813_v51 = vld [vmem:[%s6022_s26 + $0x318] sm:$0xff]  ;;  %v815_v52 = vld [vmem:[%s6022_s26 + $0x340] sm:$0xff]  ;;  %v817_v53 = vld [vmem:[%s6022_s26 + $0x348] sm:$0xff] }
  0x26   : > { %746 = vst [vmem:[%s6027_s27 + $0x88] sm:$0xff] %v745_v17  ;;  %v819_v54 = vld [vmem:[%s6022_s26 + $0x350] sm:$0xff]  ;;  %v821_v55 = vld [vmem:[%s6022_s26 + $0x358] sm:$0xff]  ;;  %v823_v56 = vld [vmem:[%s6022_s26 + $0x380] sm:$0xff] }
  0x27   : > { %748 = vst [vmem:[%s6027_s27 + $0x90] sm:$0xff] %v747_v18  ;;  %v825_v57 = vld [vmem:[%s6022_s26 + $0x388] sm:$0xff]  ;;  %v827_v58 = vld [vmem:[%s6022_s26 + $0x390] sm:$0xff]  ;;  %v829_v59 = vld [vmem:[%s6022_s26 + $0x398] sm:$0xff] }
  0x28   : > { %750 = vst [vmem:[%s6027_s27 + $0x98] sm:$0xff] %v749_v19  ;;  %v831_v60 = vld [vmem:[%s6022_s26 + $0x3c0] sm:$0xff]  ;;  %v833_v61 = vld [vmem:[%s6022_s26 + $0x3c8] sm:$0xff]  ;;  %v835_v62 = vld [vmem:[%s6022_s26 + $0x3d0] sm:$0xff] }
  0x29   : > { %752 = vst [vmem:[%s6027_s27 + $0xa0] sm:$0xff] %v751_v20  ;;  %v837_v63 = vld [vmem:[%s6022_s26 + $0x3d8] sm:$0xff]  ;;  %v839_v0 = vld [vmem:[%s6022_s26 + $0x400] sm:$0xff]  ;;  %v841_v1 = vld [vmem:[%s6022_s26 + $0x408] sm:$0xff] }
  0x2a   : > { %754 = vst [vmem:[%s6027_s27 + $0xa8] sm:$0xff] %v753_v21  ;;  %v843_v2 = vld [vmem:[%s6022_s26 + $0x410] sm:$0xff]  ;;  %v845_v3 = vld [vmem:[%s6022_s26 + $0x418] sm:$0xff]  ;;  %v847_v4 = vld [vmem:[%s6022_s26 + $0x440] sm:$0xff] }
  0x2b   : > { %756 = vst [vmem:[%s6027_s27 + $0xb0] sm:$0xff] %v755_v22  ;;  %v849_v5 = vld [vmem:[%s6022_s26 + $0x448] sm:$0xff]  ;;  %v851_v6 = vld [vmem:[%s6022_s26 + $0x450] sm:$0xff]  ;;  %v853_v7 = vld [vmem:[%s6022_s26 + $0x458] sm:$0xff] }
  0x2c   : > { %758 = vst [vmem:[%s6027_s27 + $0xb8] sm:$0xff] %v757_v23  ;;  %v855_v8 = vld [vmem:[%s6022_s26 + $0x480] sm:$0xff]  ;;  %v857_v9 = vld [vmem:[%s6022_s26 + $0x488] sm:$0xff]  ;;  %v859_v10 = vld [vmem:[%s6022_s26 + $0x490] sm:$0xff] }
  0x2d   : > { %760 = vst [vmem:[%s6027_s27 + $0xc0] sm:$0xff] %v759_v24  ;;  %v861_v11 = vld [vmem:[%s6022_s26 + $0x498] sm:$0xff]  ;;  %v863_v12 = vld [vmem:[%s6022_s26 + $0x4c0] sm:$0xff]  ;;  %v865_v13 = vld [vmem:[%s6022_s26 + $0x4c8] sm:$0xff] }
  0x2e   : > { %762 = vst [vmem:[%s6027_s27 + $0xc8] sm:$0xff] %v761_v25  ;;  %v867_v14 = vld [vmem:[%s6022_s26 + $0x4d0] sm:$0xff]  ;;  %v869_v15 = vld [vmem:[%s6022_s26 + $0x4d8] sm:$0xff]  ;;  %v871_v16 = vld [vmem:[%s6022_s26 + $0x500] sm:$0xff] }
  0x2f   : > { %764 = vst [vmem:[%s6027_s27 + $0xd0] sm:$0xff] %v763_v26  ;;  %v873_v17 = vld [vmem:[%s6022_s26 + $0x508] sm:$0xff]  ;;  %v875_v18 = vld [vmem:[%s6022_s26 + $0x510] sm:$0xff]  ;;  %v877_v19 = vld [vmem:[%s6022_s26 + $0x518] sm:$0xff] }
  0x30   : > { %766 = vst [vmem:[%s6027_s27 + $0xd8] sm:$0xff] %v765_v27  ;;  %v879_v20 = vld [vmem:[%s6022_s26 + $0x540] sm:$0xff]  ;;  %v881_v21 = vld [vmem:[%s6022_s26 + $0x548] sm:$0xff]  ;;  %v883_v22 = vld [vmem:[%s6022_s26 + $0x550] sm:$0xff] }
  0x31   : > { %768 = vst [vmem:[%s6027_s27 + $0xe0] sm:$0xff] %v767_v28  ;;  %v885_v23 = vld [vmem:[%s6022_s26 + $0x558] sm:$0xff]  ;;  %v887_v24 = vld [vmem:[%s6022_s26 + $0x580] sm:$0xff]  ;;  %v889_v25 = vld [vmem:[%s6022_s26 + $0x588] sm:$0xff] }
  0x32   : > { %770 = vst [vmem:[%s6027_s27 + $0xe8] sm:$0xff] %v769_v29  ;;  %v891_v26 = vld [vmem:[%s6022_s26 + $0x590] sm:$0xff]  ;;  %v893_v27 = vld [vmem:[%s6022_s26 + $0x598] sm:$0xff]  ;;  %v895_v28 = vld [vmem:[%s6022_s26 + $0x5c0] sm:$0xff] }
  0x33   : > { %772 = vst [vmem:[%s6027_s27 + $0xf0] sm:$0xff] %v771_v30  ;;  %v897_v29 = vld [vmem:[%s6022_s26 + $0x5c8] sm:$0xff]  ;;  %v899_v30 = vld [vmem:[%s6022_s26 + $0x5d0] sm:$0xff] }
  0x34   : > { %774 = vst [vmem:[%s6027_s27 + $0xf8] sm:$0xff] %v773_v31  ;;  %v901_v31 = vld [vmem:[%s6022_s26 + $0x5d8] sm:$0xff] }
  0x35   : > { %776 = vst [vmem:[%s6027_s27 + $0x100] sm:$0xff] %v775_v32  ;;  %v903_v32 = vld [vmem:[%s6022_s26 + $0x600] sm:$0xff] }
  0x36   : > { %778 = vst [vmem:[%s6027_s27 + $0x108] sm:$0xff] %v777_v33  ;;  %v905_v33 = vld [vmem:[%s6022_s26 + $0x608] sm:$0xff] }
  0x37   : > { %780 = vst [vmem:[%s6027_s27 + $0x110] sm:$0xff] %v779_v34  ;;  %v907_v34 = vld [vmem:[%s6022_s26 + $0x610] sm:$0xff] }
  0x38   : > { %782 = vst [vmem:[%s6027_s27 + $0x118] sm:$0xff] %v781_v35  ;;  %v909_v35 = vld [vmem:[%s6022_s26 + $0x618] sm:$0xff] }
  0x39   : > { %784 = vst [vmem:[%s6027_s27 + $0x120] sm:$0xff] %v783_v36  ;;  %v911_v36 = vld [vmem:[%s6022_s26 + $0x640] sm:$0xff] }
  0x3a   : > { %786 = vst [vmem:[%s6027_s27 + $0x128] sm:$0xff] %v785_v37  ;;  %v913_v37 = vld [vmem:[%s6022_s26 + $0x648] sm:$0xff] }
  0x3b   : > { %788 = vst [vmem:[%s6027_s27 + $0x130] sm:$0xff] %v787_v38  ;;  %v915_v38 = vld [vmem:[%s6022_s26 + $0x650] sm:$0xff] }
  0x3c   : > { %790 = vst [vmem:[%s6027_s27 + $0x138] sm:$0xff] %v789_v39  ;;  %v917_v39 = vld [vmem:[%s6022_s26 + $0x658] sm:$0xff] }
  0x3d   : > { %792 = vst [vmem:[%s6027_s27 + $0x140] sm:$0xff] %v791_v40  ;;  %v919_v40 = vld [vmem:[%s6022_s26 + $0x680] sm:$0xff] }
  0x3e   : > { %794 = vst [vmem:[%s6027_s27 + $0x148] sm:$0xff] %v793_v41  ;;  %v921_v41 = vld [vmem:[%s6022_s26 + $0x688] sm:$0xff] }
  0x3f   : > { %796 = vst [vmem:[%s6027_s27 + $0x150] sm:$0xff] %v795_v42  ;;  %v923_v42 = vld [vmem:[%s6022_s26 + $0x690] sm:$0xff] }
  0x40   : > { %798 = vst [vmem:[%s6027_s27 + $0x158] sm:$0xff] %v797_v43  ;;  %v925_v43 = vld [vmem:[%s6022_s26 + $0x698] sm:$0xff] }
  0x41   : > { %800 = vst [vmem:[%s6027_s27 + $0x160] sm:$0xff] %v799_v44  ;;  %v927_v44 = vld [vmem:[%s6022_s26 + $0x6c0] sm:$0xff] }
  0x42   : > { %802 = vst [vmem:[%s6027_s27 + $0x168] sm:$0xff] %v801_v45  ;;  %v929_v45 = vld [vmem:[%s6022_s26 + $0x6c8] sm:$0xff] }
  0x43   : > { %804 = vst [vmem:[%s6027_s27 + $0x170] sm:$0xff] %v803_v46  ;;  %v931_v46 = vld [vmem:[%s6022_s26 + $0x6d0] sm:$0xff] }
  0x44   : > { %806 = vst [vmem:[%s6027_s27 + $0x178] sm:$0xff] %v805_v47  ;;  %v933_v47 = vld [vmem:[%s6022_s26 + $0x6d8] sm:$0xff] }
  0x45   : > { %808 = vst [vmem:[%s6027_s27 + $0x180] sm:$0xff] %v807_v48  ;;  %v935_v48 = vld [vmem:[%s6022_s26 + $0x700] sm:$0xff] }
  0x46   : > { %810 = vst [vmem:[%s6027_s27 + $0x188] sm:$0xff] %v809_v49  ;;  %v937_v49 = vld [vmem:[%s6022_s26 + $0x708] sm:$0xff] }
  0x47   : > { %812 = vst [vmem:[%s6027_s27 + $0x190] sm:$0xff] %v811_v50  ;;  %v939_v50 = vld [vmem:[%s6022_s26 + $0x710] sm:$0xff] }
  0x48   : > { %814 = vst [vmem:[%s6027_s27 + $0x198] sm:$0xff] %v813_v51  ;;  %v941_v51 = vld [vmem:[%s6022_s26 + $0x718] sm:$0xff] }
  0x49   : > { %816 = vst [vmem:[%s6027_s27 + $0x1a0] sm:$0xff] %v815_v52  ;;  %v943_v52 = vld [vmem:[%s6022_s26 + $0x740] sm:$0xff] }
  0x4a   : > { %818 = vst [vmem:[%s6027_s27 + $0x1a8] sm:$0xff] %v817_v53  ;;  %v945_v53 = vld [vmem:[%s6022_s26 + $0x748] sm:$0xff] }
  0x4b   : > { %820 = vst [vmem:[%s6027_s27 + $0x1b0] sm:$0xff] %v819_v54  ;;  %v947_v54 = vld [vmem:[%s6022_s26 + $0x750] sm:$0xff] }
  0x4c   : > { %822 = vst [vmem:[%s6027_s27 + $0x1b8] sm:$0xff] %v821_v55  ;;  %v949_v55 = vld [vmem:[%s6022_s26 + $0x758] sm:$0xff] }
  0x4d   : > { %824 = vst [vmem:[%s6027_s27 + $0x1c0] sm:$0xff] %v823_v56  ;;  %v951_v56 = vld [vmem:[%s6022_s26 + $0x780] sm:$0xff] }
  0x4e   : > { %826 = vst [vmem:[%s6027_s27 + $0x1c8] sm:$0xff] %v825_v57  ;;  %v953_v57 = vld [vmem:[%s6022_s26 + $0x788] sm:$0xff] }
  0x4f   : > { %828 = vst [vmem:[%s6027_s27 + $0x1d0] sm:$0xff] %v827_v58  ;;  %v955_v58 = vld [vmem:[%s6022_s26 + $0x790] sm:$0xff] }
  0x50   : > { %830 = vst [vmem:[%s6027_s27 + $0x1d8] sm:$0xff] %v829_v59  ;;  %v957_v59 = vld [vmem:[%s6022_s26 + $0x798] sm:$0xff] }
  0x51   : > { %832 = vst [vmem:[%s6027_s27 + $0x1e0] sm:$0xff] %v831_v60  ;;  %v959_v60 = vld [vmem:[%s6022_s26 + $0x7c0] sm:$0xff] }
  0x52   : > { %834 = vst [vmem:[%s6027_s27 + $0x1e8] sm:$0xff] %v833_v61  ;;  %v961_v61 = vld [vmem:[%s6022_s26 + $0x7c8] sm:$0xff] }
  0x53   : > { %836 = vst [vmem:[%s6027_s27 + $0x1f0] sm:$0xff] %v835_v62  ;;  %v963_v62 = vld [vmem:[%s6022_s26 + $0x7d0] sm:$0xff] }
  0x54   : > { %838 = vst [vmem:[%s6027_s27 + $0x1f8] sm:$0xff] %v837_v63  ;;  %v965_v63 = vld [vmem:[%s6022_s26 + $0x7d8] sm:$0xff] }
  0x55   : > { %840 = vst [vmem:[%s6027_s27 + $0x200] sm:$0xff] %v839_v0  ;;  %v967_v0 = vld [vmem:[%s6022_s26 + $0x800] sm:$0xff] }
  0x56   : > { %842 = vst [vmem:[%s6027_s27 + $0x208] sm:$0xff] %v841_v1  ;;  %v969_v1 = vld [vmem:[%s6022_s26 + $0x808] sm:$0xff] }
  0x57   : > { %844 = vst [vmem:[%s6027_s27 + $0x210] sm:$0xff] %v843_v2  ;;  %v971_v2 = vld [vmem:[%s6022_s26 + $0x810] sm:$0xff] }
  0x58   : > { %846 = vst [vmem:[%s6027_s27 + $0x218] sm:$0xff] %v845_v3  ;;  %v973_v3 = vld [vmem:[%s6022_s26 + $0x818] sm:$0xff] }
  0x59   : > { %848 = vst [vmem:[%s6027_s27 + $0x220] sm:$0xff] %v847_v4  ;;  %v975_v4 = vld [vmem:[%s6022_s26 + $0x840] sm:$0xff] }
  0x5a   : > { %850 = vst [vmem:[%s6027_s27 + $0x228] sm:$0xff] %v849_v5  ;;  %v977_v5 = vld [vmem:[%s6022_s26 + $0x848] sm:$0xff] }
  0x5b   : > { %852 = vst [vmem:[%s6027_s27 + $0x230] sm:$0xff] %v851_v6  ;;  %v979_v6 = vld [vmem:[%s6022_s26 + $0x850] sm:$0xff] }
  0x5c   : > { %854 = vst [vmem:[%s6027_s27 + $0x238] sm:$0xff] %v853_v7  ;;  %v981_v7 = vld [vmem:[%s6022_s26 + $0x858] sm:$0xff] }
  0x5d   : > { %856 = vst [vmem:[%s6027_s27 + $0x240] sm:$0xff] %v855_v8  ;;  %v983_v8 = vld [vmem:[%s6022_s26 + $0x880] sm:$0xff] }
  0x5e   : > { %858 = vst [vmem:[%s6027_s27 + $0x248] sm:$0xff] %v857_v9  ;;  %v985_v9 = vld [vmem:[%s6022_s26 + $0x888] sm:$0xff] }
  0x5f   : > { %860 = vst [vmem:[%s6027_s27 + $0x250] sm:$0xff] %v859_v10  ;;  %v987_v10 = vld [vmem:[%s6022_s26 + $0x890] sm:$0xff] }
  0x60   : > { %862 = vst [vmem:[%s6027_s27 + $0x258] sm:$0xff] %v861_v11  ;;  %v989_v11 = vld [vmem:[%s6022_s26 + $0x898] sm:$0xff] }
  0x61   : > { %864 = vst [vmem:[%s6027_s27 + $0x260] sm:$0xff] %v863_v12  ;;  %v991_v12 = vld [vmem:[%s6022_s26 + $0x8c0] sm:$0xff] }
  0x62   : > { %866 = vst [vmem:[%s6027_s27 + $0x268] sm:$0xff] %v865_v13  ;;  %v993_v13 = vld [vmem:[%s6022_s26 + $0x8c8] sm:$0xff] }
  0x63   : > { %868 = vst [vmem:[%s6027_s27 + $0x270] sm:$0xff] %v867_v14  ;;  %v995_v14 = vld [vmem:[%s6022_s26 + $0x8d0] sm:$0xff] }
  0x64   : > { %870 = vst [vmem:[%s6027_s27 + $0x278] sm:$0xff] %v869_v15  ;;  %v997_v15 = vld [vmem:[%s6022_s26 + $0x8d8] sm:$0xff] }
  0x65   : > { %872 = vst [vmem:[%s6027_s27 + $0x280] sm:$0xff] %v871_v16  ;;  %v999_v16 = vld [vmem:[%s6022_s26 + $0x900] sm:$0xff] }
  0x66   : > { %874 = vst [vmem:[%s6027_s27 + $0x288] sm:$0xff] %v873_v17  ;;  %v1001_v17 = vld [vmem:[%s6022_s26 + $0x908] sm:$0xff] }
  0x67   : > { %876 = vst [vmem:[%s6027_s27 + $0x290] sm:$0xff] %v875_v18  ;;  %v1003_v18 = vld [vmem:[%s6022_s26 + $0x910] sm:$0xff] }
  0x68   : > { %878 = vst [vmem:[%s6027_s27 + $0x298] sm:$0xff] %v877_v19  ;;  %v1005_v19 = vld [vmem:[%s6022_s26 + $0x918] sm:$0xff] }
  0x69   : > { %880 = vst [vmem:[%s6027_s27 + $0x2a0] sm:$0xff] %v879_v20  ;;  %v1007_v20 = vld [vmem:[%s6022_s26 + $0x940] sm:$0xff] }
  0x6a   : > { %882 = vst [vmem:[%s6027_s27 + $0x2a8] sm:$0xff] %v881_v21  ;;  %v1009_v21 = vld [vmem:[%s6022_s26 + $0x948] sm:$0xff] }
  0x6b   : > { %884 = vst [vmem:[%s6027_s27 + $0x2b0] sm:$0xff] %v883_v22  ;;  %v1011_v22 = vld [vmem:[%s6022_s26 + $0x950] sm:$0xff] }
  0x6c   : > { %886 = vst [vmem:[%s6027_s27 + $0x2b8] sm:$0xff] %v885_v23  ;;  %v1013_v23 = vld [vmem:[%s6022_s26 + $0x958] sm:$0xff] }
  0x6d   : > { %888 = vst [vmem:[%s6027_s27 + $0x2c0] sm:$0xff] %v887_v24  ;;  %v1015_v24 = vld [vmem:[%s6022_s26 + $0x980] sm:$0xff] }
  0x6e   : > { %890 = vst [vmem:[%s6027_s27 + $0x2c8] sm:$0xff] %v889_v25  ;;  %v1017_v25 = vld [vmem:[%s6022_s26 + $0x988] sm:$0xff] }
  0x6f   : > { %892 = vst [vmem:[%s6027_s27 + $0x2d0] sm:$0xff] %v891_v26  ;;  %v1019_v26 = vld [vmem:[%s6022_s26 + $0x990] sm:$0xff] }
  0x70   : > { %894 = vst [vmem:[%s6027_s27 + $0x2d8] sm:$0xff] %v893_v27  ;;  %v1021_v27 = vld [vmem:[%s6022_s26 + $0x998] sm:$0xff] }
  0x71   : > { %896 = vst [vmem:[%s6027_s27 + $0x2e0] sm:$0xff] %v895_v28  ;;  %v1023_v28 = vld [vmem:[%s6022_s26 + $0x9c0] sm:$0xff] }
  0x72   : > { %898 = vst [vmem:[%s6027_s27 + $0x2e8] sm:$0xff] %v897_v29  ;;  %v1025_v29 = vld [vmem:[%s6022_s26 + $0x9c8] sm:$0xff] }
  0x73   : > { %900 = vst [vmem:[%s6027_s27 + $0x2f0] sm:$0xff] %v899_v30  ;;  %v1027_v30 = vld [vmem:[%s6022_s26 + $0x9d0] sm:$0xff] }
  0x74   : > { %902 = vst [vmem:[%s6027_s27 + $0x2f8] sm:$0xff] %v901_v31  ;;  %v1029_v31 = vld [vmem:[%s6022_s26 + $0x9d8] sm:$0xff] }
  0x75   : > { %904 = vst [vmem:[%s6027_s27 + $0x300] sm:$0xff] %v903_v32  ;;  %v1031_v32 = vld [vmem:[%s6022_s26 + $0xa00] sm:$0xff] }
  0x76   : > { %906 = vst [vmem:[%s6027_s27 + $0x308] sm:$0xff] %v905_v33  ;;  %v1033_v33 = vld [vmem:[%s6022_s26 + $0xa08] sm:$0xff] }
  0x77   : > { %908 = vst [vmem:[%s6027_s27 + $0x310] sm:$0xff] %v907_v34  ;;  %v1035_v34 = vld [vmem:[%s6022_s26 + $0xa10] sm:$0xff] }
  0x78   : > { %910 = vst [vmem:[%s6027_s27 + $0x318] sm:$0xff] %v909_v35  ;;  %v1037_v35 = vld [vmem:[%s6022_s26 + $0xa18] sm:$0xff] }
  0x79   : > { %912 = vst [vmem:[%s6027_s27 + $0x320] sm:$0xff] %v911_v36  ;;  %v1039_v36 = vld [vmem:[%s6022_s26 + $0xa40] sm:$0xff] }
  0x7a   : > { %914 = vst [vmem:[%s6027_s27 + $0x328] sm:$0xff] %v913_v37  ;;  %v1041_v37 = vld [vmem:[%s6022_s26 + $0xa48] sm:$0xff] }
  0x7b   : > { %916 = vst [vmem:[%s6027_s27 + $0x330] sm:$0xff] %v915_v38  ;;  %v1043_v38 = vld [vmem:[%s6022_s26 + $0xa50] sm:$0xff] }
  0x7c   : > { %918 = vst [vmem:[%s6027_s27 + $0x338] sm:$0xff] %v917_v39  ;;  %v1045_v39 = vld [vmem:[%s6022_s26 + $0xa58] sm:$0xff] }
  0x7d   : > { %920 = vst [vmem:[%s6027_s27 + $0x340] sm:$0xff] %v919_v40  ;;  %v1047_v40 = vld [vmem:[%s6022_s26 + $0xa80] sm:$0xff] }
  0x7e   : > { %922 = vst [vmem:[%s6027_s27 + $0x348] sm:$0xff] %v921_v41  ;;  %v1049_v41 = vld [vmem:[%s6022_s26 + $0xa88] sm:$0xff] }
  0x7f   : > { %924 = vst [vmem:[%s6027_s27 + $0x350] sm:$0xff] %v923_v42  ;;  %v1051_v42 = vld [vmem:[%s6022_s26 + $0xa90] sm:$0xff] }
  0x80   : > { %926 = vst [vmem:[%s6027_s27 + $0x358] sm:$0xff] %v925_v43  ;;  %v1053_v43 = vld [vmem:[%s6022_s26 + $0xa98] sm:$0xff] }
  0x81   : > { %928 = vst [vmem:[%s6027_s27 + $0x360] sm:$0xff] %v927_v44  ;;  %v1055_v44 = vld [vmem:[%s6022_s26 + $0xac0] sm:$0xff] }
  0x82   : > { %930 = vst [vmem:[%s6027_s27 + $0x368] sm:$0xff] %v929_v45  ;;  %v1057_v45 = vld [vmem:[%s6022_s26 + $0xac8] sm:$0xff] }
  0x83   : > { %932 = vst [vmem:[%s6027_s27 + $0x370] sm:$0xff] %v931_v46  ;;  %v1059_v46 = vld [vmem:[%s6022_s26 + $0xad0] sm:$0xff] }
  0x84   : > { %934 = vst [vmem:[%s6027_s27 + $0x378] sm:$0xff] %v933_v47  ;;  %v1061_v47 = vld [vmem:[%s6022_s26 + $0xad8] sm:$0xff] }
  0x85   : > { %936 = vst [vmem:[%s6027_s27 + $0x380] sm:$0xff] %v935_v48  ;;  %v1063_v48 = vld [vmem:[%s6022_s26 + $0xb00] sm:$0xff] }
  0x86   : > { %938 = vst [vmem:[%s6027_s27 + $0x388] sm:$0xff] %v937_v49  ;;  %v1065_v49 = vld [vmem:[%s6022_s26 + $0xb08] sm:$0xff] }
  0x87   : > { %940 = vst [vmem:[%s6027_s27 + $0x390] sm:$0xff] %v939_v50  ;;  %v1067_v50 = vld [vmem:[%s6022_s26 + $0xb10] sm:$0xff] }
  0x88   : > { %942 = vst [vmem:[%s6027_s27 + $0x398] sm:$0xff] %v941_v51  ;;  %v1069_v51 = vld [vmem:[%s6022_s26 + $0xb18] sm:$0xff] }
  0x89   : > { %944 = vst [vmem:[%s6027_s27 + $0x3a0] sm:$0xff] %v943_v52  ;;  %v1071_v52 = vld [vmem:[%s6022_s26 + $0xb40] sm:$0xff] }
  0x8a   : > { %946 = vst [vmem:[%s6027_s27 + $0x3a8] sm:$0xff] %v945_v53  ;;  %v1073_v53 = vld [vmem:[%s6022_s26 + $0xb48] sm:$0xff] }
  0x8b   : > { %948 = vst [vmem:[%s6027_s27 + $0x3b0] sm:$0xff] %v947_v54  ;;  %v1075_v54 = vld [vmem:[%s6022_s26 + $0xb50] sm:$0xff] }
  0x8c   : > { %950 = vst [vmem:[%s6027_s27 + $0x3b8] sm:$0xff] %v949_v55  ;;  %v1077_v55 = vld [vmem:[%s6022_s26 + $0xb58] sm:$0xff] }
  0x8d   : > { %952 = vst [vmem:[%s6027_s27 + $0x3c0] sm:$0xff] %v951_v56  ;;  %v1079_v56 = vld [vmem:[%s6022_s26 + $0xb80] sm:$0xff] }
  0x8e   : > { %954 = vst [vmem:[%s6027_s27 + $0x3c8] sm:$0xff] %v953_v57  ;;  %v1081_v57 = vld [vmem:[%s6022_s26 + $0xb88] sm:$0xff] }
  0x8f   : > { %956 = vst [vmem:[%s6027_s27 + $0x3d0] sm:$0xff] %v955_v58  ;;  %v1083_v58 = vld [vmem:[%s6022_s26 + $0xb90] sm:$0xff] }
  0x90   : > { %958 = vst [vmem:[%s6027_s27 + $0x3d8] sm:$0xff] %v957_v59  ;;  %v1085_v59 = vld [vmem:[%s6022_s26 + $0xb98] sm:$0xff] }
  0x91   : > { %960 = vst [vmem:[%s6027_s27 + $0x3e0] sm:$0xff] %v959_v60  ;;  %v1087_v60 = vld [vmem:[%s6022_s26 + $0xbc0] sm:$0xff] }
  0x92   : > { %962 = vst [vmem:[%s6027_s27 + $0x3e8] sm:$0xff] %v961_v61  ;;  %v1089_v61 = vld [vmem:[%s6022_s26 + $0xbc8] sm:$0xff] }
  0x93   : > { %964 = vst [vmem:[%s6027_s27 + $0x3f0] sm:$0xff] %v963_v62  ;;  %v1091_v62 = vld [vmem:[%s6022_s26 + $0xbd0] sm:$0xff] }
  0x94   : > { %966 = vst [vmem:[%s6027_s27 + $0x3f8] sm:$0xff] %v965_v63  ;;  %v1093_v63 = vld [vmem:[%s6022_s26 + $0xbd8] sm:$0xff] }
  0x95   : > { %968 = vst [vmem:[%s6027_s27 + $0x400] sm:$0xff] %v967_v0  ;;  %v1095_v0 = vld [vmem:[%s6022_s26 + $0xc00] sm:$0xff] }
  0x96   : > { %970 = vst [vmem:[%s6027_s27 + $0x408] sm:$0xff] %v969_v1  ;;  %v1097_v1 = vld [vmem:[%s6022_s26 + $0xc08] sm:$0xff] }
  0x97   : > { %972 = vst [vmem:[%s6027_s27 + $0x410] sm:$0xff] %v971_v2  ;;  %v1099_v2 = vld [vmem:[%s6022_s26 + $0xc10] sm:$0xff] }
  0x98   : > { %974 = vst [vmem:[%s6027_s27 + $0x418] sm:$0xff] %v973_v3  ;;  %v1101_v3 = vld [vmem:[%s6022_s26 + $0xc18] sm:$0xff] }
  0x99   : > { %976 = vst [vmem:[%s6027_s27 + $0x420] sm:$0xff] %v975_v4 }
  0x9a   : > { %978 = vst [vmem:[%s6027_s27 + $0x428] sm:$0xff] %v977_v5 }
  0x9b   : > { %980 = vst [vmem:[%s6027_s27 + $0x430] sm:$0xff] %v979_v6 }
  0x9c   : > { %982 = vst [vmem:[%s6027_s27 + $0x438] sm:$0xff] %v981_v7 }
  0x9d   : > { %984 = vst [vmem:[%s6027_s27 + $0x440] sm:$0xff] %v983_v8 }
  0x9e   : > { %986 = vst [vmem:[%s6027_s27 + $0x448] sm:$0xff] %v985_v9 }
  0x9f   : > { %988 = vst [vmem:[%s6027_s27 + $0x450] sm:$0xff] %v987_v10 }
  0xa0   : > { %990 = vst [vmem:[%s6027_s27 + $0x458] sm:$0xff] %v989_v11 }
  0xa1   : > { %992 = vst [vmem:[%s6027_s27 + $0x460] sm:$0xff] %v991_v12 }
  0xa2   : > { %994 = vst [vmem:[%s6027_s27 + $0x468] sm:$0xff] %v993_v13 }
  0xa3   : > { %996 = vst [vmem:[%s6027_s27 + $0x470] sm:$0xff] %v995_v14 }
  0xa4   : > { %998 = vst [vmem:[%s6027_s27 + $0x478] sm:$0xff] %v997_v15 }
  0xa5   : > { %1000 = vst [vmem:[%s6027_s27 + $0x480] sm:$0xff] %v999_v16 }
  0xa6   : > { %1002 = vst [vmem:[%s6027_s27 + $0x488] sm:$0xff] %v1001_v17 }
  0xa7   : > { %1004 = vst [vmem:[%s6027_s27 + $0x490] sm:$0xff] %v1003_v18 }
  0xa8   : > { %1006 = vst [vmem:[%s6027_s27 + $0x498] sm:$0xff] %v1005_v19 }
  0xa9   : > { %1008 = vst [vmem:[%s6027_s27 + $0x4a0] sm:$0xff] %v1007_v20 }
  0xaa   : > { %1010 = vst [vmem:[%s6027_s27 + $0x4a8] sm:$0xff] %v1009_v21 }
  0xab   : > { %1012 = vst [vmem:[%s6027_s27 + $0x4b0] sm:$0xff] %v1011_v22 }
  0xac   : > { %1014 = vst [vmem:[%s6027_s27 + $0x4b8] sm:$0xff] %v1013_v23 }
  0xad   : > { %1016 = vst [vmem:[%s6027_s27 + $0x4c0] sm:$0xff] %v1015_v24 }
  0xae   : > { %1018 = vst [vmem:[%s6027_s27 + $0x4c8] sm:$0xff] %v1017_v25 }
  0xaf   : > { %1020 = vst [vmem:[%s6027_s27 + $0x4d0] sm:$0xff] %v1019_v26 }
  0xb0   : > { %1022 = vst [vmem:[%s6027_s27 + $0x4d8] sm:$0xff] %v1021_v27 }
  0xb1   : > { %1024 = vst [vmem:[%s6027_s27 + $0x4e0] sm:$0xff] %v1023_v28 }
  0xb2   : > { %1026 = vst [vmem:[%s6027_s27 + $0x4e8] sm:$0xff] %v1025_v29 }
  0xb3   : > { %1028 = vst [vmem:[%s6027_s27 + $0x4f0] sm:$0xff] %v1027_v30 }
  0xb4   : > { %1030 = vst [vmem:[%s6027_s27 + $0x4f8] sm:$0xff] %v1029_v31 }
  0xb5   : > { %1032 = vst [vmem:[%s6027_s27 + $0x500] sm:$0xff] %v1031_v32 }
  0xb6   : > { %1034 = vst [vmem:[%s6027_s27 + $0x508] sm:$0xff] %v1033_v33 }
  0xb7   : > { %1036 = vst [vmem:[%s6027_s27 + $0x510] sm:$0xff] %v1035_v34 }
  0xb8   : > { %1038 = vst [vmem:[%s6027_s27 + $0x518] sm:$0xff] %v1037_v35 }
  0xb9   : > { %1040 = vst [vmem:[%s6027_s27 + $0x520] sm:$0xff] %v1039_v36 }
  0xba   : > { %1042 = vst [vmem:[%s6027_s27 + $0x528] sm:$0xff] %v1041_v37 }
  0xbb   : > { %1044 = vst [vmem:[%s6027_s27 + $0x530] sm:$0xff] %v1043_v38 }
  0xbc   : > { %1046 = vst [vmem:[%s6027_s27 + $0x538] sm:$0xff] %v1045_v39 }
  0xbd   : > { %1048 = vst [vmem:[%s6027_s27 + $0x540] sm:$0xff] %v1047_v40 }
  0xbe   : > { %1050 = vst [vmem:[%s6027_s27 + $0x548] sm:$0xff] %v1049_v41 }
  0xbf   : > { %1052 = vst [vmem:[%s6027_s27 + $0x550] sm:$0xff] %v1051_v42 }
  0xc0   : > { %1054 = vst [vmem:[%s6027_s27 + $0x558] sm:$0xff] %v1053_v43 }
  0xc1   : > { %1056 = vst [vmem:[%s6027_s27 + $0x560] sm:$0xff] %v1055_v44 }
  0xc2   : > { %1058 = vst [vmem:[%s6027_s27 + $0x568] sm:$0xff] %v1057_v45 }
  0xc3   : > { %1060 = vst [vmem:[%s6027_s27 + $0x570] sm:$0xff] %v1059_v46 }
  0xc4   : > { %1062 = vst [vmem:[%s6027_s27 + $0x578] sm:$0xff] %v1061_v47 }
  0xc5   : > { %1064 = vst [vmem:[%s6027_s27 + $0x580] sm:$0xff] %v1063_v48 }
  0xc6   : > { %1066 = vst [vmem:[%s6027_s27 + $0x588] sm:$0xff] %v1065_v49 }
  0xc7   : > { %1068 = vst [vmem:[%s6027_s27 + $0x590] sm:$0xff] %v1067_v50 }
  0xc8   : > { %1070 = vst [vmem:[%s6027_s27 + $0x598] sm:$0xff] %v1069_v51 }
  0xc9   : > { %1072 = vst [vmem:[%s6027_s27 + $0x5a0] sm:$0xff] %v1071_v52 }
  0xca   : > { %1074 = vst [vmem:[%s6027_s27 + $0x5a8] sm:$0xff] %v1073_v53 }
  0xcb   : > { %1076 = vst [vmem:[%s6027_s27 + $0x5b0] sm:$0xff] %v1075_v54 }
  0xcc   : > { %1078 = vst [vmem:[%s6027_s27 + $0x5b8] sm:$0xff] %v1077_v55 }
  0xcd   : > { %1080 = vst [vmem:[%s6027_s27 + $0x5c0] sm:$0xff] %v1079_v56 }
  0xce   : > { %1082 = vst [vmem:[%s6027_s27 + $0x5c8] sm:$0xff] %v1081_v57 }
  0xcf   : > { %1084 = vst [vmem:[%s6027_s27 + $0x5d0] sm:$0xff] %v1083_v58 }
  0xd0   : > { %1086 = vst [vmem:[%s6027_s27 + $0x5d8] sm:$0xff] %v1085_v59 }
  0xd1   : > { %1088 = vst [vmem:[%s6027_s27 + $0x5e0] sm:$0xff] %v1087_v60 }
  0xd2   : > { %1090 = vst [vmem:[%s6027_s27 + $0x5e8] sm:$0xff] %v1089_v61 }
  0xd3   : > { %1092 = vst [vmem:[%s6027_s27 + $0x5f0] sm:$0xff] %v1091_v62 }
  0xd4   : > { %1094 = vst [vmem:[%s6027_s27 + $0x5f8] sm:$0xff] %v1093_v63 }
  0xd5   : > { %1096 = vst [vmem:[%s6027_s27 + $0x600] sm:$0xff] %v1095_v0 }
  0xd6   : > { %1098 = vst [vmem:[%s6027_s27 + $0x608] sm:$0xff] %v1097_v1 }
  0xd7   : > { %1100 = vst [vmem:[%s6027_s27 + $0x610] sm:$0xff] %v1099_v2 }
  0xd8   : > { %1102 = vst [vmem:[%s6027_s27 + $0x618] sm:$0xff] %v1101_v3 }
  0xd9 PF: > { %p5376_p10 = scmp.ge.s32.totalorder %s5911_s12, 1  ;;  %p1116_p11 = scmp.lt.s32.totalorder %s5911_s12, 3 }
  0xdb   : > { %p1117_p12 = pnand %p5376_p10, %p1116_p11 }
  0xdd   : > { %1120 = sbr.rel (%p1117_p12) target bundleno = 1686 (0x696), region = 90 }
  0xe2   : > { %v1369_v4 = vld [vmem:[%s8775_s2 + $0x10] sm:$0x3]  ;;  %vm1963_vm0 = vcmask 1041408   ;;  %v1368_v5 = vld [vmem:[%s8775_s2 + $0x8] sm:$0xff]  ;;  %s6427_s17 = sand.u32 1, %s5903_s10   ;;  %v1367_v6 = vld [vmem:[%s8775_s2] sm:$0xff] }
  0xe3   : > { %5380 = vmatpush.msk.msra.mxu0 %vm1963_vm0, %v1369_v4  ;;  %5781 = vmatpush.msk.msra.mxu2 %vm1963_vm0, %v1369_v4  ;;  %s5790_s23 = smul.u32 1568, %s6427_s17  ;;  %vm1374_vm1 = vcmask 146432   ;;  %vm2852_vm2 = vcmask 261120   ;;  %s5378_s27 = sshll.u32 %s5988_s13, 2 }
  0xe4   : > { %5780 = vmatpush.msk.msra.mxu1 %vm1963_vm0, %v1369_v4  ;;  %5782 = vmatpush.msk.msra.mxu3 %vm1963_vm0, %v1369_v4  ;;  %p1165_p13 = scmp.lt.s32.totalorder %s5378_s27, 7  ;;  %s5276_s22 = scalar_lea.sflag [#allocation4], %s6427_s17 }
  0xe5   : > { %1981 = vmatpush.msra.mxu0 %v1368_v5  ;;  %5784 = vmatpush.msra.mxu2 %v1368_v5  ;;  %s6433_s24 = scalar_lea.vmem [#allocation2], %s5790_s23  ;;  %s5377_s23 = sshll.u32 %s6427_s17, 5 }
  0xe6   : > { %v1171_v7 = vld [vmem:[%s6433_s24] sm:$0xff]  ;;  %v1301_v8 = vld [vmem:[%s6433_s24 + $0x410] sm:$0xff]  ;;  %5783 = vmatpush.msra.mxu1 %v1368_v5  ;;  %5785 = vmatpush.msra.mxu3 %v1368_v5  ;;  %v1270_v9 = vld [vmem:[%s6433_s24 + $0x318] sm:$0xff]  ;;  %s8990_s27 = smov (!%p1165_p13, %s5378_s27), 7  ;;  %s1162_s26 = scalar_lea.vmem [#allocation3], %s5377_s23 }
  0xe7   : > { %1982 = vmatpush.msra.mxu0 %v1367_v6  ;;  %5787 = vmatpush.msra.mxu2 %v1367_v6  ;;  %v1332_v10 = vld [vmem:[%s6433_s24 + $0x508] sm:$0xff]  ;;  %v1302_v12 = vld [vmem:[%s6433_s24 + $0x418] sm:$0xff]  ;;  %v1271_v13 = vld [vmem:[%s6433_s24 + $0x320] sm:$0xff]  ;;  %s5379_s21 = sshll.u32 %s8990_s27, 3  ;;  %s5779_s27 = sshll.u32 %s5988_s13, 5 }
  0xe8   : > { %5381 = vmatmul.msk.f32.vlgmr.msra.gmra.mxu0 %vm1374_vm1, %v1171_v7  ;;  %5511 = vmatmul.msk.f32.vlgmr.msra.gmra.mxu2 %vm1374_vm1, %v1301_v8  ;;  %v1172_v11 = vld [vmem:[%s6433_s24 + $0x8] sm:$0xff]  ;;  %v1333_v14 = vld [vmem:[%s6433_s24 + $0x510] sm:$0xff]  ;;  %v1303_v16 = vld [vmem:[%s6433_s24 + $0x420] sm:$0xff]  ;;  %s5287_s14 = scalar_lea.hbm %s8782_s9, %s5779_s27  ;;  %s5288_s16 = sshll.u32 %s1162_s26, 4  ;;  %s5289_s16 = int_to_ptr.vmem [resolvable:$true] %s5288_s16 }
  0xe9   : > { %5786 = vmatpush.msra.mxu1 %v1367_v6  ;;  %5788 = vmatpush.msra.mxu3 %v1367_v6  ;;  %v1173_v15 = vld [vmem:[%s6433_s24 + $0x10] sm:$0xff]  ;;  %v1272_v17 = vld [vmem:[%s6433_s24 + $0x328] sm:$0xff]  ;;  %v1334_v18 = vld [vmem:[%s6433_s24 + $0x518] sm:$0xff]  ;;  %s5869_s27 = scalar_lea.hbm %s8782_s9, 64 }
  0xea   : > { %5480 = vmatmul.msk.f32.vlgmr.msra.gmra.mxu1 %vm1374_vm1, %v1270_v9  ;;  %5542 = vmatmul.msk.f32.vlgmr.msra.gmra.mxu3 %vm1374_vm1, %v1332_v10  ;;  %v1174_v19 = vld [vmem:[%s6433_s24 + $0x18] sm:$0xff]  ;;  %v1304_v20 = vld [vmem:[%s6433_s24 + $0x428] sm:$0xff]  ;;  %v1273_v21 = vld [vmem:[%s6433_s24 + $0x330] sm:$0xff] }
  0xeb   : > { %v1335_v22 = vld [vmem:[%s6433_s24 + $0x520] sm:$0xff]  ;;  %v1305_v24 = vld [vmem:[%s6433_s24 + $0x430] sm:$0xff]  ;;  %v1274_v25 = vld [vmem:[%s6433_s24 + $0x338] sm:$0xff] }
  0xec   : > { %v1175_v23 = vld [vmem:[%s6433_s24 + $0x20] sm:$0xff]  ;;  %v1336_v26 = vld [vmem:[%s6433_s24 + $0x528] sm:$0xff]  ;;  %v1306_v28 = vld [vmem:[%s6433_s24 + $0x438] sm:$0xff] }
  0xed   : > { %v1176_v27 = vld [vmem:[%s6433_s24 + $0x28] sm:$0xff]  ;;  %v1275_v29 = vld [vmem:[%s6433_s24 + $0x340] sm:$0xff]  ;;  %v1337_v30 = vld [vmem:[%s6433_s24 + $0x530] sm:$0xff] }
  0xee   : > { %v1177_v31 = vld [vmem:[%s6433_s24 + $0x30] sm:$0xff]  ;;  %v1307_v32 = vld [vmem:[%s6433_s24 + $0x440] sm:$0xff]  ;;  %v1276_v33 = vld [vmem:[%s6433_s24 + $0x348] sm:$0xff] }
  0xef   : > { %v1338_v34 = vld [vmem:[%s6433_s24 + $0x538] sm:$0xff]  ;;  %v1308_v36 = vld [vmem:[%s6433_s24 + $0x448] sm:$0xff]  ;;  %v1277_v37 = vld [vmem:[%s6433_s24 + $0x350] sm:$0xff] }
  0xf0   : > { %5382 = vmatmul.msk.f32.gmra.mxu0 %vm1374_vm1, %v1172_v11  ;;  %5512 = vmatmul.msk.f32.gmra.mxu2 %vm1374_vm1, %v1302_v12  ;;  %v1178_v35 = vld [vmem:[%s6433_s24 + $0x38] sm:$0xff]  ;;  %v1339_v38 = vld [vmem:[%s6433_s24 + $0x540] sm:$0xff]  ;;  %v1309_v40 = vld [vmem:[%s6433_s24 + $0x450] sm:$0xff] }
  0xf1   : > { %v1179_v39 = vld [vmem:[%s6433_s24 + $0x40] sm:$0xff]  ;;  %v1278_v41 = vld [vmem:[%s6433_s24 + $0x358] sm:$0xff]  ;;  %v1340_v42 = vld [vmem:[%s6433_s24 + $0x548] sm:$0xff] }
  0xf2   : > { %5481 = vmatmul.msk.f32.gmra.mxu1 %vm1374_vm1, %v1271_v13  ;;  %5543 = vmatmul.msk.f32.gmra.mxu3 %vm1374_vm1, %v1333_v14  ;;  %v1180_v43 = vld [vmem:[%s6433_s24 + $0x48] sm:$0xff]  ;;  %v1310_v44 = vld [vmem:[%s6433_s24 + $0x458] sm:$0xff]  ;;  %v1279_v45 = vld [vmem:[%s6433_s24 + $0x360] sm:$0xff] }
  0xf3   : > { %v1341_v46 = vld [vmem:[%s6433_s24 + $0x550] sm:$0xff]  ;;  %v1311_v48 = vld [vmem:[%s6433_s24 + $0x460] sm:$0xff]  ;;  %v1280_v49 = vld [vmem:[%s6433_s24 + $0x368] sm:$0xff] }
  0xf4   : > { %v1181_v47 = vld [vmem:[%s6433_s24 + $0x50] sm:$0xff]  ;;  %v1342_v50 = vld [vmem:[%s6433_s24 + $0x558] sm:$0xff]  ;;  %v1312_v52 = vld [vmem:[%s6433_s24 + $0x468] sm:$0xff] }
  0xf5   : > { %v1182_v51 = vld [vmem:[%s6433_s24 + $0x58] sm:$0xff]  ;;  %v1281_v53 = vld [vmem:[%s6433_s24 + $0x370] sm:$0xff]  ;;  %v1343_v54 = vld [vmem:[%s6433_s24 + $0x560] sm:$0xff] }
  0xf6   : > { %v1183_v55 = vld [vmem:[%s6433_s24 + $0x60] sm:$0xff]  ;;  %v1313_v56 = vld [vmem:[%s6433_s24 + $0x470] sm:$0xff]  ;;  %v1282_v57 = vld [vmem:[%s6433_s24 + $0x378] sm:$0xff] }
  0xf7   : > { %v1344_v58 = vld [vmem:[%s6433_s24 + $0x568] sm:$0xff]  ;;  %v1314_v60 = vld [vmem:[%s6433_s24 + $0x478] sm:$0xff]  ;;  %v1283_v61 = vld [vmem:[%s6433_s24 + $0x380] sm:$0xff] }
  0xf8   : > { %5383 = vmatmul.msk.f32.gmra.mxu0 %vm1374_vm1, %v1173_v15  ;;  %5513 = vmatmul.msk.f32.gmra.mxu2 %vm1374_vm1, %v1303_v16  ;;  %v1184_v59 = vld [vmem:[%s6433_s24 + $0x68] sm:$0xff]  ;;  %v1345_v62 = vld [vmem:[%s6433_s24 + $0x570] sm:$0xff]  ;;  %v1315_v0 = vld [vmem:[%s6433_s24 + $0x480] sm:$0xff] }
  0xf9   : > { %v1185_v63 = vld [vmem:[%s6433_s24 + $0x70] sm:$0xff]  ;;  %v1284_v1 = vld [vmem:[%s6433_s24 + $0x388] sm:$0xff]  ;;  %v1346_v2 = vld [vmem:[%s6433_s24 + $0x578] sm:$0xff] }
  0xfa   : > { %5482 = vmatmul.msk.f32.gmra.mxu1 %vm1374_vm1, %v1272_v17  ;;  %5544 = vmatmul.msk.f32.gmra.mxu3 %vm1374_vm1, %v1334_v18  ;;  %v1186_v3 = vld [vmem:[%s6433_s24 + $0x78] sm:$0xff]  ;;  %v1316_v4 = vld [vmem:[%s6433_s24 + $0x488] sm:$0xff]  ;;  %v1285_v5 = vld [vmem:[%s6433_s24 + $0x390] sm:$0xff] }
  0xfb   : > { %v1347_v6 = vld [vmem:[%s6433_s24 + $0x580] sm:$0xff]  ;;  %v1317_v9 = vld [vmem:[%s6433_s24 + $0x490] sm:$0xff]  ;;  %v1286_v10 = vld [vmem:[%s6433_s24 + $0x398] sm:$0xff] }
  0xfc   : > { %v1187_v8 = vld [vmem:[%s6433_s24 + $0x80] sm:$0xff]  ;;  %v1348_v11 = vld [vmem:[%s6433_s24 + $0x588] sm:$0xff]  ;;  %v1318_v14 = vld [vmem:[%s6433_s24 + $0x498] sm:$0xff] }
  0xfd   : > { %v1188_v13 = vld [vmem:[%s6433_s24 + $0x88] sm:$0xff]  ;;  %v1287_v15 = vld [vmem:[%s6433_s24 + $0x3a0] sm:$0xff]  ;;  %v1349_v16 = vld [vmem:[%s6433_s24 + $0x590] sm:$0xff] }
  0xfe   : > { %v1189_v18 = vld [vmem:[%s6433_s24 + $0x90] sm:$0xff] }
 0x100   : > { %5384 = vmatmul.msk.f32.gmra.mxu0 %vm1374_vm1, %v1174_v19  ;;  %5514 = vmatmul.msk.f32.gmra.mxu2 %vm1374_vm1, %v1304_v20  ;;  %v1319_v19 = vld [vmem:[%s6433_s24 + $0x4a0] sm:$0xff]  ;;  %v1288_v20 = vld [vmem:[%s6433_s24 + $0x3a8] sm:$0xff] }
 0x102   : > { %5483 = vmatmul.msk.f32.gmra.mxu1 %vm1374_vm1, %v1273_v21  ;;  %5545 = vmatmul.msk.f32.gmra.mxu3 %vm1374_vm1, %v1335_v22  ;;  %v1350_v21 = vld [vmem:[%s6433_s24 + $0x598] sm:$0xff] }
 0x108   : > { %5385 = vmatmul.msk.f32.gmra.mxu0 %vm1374_vm1, %v1175_v23  ;;  %5515 = vmatmul.msk.f32.gmra.mxu2 %vm1374_vm1, %v1305_v24  ;;  %v1190_v23 = vld [vmem:[%s6433_s24 + $0x98] sm:$0xff]  ;;  %v1320_v24 = vld [vmem:[%s6433_s24 + $0x4a8] sm:$0xff] }
 0x10a   : > { %5484 = vmatmul.msk.f32.gmra.mxu1 %vm1374_vm1, %v1274_v25  ;;  %5546 = vmatmul.msk.f32.gmra.mxu3 %vm1374_vm1, %v1336_v26  ;;  %v1289_v25 = vld [vmem:[%s6433_s24 + $0x3b0] sm:$0xff]  ;;  %v1351_v26 = vld [vmem:[%s6433_s24 + $0x5a0] sm:$0xff] }
 0x110   : > { %5386 = vmatmul.msk.f32.gmra.mxu0 %vm1374_vm1, %v1176_v27  ;;  %5516 = vmatmul.msk.f32.gmra.mxu2 %vm1374_vm1, %v1306_v28  ;;  %v1191_v28 = vld [vmem:[%s6433_s24 + $0xa0] sm:$0xff] }
 0x112   : > { %5485 = vmatmul.msk.f32.gmra.mxu1 %vm1374_vm1, %v1275_v29  ;;  %5547 = vmatmul.msk.f32.gmra.mxu3 %vm1374_vm1, %v1337_v30  ;;  %v1321_v29 = vld [vmem:[%s6433_s24 + $0x4b0] sm:$0xff]  ;;  %v1290_v30 = vld [vmem:[%s6433_s24 + $0x3b8] sm:$0xff] }
 0x118   : > { %5387 = vmatmul.msk.f32.gmra.mxu0 %vm1374_vm1, %v1177_v31  ;;  %5517 = vmatmul.msk.f32.gmra.mxu2 %vm1374_vm1, %v1307_v32  ;;  %v1352_v31 = vld [vmem:[%s6433_s24 + $0x5a8] sm:$0xff] }
 0x11a   : > { %5486 = vmatmul.msk.f32.gmra.mxu1 %vm1374_vm1, %v1276_v33  ;;  %5548 = vmatmul.msk.f32.gmra.mxu3 %vm1374_vm1, %v1338_v34  ;;  %v1192_v33 = vld [vmem:[%s6433_s24 + $0xa8] sm:$0xff]  ;;  %v1322_v34 = vld [vmem:[%s6433_s24 + $0x4b8] sm:$0xff] }
 0x120   : > { %5388 = vmatmul.msk.f32.gmra.mxu0 %vm1374_vm1, %v1178_v35  ;;  %5518 = vmatmul.msk.f32.gmra.mxu2 %vm1374_vm1, %v1308_v36  ;;  %v1291_v36 = vld [vmem:[%s6433_s24 + $0x3c0] sm:$0xff] }
 0x122   : > { %5487 = vmatmul.msk.f32.gmra.mxu1 %vm1374_vm1, %v1277_v37  ;;  %5549 = vmatmul.msk.f32.gmra.mxu3 %vm1374_vm1, %v1339_v38  ;;  %v1353_v37 = vld [vmem:[%s6433_s24 + $0x5b0] sm:$0xff] }
 0x128   : > { %5389 = vmatmul.msk.f32.gmra.mxu0 %vm1374_vm1, %v1179_v39  ;;  %5519 = vmatmul.msk.f32.gmra.mxu2 %vm1374_vm1, %v1309_v40  ;;  %v1193_v40 = vld [vmem:[%s6433_s24 + $0xb0] sm:$0xff] }
 0x12a   : > { %5488 = vmatmul.msk.f32.gmra.mxu1 %vm1374_vm1, %v1278_v41  ;;  %5550 = vmatmul.msk.f32.gmra.mxu3 %vm1374_vm1, %v1340_v42  ;;  %v1323_v41 = vld [vmem:[%s6433_s24 + $0x4c0] sm:$0xff] }
 0x130   : > { %5390 = vmatmul.msk.f32.gmra.mxu0 %vm1374_vm1, %v1180_v43  ;;  %5520 = vmatmul.msk.f32.gmra.mxu2 %vm1374_vm1, %v1310_v44  ;;  %v1292_v43 = vld [vmem:[%s6433_s24 + $0x3c8] sm:$0xff]  ;;  %v1354_v44 = vld [vmem:[%s6433_s24 + $0x5b8] sm:$0xff] }
 0x132   : > { %5489 = vmatmul.msk.f32.gmra.mxu1 %vm1374_vm1, %v1279_v45  ;;  %5551 = vmatmul.msk.f32.gmra.mxu3 %vm1374_vm1, %v1341_v46 }
 0x138   : > { %5391 = vmatmul.msk.f32.gmra.mxu0 %vm1374_vm1, %v1181_v47  ;;  %5521 = vmatmul.msk.f32.gmra.mxu2 %vm1374_vm1, %v1311_v48  ;;  %v1194_v47 = vld [vmem:[%s6433_s24 + $0xb8] sm:$0xff]  ;;  %v1324_v48 = vld [vmem:[%s6433_s24 + $0x4c8] sm:$0xff] }
 0x13a   : > { %5490 = vmatmul.msk.f32.gmra.mxu1 %vm1374_vm1, %v1280_v49  ;;  %5552 = vmatmul.msk.f32.gmra.mxu3 %vm1374_vm1, %v1342_v50  ;;  %v1293_v50 = vld [vmem:[%s6433_s24 + $0x3d0] sm:$0xff] }
 0x140   : > { %5392 = vmatmul.msk.f32.gmra.mxu0 %vm1374_vm1, %v1182_v51  ;;  %5522 = vmatmul.msk.f32.gmra.mxu2 %vm1374_vm1, %v1312_v52  ;;  %v1355_v51 = vld [vmem:[%s6433_s24 + $0x5c0] sm:$0xff] }
 0x142   : > { %5491 = vmatmul.msk.f32.gmra.mxu1 %vm1374_vm1, %v1281_v53  ;;  %5553 = vmatmul.msk.f32.gmra.mxu3 %vm1374_vm1, %v1343_v54 }
 0x148   : > { %5393 = vmatmul.msk.f32.gmra.mxu0 %vm1374_vm1, %v1183_v55  ;;  %5523 = vmatmul.msk.f32.gmra.mxu2 %vm1374_vm1, %v1313_v56  ;;  %v1195_v55 = vld [vmem:[%s6433_s24 + $0xc0] sm:$0xff]  ;;  %v1325_v56 = vld [vmem:[%s6433_s24 + $0x4d0] sm:$0xff] }
 0x14a   : > { %5492 = vmatmul.msk.f32.gmra.mxu1 %vm1374_vm1, %v1282_v57  ;;  %5554 = vmatmul.msk.f32.gmra.mxu3 %vm1374_vm1, %v1344_v58  ;;  %v1294_v57 = vld [vmem:[%s6433_s24 + $0x3d8] sm:$0xff]  ;;  %v1356_v58 = vld [vmem:[%s6433_s24 + $0x5c8] sm:$0xff] }
 0x150   : > { %5394 = vmatmul.msk.f32.gmra.mxu0 %vm1374_vm1, %v1184_v59  ;;  %5524 = vmatmul.msk.f32.gmra.mxu2 %vm1374_vm1, %v1314_v60 }
 0x152   : > { %5493 = vmatmul.msk.f32.gmra.mxu1 %vm1374_vm1, %v1283_v61  ;;  %5555 = vmatmul.msk.f32.gmra.mxu3 %vm1374_vm1, %v1345_v62 }
 0x158   : > { %5395 = vmatmul.msk.f32.gmra.mxu0 %vm1374_vm1, %v1185_v63  ;;  %5525 = vmatmul.msk.f32.gmra.mxu2 %vm1374_vm1, %v1315_v0  ;;  %v1196_v63 = vld [vmem:[%s6433_s24 + $0xc8] sm:$0xff]  ;;  %v1326_v0 = vld [vmem:[%s6433_s24 + $0x4d8] sm:$0xff] }
 0x15a   : > { %5494 = vmatmul.msk.f32.gmra.mxu1 %vm1374_vm1, %v1284_v1  ;;  %5556 = vmatmul.msk.f32.gmra.mxu3 %vm1374_vm1, %v1346_v2  ;;  %v1295_v1 = vld [vmem:[%s6433_s24 + $0x3e0] sm:$0xff]  ;;  %v1357_v2 = vld [vmem:[%s6433_s24 + $0x5d0] sm:$0xff] }
 0x160   : > { %5396 = vmatmul.msk.f32.gmra.mxu0 %vm1374_vm1, %v1186_v3  ;;  %5526 = vmatmul.msk.f32.gmra.mxu2 %vm1374_vm1, %v1316_v4 }
 0x162   : > { %5495 = vmatmul.msk.f32.gmra.mxu1 %vm1374_vm1, %v1285_v5  ;;  %5557 = vmatmul.msk.f32.gmra.mxu3 %vm1374_vm1, %v1347_v6  ;;  %v1197_v6 = vld [vmem:[%s6433_s24 + $0xd0] sm:$0xff] }
 0x165   : > { %v6563_v7 = vpop.f32.mrf.mxu0 }
 0x167   : > { %v6631_v42 = vpop.f32.mrf.mxu1 }
 0x168   : > { %5397 = vmatmul.msk.f32.gmra.mxu0 %vm1374_vm1, %v1187_v8  ;;  %5527 = vmatmul.msk.f32.gmra.mxu2 %vm1374_vm1, %v1317_v9  ;;  %v1327_v8 = vld [vmem:[%s6433_s24 + $0x4e0] sm:$0xff] }
 0x16a   : > { %5496 = vmatmul.msk.f32.gmra.mxu1 %vm1374_vm1, %v1286_v10  ;;  %5558 = vmatmul.msk.f32.gmra.mxu3 %vm1374_vm1, %v1348_v11  ;;  %v1296_v10 = vld [vmem:[%s6433_s24 + $0x3e8] sm:$0xff]  ;;  %v1358_v11 = vld [vmem:[%s6433_s24 + $0x5d8] sm:$0xff] }
 0x16b   : > { %v6625_v38 = vpop.f32.mrf.mxu2 }
 0x16d   : > { %v6573_v12 = vpop.f32.mrf.mxu0  ;;  %v6617_v35 = vpop.f32.mrf.mxu3 }
 0x16e   : > { %8785 = vst [vmem:[#allocation6_spill] sm:$0xff] %v6617_v35 }
 0x16f   : > { %v6649_v52 = vpop.f32.mrf.mxu1 }
 0x170   : > { %5398 = vmatmul.msk.f32.gmra.mxu0 %vm1374_vm1, %v1188_v13  ;;  %5528 = vmatmul.msk.f32.gmra.mxu2 %vm1374_vm1, %v1318_v14  ;;  %v2835_v13 = vld [vmem:[%s8777_s4 + $0x18] sm:$0xff]  ;;  %v2834_v14 = vld [vmem:[%s8777_s4 + $0x10] sm:$0xff] }
 0x171   : > { %2918 = vmatpush.msrb.mxu2 %v2835_v13 }
 0x172   : > { %5497 = vmatmul.msk.f32.gmra.mxu1 %vm1374_vm1, %v1287_v15  ;;  %5559 = vmatmul.msk.f32.gmra.mxu3 %vm1374_vm1, %v1349_v16  ;;  %v2833_v16 = vld [vmem:[%s8777_s4 + $0x8] sm:$0xff] }
 0x173   : > { %v6645_v49 = vpop.f32.mrf.mxu2  ;;  %2919 = vmatpush.msrb.mxu2 %v2834_v14 }
 0x175   : > { %v6583_v17 = vpop.f32.mrf.mxu0  ;;  %v6635_v45 = vpop.f32.mrf.mxu3  ;;  %2920 = vmatpush.msrb.mxu2 %v2833_v16  ;;  %v1202_v16 = vld [vmem:[%s6433_s24 + $0xf8] sm:$0xff] }
 0x176   : > { %8786 = vst [vmem:[#allocation7_spill] sm:$0xff] %v6635_v45  ;;  %v1242_v45 = vld [vmem:[%s6433_s24 + $0x238] sm:$0xff] }
 0x177   : > { %v6667_v60 = vpop.f32.mrf.mxu1 }
 0x178   : > { %5399 = vmatmul.msk.f32.gmra.mxu0 %vm1374_vm1, %v1189_v18  ;;  %5529 = vmatmul.msk.f32.gmra.mxu2 %vm1374_vm1, %v1319_v19  ;;  %v1198_v19 = vld [vmem:[%s6433_s24 + $0xd8] sm:$0xff] }
 0x17a   : > { %5498 = vmatmul.msk.f32.gmra.mxu1 %vm1374_vm1, %v1288_v20  ;;  %5560 = vmatmul.msk.f32.gmra.mxu3 %vm1374_vm1, %v1350_v21  ;;  %v1328_v20 = vld [vmem:[%s6433_s24 + $0x4e8] sm:$0xff] }
 0x17b   : > { %v6663_v59 = vpop.f32.mrf.mxu2 }
 0x17d   : > { %v6593_v22 = vpop.f32.mrf.mxu0  ;;  %v6653_v53 = vpop.f32.mrf.mxu3 }
 0x17e   : > { %8787 = vst [vmem:[#allocation8_spill] sm:$0xff] %v6653_v53 }
 0x17f   : > { %v6685_v4 = vpop.f32.mrf.mxu1 }
 0x180   : > { %5400 = vmatmul.msk.f32.gmra.mxu0 %vm1374_vm1, %v1190_v23  ;;  %5530 = vmatmul.msk.f32.gmra.mxu2 %vm1374_vm1, %v1320_v24  ;;  %v2832_v23 = vld [vmem:[%s8777_s4] sm:$0xff]  ;;  %v1297_v24 = vld [vmem:[%s6433_s24 + $0x3f0] sm:$0xff] }
 0x181   : > { %2921 = vmatpush.msrb.mxu2 %v2832_v23  ;;  %v1363_v23 = vld [vmem:[%s6433_s24 + $0x600] sm:$0xff] }
 0x182   : > { %5499 = vmatmul.msk.f32.gmra.mxu1 %vm1374_vm1, %v1289_v25  ;;  %5561 = vmatmul.msk.f32.gmra.mxu3 %vm1374_vm1, %v1351_v26  ;;  %v1359_v25 = vld [vmem:[%s6433_s24 + $0x5e0] sm:$0xff] }
 0x183   : > { %v6681_v3 = vpop.f32.mrf.mxu2 }
 0x185   : > { %v6603_v27 = vpop.f32.mrf.mxu0  ;;  %v6671_v61 = vpop.f32.mrf.mxu3 }
 0x186   : > { %8788 = vst [vmem:[#allocation9_spill] sm:$0xff] %v6671_v61 }
 0x187   : > { %v6714_v21 = vpop.f32.mrf.mxu1 }
 0x188   : > { %5401 = vmatmul.msk.f32.gmra.mxu0 %vm1374_vm1, %v1191_v28  ;;  %5531 = vmatmul.msk.f32.gmra.mxu2 %vm1374_vm1, %v1321_v29  ;;  %v2851_v28 = vld [vmem:[%s8777_s4 + $0x98] sm:$0xff]  ;;  %v2850_v29 = vld [vmem:[%s8777_s4 + $0x90] sm:$0xff] }
 0x189   : > { %2877 = vmatpush.msrb.mxu1 %v2851_v28 }
 0x18a   : > { %5500 = vmatmul.msk.f32.gmra.mxu1 %vm1374_vm1, %v1290_v30  ;;  %5562 = vmatmul.msk.f32.gmra.mxu3 %vm1374_vm1, %v1352_v31  ;;  %v1199_v31 = vld [vmem:[%s6433_s24 + $0xe0] sm:$0xff] }
 0x18b   : > { %v6705_v15 = vpop.f32.mrf.mxu2  ;;  %2878 = vmatpush.msrb.mxu1 %v2850_v29  ;;  %v2937_v29 = vld [vmem:[%s8777_s4 + $0xb0] sm:$0xff] }
 0x18d   : > { %v6613_v32 = vpop.f32.mrf.mxu0  ;;  %v6691_v9 = vpop.f32.mrf.mxu3 }
 0x18e   : > { %8789 = vst [vmem:[#allocation10_spill] sm:$0xff] %v6691_v9 }
 0x190   : > { %5402 = vmatmul.msk.f32.gmra.mxu0 %vm1374_vm1, %v1192_v33  ;;  %5532 = vmatmul.msk.f32.gmra.mxu2 %vm1374_vm1, %v1322_v34  ;;  %v1329_v33 = vld [vmem:[%s6433_s24 + $0x4f0] sm:$0xff] }
 0x192   : > { %5501 = vmatmul.msk.f32.gmra.mxu1 %vm1374_vm1, %v1291_v36  ;;  %5563 = vmatmul.msk.f32.gmra.mxu3 %vm1374_vm1, %v1353_v37  ;;  %v2849_v36 = vld [vmem:[%s8777_s4 + $0x88] sm:$0xff]  ;;  %v1298_v37 = vld [vmem:[%s6433_s24 + $0x3f8] sm:$0xff] }
 0x193   : > { %v6737_v34 = vpop.f32.mrf.mxu2  ;;  %2879 = vmatpush.msrb.mxu1 %v2849_v36 }
 0x195   : > { %v6627_v39 = vpop.f32.mrf.mxu0  ;;  %v6721_v26 = vpop.f32.mrf.mxu3 }
 0x196   : > { %8790 = vst [vmem:[#allocation11_spill] sm:$0xff] %v6721_v26 }
 0x198   : > { %5403 = vmatmul.msk.f32.gmra.mxu0 %vm1374_vm1, %v1193_v40  ;;  %5533 = vmatmul.msk.f32.gmra.mxu2 %vm1374_vm1, %v1323_v41  ;;  %v1360_v40 = vld [vmem:[%s6433_s24 + $0x5e8] sm:$0xff]  ;;  %v6744_v41 = vpop.f32.mrf.mxu1 }
 0x19a   : > { %5502 = vmatmul.msk.f32.gmra.mxu1 %vm1374_vm1, %v1292_v43  ;;  %5564 = vmatmul.msk.f32.gmra.mxu3 %vm1374_vm1, %v1354_v44  ;;  %v2848_v43 = vld [vmem:[%s8777_s4 + $0x80] sm:$0xff] }
 0x19b   : > { %2880 = vmatpush.msrb.mxu1 %v2848_v43  ;;  %v2936_v43 = vld [vmem:[%s8777_s4 + $0xa8] sm:$0xff] }
 0x19d   : > { %v6641_v46 = vpop.f32.mrf.mxu0  ;;  %v6751_v44 = vpop.f32.mrf.mxu3 }
 0x19e   : > { %8791 = vst [vmem:[#allocation12_spill] sm:$0xff] %v6751_v44 }
 0x1a0   : > { %5404 = vmatmul.msk.f32.gmra.mxu0 %vm1374_vm1, %v1194_v47  ;;  %5534 = vmatmul.msk.f32.gmra.mxu2 %vm1374_vm1, %v1324_v48  ;;  %v1200_v48 = vld [vmem:[%s6433_s24 + $0xe8] sm:$0xff] }
 0x1a2   : > { %5503 = vmatmul.msk.f32.gmra.mxu1 %vm1374_vm1, %v1293_v50  ;;  %5565 = vmatmul.msk.f32.gmra.mxu3 %vm1374_vm1, %v1355_v51  ;;  %v1330_v50 = vld [vmem:[%s6433_s24 + $0x4f8] sm:$0xff]  ;;  %v1299_v51 = vld [vmem:[%s6433_s24 + $0x400] sm:$0xff] }
 0x1a5   : > { %v6657_v54 = vpop.f32.mrf.mxu0 }
 0x1a8   : > { %5405 = vmatmul.msk.f32.gmra.mxu0 %vm1374_vm1, %v1195_v55  ;;  %5535 = vmatmul.msk.f32.gmra.mxu2 %vm1374_vm1, %v1325_v56  ;;  %v1361_v55 = vld [vmem:[%s6433_s24 + $0x5f0] sm:$0xff]  ;;  %v6761_v56 = vpop.f32.mrf.mxu2 }
 0x1aa   : > { %5504 = vmatmul.msk.f32.gmra.mxu1 %vm1374_vm1, %v1294_v57  ;;  %5566 = vmatmul.msk.f32.gmra.mxu3 %vm1374_vm1, %v1356_v58  ;;  %v6765_v57 = vpop.f32.mrf.mxu1  ;;  %v6769_v58 = vpop.f32.mrf.mxu3 }
 0x1ab   : > { %8792 = vst [vmem:[#allocation13_spill] sm:$0xff] %v6769_v58 }
 0x1ad   : > { %v6673_v62 = vpop.f32.mrf.mxu0 }
 0x1b0   : > { %5406 = vmatmul.msk.f32.gmra.mxu0 %vm1374_vm1, %v1196_v63  ;;  %5536 = vmatmul.msk.f32.gmra.mxu2 %vm1374_vm1, %v1326_v0  ;;  %v1201_v0 = vld [vmem:[%s6433_s24 + $0xf0] sm:$0xff] }
 0x1b2   : > { %5505 = vmatmul.msk.f32.gmra.mxu1 %vm1374_vm1, %v1295_v1  ;;  %5567 = vmatmul.msk.f32.gmra.mxu3 %vm1374_vm1, %v1357_v2  ;;  %v1331_v1 = vld [vmem:[%s6433_s24 + $0x500] sm:$0xff]  ;;  %v6790_v13 = vpop.f32.mrf.mxu1 }
 0x1b3   : > { %v6778_v2 = vld [vmem:[%s8776_s3] ss:$0 sm:$0xff] }
 0x1b5   : > { %v6687_v5 = vpop.f32.mrf.mxu0 }
 0x1b8   : > { %5407 = vmatmul.msk.f32.gmra.mxu0 %vm1374_vm1, %v1197_v6  ;;  %5537 = vmatmul.msk.f32.gmra.mxu2 %vm1374_vm1, %v1327_v8  ;;  %v1300_v6 = vld [vmem:[%s6433_s24 + $0x408] sm:$0xff]  ;;  %v1362_v8 = vld [vmem:[%s6433_s24 + $0x5f8] sm:$0xff] }
 0x1ba   : > { %5506 = vmatmul.msk.f32.gmra.mxu1 %vm1374_vm1, %v1296_v10  ;;  %5568 = vmatmul.msk.f32.gmra.mxu3 %vm1374_vm1, %v1358_v11  ;;  %v1985_v10 = vadd.f32 %v6778_v2, %v6563_v7  ;;  %v6786_v11 = vpop.f32.mrf.mxu2  ;;  %v1988_v7 = vadd.f32 %v6778_v2, %v6573_v12  ;;  %v2838_v12 = vld [vmem:[%s8777_s4 + $0x30] sm:$0xff] }
 0x1bc   : > { %v2573_v36 = vmax.f32 %v1988_v7, 0.0  ;;  %v1365_v7 = vld [vmem:[%s6433_s24 + $0x610] sm:$0xff] }
 0x1bd   : > { %v6710_v18 = vpop.f32.mrf.mxu0 }
 0x1c0   : > { %5408 = vmatmul.msk.f32.gmra.mxu0 %vm1374_vm1, %v1198_v19  ;;  %5538 = vmatmul.msk.f32.gmra.mxu2 %vm1374_vm1, %v1328_v20  ;;  %v2572_v19 = vmax.f32 %v1985_v10, 0.0  ;;  %v6795_v20 = vpop.f32.mrf.mxu3  ;;  %v1204_v10 = vld [vmem:[%s6433_s24 + $0x108] sm:$0xff] }
 0x1c1   : > { %8793 = vst [vmem:[#allocation14_spill] sm:$0xff] %v6795_v20 }
 0x1c2   : > { %5507 = vmatmul.msk.f32.gmra.mxu1 %vm1374_vm1, %v1297_v24  ;;  %5569 = vmatmul.msk.f32.gmra.mxu3 %vm1374_vm1, %v1359_v25  ;;  %v2938_v24 = vld [vmem:[%s8777_s4 + $0xb8] sm:$0xff]  ;;  %v6809_v28 = vpop.f32.mrf.mxu2 }
 0x1c3   : > { %v2839_v25 = vld [vmem:[%s8777_s4 + $0x38] sm:$0xff]  ;;  %2963 = vmatpush.msrb.mxu3 %v2938_v24 }
 0x1c4   : > { %3004 = vmatpush.msra.mxu1 %v2839_v25 }
 0x1c5   : > { %v6733_v30 = vpop.f32.mrf.mxu0  ;;  %2964 = vmatpush.msrb.mxu3 %v2937_v29 }
 0x1c6   : > { %3005 = vmatpush.msra.mxu1 %v2838_v12 }
 0x1c7   : > { %2965 = vmatpush.msrb.mxu3 %v2936_v43 }
 0x1c8   : > { %5409 = vmatmul.msk.f32.gmra.mxu0 %vm1374_vm1, %v1199_v31  ;;  %5539 = vmatmul.msk.f32.gmra.mxu2 %vm1374_vm1, %v1329_v33  ;;  %v1203_v33 = vld [vmem:[%s6433_s24 + $0x100] sm:$0xff] }
 0x1ca   : > { %5508 = vmatmul.msk.f32.gmra.mxu1 %vm1374_vm1, %v1298_v37  ;;  %5570 = vmatmul.msk.f32.gmra.mxu3 %vm1374_vm1, %v1360_v40  ;;  %v6818_v37 = vpop.f32.mrf.mxu1 }
 0x1cd   : > { %v6755_v47 = vpop.f32.mrf.mxu0 }
 0x1d0   : > { %5410 = vmatmul.msk.f32.gmra.mxu0 %vm1374_vm1, %v1200_v48  ;;  %5540 = vmatmul.msk.f32.gmra.mxu2 %vm1374_vm1, %v1330_v50  ;;  %v2837_v48 = vld [vmem:[%s8777_s4 + $0x28] sm:$0xff] }
 0x1d1   : > { %v1364_v50 = vld [vmem:[%s6433_s24 + $0x608] sm:$0xff]  ;;  %3006 = vmatpush.msra.mxu1 %v2837_v48 }
 0x1d2   : > { %5509 = vmatmul.msk.f32.gmra.mxu1 %vm1374_vm1, %v1299_v51  ;;  %5571 = vmatmul.msk.f32.gmra.mxu3 %vm1374_vm1, %v1361_v55  ;;  %v6828_v51 = vpop.f32.mrf.mxu3  ;;  %v6847_v24 = vpop.f32.mrf.mxu1 }
 0x1d3   : > { %8794 = vst [vmem:[#allocation15_spill] sm:$0xff] %v6828_v51 }
 0x1d5   : > { %v6771_v63 = vpop.f32.mrf.mxu0 }
 0x1d8   : > { %5411 = vmatmul.msk.f32.gmra.mxu0 %vm1374_vm1, %v1201_v0  ;;  %5541 = vmatmul.msk.f32.gmra.mxu2 %vm1374_vm1, %v1331_v1  ;;  %v2935_v0 = vld [vmem:[%s8777_s4 + $0xa0] sm:$0xff] }
 0x1d9   : > { %v2836_v1 = vld [vmem:[%s8777_s4 + $0x20] sm:$0xff]  ;;  %2966 = vmatpush.msrb.mxu3 %v2935_v0  ;;  %v1206_v0 = vld [vmem:[%s6433_s24 + $0x118] sm:$0xff] }
 0x1da   : > { %5510 = vmatmul.msk.f32.gmra.mxu1 %vm1374_vm1, %v1300_v6  ;;  %5572 = vmatmul.msk.f32.gmra.mxu3 %vm1374_vm1, %v1362_v8  ;;  %v1991_v6 = vadd.f32 %v6778_v2, %v6583_v17  ;;  %v1994_v17 = vadd.f32 %v6778_v2, %v6593_v22  ;;  %v6853_v29 = vpop.f32.mrf.mxu3  ;;  %v6864_v22 = vpop.f32.mrf.mxu1 }
 0x1db   : > { %3007 = vmatpush.msra.mxu1 %v2836_v1  ;;  %8795 = vst [vmem:[#allocation16_spill] sm:$0xff] %v6853_v29 }
 0x1dd   : > { %v6792_v14 = vpop.f32.mrf.mxu0 }
 0x1e0   : > { %5412 = vmatmul.msk.f32.gmra.mxu0 %vm1374_vm1, %v1202_v16  ;;  %5581 = vmatmul.msk.f32.vlgmr.msrb.gmra.mxu2 %vm2852_vm2, %v2572_v19  ;;  %v2574_v16 = vmax.f32 %v1991_v6, 0.0  ;;  %v6843_v19 = vpop.f32.mrf.mxu2 }
 0x1e2   : > { %5573 = vmatmul.msk.f32.gmra.mxu3 %vm1374_vm1, %v1363_v23 }
 0x1e5   : > { %v2032_v31 = vpop.f32.mrf.mxu0 }
 0x1e6   : > { %v2033_v40 = vadd.f32 %v6778_v2, %v2032_v31  ;;  %v1205_v31 = vld [vmem:[%s6433_s24 + $0x110] sm:$0xff] }
 0x1e8   : > { %v2588_v55 = vmax.f32 %v2033_v40, 0.0  ;;  %5413 = vmatmul.msk.f32.gmra.mxu0 %vm1374_vm1, %v1203_v33  ;;  %5582 = vmatmul.msk.f32.gmra.mxu2 %vm2852_vm2, %v2573_v36  ;;  %v2575_v33 = vmax.f32 %v1994_v17, 0.0  ;;  %v1366_v40 = vld [vmem:[%s6433_s24 + $0x618] sm:$0xff]  ;;  %v6860_v43 = vpop.f32.mrf.mxu2 }
 0x1ea   : > { %5577 = vmatmul.msk.f32.vlgmr.msrb.gmra.mxu1 %vm2852_vm2, %v2588_v55  ;;  %5574 = vmatmul.msk.f32.gmra.mxu3 %vm1374_vm1, %v1364_v50  ;;  %v6868_v50 = vpop.f32.mrf.mxu3 }
 0x1eb   : > { %8796 = vst [vmem:[#allocation17_spill] sm:$0xff] %v6868_v50  ;;  %v1238_v50 = vld [vmem:[%s6433_s24 + $0x218] sm:$0xff] }
 0x1ed   : > { %v2035_v8 = vpop.f32.mrf.mxu0 }
 0x1ee   : > { %v2036_v23 = vadd.f32 %v6778_v2, %v2035_v8  ;;  %v3024_v8 = vld [vmem:[%s8777_s4 + $0xd8] sm:$0xff] }
 0x1ef   : > { %3049 = vmatpush.msra.mxu2 %v3024_v8  ;;  %v1208_v8 = vld [vmem:[%s6433_s24 + $0x128] sm:$0xff] }
 0x1f0   : > { %v2589_v25 = vmax.f32 %v2036_v23, 0.0  ;;  %5414 = vmatmul.msk.f32.gmra.mxu0 %vm1374_vm1, %v1204_v10  ;;  %5583 = vmatmul.msk.f32.gmra.mxu2 %vm2852_vm2, %v2574_v16  ;;  %v2843_v10 = vld [vmem:[%s8777_s4 + $0x58] sm:$0xff]  ;;  %v1997_v16 = vadd.f32 %v6778_v2, %v6603_v27  ;;  %v6882_v23 = vpop.f32.mrf.mxu1  ;;  %v3022_v27 = vld [vmem:[%s8777_s4 + $0xc8] sm:$0xff] }
 0x1f1   : > { %3090 = vmatpush.msra.mxu3 %v2843_v10 }
 0x1f2   : > { %5578 = vmatmul.msk.f32.gmra.mxu1 %vm2852_vm2, %v2589_v25  ;;  %5575 = vmatmul.msk.f32.gmra.mxu3 %vm1374_vm1, %v1365_v7  ;;  %v3023_v7 = vld [vmem:[%s8777_s4 + $0xd0] sm:$0xff] }
 0x1f3   : > { %v2842_v25 = vld [vmem:[%s8777_s4 + $0x50] sm:$0xff]  ;;  %3050 = vmatpush.msra.mxu2 %v3023_v7 }
 0x1f4   : > { %3091 = vmatpush.msra.mxu3 %v2842_v25 }
 0x1f5   : > { %v2038_v12 = vpop.f32.mrf.mxu0  ;;  %3051 = vmatpush.msra.mxu2 %v3022_v27 }
 0x1f6   : > { %v2039_v36 = vadd.f32 %v6778_v2, %v2038_v12  ;;  %v1207_v12 = vld [vmem:[%s6433_s24 + $0x120] sm:$0xff] }
 0x1f8   : > { %v2590_v48 = vmax.f32 %v2039_v36, 0.0  ;;  %5415 = vmatmul.msk.f32.gmra.mxu0 %vm1374_vm1, %v1205_v31  ;;  %5584 = vmatmul.msk.f32.gmra.mxu2 %vm2852_vm2, %v2575_v33  ;;  %v6891_v31 = vpop.f32.mrf.mxu3  ;;  %v2841_v36 = vld [vmem:[%s8777_s4 + $0x48] sm:$0xff]  ;;  %v6912_v10 = vpop.f32.mrf.mxu1 }
 0x1f9   : > { %8797 = vst [vmem:[#allocation18_spill] sm:$0xff] %v6891_v31  ;;  %3092 = vmatpush.msra.mxu3 %v2841_v36 }
 0x1fa   : > { %5579 = vmatmul.msk.f32.gmra.mxu1 %vm2852_vm2, %v2590_v48  ;;  %5576 = vmatmul.msk.f32.gmra.mxu3 %vm1374_vm1, %v1366_v40  ;;  %v2576_v40 = vmax.f32 %v1997_v16, 0.0 }
 0x1fd   : > { %v2041_v55 = vpop.f32.mrf.mxu0 }
 0x1fe   : > { %v2042_v1 = vadd.f32 %v6778_v2, %v2041_v55  ;;  %v3021_v55 = vld [vmem:[%s8777_s4 + $0xc0] sm:$0xff] }
 0x1ff   : > { %3052 = vmatpush.msra.mxu2 %v3021_v55 }
 0x200   : > { %v2591_v6 = vmax.f32 %v2042_v1, 0.0  ;;  %5416 = vmatmul.msk.f32.gmra.mxu0 %vm1374_vm1, %v1206_v0  ;;  %v2840_v0 = vld [vmem:[%s8777_s4 + $0x40] sm:$0xff]  ;;  %v2000_v1 = vadd.f32 %v6778_v2, %v6613_v32  ;;  %v6915_v25 = vpop.f32.mrf.mxu3  ;;  %v2003_v32 = vadd.f32 %v6778_v2, %v6627_v39  ;;  %v6933_v39 = vpop.f32.mrf.mxu2 }
 0x201   : > { %3093 = vmatpush.msra.mxu3 %v2840_v0  ;;  %8798 = vst [vmem:[#allocation19_spill] sm:$0xff] %v6915_v25  ;;  %v2006_v0 = vadd.f32 %v6778_v2, %v6641_v46  ;;  %v3110_v46 = vld [vmem:[%s8777_s4 + $0xf8] sm:$0xff] }
 0x202   : > { %5580 = vmatmul.msk.f32.gmra.mxu1 %vm2852_vm2, %v2591_v6  ;;  %v2577_v7 = vmax.f32 %v2000_v1, 0.0  ;;  %v2578_v36 = vmax.f32 %v2003_v32, 0.0  ;;  %v2847_v32 = vld [vmem:[%s8777_s4 + $0x78] sm:$0xff] }
 0x203   : > { %3135 = vmatpush.msrb.mxu1 %v3110_v46  ;;  %3176 = vmatpush.msrb.mxu2 %v2847_v32  ;;  %v3107_v46 = vld [vmem:[%s8777_s4 + $0xe0] sm:$0xff]  ;;  %v1230_v25 = vld [vmem:[%s6433_s24 + $0x1d8] sm:$0xff] }
 0x204   : > { %v2844_v32 = vld [vmem:[%s8777_s4 + $0x60] sm:$0xff] }
 0x205   : > { %v2044_v17 = vpop.f32.mrf.mxu0 }
 0x206   : > { %v2045_v33 = vadd.f32 %v6778_v2, %v2044_v17 }
 0x208   : > { %v2592_v48 = vmax.f32 %v2045_v33, 0.0  ;;  %5417 = vmatmul.msk.f32.gmra.mxu0 %vm1374_vm1, %v1207_v12  ;;  %v1209_v33 = vld [vmem:[%s6433_s24 + $0x130] sm:$0xff]  ;;  %v6927_v55 = vpop.f32.mrf.mxu3 }
 0x209   : > { %8799 = vst [vmem:[#allocation20_spill] sm:$0xff] %v6927_v55 }
 0x20a   : > { %5585 = vmatmul.msk.f32.vlgmr.msrb.gmra.mxu3 %vm2852_vm2, %v2592_v48  ;;  %5589 = vmatmul.msk.f32.vlgmr.msra.gmra.mxu1 %vm2852_vm2, %v2576_v40  ;;  %v6924_v40 = vpop.f32.mrf.mxu1 }
 0x20d   : > { %v2047_v6 = vpop.f32.mrf.mxu0 }
 0x20e   : > { %v2048_v16 = vadd.f32 %v6778_v2, %v2047_v6  ;;  %v1210_v6 = vld [vmem:[%s6433_s24 + $0x138] sm:$0xff] }
 0x210   : > { %v2593_v17 = vmax.f32 %v2048_v16, 0.0  ;;  %5418 = vmatmul.msk.f32.gmra.mxu0 %vm1374_vm1, %v1208_v8  ;;  %v2579_v16 = vmax.f32 %v2006_v0, 0.0  ;;  %v1211_v0 = vld [vmem:[%s6433_s24 + $0x140] sm:$0xff] }
 0x212   : > { %5586 = vmatmul.msk.f32.gmra.mxu3 %vm2852_vm2, %v2593_v17  ;;  %5590 = vmatmul.msk.f32.gmra.mxu1 %vm2852_vm2, %v2577_v7  ;;  %v6938_v17 = vpop.f32.mrf.mxu1 }
 0x215   : > { %v2050_v12 = vpop.f32.mrf.mxu0 }
 0x216   : > { %v2051_v27 = vadd.f32 %v6778_v2, %v2050_v12  ;;  %v2009_v12 = vadd.f32 %v6778_v2, %v6657_v54  ;;  %v3108_v54 = vld [vmem:[%s8777_s4 + $0xe8] sm:$0xff] }
 0x218   : > { %v2594_v48 = vmax.f32 %v2051_v27, 0.0  ;;  %5419 = vmatmul.msk.f32.gmra.mxu0 %vm1374_vm1, %v1209_v33  ;;  %v6950_v33 = vpop.f32.mrf.mxu3  ;;  %v3109_v27 = vld [vmem:[%s8777_s4 + $0xf0] sm:$0xff] }
 0x219   : > { %8800 = vst [vmem:[#allocation21_spill] sm:$0xff] %v6950_v33  ;;  %3136 = vmatpush.msrb.mxu1 %v3109_v27  ;;  %v1226_v33 = vld [vmem:[%s6433_s24 + $0x1b8] sm:$0xff] }
 0x21a   : > { %5587 = vmatmul.msk.f32.gmra.mxu3 %vm2852_vm2, %v2594_v48  ;;  %5591 = vmatmul.msk.f32.gmra.mxu1 %vm2852_vm2, %v2578_v36  ;;  %v2846_v36 = vld [vmem:[%s8777_s4 + $0x70] sm:$0xff] }
 0x21b   : > { %3177 = vmatpush.msrb.mxu2 %v2846_v36  ;;  %3137 = vmatpush.msrb.mxu1 %v3108_v54  ;;  %v1212_v36 = vld [vmem:[%s6433_s24 + $0x148] sm:$0xff] }
 0x21d   : > { %v2053_v1 = vpop.f32.mrf.mxu0  ;;  %3138 = vmatpush.msrb.mxu1 %v3107_v46 }
 0x21e   : > { %v2054_v8 = vadd.f32 %v6778_v2, %v2053_v1  ;;  %v6959_v1 = vpop.f32.mrf.mxu2 }
 0x220   : > { %v2595_v7 = vmax.f32 %v2054_v8, 0.0  ;;  %5420 = vmatmul.msk.f32.gmra.mxu0 %vm1374_vm1, %v1210_v6  ;;  %v2845_v8 = vld [vmem:[%s8777_s4 + $0x68] sm:$0xff] }
 0x221   : > { %3178 = vmatpush.msrb.mxu2 %v2845_v8 }
 0x222   : > { %5588 = vmatmul.msk.f32.gmra.mxu3 %vm2852_vm2, %v2595_v7  ;;  %5592 = vmatmul.msk.f32.gmra.mxu1 %vm2852_vm2, %v2579_v16  ;;  %v2580_v16 = vmax.f32 %v2009_v12, 0.0  ;;  %v2012_v12 = vadd.f32 %v6778_v2, %v6673_v62  ;;  %v2015_v62 = vadd.f32 %v6778_v2, %v6687_v5 }
 0x223   : > { %3179 = vmatpush.msrb.mxu2 %v2844_v32 }
 0x224   : > { %v2582_v32 = vmax.f32 %v2015_v62, 0.0 }
 0x225   : > { %v2056_v48 = vpop.f32.mrf.mxu0 }
 0x226   : > { %v2057_v6 = vadd.f32 %v6778_v2, %v2056_v48  ;;  %v6980_v48 = vpop.f32.mrf.mxu3  ;;  %v6983_v54 = vpop.f32.mrf.mxu2 }
 0x227   : > { %8801 = vst [vmem:[#allocation22_spill] sm:$0xff] %v6980_v48 }
 0x228   : > { %v2596_v7 = vmax.f32 %v2057_v6, 0.0  ;;  %5421 = vmatmul.msk.f32.gmra.mxu0 %vm1374_vm1, %v1211_v0  ;;  %v2581_v6 = vmax.f32 %v2012_v12, 0.0 }
 0x22a   : > { %5593 = vmatmul.msk.f32.vlgmr.msra.gmra.mxu2 %vm2852_vm2, %v2596_v7  ;;  %5597 = vmatmul.msk.f32.vlgmr.msra.gmra.mxu3 %vm2852_vm2, %v2580_v16  ;;  %v1213_v7 = vld [vmem:[%s6433_s24 + $0x150] sm:$0xff] }
 0x22d   : > { %v2059_v27 = vpop.f32.mrf.mxu0 }
 0x22e   : > { %v2060_v0 = vadd.f32 %v6778_v2, %v2059_v27  ;;  %v6992_v27 = vpop.f32.mrf.mxu3 }
 0x22f   : > { %8802 = vst [vmem:[#allocation23_spill] sm:$0xff] %v6992_v27 }
 0x230   : > { %v2597_v8 = vmax.f32 %v2060_v0, 0.0  ;;  %5422 = vmatmul.msk.f32.gmra.mxu0 %vm1374_vm1, %v1212_v36  ;;  %v6995_v0 = vpop.f32.mrf.mxu2  ;;  %v2018_v36 = vadd.f32 %v6778_v2, %v6710_v18  ;;  %v2021_v18 = vadd.f32 %v6778_v2, %v6733_v30 }
 0x232   : > { %5594 = vmatmul.msk.f32.gmra.mxu2 %vm2852_vm2, %v2597_v8  ;;  %5598 = vmatmul.msk.f32.gmra.mxu3 %vm2852_vm2, %v2581_v6  ;;  %v1214_v6 = vld [vmem:[%s6433_s24 + $0x158] sm:$0xff]  ;;  %v2583_v62 = vmax.f32 %v2018_v36, 0.0  ;;  %v3195_v36 = vld [vmem:[%s8777_s4 + $0x110] sm:$0xff]  ;;  %v2584_v30 = vmax.f32 %v2021_v18, 0.0 }
 0x235   : > { %v2062_v16 = vpop.f32.mrf.mxu0 }
 0x236   : > { %v2063_v46 = vadd.f32 %v6778_v2, %v2062_v16 }
 0x238   : > { %v2598_v12 = vmax.f32 %v2063_v46, 0.0  ;;  %5423 = vmatmul.msk.f32.gmra.mxu0 %vm1374_vm1, %v1213_v7  ;;  %v7004_v46 = vpop.f32.mrf.mxu3  ;;  %v3196_v7 = vld [vmem:[%s8777_s4 + $0x118] sm:$0xff] }
 0x239   : > { %8803 = vst [vmem:[#allocation24_spill] sm:$0xff] %v7004_v46  ;;  %3221 = vmatpush.msrb.mxu3 %v3196_v7  ;;  %v3193_v7 = vld [vmem:[%s8777_s4 + $0x100] sm:$0xff]  ;;  %v1216_v46 = vld [vmem:[%s6433_s24 + $0x168] sm:$0xff] }
 0x23a   : > { %5595 = vmatmul.msk.f32.gmra.mxu2 %vm2852_vm2, %v2598_v12  ;;  %5599 = vmatmul.msk.f32.gmra.mxu3 %vm2852_vm2, %v2582_v32  ;;  %v7013_v32 = vpop.f32.mrf.mxu2  ;;  %v7015_v12 = vpop.f32.mrf.mxu1 }
 0x23b   : > { %8804 = vst [vmem:[#allocation25_spill] sm:$0xff] %v7013_v32  ;;  %3222 = vmatpush.msrb.mxu3 %v3195_v36  ;;  %v2024_v36 = vadd.f32 %v6778_v2, %v6755_v47  ;;  %v2027_v47 = vadd.f32 %v6778_v2, %v6771_v63 }
 0x23d   : > { %v2065_v5 = vpop.f32.mrf.mxu0  ;;  %v2586_v27 = vmax.f32 %v2027_v47, 0.0 }
 0x23e   : > { %v2066_v8 = vadd.f32 %v6778_v2, %v2065_v5 }
 0x240   : > { %v2599_v16 = vmax.f32 %v2066_v8, 0.0  ;;  %5424 = vmatmul.msk.f32.gmra.mxu0 %vm1374_vm1, %v1214_v6  ;;  %v1215_v6 = vld [vmem:[%s6433_s24 + $0x160] sm:$0xff] }
 0x242   : > { %5596 = vmatmul.msk.f32.gmra.mxu2 %vm2852_vm2, %v2599_v16  ;;  %5600 = vmatmul.msk.f32.gmra.mxu3 %vm2852_vm2, %v2583_v62  ;;  %v3194_v62 = vld [vmem:[%s8777_s4 + $0x108] sm:$0xff]  ;;  %v7036_v18 = vpop.f32.mrf.mxu1 }
 0x243   : > { %3223 = vmatpush.msrb.mxu3 %v3194_v62  ;;  %v7034_v62 = vpop.f32.mrf.mxu2 }
 0x244   : > { %8805 = vst [vmem:[#allocation26_spill] sm:$0xff] %v7034_v62  ;;  %v1250_v62 = vld [vmem:[%s6433_s24 + $0x278] sm:$0xff] }
 0x245   : > { %v2068_v5 = vpop.f32.mrf.mxu0  ;;  %3224 = vmatpush.msrb.mxu3 %v3193_v7 }
 0x246   : > { %v2069_v8 = vadd.f32 %v6778_v2, %v2068_v5 }
 0x248   : > { %v2600_v16 = vmax.f32 %v2069_v8, 0.0  ;;  %5425 = vmatmul.msk.f32.gmra.mxu0 %vm1374_vm1, %v1215_v6  ;;  %v2585_v8 = vmax.f32 %v2024_v36, 0.0 }
 0x24a   : > { %5601 = vmatmul.msk.f32.vlgmr.msrb.gmra.mxu1 %vm2852_vm2, %v2600_v16  ;;  %5605 = vmatmul.msk.f32.vlgmr.msrb.gmra.mxu2 %vm2852_vm2, %v2584_v30  ;;  %v1217_v16 = vld [vmem:[%s6433_s24 + $0x170] sm:$0xff] }
 0x24b   : > { %v7046_v51 = vpop.f32.mrf.mxu2 }
 0x24c   : > { %8806 = vst [vmem:[#allocation27_spill] sm:$0xff] %v7046_v51 }
 0x24d   : > { %v2071_v5 = vpop.f32.mrf.mxu0 }
 0x24e   : > { %v2072_v6 = vadd.f32 %v6778_v2, %v2071_v5  ;;  %v7048_v5 = vpop.f32.mrf.mxu1 }
 0x250   : > { %v2601_v29 = vmax.f32 %v2072_v6, 0.0  ;;  %5426 = vmatmul.msk.f32.gmra.mxu0 %vm1374_vm1, %v1216_v46  ;;  %v1218_v46 = vld [vmem:[%s6433_s24 + $0x178] sm:$0xff] }
 0x252   : > { %5602 = vmatmul.msk.f32.gmra.mxu1 %vm2852_vm2, %v2601_v29  ;;  %5606 = vmatmul.msk.f32.gmra.mxu2 %vm2852_vm2, %v2585_v8  ;;  %v2030_v29 = vadd.f32 %v6778_v2, %v6792_v14  ;;  %v3245_v14 = vld [vmem:[%s8777_s4 + $0x138] sm:$0xff] }
 0x253   : > { %3270 = vmatpush.msra.mxu1 %v3245_v14  ;;  %v1220_v14 = vld [vmem:[%s6433_s24 + $0x188] sm:$0xff] }
 0x254   : > { %v2587_v8 = vmax.f32 %v2030_v29, 0.0  ;;  %v1219_v29 = vld [vmem:[%s6433_s24 + $0x180] sm:$0xff] }
 0x255   : > { %v2074_v30 = vpop.f32.mrf.mxu0 }
 0x256   : > { %v2075_v7 = vadd.f32 %v6778_v2, %v2074_v30  ;;  %v7058_v30 = vpop.f32.mrf.mxu2 }
 0x258   : > { %v2602_v36 = vmax.f32 %v2075_v7, 0.0  ;;  %5427 = vmatmul.msk.f32.gmra.mxu0 %vm1374_vm1, %v1217_v16  ;;  %v7060_v7 = vpop.f32.mrf.mxu1  ;;  %v3244_v16 = vld [vmem:[%s8777_s4 + $0x130] sm:$0xff] }
 0x259   : > { %3271 = vmatpush.msra.mxu1 %v3244_v16 }
 0x25a   : > { %5603 = vmatmul.msk.f32.gmra.mxu1 %vm2852_vm2, %v2602_v36  ;;  %5607 = vmatmul.msk.f32.gmra.mxu2 %vm2852_vm2, %v2586_v27  ;;  %v7067_v27 = vpop.f32.mrf.mxu3 }
 0x25b   : > { %8807 = vst [vmem:[#allocation28_spill] sm:$0xff] %v7067_v27 }
 0x25d   : > { %v2077_v63 = vpop.f32.mrf.mxu0 }
 0x25e   : > { %v2078_v6 = vadd.f32 %v6778_v2, %v2077_v63 }
 0x260   : > { %v2603_v47 = vmax.f32 %v2078_v6, 0.0  ;;  %5428 = vmatmul.msk.f32.gmra.mxu0 %vm1374_vm1, %v1218_v46  ;;  %v3243_v46 = vld [vmem:[%s8777_s4 + $0x128] sm:$0xff] }
 0x261   : > { %3272 = vmatpush.msra.mxu1 %v3243_v46 }
 0x262   : > { %5604 = vmatmul.msk.f32.gmra.mxu1 %vm2852_vm2, %v2603_v47  ;;  %5608 = vmatmul.msk.f32.gmra.mxu2 %vm2852_vm2, %v2587_v8  ;;  %v3242_v8 = vld [vmem:[%s8777_s4 + $0x120] sm:$0xff]  ;;  %v7083_v16 = vpop.f32.mrf.mxu3 }
 0x263   : > { %3273 = vmatpush.msra.mxu1 %v3242_v8  ;;  %8808 = vst [vmem:[#allocation29_spill] sm:$0xff] %v7083_v16  ;;  %v1222_v16 = vld [vmem:[%s6433_s24 + $0x198] sm:$0xff] }
 0x265   : > { %v2080_v36 = vpop.f32.mrf.mxu0 }
 0x266   : > { %v2081_v63 = vadd.f32 %v6778_v2, %v2080_v36 }
 0x268   : > { %v2604_v6 = vmax.f32 %v2081_v63, 0.0  ;;  %5429 = vmatmul.msk.f32.gmra.mxu0 %vm1374_vm1, %v1219_v29  ;;  %v1221_v63 = vld [vmem:[%s6433_s24 + $0x190] sm:$0xff] }
 0x26a   : > { %5609 = vmatmul.msk.f32.vlgmr.msrb.gmra.mxu3 %vm2852_vm2, %v2604_v6  ;;  %v7090_v48 = vpop.f32.mrf.mxu3 }
 0x26b   : > { %8809 = vst [vmem:[#allocation30_spill] sm:$0xff] %v7090_v48 }
 0x26d   : > { %v2083_v47 = vpop.f32.mrf.mxu0 }
 0x26e   : > { %v2084_v36 = vadd.f32 %v6778_v2, %v2083_v47 }
 0x270   : > { %v2605_v27 = vmax.f32 %v2084_v36, 0.0  ;;  %5430 = vmatmul.msk.f32.gmra.mxu0 %vm1374_vm1, %v1220_v14  ;;  %v3294_v14 = vld [vmem:[%s8777_s4 + $0x158] sm:$0xff] }
 0x271   : > { %3319 = vmatpush.msra.mxu2 %v3294_v14 }
 0x272   : > { %5610 = vmatmul.msk.f32.gmra.mxu3 %vm2852_vm2, %v2605_v27  ;;  %v7097_v27 = vpop.f32.mrf.mxu3 }
 0x273   : > { %8810 = vst [vmem:[#allocation31_spill] sm:$0xff] %v7097_v27 }
 0x275   : > { %v2086_v29 = vpop.f32.mrf.mxu0 }
 0x276   : > { %v2087_v46 = vadd.f32 %v6778_v2, %v2086_v29  ;;  %v7103_v29 = vpop.f32.mrf.mxu1 }
 0x278   : > { %v2606_v6 = vmax.f32 %v2087_v46, 0.0  ;;  %5431 = vmatmul.msk.f32.gmra.mxu0 %vm1374_vm1, %v1221_v63  ;;  %v3293_v63 = vld [vmem:[%s8777_s4 + $0x150] sm:$0xff] }
 0x279   : > { %3320 = vmatpush.msra.mxu2 %v3293_v63  ;;  %v1224_v63 = vld [vmem:[%s6433_s24 + $0x1a8] sm:$0xff] }
 0x27a   : > { %5611 = vmatmul.msk.f32.gmra.mxu3 %vm2852_vm2, %v2606_v6  ;;  %v1223_v6 = vld [vmem:[%s6433_s24 + $0x1a0] sm:$0xff] }
 0x27d   : > { %v2089_v8 = vpop.f32.mrf.mxu0 }
 0x27e   : > { %v2090_v47 = vadd.f32 %v6778_v2, %v2089_v8  ;;  %v3292_v8 = vld [vmem:[%s8777_s4 + $0x148] sm:$0xff] }
 0x27f   : > { %3321 = vmatpush.msra.mxu2 %v3292_v8 }
 0x280   : > { %v2607_v36 = vmax.f32 %v2090_v47, 0.0  ;;  %5432 = vmatmul.msk.f32.gmra.mxu0 %vm1374_vm1, %v1222_v16 }
 0x282   : > { %5612 = vmatmul.msk.f32.gmra.mxu3 %vm2852_vm2, %v2607_v36  ;;  %v3291_v36 = vld [vmem:[%s8777_s4 + $0x140] sm:$0xff] }
 0x283   : > { %3322 = vmatpush.msra.mxu2 %v3291_v36 }
 0x285   : > { %v2092_v46 = vpop.f32.mrf.mxu0 }
 0x286   : > { %v2093_v16 = vadd.f32 %v6778_v2, %v2092_v46  ;;  %v7119_v46 = vpop.f32.mrf.mxu1 }
 0x288   : > { %v2608_v47 = vmax.f32 %v2093_v16, 0.0  ;;  %5433 = vmatmul.msk.f32.gmra.mxu0 %vm1374_vm1, %v1223_v6  ;;  %v1225_v16 = vld [vmem:[%s6433_s24 + $0x1b0] sm:$0xff] }
 0x28a   : > { %5613 = vmatmul.msk.f32.vlgmr.msra.gmra.mxu1 %vm2852_vm2, %v2608_v47 }
 0x28d   : > { %v2095_v14 = vpop.f32.mrf.mxu0 }
 0x28e   : > { %v2096_v27 = vadd.f32 %v6778_v2, %v2095_v14  ;;  %v7126_v36 = vpop.f32.mrf.mxu1 }
 0x290   : > { %v2609_v48 = vmax.f32 %v2096_v27, 0.0  ;;  %5434 = vmatmul.msk.f32.gmra.mxu0 %vm1374_vm1, %v1224_v63  ;;  %v3343_v63 = vld [vmem:[%s8777_s4 + $0x178] sm:$0xff] }
 0x291   : > { %3368 = vmatpush.msra.mxu3 %v3343_v63 }
 0x292   : > { %5614 = vmatmul.msk.f32.gmra.mxu1 %vm2852_vm2, %v2609_v48 }
 0x295   : > { %v2098_v6 = vpop.f32.mrf.mxu0 }
 0x296   : > { %v2099_v8 = vadd.f32 %v6778_v2, %v2098_v6  ;;  %v7133_v48 = vpop.f32.mrf.mxu1  ;;  %v7139_v6 = vpop.f32.mrf.mxu2 }
 0x298   : > { %v2610_v47 = vmax.f32 %v2099_v8, 0.0  ;;  %5435 = vmatmul.msk.f32.gmra.mxu0 %vm1374_vm1, %v1225_v16  ;;  %v1227_v8 = vld [vmem:[%s6433_s24 + $0x1c0] sm:$0xff] }
 0x29a   : > { %5615 = vmatmul.msk.f32.gmra.mxu1 %vm2852_vm2, %v2610_v47  ;;  %v3341_v47 = vld [vmem:[%s8777_s4 + $0x168] sm:$0xff] }
 0x29d   : > { %v2101_v20 = vpop.f32.mrf.mxu0 }
 0x29e   : > { %v2102_v27 = vadd.f32 %v6778_v2, %v2101_v20  ;;  %v3342_v20 = vld [vmem:[%s8777_s4 + $0x170] sm:$0xff] }
 0x29f   : > { %3369 = vmatpush.msra.mxu3 %v3342_v20  ;;  %v7155_v20 = vpop.f32.mrf.mxu2 }
 0x2a0   : > { %v2611_v14 = vmax.f32 %v2102_v27, 0.0  ;;  %5436 = vmatmul.msk.f32.gmra.mxu0 %vm1374_vm1, %v1226_v33 }
 0x2a1   : > { %3370 = vmatpush.msra.mxu3 %v3341_v47 }
 0x2a2   : > { %5616 = vmatmul.msk.f32.gmra.mxu1 %vm2852_vm2, %v2611_v14  ;;  %v3340_v14 = vld [vmem:[%s8777_s4 + $0x160] sm:$0xff] }
 0x2a3   : > { %3371 = vmatpush.msra.mxu3 %v3340_v14 }
 0x2a5   : > { %v2104_v16 = vpop.f32.mrf.mxu0 }
 0x2a6   : > { %v2105_v33 = vadd.f32 %v6778_v2, %v2104_v16  ;;  %v1228_v16 = vld [vmem:[%s6433_s24 + $0x1c8] sm:$0xff] }
 0x2a7   : > { %v7162_v44 = vpop.f32.mrf.mxu2 }
 0x2a8   : > { %v2612_v27 = vmax.f32 %v2105_v33, 0.0  ;;  %5437 = vmatmul.msk.f32.gmra.mxu0 %vm1374_vm1, %v1227_v8  ;;  %v1229_v33 = vld [vmem:[%s6433_s24 + $0x1d0] sm:$0xff] }
 0x2aa   : > { %5617 = vmatmul.msk.f32.vlgmr.msra.gmra.mxu2 %vm2852_vm2, %v2612_v27 }
 0x2ad   : > { %v2107_v63 = vpop.f32.mrf.mxu0 }
 0x2ae   : > { %v2108_v58 = vadd.f32 %v6778_v2, %v2107_v63 }
 0x2b0   : > { %v2613_v55 = vmax.f32 %v2108_v58, 0.0  ;;  %5438 = vmatmul.msk.f32.gmra.mxu0 %vm1374_vm1, %v1228_v16  ;;  %v3392_v16 = vld [vmem:[%s8777_s4 + $0x198] sm:$0xff] }
 0x2b1   : > { %3417 = vmatpush.msrb.mxu1 %v3392_v16 }
 0x2b2   : > { %5618 = vmatmul.msk.f32.gmra.mxu2 %vm2852_vm2, %v2613_v55  ;;  %v7169_v55 = vpop.f32.mrf.mxu2 }
 0x2b5   : > { %v2110_v8 = vpop.f32.mrf.mxu0 }
 0x2b6   : > { %v2111_v47 = vadd.f32 %v6778_v2, %v2110_v8  ;;  %v7175_v8 = vpop.f32.mrf.mxu3 }
 0x2b7   : > { %8811 = vst [vmem:[#allocation32_spill] sm:$0xff] %v7175_v8 }
 0x2b8   : > { %v2614_v27 = vmax.f32 %v2111_v47, 0.0  ;;  %5439 = vmatmul.msk.f32.gmra.mxu0 %vm1374_vm1, %v1229_v33  ;;  %v1231_v47 = vld [vmem:[%s6433_s24 + $0x1e0] sm:$0xff] }
 0x2ba   : > { %5619 = vmatmul.msk.f32.gmra.mxu2 %vm2852_vm2, %v2614_v27  ;;  %v3391_v27 = vld [vmem:[%s8777_s4 + $0x190] sm:$0xff] }
 0x2bb   : > { %3418 = vmatpush.msrb.mxu1 %v3391_v27 }
 0x2bd   : > { %v2113_v14 = vpop.f32.mrf.mxu0 }
 0x2be   : > { %v2114_v58 = vadd.f32 %v6778_v2, %v2113_v14  ;;  %v3390_v14 = vld [vmem:[%s8777_s4 + $0x188] sm:$0xff]  ;;  %v7191_v27 = vpop.f32.mrf.mxu3 }
 0x2bf   : > { %3419 = vmatpush.msrb.mxu1 %v3390_v14  ;;  %8812 = vst [vmem:[#allocation33_spill] sm:$0xff] %v7191_v27  ;;  %v1234_v27 = vld [vmem:[%s6433_s24 + $0x1f8] sm:$0xff] }
 0x2c0   : > { %v2615_v63 = vmax.f32 %v2114_v58, 0.0  ;;  %5440 = vmatmul.msk.f32.gmra.mxu0 %vm1374_vm1, %v1230_v25 }
 0x2c2   : > { %5620 = vmatmul.msk.f32.gmra.mxu2 %vm2852_vm2, %v2615_v63  ;;  %v3389_v63 = vld [vmem:[%s8777_s4 + $0x180] sm:$0xff] }
 0x2c3   : > { %3420 = vmatpush.msrb.mxu1 %v3389_v63 }
 0x2c5   : > { %v2116_v33 = vpop.f32.mrf.mxu0 }
 0x2c6   : > { %v2117_v25 = vadd.f32 %v6778_v2, %v2116_v33  ;;  %v1232_v33 = vld [vmem:[%s6433_s24 + $0x1e8] sm:$0xff]  ;;  %v7198_v31 = vpop.f32.mrf.mxu3 }
 0x2c7   : > { %8813 = vst [vmem:[#allocation34_spill] sm:$0xff] %v7198_v31 }
 0x2c8   : > { %v2616_v58 = vmax.f32 %v2117_v25, 0.0  ;;  %5441 = vmatmul.msk.f32.gmra.mxu0 %vm1374_vm1, %v1231_v47  ;;  %v1233_v25 = vld [vmem:[%s6433_s24 + $0x1f0] sm:$0xff] }
 0x2ca   : > { %5621 = vmatmul.msk.f32.vlgmr.msra.gmra.mxu3 %vm2852_vm2, %v2616_v58 }
 0x2cd   : > { %v2119_v16 = vpop.f32.mrf.mxu0 }
 0x2ce   : > { %v2120_v8 = vadd.f32 %v6778_v2, %v2119_v16 }
 0x2d0   : > { %v2617_v26 = vmax.f32 %v2120_v8, 0.0  ;;  %5442 = vmatmul.msk.f32.gmra.mxu0 %vm1374_vm1, %v1232_v33  ;;  %v3441_v33 = vld [vmem:[%s8777_s4 + $0x1b8] sm:$0xff] }
 0x2d1   : > { %3466 = vmatpush.msrb.mxu2 %v3441_v33 }
 0x2d2   : > { %5622 = vmatmul.msk.f32.gmra.mxu3 %vm2852_vm2, %v2617_v26  ;;  %v7205_v26 = vpop.f32.mrf.mxu3 }
 0x2d3   : > { %8814 = vst [vmem:[#allocation35_spill] sm:$0xff] %v7205_v26 }
 0x2d5   : > { %v2122_v47 = vpop.f32.mrf.mxu0 }
 0x2d6   : > { %v2123_v14 = vadd.f32 %v6778_v2, %v2122_v47  ;;  %v7211_v47 = vpop.f32.mrf.mxu1 }
 0x2d8   : > { %v2618_v58 = vmax.f32 %v2123_v14, 0.0  ;;  %5443 = vmatmul.msk.f32.gmra.mxu0 %vm1374_vm1, %v1233_v25  ;;  %v1235_v14 = vld [vmem:[%s6433_s24 + $0x200] sm:$0xff] }
 0x2da   : > { %5623 = vmatmul.msk.f32.gmra.mxu3 %vm2852_vm2, %v2618_v58  ;;  %v3440_v58 = vld [vmem:[%s8777_s4 + $0x1b0] sm:$0xff] }
 0x2db   : > { %3467 = vmatpush.msrb.mxu2 %v3440_v58 }
 0x2dd   : > { %v2125_v63 = vpop.f32.mrf.mxu0 }
 0x2de   : > { %v2126_v8 = vadd.f32 %v6778_v2, %v2125_v63  ;;  %v3439_v63 = vld [vmem:[%s8777_s4 + $0x1a8] sm:$0xff]  ;;  %v7227_v58 = vpop.f32.mrf.mxu1 }
 0x2df   : > { %3468 = vmatpush.msrb.mxu2 %v3439_v63 }
 0x2e0   : > { %v2619_v16 = vmax.f32 %v2126_v8, 0.0  ;;  %5444 = vmatmul.msk.f32.gmra.mxu0 %vm1374_vm1, %v1234_v27 }
 0x2e2   : > { %5624 = vmatmul.msk.f32.gmra.mxu3 %vm2852_vm2, %v2619_v16  ;;  %v3438_v16 = vld [vmem:[%s8777_s4 + $0x1a0] sm:$0xff] }
 0x2e3   : > { %3469 = vmatpush.msrb.mxu2 %v3438_v16 }
 0x2e5   : > { %v2128_v25 = vpop.f32.mrf.mxu0 }
 0x2e6   : > { %v2129_v27 = vadd.f32 %v6778_v2, %v2128_v25  ;;  %v1236_v25 = vld [vmem:[%s6433_s24 + $0x208] sm:$0xff]  ;;  %v7234_v9 = vpop.f32.mrf.mxu1 }
 0x2e8   : > { %v2620_v8 = vmax.f32 %v2129_v27, 0.0  ;;  %5445 = vmatmul.msk.f32.gmra.mxu0 %vm1374_vm1, %v1235_v14  ;;  %v1237_v27 = vld [vmem:[%s6433_s24 + $0x210] sm:$0xff] }
 0x2ea   : > { %5625 = vmatmul.msk.f32.vlgmr.msrb.gmra.mxu1 %vm2852_vm2, %v2620_v8 }
 0x2ed   : > { %v2131_v33 = vpop.f32.mrf.mxu0 }
 0x2ee   : > { %v2132_v26 = vadd.f32 %v6778_v2, %v2131_v33 }
 0x2f0   : > { %v2621_v31 = vmax.f32 %v2132_v26, 0.0  ;;  %5446 = vmatmul.msk.f32.gmra.mxu0 %vm1374_vm1, %v1236_v25  ;;  %v3490_v25 = vld [vmem:[%s8777_s4 + $0x1d8] sm:$0xff] }
 0x2f1   : > { %3515 = vmatpush.msrb.mxu3 %v3490_v25 }
 0x2f2   : > { %5626 = vmatmul.msk.f32.gmra.mxu1 %vm2852_vm2, %v2621_v31  ;;  %v7241_v31 = vpop.f32.mrf.mxu1 }
 0x2f5   : > { %v2134_v14 = vpop.f32.mrf.mxu0 }
 0x2f6   : > { %v2135_v63 = vadd.f32 %v6778_v2, %v2134_v14  ;;  %v7247_v14 = vpop.f32.mrf.mxu2 }
 0x2f7   : > { %8815 = vst [vmem:[#allocation36_spill] sm:$0xff] %v7247_v14 }
 0x2f8   : > { %v2622_v8 = vmax.f32 %v2135_v63, 0.0  ;;  %5447 = vmatmul.msk.f32.gmra.mxu0 %vm1374_vm1, %v1237_v27  ;;  %v1239_v63 = vld [vmem:[%s6433_s24 + $0x220] sm:$0xff] }
 0x2fa   : > { %5627 = vmatmul.msk.f32.gmra.mxu1 %vm2852_vm2, %v2622_v8  ;;  %v3489_v8 = vld [vmem:[%s8777_s4 + $0x1d0] sm:$0xff] }
 0x2fb   : > { %3516 = vmatpush.msrb.mxu3 %v3489_v8 }
 0x2fd   : > { %v2137_v16 = vpop.f32.mrf.mxu0 }
 0x2fe   : > { %v2138_v26 = vadd.f32 %v6778_v2, %v2137_v16  ;;  %v3488_v16 = vld [vmem:[%s8777_s4 + $0x1c8] sm:$0xff]  ;;  %v7263_v8 = vpop.f32.mrf.mxu2 }
 0x2ff   : > { %3517 = vmatpush.msrb.mxu3 %v3488_v16  ;;  %8816 = vst [vmem:[#allocation37_spill] sm:$0xff] %v7263_v8 }
 0x300   : > { %v2623_v33 = vmax.f32 %v2138_v26, 0.0  ;;  %5448 = vmatmul.msk.f32.gmra.mxu0 %vm1374_vm1, %v1238_v50 }
 0x302   : > { %5628 = vmatmul.msk.f32.gmra.mxu1 %vm2852_vm2, %v2623_v33  ;;  %v3487_v33 = vld [vmem:[%s8777_s4 + $0x1c0] sm:$0xff] }
 0x303   : > { %3518 = vmatpush.msrb.mxu3 %v3487_v33 }
 0x305   : > { %v2140_v27 = vpop.f32.mrf.mxu0 }
 0x306   : > { %v2141_v50 = vadd.f32 %v6778_v2, %v2140_v27  ;;  %v1240_v27 = vld [vmem:[%s6433_s24 + $0x228] sm:$0xff]  ;;  %v7270_v51 = vpop.f32.mrf.mxu2 }
 0x307   : > { %8817 = vst [vmem:[#allocation38_spill] sm:$0xff] %v7270_v51 }
 0x308   : > { %v2624_v26 = vmax.f32 %v2141_v50, 0.0  ;;  %5449 = vmatmul.msk.f32.gmra.mxu0 %vm1374_vm1, %v1239_v63  ;;  %v1241_v50 = vld [vmem:[%s6433_s24 + $0x230] sm:$0xff] }
 0x30a   : > { %5629 = vmatmul.msk.f32.vlgmr.msrb.gmra.mxu2 %vm2852_vm2, %v2624_v26 }
 0x30d   : > { %v2143_v25 = vpop.f32.mrf.mxu0 }
 0x30e   : > { %v2144_v61 = vadd.f32 %v6778_v2, %v2143_v25 }
 0x310   : > { %v2625_v53 = vmax.f32 %v2144_v61, 0.0  ;;  %5450 = vmatmul.msk.f32.gmra.mxu0 %vm1374_vm1, %v1240_v27  ;;  %v3539_v27 = vld [vmem:[%s8777_s4 + $0x1f8] sm:$0xff] }
 0x311   : > { %3564 = vmatpush.msra.mxu1 %v3539_v27 }
 0x312   : > { %5630 = vmatmul.msk.f32.gmra.mxu2 %vm2852_vm2, %v2625_v53  ;;  %v7277_v53 = vpop.f32.mrf.mxu2 }
 0x313   : > { %8818 = vst [vmem:[#allocation39_spill] sm:$0xff] %v7277_v53 }
 0x315   : > { %v2146_v63 = vpop.f32.mrf.mxu0 }
 0x316   : > { %v2147_v16 = vadd.f32 %v6778_v2, %v2146_v63  ;;  %v7283_v63 = vpop.f32.mrf.mxu3 }
 0x317   : > { %8819 = vst [vmem:[#allocation40_spill] sm:$0xff] %v7283_v63 }
 0x318   : > { %v2626_v26 = vmax.f32 %v2147_v16, 0.0  ;;  %5451 = vmatmul.msk.f32.gmra.mxu0 %vm1374_vm1, %v1241_v50  ;;  %v1243_v16 = vld [vmem:[%s6433_s24 + $0x240] sm:$0xff] }
 0x31a   : > { %5631 = vmatmul.msk.f32.gmra.mxu2 %vm2852_vm2, %v2626_v26  ;;  %v3538_v26 = vld [vmem:[%s8777_s4 + $0x1f0] sm:$0xff] }
 0x31b   : > { %3565 = vmatpush.msra.mxu1 %v3538_v26 }
 0x31d   : > { %v2149_v33 = vpop.f32.mrf.mxu0 }
 0x31e   : > { %v2150_v61 = vadd.f32 %v6778_v2, %v2149_v33  ;;  %v3537_v33 = vld [vmem:[%s8777_s4 + $0x1e8] sm:$0xff]  ;;  %v7299_v26 = vpop.f32.mrf.mxu3 }
 0x31f   : > { %3566 = vmatpush.msra.mxu1 %v3537_v33  ;;  %8820 = vst [vmem:[#allocation41_spill] sm:$0xff] %v7299_v26  ;;  %v1246_v26 = vld [vmem:[%s6433_s24 + $0x258] sm:$0xff] }
 0x320   : > { %v2627_v25 = vmax.f32 %v2150_v61, 0.0  ;;  %5452 = vmatmul.msk.f32.gmra.mxu0 %vm1374_vm1, %v1242_v45 }
 0x322   : > { %5632 = vmatmul.msk.f32.gmra.mxu2 %vm2852_vm2, %v2627_v25  ;;  %v3536_v25 = vld [vmem:[%s8777_s4 + $0x1e0] sm:$0xff] }
 0x323   : > { %3567 = vmatpush.msra.mxu1 %v3536_v25 }
 0x325   : > { %v2152_v50 = vpop.f32.mrf.mxu0 }
 0x326   : > { %v2153_v45 = vadd.f32 %v6778_v2, %v2152_v50  ;;  %v1244_v50 = vld [vmem:[%s6433_s24 + $0x248] sm:$0xff]  ;;  %v7306_v51 = vpop.f32.mrf.mxu3 }
 0x327   : > { %8821 = vst [vmem:[#allocation42_spill] sm:$0xff] %v7306_v51 }
 0x328   : > { %v2628_v61 = vmax.f32 %v2153_v45, 0.0  ;;  %5453 = vmatmul.msk.f32.gmra.mxu0 %vm1374_vm1, %v1243_v16  ;;  %v1245_v45 = vld [vmem:[%s6433_s24 + $0x250] sm:$0xff] }
 0x32a   : > { %5633 = vmatmul.msk.f32.vlgmr.msrb.gmra.mxu3 %vm2852_vm2, %v2628_v61 }
 0x32d   : > { %v2155_v27 = vpop.f32.mrf.mxu0 }
 0x32e   : > { %v2156_v63 = vadd.f32 %v6778_v2, %v2155_v27 }
 0x330   : > { %v2629_v53 = vmax.f32 %v2156_v63, 0.0  ;;  %5454 = vmatmul.msk.f32.gmra.mxu0 %vm1374_vm1, %v1244_v50  ;;  %v3588_v50 = vld [vmem:[%s8777_s4 + $0x218] sm:$0xff] }
 0x331   : > { %3613 = vmatpush.msra.mxu2 %v3588_v50 }
 0x332   : > { %5634 = vmatmul.msk.f32.gmra.mxu3 %vm2852_vm2, %v2629_v53  ;;  %v7313_v53 = vpop.f32.mrf.mxu3 }
 0x333   : > { %8822 = vst [vmem:[#allocation43_spill] sm:$0xff] %v7313_v53 }
 0x335   : > { %v2158_v16 = vpop.f32.mrf.mxu0 }
 0x336   : > { %v2159_v33 = vadd.f32 %v6778_v2, %v2158_v16  ;;  %v7319_v16 = vpop.f32.mrf.mxu1 }
 0x338   : > { %v2630_v61 = vmax.f32 %v2159_v33, 0.0  ;;  %5455 = vmatmul.msk.f32.gmra.mxu0 %vm1374_vm1, %v1245_v45  ;;  %v1247_v33 = vld [vmem:[%s6433_s24 + $0x260] sm:$0xff] }
 0x33a   : > { %5635 = vmatmul.msk.f32.gmra.mxu3 %vm2852_vm2, %v2630_v61 }
 0x33d   : > { %v2161_v25 = vpop.f32.mrf.mxu0 }
 0x33e   : > { %v2162_v63 = vadd.f32 %v6778_v2, %v2161_v25  ;;  %v3587_v2 = vld [vmem:[%s8777_s4 + $0x210] sm:$0xff]  ;;  %v3586_v25 = vld [vmem:[%s8777_s4 + $0x208] sm:$0xff] }
 0x33f   : > { %3614 = vmatpush.msra.mxu2 %v3587_v2  ;;  %v7340_v2 = vpop.f32.mrf.mxu1 }
 0x340   : > { %v2631_v27 = vmax.f32 %v2162_v63, 0.0  ;;  %5456 = vmatmul.msk.f32.gmra.mxu0 %vm1374_vm1, %v1246_v26  ;;  %v7328_v26 = vld [vmem:[%s8776_s3] ss:$0 sm:$0xff] }
 0x341   : > { %3615 = vmatpush.msra.mxu2 %v3586_v25 }
 0x342   : > { %5636 = vmatmul.msk.f32.gmra.mxu3 %vm2852_vm2, %v2631_v27  ;;  %v3585_v27 = vld [vmem:[%s8777_s4 + $0x200] sm:$0xff] }
 0x343   : > { %3616 = vmatpush.msra.mxu2 %v3585_v27 }
 0x345   : > { %v2164_v45 = vpop.f32.mrf.mxu0 }
 0x346   : > { %v2165_v61 = vadd.f32 %v7328_v26, %v2164_v45  ;;  %v1248_v45 = vld [vmem:[%s6433_s24 + $0x268] sm:$0xff] }
 0x347   : > { %v7347_v8 = vpop.f32.mrf.mxu1 }
 0x348   : > { %v2632_v63 = vmax.f32 %v2165_v61, 0.0  ;;  %5457 = vmatmul.msk.f32.gmra.mxu0 %vm1374_vm1, %v1247_v33  ;;  %v1249_v61 = vld [vmem:[%s6433_s24 + $0x270] sm:$0xff] }
 0x34a   : > { %5637 = vmatmul.msk.f32.vlgmr.msra.gmra.mxu1 %vm2852_vm2, %v2632_v63 }
 0x34d   : > { %v2167_v50 = vpop.f32.mrf.mxu0 }
 0x34e   : > { %v2168_v53 = vadd.f32 %v7328_v26, %v2167_v50 }
 0x350   : > { %v2633_v51 = vmax.f32 %v2168_v53, 0.0  ;;  %5458 = vmatmul.msk.f32.gmra.mxu0 %vm1374_vm1, %v1248_v45  ;;  %v3637_v45 = vld [vmem:[%s8777_s4 + $0x238] sm:$0xff] }
 0x351   : > { %3662 = vmatpush.msra.mxu3 %v3637_v45 }
 0x352   : > { %5638 = vmatmul.msk.f32.gmra.mxu1 %vm2852_vm2, %v2633_v51  ;;  %v7354_v51 = vpop.f32.mrf.mxu1 }
 0x355   : > { %v2170_v33 = vpop.f32.mrf.mxu0 }
 0x356   : > { %v2171_v25 = vadd.f32 %v7328_v26, %v2170_v33  ;;  %v7360_v33 = vpop.f32.mrf.mxu2 }
 0x357   : > { %8823 = vst [vmem:[#allocation44_spill] sm:$0xff] %v7360_v33 }
 0x358   : > { %v2634_v63 = vmax.f32 %v2171_v25, 0.0  ;;  %5459 = vmatmul.msk.f32.gmra.mxu0 %vm1374_vm1, %v1249_v61  ;;  %v1251_v25 = vld [vmem:[%s6433_s24 + $0x280] sm:$0xff] }
 0x35a   : > { %5639 = vmatmul.msk.f32.gmra.mxu1 %vm2852_vm2, %v2634_v63  ;;  %v3636_v63 = vld [vmem:[%s8777_s4 + $0x230] sm:$0xff] }
 0x35b   : > { %3663 = vmatpush.msra.mxu3 %v3636_v63 }
 0x35d   : > { %v2173_v27 = vpop.f32.mrf.mxu0 }
 0x35e   : > { %v2174_v53 = vadd.f32 %v7328_v26, %v2173_v27  ;;  %v3635_v27 = vld [vmem:[%s8777_s4 + $0x228] sm:$0xff]  ;;  %v7376_v63 = vpop.f32.mrf.mxu2 }
 0x35f   : > { %3664 = vmatpush.msra.mxu3 %v3635_v27  ;;  %8824 = vst [vmem:[#allocation45_spill] sm:$0xff] %v7376_v63  ;;  %v1254_v63 = vld [vmem:[%s6433_s24 + $0x298] sm:$0xff] }
 0x360   : > { %v2635_v50 = vmax.f32 %v2174_v53, 0.0  ;;  %5460 = vmatmul.msk.f32.gmra.mxu0 %vm1374_vm1, %v1250_v62 }
 0x362   : > { %5640 = vmatmul.msk.f32.gmra.mxu1 %vm2852_vm2, %v2635_v50  ;;  %v3634_v50 = vld [vmem:[%s8777_s4 + $0x220] sm:$0xff] }
 0x363   : > { %3665 = vmatpush.msra.mxu3 %v3634_v50 }
 0x365   : > { %v2176_v61 = vpop.f32.mrf.mxu0 }
 0x366   : > { %v2177_v62 = vadd.f32 %v7328_v26, %v2176_v61  ;;  %v1252_v61 = vld [vmem:[%s6433_s24 + $0x288] sm:$0xff]  ;;  %v7383_v14 = vpop.f32.mrf.mxu2 }
 0x367   : > { %8825 = vst [vmem:[#allocation46_spill] sm:$0xff] %v7383_v14 }
 0x368   : > { %v2636_v53 = vmax.f32 %v2177_v62, 0.0  ;;  %5461 = vmatmul.msk.f32.gmra.mxu0 %vm1374_vm1, %v1251_v25  ;;  %v1253_v62 = vld [vmem:[%s6433_s24 + $0x290] sm:$0xff] }
 0x36a   : > { %5641 = vmatmul.msk.f32.vlgmr.msra.gmra.mxu2 %vm2852_vm2, %v2636_v53 }
 0x36d   : > { %v2179_v45 = vpop.f32.mrf.mxu0 }
 0x36e   : > { %v2180_v33 = vadd.f32 %v7328_v26, %v2179_v45 }
 0x370   : > { %v2637_v35 = vmax.f32 %v2180_v33, 0.0  ;;  %5462 = vmatmul.msk.f32.gmra.mxu0 %vm1374_vm1, %v1252_v61  ;;  %v3686_v61 = vld [vmem:[%s8777_s4 + $0x258] sm:$0xff] }
 0x371   : > { %3711 = vmatpush.msrb.mxu1 %v3686_v61 }
 0x372   : > { %5642 = vmatmul.msk.f32.gmra.mxu2 %vm2852_vm2, %v2637_v35  ;;  %v7390_v35 = vpop.f32.mrf.mxu2 }
 0x373   : > { %8826 = vst [vmem:[#allocation47_spill] sm:$0xff] %v7390_v35  ;;  %v1265_v35 = vld [vmem:[%s6433_s24 + $0x2f0] sm:$0xff] }
 0x375   : > { %v2182_v25 = vpop.f32.mrf.mxu0 }
 0x376   : > { %v2183_v27 = vadd.f32 %v7328_v26, %v2182_v25  ;;  %v7396_v25 = vpop.f32.mrf.mxu3 }
 0x377   : > { %8827 = vst [vmem:[#allocation48_spill] sm:$0xff] %v7396_v25 }
 0x378   : > { %v2638_v53 = vmax.f32 %v2183_v27, 0.0  ;;  %5463 = vmatmul.msk.f32.gmra.mxu0 %vm1374_vm1, %v1253_v62  ;;  %v1255_v27 = vld [vmem:[%s6433_s24 + $0x2a0] sm:$0xff] }
 0x37a   : > { %5643 = vmatmul.msk.f32.gmra.mxu2 %vm2852_vm2, %v2638_v53  ;;  %v3685_v53 = vld [vmem:[%s8777_s4 + $0x250] sm:$0xff] }
 0x37b   : > { %3712 = vmatpush.msrb.mxu1 %v3685_v53 }
 0x37d   : > { %v2185_v50 = vpop.f32.mrf.mxu0 }
 0x37e   : > { %v2186_v33 = vadd.f32 %v7328_v26, %v2185_v50  ;;  %v3684_v50 = vld [vmem:[%s8777_s4 + $0x248] sm:$0xff]  ;;  %v7412_v53 = vpop.f32.mrf.mxu3 }
 0x37f   : > { %3713 = vmatpush.msrb.mxu1 %v3684_v50  ;;  %8828 = vst [vmem:[#allocation49_spill] sm:$0xff] %v7412_v53  ;;  %v1258_v53 = vld [vmem:[%s6433_s24 + $0x2b8] sm:$0xff] }
 0x380   : > { %v2639_v45 = vmax.f32 %v2186_v33, 0.0  ;;  %5464 = vmatmul.msk.f32.gmra.mxu0 %vm1374_vm1, %v1254_v63 }
 0x382   : > { %5644 = vmatmul.msk.f32.gmra.mxu2 %vm2852_vm2, %v2639_v45  ;;  %v3683_v45 = vld [vmem:[%s8777_s4 + $0x240] sm:$0xff] }
 0x383   : > { %3714 = vmatpush.msrb.mxu1 %v3683_v45 }
 0x385   : > { %v2188_v62 = vpop.f32.mrf.mxu0 }
 0x386   : > { %v2189_v63 = vadd.f32 %v7328_v26, %v2188_v62  ;;  %v1256_v62 = vld [vmem:[%s6433_s24 + $0x2a8] sm:$0xff]  ;;  %v7419_v32 = vpop.f32.mrf.mxu3 }
 0x387   : > { %8829 = vst [vmem:[#allocation50_spill] sm:$0xff] %v7419_v32 }
 0x388   : > { %v2640_v33 = vmax.f32 %v2189_v63, 0.0  ;;  %5465 = vmatmul.msk.f32.gmra.mxu0 %vm1374_vm1, %v1255_v27  ;;  %v1257_v63 = vld [vmem:[%s6433_s24 + $0x2b0] sm:$0xff] }
 0x38a   : > { %5645 = vmatmul.msk.f32.vlgmr.msra.gmra.mxu3 %vm2852_vm2, %v2640_v33 }
 0x38d   : > { %v2191_v61 = vpop.f32.mrf.mxu0 }
 0x38e   : > { %v2192_v25 = vadd.f32 %v7328_v26, %v2191_v61 }
 0x390   : > { %v2641_v14 = vmax.f32 %v2192_v25, 0.0  ;;  %5466 = vmatmul.msk.f32.gmra.mxu0 %vm1374_vm1, %v1256_v62  ;;  %v7428_v62 = vpop.f32.mrf.mxu3 }
 0x391   : > { %8831 = vst [vmem:[#allocation52_spill] sm:$0xff] %v7428_v62 }
 0x392   : > { %5646 = vmatmul.msk.f32.gmra.mxu3 %vm2852_vm2, %v2641_v14  ;;  %v7426_v14 = vpop.f32.mrf.mxu2 }
 0x393   : > { %8830 = vst [vmem:[#allocation51_spill] sm:$0xff] %v7426_v14 }
 0x395   : > { %v2194_v27 = vpop.f32.mrf.mxu0 }
 0x396   : > { %v2195_v50 = vadd.f32 %v7328_v26, %v2194_v27  ;;  %v3735_v27 = vld [vmem:[%s8777_s4 + $0x278] sm:$0xff] }
 0x397   : > { %3760 = vmatpush.msrb.mxu2 %v3735_v27  ;;  %v3732_v27 = vld [vmem:[%s8777_s4 + $0x260] sm:$0xff] }
 0x398   : > { %v2642_v33 = vmax.f32 %v2195_v50, 0.0  ;;  %5467 = vmatmul.msk.f32.gmra.mxu0 %vm1374_vm1, %v1257_v63  ;;  %v7434_v63 = vpop.f32.mrf.mxu1 }
 0x399   : > { %8832 = vst [vmem:[#allocation53_spill] sm:$0xff] %v7434_v63  ;;  %v1261_v63 = vld [vmem:[%s6433_s24 + $0x2d0] sm:$0xff] }
 0x39a   : > { %5647 = vmatmul.msk.f32.gmra.mxu3 %vm2852_vm2, %v2642_v33  ;;  %v1259_v33 = vld [vmem:[%s6433_s24 + $0x2c0] sm:$0xff]  ;;  %v7449_v62 = vpop.f32.mrf.mxu2 }
 0x39b   : > { %8833 = vst [vmem:[#allocation54_spill] sm:$0xff] %v7449_v62 }
 0x39d   : > { %v2197_v45 = vpop.f32.mrf.mxu0 }
 0x39e   : > { %v2198_v25 = vadd.f32 %v7328_v26, %v2197_v45 }
 0x3a0   : > { %v2643_v61 = vmax.f32 %v2198_v25, 0.0  ;;  %5468 = vmatmul.msk.f32.gmra.mxu0 %vm1374_vm1, %v1258_v53  ;;  %v3734_v53 = vld [vmem:[%s8777_s4 + $0x270] sm:$0xff]  ;;  %v3733_v25 = vld [vmem:[%s8777_s4 + $0x268] sm:$0xff]  ;;  %v7452_v32 = vpop.f32.mrf.mxu1 }
 0x3a1   : > { %3761 = vmatpush.msrb.mxu2 %v3734_v53  ;;  %v1260_v53 = vld [vmem:[%s6433_s24 + $0x2c8] sm:$0xff]  ;;  %8834 = vst [vmem:[#allocation55_spill] sm:$0xff] %v7452_v32 }
 0x3a2   : > { %5648 = vmatmul.msk.f32.gmra.mxu3 %vm2852_vm2, %v2643_v61 }
 0x3a3   : > { %3762 = vmatpush.msrb.mxu2 %v3733_v25 }
 0x3a5   : > { %v2200_v50 = vpop.f32.mrf.mxu0  ;;  %3763 = vmatpush.msrb.mxu2 %v3732_v27 }
 0x3a6   : > { %v2201_v45 = vadd.f32 %v7328_v26, %v2200_v50 }
 0x3a8   : > { %v2644_v61 = vmax.f32 %v2201_v45, 0.0  ;;  %5469 = vmatmul.msk.f32.gmra.mxu0 %vm1374_vm1, %v1259_v33  ;;  %v7457_v33 = vpop.f32.mrf.mxu2  ;;  %v7461_v27 = vpop.f32.mrf.mxu1 }
 0x3a9   : > { %8835 = vst [vmem:[#allocation56_spill] sm:$0xff] %v7457_v33  ;;  %v7470_v33 = vpop.f32.mrf.mxu3 }
 0x3aa   : > { %5649 = vmatmul.msk.f32.vlgmr.msrb.gmra.mxu1 %vm2852_vm2, %v2644_v61  ;;  %8836 = vst [vmem:[#allocation57_spill] sm:$0xff] %v7461_v27 }
 0x3ab   : > { %8838 = vst [vmem:[#allocation59_spill] sm:$0xff] %v7470_v33 }
 0x3ad   : > { %v2203_v50 = vpop.f32.mrf.mxu0 }
 0x3ae   : > { %v2204_v45 = vadd.f32 %v7328_v26, %v2203_v50 }
 0x3b0   : > { %v2645_v14 = vmax.f32 %v2204_v45, 0.0  ;;  %5470 = vmatmul.msk.f32.gmra.mxu0 %vm1374_vm1, %v1260_v53  ;;  %v1262_v45 = vld [vmem:[%s6433_s24 + $0x2d8] sm:$0xff]  ;;  %v7467_v32 = vpop.f32.mrf.mxu2 }
 0x3b1   : > { %8837 = vst [vmem:[#allocation58_spill] sm:$0xff] %v7467_v32 }
 0x3b2   : > { %5650 = vmatmul.msk.f32.gmra.mxu1 %vm2852_vm2, %v2645_v14 }
 0x3b5   : > { %v2206_v25 = vpop.f32.mrf.mxu0 }
 0x3b6   : > { %v2207_v61 = vadd.f32 %v7328_v26, %v2206_v25  ;;  %v7472_v25 = vpop.f32.mrf.mxu1 }
 0x3b7   : > { %8839 = vst [vmem:[#allocation60_spill] sm:$0xff] %v7472_v25  ;;  %v1264_v25 = vld [vmem:[%s6433_s24 + $0x2e8] sm:$0xff] }
 0x3b8   : > { %v2646_v62 = vmax.f32 %v2207_v61, 0.0  ;;  %5471 = vmatmul.msk.f32.gmra.mxu0 %vm1374_vm1, %v1261_v63  ;;  %v3784_v63 = vld [vmem:[%s8777_s4 + $0x298] sm:$0xff]  ;;  %v1263_v61 = vld [vmem:[%s6433_s24 + $0x2e0] sm:$0xff] }
 0x3b9   : > { %3809 = vmatpush.msrb.mxu3 %v3784_v63  ;;  %v3781_v63 = vld [vmem:[%s8777_s4 + $0x280] sm:$0xff] }
 0x3ba   : > { %5651 = vmatmul.msk.f32.gmra.mxu1 %vm2852_vm2, %v2646_v62 }
 0x3bd   : > { %v2209_v50 = vpop.f32.mrf.mxu0 }
 0x3be   : > { %v2210_v53 = vadd.f32 %v7328_v26, %v2209_v50  ;;  %v3783_v50 = vld [vmem:[%s8777_s4 + $0x290] sm:$0xff] }
 0x3bf   : > { %3810 = vmatpush.msrb.mxu3 %v3783_v50 }
 0x3c0   : > { %v2647_v14 = vmax.f32 %v2210_v53, 0.0  ;;  %5472 = vmatmul.msk.f32.gmra.mxu0 %vm1374_vm1, %v1262_v45  ;;  %v7483_v53 = vpop.f32.mrf.mxu2 }
 0x3c1   : > { %8840 = vst [vmem:[#allocation61_spill] sm:$0xff] %v7483_v53 }
 0x3c2   : > { %5652 = vmatmul.msk.f32.gmra.mxu1 %vm2852_vm2, %v2647_v14  ;;  %v3782_v14 = vld [vmem:[%s8777_s4 + $0x288] sm:$0xff] }
 0x3c3   : > { %3811 = vmatpush.msrb.mxu3 %v3782_v14 }
 0x3c5   : > { %v2212_v62 = vpop.f32.mrf.mxu0  ;;  %3812 = vmatpush.msrb.mxu3 %v3781_v63 }
 0x3c6   : > { %v2213_v45 = vadd.f32 %v7328_v26, %v2212_v62  ;;  %v7493_v62 = vpop.f32.mrf.mxu3 }
 0x3c7   : > { %8841 = vst [vmem:[#allocation62_spill] sm:$0xff] %v7493_v62  ;;  %v1266_v62 = vld [vmem:[%s6433_s24 + $0x2f8] sm:$0xff] }
 0x3c8   : > { %v2648_v32 = vmax.f32 %v2213_v45, 0.0  ;;  %5473 = vmatmul.msk.f32.gmra.mxu0 %vm1374_vm1, %v1263_v61  ;;  %v7498_v45 = vpop.f32.mrf.mxu2 }
 0x3c9   : > { %8842 = vst [vmem:[#allocation63_spill] sm:$0xff] %v7498_v45 }
 0x3ca   : > { %5653 = vmatmul.msk.f32.vlgmr.msrb.gmra.mxu2 %vm2852_vm2, %v2648_v32 }
 0x3cd   : > { %v2215_v50 = vpop.f32.mrf.mxu0 }
 0x3ce   : > { %v2216_v27 = vadd.f32 %v7328_v26, %v2215_v50  ;;  %v7501_v61 = vpop.f32.mrf.mxu3 }
 0x3cf   : > { %8843 = vst [vmem:[#allocation64_spill] sm:$0xff] %v7501_v61 }
 0x3d0   : > { %v2649_v33 = vmax.f32 %v2216_v27, 0.0  ;;  %5474 = vmatmul.msk.f32.gmra.mxu0 %vm1374_vm1, %v1264_v25  ;;  %v7507_v50 = vpop.f32.mrf.mxu2  ;;  %v7509_v27 = vpop.f32.mrf.mxu1 }
 0x3d1   : > { %8844 = vst [vmem:[#allocation65_spill] sm:$0xff] %v7507_v50 }
 0x3d2   : > { %5654 = vmatmul.msk.f32.gmra.mxu2 %vm2852_vm2, %v2649_v33  ;;  %8845 = vst [vmem:[#allocation66_spill] sm:$0xff] %v7509_v27 }
 0x3d5   : > { %v2218_v14 = vpop.f32.mrf.mxu0 }
 0x3d6   : > { %v2219_v32 = vadd.f32 %v7328_v26, %v2218_v14  ;;  %v7513_v45 = vpop.f32.mrf.mxu3 }
 0x3d7   : > { %8846 = vst [vmem:[#allocation67_spill] sm:$0xff] %v7513_v45 }
 0x3d8   : > { %v2650_v63 = vmax.f32 %v2219_v32, 0.0  ;;  %5475 = vmatmul.msk.f32.gmra.mxu0 %vm1374_vm1, %v1265_v35  ;;  %v3833_v35 = vld [vmem:[%s8777_s4 + $0x2b8] sm:$0xff]  ;;  %v7520_v14 = vpop.f32.mrf.mxu2  ;;  %v7526_v45 = vpop.f32.mrf.mxu1 }
 0x3d9   : > { %3858 = vmatpush.msra.mxu1 %v3833_v35  ;;  %8847 = vst [vmem:[#allocation68_spill] sm:$0xff] %v7520_v14  ;;  %v3830_v35 = vld [vmem:[%s8777_s4 + $0x2a0] sm:$0xff] }
 0x3da   : > { %5655 = vmatmul.msk.f32.gmra.mxu2 %vm2852_vm2, %v2650_v63  ;;  %v1267_v63 = vld [vmem:[%s6433_s24 + $0x300] sm:$0xff]  ;;  %8848 = vst [vmem:[#allocation69_spill] sm:$0xff] %v7526_v45 }
 0x3dd   : > { %v2221_v25 = vpop.f32.mrf.mxu0 }
 0x3de   : > { %v2222_v33 = vadd.f32 %v7328_v26, %v2221_v25  ;;  %v3832_v25 = vld [vmem:[%s8777_s4 + $0x2b0] sm:$0xff]  ;;  %v7536_v27 = vpop.f32.mrf.mxu3 }
 0x3df   : > { %3859 = vmatpush.msra.mxu1 %v3832_v25  ;;  %8849 = vst [vmem:[#allocation70_spill] sm:$0xff] %v7536_v27  ;;  %v1268_v25 = vld [vmem:[%s6433_s24 + $0x308] sm:$0xff]  ;;  %v1269_v27 = vld [vmem:[%s6433_s24 + $0x310] sm:$0xff]  ;;  %s8467_s24 = scalar_lea.vmem %s8774_s1, %s5379_s21  ;;  %s5290_s21 = sshll.u32 %s5287_s14, 4  ;;  %s5291_s21 = int_to_ptr.hbm [resolvable:$true] %s5290_s21 }
 0x3e0   : > { %v2651_v61 = vmax.f32 %v2222_v33, 0.0  ;;  %5476 = vmatmul.msk.f32.gmra.mxu0 %vm1374_vm1, %v1266_v62  ;;  %v7541_v14 = vpop.f32.mrf.mxu2  ;;  %s5863_s23 = sshra.s32 %s5291_s21, 4  ;;  %s5864_s23 = int_to_ptr.hbm [resolvable:$true] %s5863_s23 }
 0x3e1   : > { %8850 = vst [vmem:[#allocation71_spill] sm:$0xff] %v7541_v14  ;;  %p5870_p3 = scmp.lt.s32.totalorder %s5864_s23, %s8782_s9 }
 0x3e2   : > { %5656 = vmatmul.msk.f32.gmra.mxu2 %vm2852_vm2, %v2651_v61  ;;  %v3831_v61 = vld [vmem:[%s8777_s4 + $0x2a8] sm:$0xff] }
 0x3e3   : > { %3860 = vmatpush.msra.mxu1 %v3831_v61 }
 0x3e5   : > { %v2224_v32 = vpop.f32.mrf.mxu0  ;;  %3861 = vmatpush.msra.mxu1 %v3830_v35 }
 0x3e6   : > { %v2225_v62 = vadd.f32 %v7328_v26, %v2224_v32  ;;  %v7547_v61 = vpop.f32.mrf.mxu3 }
 0x3e7   : > { %8852 = vst [vmem:[#allocation73_spill] sm:$0xff] %v7547_v61 }
 0x3e8   : > { %v2652_v33 = vmax.f32 %v2225_v62, 0.0  ;;  %5477 = vmatmul.msk.f32.gmra.mxu0 %vm1374_vm1, %v1267_v63  ;;  %v7543_v62 = vpop.f32.mrf.mxu1  ;;  %v7552_v53 = vpop.f32.mrf.mxu2 }
 0x3e9   : > { %8851 = vst [vmem:[#allocation72_spill] sm:$0xff] %v7543_v62 }
 0x3ea   : > { %5657 = vmatmul.msk.f32.vlgmr.msrb.gmra.mxu3 %vm2852_vm2, %v2652_v33  ;;  %8853 = vst [vmem:[#allocation74_spill] sm:$0xff] %v7552_v53 }
 0x3ed   : > { %v2227_v32 = vpop.f32.mrf.mxu0 }
 0x3ee   : > { %v2228_v45 = vadd.f32 %v7328_v26, %v2227_v32 }
 0x3f0   : > { %v2653_v63 = vmax.f32 %v2228_v45, 0.0  ;;  %5478 = vmatmul.msk.f32.gmra.mxu0 %vm1374_vm1, %v1268_v25  ;;  %v7554_v32 = vpop.f32.mrf.mxu1  ;;  %v7557_v45 = vpop.f32.mrf.mxu3 }
 0x3f1   : > { %8854 = vst [vmem:[#allocation75_spill] sm:$0xff] %v7554_v32 }
 0x3f2   : > { %5658 = vmatmul.msk.f32.gmra.mxu3 %vm2852_vm2, %v2653_v63  ;;  %8855 = vst [vmem:[#allocation76_spill] sm:$0xff] %v7557_v45 }
 0x3f5   : > { %v2230_v50 = vpop.f32.mrf.mxu0 }
 0x3f6   : > { %v2231_v33 = vadd.f32 %v7328_v26, %v2230_v50  ;;  %v3882_v50 = vld [vmem:[%s8777_s4 + $0x2d8] sm:$0xff] }
 0x3f7   : > { %3907 = vmatpush.msra.mxu2 %v3882_v50  ;;  %v3879_v50 = vld [vmem:[%s8777_s4 + $0x2c0] sm:$0xff] }
 0x3f8   : > { %v2654_v35 = vmax.f32 %v2231_v33, 0.0  ;;  %5479 = vmatmul.msk.f32.gmra.mxu0 %vm1374_vm1, %v1269_v27  ;;  %v7560_v62 = vpop.f32.mrf.mxu1  ;;  %v7566_v27 = vpop.f32.mrf.mxu2 }
 0x3f9   : > { %8856 = vst [vmem:[#allocation77_spill] sm:$0xff] %v7560_v62 }
 0x3fa   : > { %5659 = vmatmul.msk.f32.gmra.mxu3 %vm2852_vm2, %v2654_v35  ;;  %8857 = vst [vmem:[#allocation78_spill] sm:$0xff] %v7566_v27  ;;  %v3881_v35 = vld [vmem:[%s8777_s4 + $0x2d0] sm:$0xff] }
 0x3fb   : > { %3908 = vmatpush.msra.mxu2 %v3881_v35 }
 0x3fd   : > { %v2233_v25 = vpop.f32.mrf.mxu0 }
 0x3fe   : > { %v2234_v63 = vadd.f32 %v7328_v26, %v2233_v25  ;;  %v7572_v25 = vpop.f32.mrf.mxu3 }
 0x3ff   : > { %8858 = vst [vmem:[#allocation79_spill] sm:$0xff] %v7572_v25 }
 0x400   : > { %v2655_v14 = vmax.f32 %v2234_v63, 0.0  ;;  %v7581_v27 = vpop.f32.mrf.mxu1  ;;  %v7583_v62 = vpop.f32.mrf.mxu2 }
 0x401   : > { %8859 = vst [vmem:[#allocation80_spill] sm:$0xff] %v7581_v27 }
 0x402   : > { %5660 = vmatmul.msk.f32.gmra.mxu3 %vm2852_vm2, %v2655_v14  ;;  %v3880_v14 = vld [vmem:[%s8777_s4 + $0x2c8] sm:$0xff]  ;;  %8860 = vst [vmem:[#allocation81_spill] sm:$0xff] %v7583_v62 }
 0x403   : > { %3909 = vmatpush.msra.mxu2 %v3880_v14 }
 0x405   : > { %v2236_v33 = vpop.f32.mrf.mxu0  ;;  %3910 = vmatpush.msra.mxu2 %v3879_v50 }
 0x406   : > { %v2237_v53 = vadd.f32 %v7328_v26, %v2236_v33  ;;  %v7586_v32 = vpop.f32.mrf.mxu3 }
 0x407   : > { %8861 = vst [vmem:[#allocation82_spill] sm:$0xff] %v7586_v32 }
 0x408   : > { %v2656_v63 = vmax.f32 %v2237_v53, 0.0  ;;  %v7589_v53 = vpop.f32.mrf.mxu2  ;;  %v7591_v45 = vpop.f32.mrf.mxu1 }
 0x409   : > { %8862 = vst [vmem:[#allocation83_spill] sm:$0xff] %v7591_v45  ;;  %v3931_v45 = vld [vmem:[%s8777_s4 + $0x2f8] sm:$0xff] }
 0x40a   : > { %5661 = vmatmul.msk.f32.vlgmr.msra.gmra.mxu1 %vm2852_vm2, %v2656_v63  ;;  %3956 = vmatpush.msra.mxu3 %v3931_v45  ;;  %v4027_v45 = vld [vmem:[%s8777_s4 + $0x328] sm:$0xff] }
 0x40d   : > { %v2239_v33 = vpop.f32.mrf.mxu0 }
 0x40e   : > { %v2240_v35 = vadd.f32 %v7328_v26, %v2239_v33  ;;  %v7594_v61 = vpop.f32.mrf.mxu3 }
 0x40f   : > { %8863 = vst [vmem:[#allocation84_spill] sm:$0xff] %v7594_v61  ;;  %v3928_v61 = vld [vmem:[%s8777_s4 + $0x2e0] sm:$0xff] }
 0x410   : > { %v2657_v25 = vmax.f32 %v2240_v35, 0.0  ;;  %v7598_v27 = vpop.f32.mrf.mxu2  ;;  %v7600_v35 = vpop.f32.mrf.mxu1 }
 0x411   : > { %8864 = vst [vmem:[#allocation85_spill] sm:$0xff] %v7600_v35  ;;  %v3929_v35 = vld [vmem:[%s8777_s4 + $0x2e8] sm:$0xff] }
 0x412   : > { %5662 = vmatmul.msk.f32.gmra.mxu1 %vm2852_vm2, %v2657_v25 }
 0x415   : > { %v2242_v14 = vpop.f32.mrf.mxu0 }
 0x416   : > { %v2243_v63 = vadd.f32 %v7328_v26, %v2242_v14  ;;  %v4029_v14 = vld [vmem:[%s8777_s4 + $0x338] sm:$0xff] }
 0x417   : > { %4054 = vmatpush.msrb.mxu2 %v4029_v14 }
 0x418   : > { %v2658_v50 = vmax.f32 %v2243_v63, 0.0  ;;  %v7609_v63 = vpop.f32.mrf.mxu3  ;;  %v7624_v14 = vpop.f32.mrf.mxu1 }
 0x419   : > { %8865 = vst [vmem:[#allocation86_spill] sm:$0xff] %v7609_v63 }
 0x41a   : > { %5663 = vmatmul.msk.f32.gmra.mxu1 %vm2852_vm2, %v2658_v50  ;;  %v3930_v50 = vld [vmem:[%s8777_s4 + $0x2f0] sm:$0xff]  ;;  %8866 = vst [vmem:[#allocation87_spill] sm:$0xff] %v7624_v14 }
 0x41b   : > { %3957 = vmatpush.msra.mxu3 %v3930_v50  ;;  %v7632_v50 = vpop.f32.mrf.mxu2 }
 0x41c   : > { %8867 = vst [vmem:[#allocation88_spill] sm:$0xff] %v7632_v50 }
 0x41d   : > { %v2245_v62 = vpop.f32.mrf.mxu0  ;;  %3958 = vmatpush.msra.mxu3 %v3929_v35 }
 0x41e   : > { %v2246_v33 = vadd.f32 %v7328_v26, %v2245_v62 }
 0x41f   : > { %3959 = vmatpush.msra.mxu3 %v3928_v61  ;;  %v3979_v61 = vld [vmem:[%s8777_s4 + $0x310] sm:$0xff] }
 0x420   : > { %v2659_v25 = vmax.f32 %v2246_v33, 0.0  ;;  %v4028_v33 = vld [vmem:[%s8777_s4 + $0x330] sm:$0xff]  ;;  %v7638_v35 = vpop.f32.mrf.mxu3  ;;  %v7641_v14 = vpop.f32.mrf.mxu1 }
 0x421   : > { %4055 = vmatpush.msrb.mxu2 %v4028_v33  ;;  %v3980_v33 = vld [vmem:[%s8777_s4 + $0x318] sm:$0xff]  ;;  %8868 = vst [vmem:[#allocation89_spill] sm:$0xff] %v7638_v35 }
 0x422   : > { %5664 = vmatmul.msk.f32.gmra.mxu1 %vm2852_vm2, %v2659_v25  ;;  %8869 = vst [vmem:[#allocation90_spill] sm:$0xff] %v7641_v14 }
 0x423   : > { %4056 = vmatpush.msrb.mxu2 %v4027_v45  ;;  %4005 = vmatpush.msrb.mxu1 %v3980_v33 }
 0x425   : > { %v2248_v62 = vpop.f32.mrf.mxu0  ;;  %4006 = vmatpush.msrb.mxu1 %v3979_v61 }
 0x426   : > { %v2249_v25 = vadd.f32 %v7328_v26, %v2248_v62  ;;  %v4026_v62 = vld [vmem:[%s8777_s4 + $0x320] sm:$0xff] }
 0x427   : > { %4057 = vmatpush.msrb.mxu2 %v4026_v62 }
 0x428   : > { %v2660_v63 = vmax.f32 %v2249_v25, 0.0  ;;  %v7649_v50 = vpop.f32.mrf.mxu3 }
 0x429   : > { %8871 = vst [vmem:[#allocation92_spill] sm:$0xff] %v7649_v50 }
 0x42a   : > { %5665 = vmatmul.msk.f32.vlgmr.msra.gmra.mxu2 %vm2852_vm2, %v2660_v63  ;;  %v7647_v63 = vpop.f32.mrf.mxu2 }
 0x42b   : > { %8870 = vst [vmem:[#allocation91_spill] sm:$0xff] %v7647_v63 }
 0x42d   : > { %v2251_v25 = vpop.f32.mrf.mxu0 }
 0x42e   : > { %v2252_v45 = vadd.f32 %v7328_v26, %v2251_v25  ;;  %v3978_v25 = vld [vmem:[%s8777_s4 + $0x308] sm:$0xff] }
 0x42f   : > { %4007 = vmatpush.msrb.mxu1 %v3978_v25 }
 0x430   : > { %v2661_v32 = vmax.f32 %v2252_v45, 0.0  ;;  %v7658_v45 = vpop.f32.mrf.mxu1  ;;  %v7661_v63 = vpop.f32.mrf.mxu3 }
 0x431   : > { %8873 = vst [vmem:[#allocation94_spill] sm:$0xff] %v7658_v45 }
 0x432   : > { %5666 = vmatmul.msk.f32.gmra.mxu2 %vm2852_vm2, %v2661_v32  ;;  %v7656_v32 = vpop.f32.mrf.mxu2  ;;  %8874 = vst [vmem:[#allocation95_spill] sm:$0xff] %v7661_v63  ;;  %v4175_v63 = vld [vmem:[%s8777_s4 + $0x390] sm:$0xff] }
 0x433   : > { %8872 = vst [vmem:[#allocation93_spill] sm:$0xff] %v7656_v32 }
 0x435   : > { %v2254_v62 = vpop.f32.mrf.mxu0 }
 0x436   : > { %v2255_v33 = vadd.f32 %v7328_v26, %v2254_v62  ;;  %v4078_v62 = vld [vmem:[%s8777_s4 + $0x358] sm:$0xff] }
 0x437   : > { %4103 = vmatpush.msrb.mxu3 %v4078_v62  ;;  %v4174_v62 = vld [vmem:[%s8777_s4 + $0x388] sm:$0xff] }
 0x438   : > { %v2662_v35 = vmax.f32 %v2255_v33, 0.0  ;;  %v4176_v33 = vld [vmem:[%s8777_s4 + $0x398] sm:$0xff]  ;;  %v7683_v45 = vpop.f32.mrf.mxu1 }
 0x439   : > { %4201 = vmatpush.msra.mxu2 %v4176_v33  ;;  %8876 = vst [vmem:[#allocation97_spill] sm:$0xff] %v7683_v45  ;;  %v4075_v45 = vld [vmem:[%s8777_s4 + $0x340] sm:$0xff] }
 0x43a   : > { %5667 = vmatmul.msk.f32.gmra.mxu2 %vm2852_vm2, %v2662_v35  ;;  %v3977_v35 = vld [vmem:[%s8777_s4 + $0x300] sm:$0xff]  ;;  %v7675_v25 = vpop.f32.mrf.mxu2 }
 0x43b   : > { %4008 = vmatpush.msrb.mxu1 %v3977_v35  ;;  %8875 = vst [vmem:[#allocation96_spill] sm:$0xff] %v7675_v25  ;;  %4202 = vmatpush.msra.mxu2 %v4175_v63  ;;  %v4173_v63 = vld [vmem:[%s8777_s4 + $0x380] sm:$0xff] }
 0x43d   : > { %v2257_v14 = vpop.f32.mrf.mxu0  ;;  %4203 = vmatpush.msra.mxu2 %v4174_v62 }
 0x43e   : > { %v2258_v61 = vadd.f32 %v7328_v26, %v2257_v14  ;;  %v2285_v14 = vadd.f32 %v7328_v26, %v6649_v52  ;;  %v4076_v52 = vld [vmem:[%s8777_s4 + $0x348] sm:$0xff] }
 0x43f   : > { %4204 = vmatpush.msra.mxu2 %v4173_v63 }
 0x440   : > { %v2663_v50 = vmax.f32 %v2258_v61, 0.0  ;;  %v4077_v61 = vld [vmem:[%s8777_s4 + $0x350] sm:$0xff]  ;;  %v2672_v33 = vmax.f32 %v2285_v14, 0.0  ;;  %v4127_v14 = vld [vmem:[%s8777_s4 + $0x378] sm:$0xff] }
 0x441   : > { %4104 = vmatpush.msrb.mxu3 %v4077_v61  ;;  %v2288_v61 = vadd.f32 %v7328_v26, %v6667_v60  ;;  %4152 = vmatpush.msra.mxu1 %v4127_v14  ;;  %v2291_v60 = vadd.f32 %v7328_v26, %v6685_v4  ;;  %v2294_v4 = vadd.f32 %v7328_v26, %v6714_v21  ;;  %v4225_v21 = vld [vmem:[%s8777_s4 + $0x3b8] sm:$0xff] }
 0x442   : > { %5668 = vmatmul.msk.f32.gmra.mxu2 %vm2852_vm2, %v2663_v50 }
 0x443   : > { %4105 = vmatpush.msrb.mxu3 %v4076_v52  ;;  %v7707_v52 = vpop.f32.mrf.mxu1 }
 0x444   : > { %8878 = vst [vmem:[#allocation99_spill] sm:$0xff] %v7707_v52 }
 0x445   : > { %v2260_v50 = vpop.f32.mrf.mxu0  ;;  %4106 = vmatpush.msrb.mxu3 %v4075_v45  ;;  %v4126_v45 = vld [vmem:[%s8777_s4 + $0x370] sm:$0xff] }
 0x446   : > { %v2261_v35 = vadd.f32 %v7328_v26, %v2260_v50  ;;  %v7698_v50 = vpop.f32.mrf.mxu3  ;;  %4153 = vmatpush.msra.mxu1 %v4126_v45 }
 0x447   : > { %8877 = vst [vmem:[#allocation98_spill] sm:$0xff] %v7698_v50  ;;  %v7710_v50 = vpop.f32.mrf.mxu2 }
 0x448   : > { %v2664_v25 = vmax.f32 %v2261_v35, 0.0 }
 0x44a   : > { %5669 = vmatmul.msk.f32.vlgmr.msra.gmra.mxu3 %vm2852_vm2, %v2664_v25  ;;  %5677 = vmatmul.msk.f32.vlgmr.msrb.gmra.mxu2 %vm2852_vm2, %v2672_v33  ;;  %v2673_v25 = vmax.f32 %v2288_v61, 0.0 }
 0x44b   : > { %v7722_v61 = vpop.f32.mrf.mxu1  ;;  %4250 = vmatpush.msra.mxu3 %v4225_v21 }
 0x44c   : > { %8880 = vst [vmem:[#allocation101_spill] sm:$0xff] %v7722_v61 }
 0x44d   : > { %v2263_v35 = vpop.f32.mrf.mxu0 }
 0x44e   : > { %v2264_v62 = vadd.f32 %v7328_v26, %v2263_v35  ;;  %v7717_v33 = vpop.f32.mrf.mxu3  ;;  %v2674_v35 = vmax.f32 %v2291_v60, 0.0 }
 0x44f   : > { %8879 = vst [vmem:[#allocation100_spill] sm:$0xff] %v7717_v33 }
 0x450   : > { %v2665_v32 = vmax.f32 %v2264_v62, 0.0 }
 0x452   : > { %5670 = vmatmul.msk.f32.gmra.mxu3 %vm2852_vm2, %v2665_v32  ;;  %5678 = vmatmul.msk.f32.gmra.mxu2 %vm2852_vm2, %v2673_v25  ;;  %v7724_v32 = vpop.f32.mrf.mxu2  ;;  %v4125_v25 = vld [vmem:[%s8777_s4 + $0x368] sm:$0xff] }
 0x453   : > { %8881 = vst [vmem:[#allocation102_spill] sm:$0xff] %v7724_v32  ;;  %4154 = vmatpush.msra.mxu1 %v4125_v25  ;;  %v4323_v25 = vld [vmem:[%s8777_s4 + $0x3f8] sm:$0xff] }
 0x454   : > { %4348 = vmatpush.msrb.mxu2 %v4323_v25 }
 0x455   : > { %v2266_v63 = vpop.f32.mrf.mxu0 }
 0x456   : > { %v2267_v14 = vadd.f32 %v7328_v26, %v2266_v63  ;;  %v7731_v45 = vpop.f32.mrf.mxu3 }
 0x458   : > { %v2666_v62 = vmax.f32 %v2267_v14, 0.0  ;;  %v2675_v14 = vmax.f32 %v2294_v4, 0.0  ;;  %v2297_v4 = vadd.f32 %v7328_v26, %v6744_v41  ;;  %v4223_v41 = vld [vmem:[%s8777_s4 + $0x3a8] sm:$0xff] }
 0x45a   : > { %5671 = vmatmul.msk.f32.gmra.mxu3 %vm2852_vm2, %v2666_v62  ;;  %5679 = vmatmul.msk.f32.gmra.mxu2 %vm2852_vm2, %v2674_v35  ;;  %v7736_v61 = vpop.f32.mrf.mxu2  ;;  %v7738_v62 = vpop.f32.mrf.mxu1  ;;  %v4124_v35 = vld [vmem:[%s8777_s4 + $0x360] sm:$0xff]  ;;  %v2676_v21 = vmax.f32 %v2297_v4, 0.0  ;;  %v4274_v4 = vld [vmem:[%s8777_s4 + $0x3d8] sm:$0xff] }
 0x45b   : > { %8882 = vst [vmem:[#allocation103_spill] sm:$0xff] %v7736_v61  ;;  %4155 = vmatpush.msra.mxu1 %v4124_v35  ;;  %v4322_v35 = vld [vmem:[%s8777_s4 + $0x3f0] sm:$0xff]  ;;  %v4222_v61 = vld [vmem:[%s8777_s4 + $0x3a0] sm:$0xff] }
 0x45c   : > { %8883 = vst [vmem:[#allocation104_spill] sm:$0xff] %v7738_v62  ;;  %4349 = vmatpush.msrb.mxu2 %v4322_v35  ;;  %v2324_v35 = vadd.f32 %v7328_v26, %v6938_v17  ;;  %v2303_v17 = vadd.f32 %v7328_v26, %v6790_v13  ;;  %v4272_v13 = vld [vmem:[%s8777_s4 + $0x3c8] sm:$0xff] }
 0x45d   : > { %v2269_v60 = vpop.f32.mrf.mxu0 }
 0x45e   : > { %v2270_v63 = vadd.f32 %v7328_v26, %v2269_v60  ;;  %v7755_v60 = vpop.f32.mrf.mxu3  ;;  %v2685_v32 = vmax.f32 %v2324_v35, 0.0 }
 0x460   : > { %v2667_v33 = vmax.f32 %v2270_v63, 0.0 }
 0x462   : > { %5672 = vmatmul.msk.f32.gmra.mxu3 %vm2852_vm2, %v2667_v33  ;;  %5680 = vmatmul.msk.f32.gmra.mxu2 %vm2852_vm2, %v2675_v14  ;;  %v2321_v33 = vadd.f32 %v7328_v26, %v6924_v40  ;;  %v4224_v14 = vld [vmem:[%s8777_s4 + $0x3b0] sm:$0xff]  ;;  %v4321_v40 = vld [vmem:[%s8777_s4 + $0x3e8] sm:$0xff] }
 0x463   : > { %4251 = vmatpush.msra.mxu3 %v4224_v14  ;;  %4350 = vmatpush.msrb.mxu2 %v4321_v40  ;;  %v7786_v14 = vpop.f32.mrf.mxu1 }
 0x464   : > { %v2684_v52 = vmax.f32 %v2321_v33, 0.0  ;;  %v2300_v33 = vadd.f32 %v7328_v26, %v6765_v57  ;;  %v4273_v57 = vld [vmem:[%s8777_s4 + $0x3d0] sm:$0xff] }
 0x465   : > { %v2272_v63 = vpop.f32.mrf.mxu0  ;;  %4252 = vmatpush.msra.mxu3 %v4223_v41 }
 0x466   : > { %v2273_v62 = vadd.f32 %v7328_v26, %v2272_v63  ;;  %v4320_v63 = vld [vmem:[%s8777_s4 + $0x3e0] sm:$0xff] }
 0x467   : > { %4253 = vmatpush.msra.mxu3 %v4222_v61  ;;  %4351 = vmatpush.msrb.mxu2 %v4320_v63  ;;  %v2327_v61 = vadd.f32 %v7328_v26, %v7015_v12  ;;  %v2282_v12 = vadd.f32 %v7328_v26, %v6631_v42  ;;  %v4271_v42 = vld [vmem:[%s8777_s4 + $0x3c0] sm:$0xff] }
 0x468   : > { %v2668_v25 = vmax.f32 %v2273_v62, 0.0  ;;  %v7781_v62 = vpop.f32.mrf.mxu2 }
 0x469   : > { %8884 = vst [vmem:[#allocation105_spill] sm:$0xff] %v7781_v62 }
 0x46a   : > { %5673 = vmatmul.msk.f32.vlgmr.msrb.gmra.mxu1 %vm2852_vm2, %v2668_v25  ;;  %5681 = vmatmul.msk.f32.vlgmr.msrb.gmra.mxu3 %vm2852_vm2, %v2676_v21  ;;  %v7791_v21 = vpop.f32.mrf.mxu3  ;;  %v2677_v25 = vmax.f32 %v2300_v33, 0.0  ;;  %v2678_v33 = vmax.f32 %v2303_v17, 0.0 }
 0x46b   : > { %5689 = vmatmul.msk.f32.vlgmr.msra.gmra.mxu2 %vm2852_vm2, %v2684_v52  ;;  %4299 = vmatpush.msrb.mxu1 %v4274_v4  ;;  %v7801_v52 = vpop.f32.mrf.mxu1 }
 0x46d   : > { %v2275_v41 = vpop.f32.mrf.mxu0  ;;  %4300 = vmatpush.msrb.mxu1 %v4273_v57 }
 0x46e   : > { %v2276_v40 = vadd.f32 %v7328_v26, %v2275_v41  ;;  %v2686_v41 = vmax.f32 %v2327_v61, 0.0  ;;  %v2671_v61 = vmax.f32 %v2282_v12, 0.0  ;;  %v4469_v12 = vld [vmem:[%s8777_s4 + $0x450] sm:$0xff] }
 0x46f   : > { %4301 = vmatpush.msrb.mxu1 %v4272_v13  ;;  %v2333_v13 = vadd.f32 %v7328_v26, %v7048_v5 }
 0x470   : > { %v2669_v62 = vmax.f32 %v2276_v40, 0.0  ;;  %v7805_v63 = vpop.f32.mrf.mxu2 }
 0x471   : > { %4302 = vmatpush.msrb.mxu1 %v4271_v42 }
 0x472   : > { %5674 = vmatmul.msk.f32.gmra.mxu1 %vm2852_vm2, %v2669_v62  ;;  %5682 = vmatmul.msk.f32.gmra.mxu3 %vm2852_vm2, %v2677_v25  ;;  %v7808_v40 = vpop.f32.mrf.mxu3  ;;  %v2330_v25 = vadd.f32 %v7328_v26, %v7036_v18  ;;  %v4470_v18 = vld [vmem:[%s8777_s4 + $0x458] sm:$0xff] }
 0x473   : > { %5690 = vmatmul.msk.f32.gmra.mxu2 %vm2852_vm2, %v2685_v32  ;;  %v2306_v32 = vadd.f32 %v7328_v26, %v6818_v37  ;;  %v7822_v57 = vpop.f32.mrf.mxu1  ;;  %v4372_v37 = vld [vmem:[%s8777_s4 + $0x418] sm:$0xff] }
 0x474   : > { %4397 = vmatpush.msrb.mxu3 %v4372_v37  ;;  %4495 = vmatpush.msra.mxu2 %v4470_v18  ;;  %v4467_v37 = vld [vmem:[%s8777_s4 + $0x440] sm:$0xff]  ;;  %v4421_v18 = vld [vmem:[%s8777_s4 + $0x438] sm:$0xff] }
 0x475   : > { %v2278_v4 = vpop.f32.mrf.mxu0 }
 0x476   : > { %v2279_v62 = vadd.f32 %v7328_v26, %v2278_v4  ;;  %v2679_v4 = vmax.f32 %v2306_v32, 0.0  ;;  %v2357_v32 = vadd.f32 %v7328_v26, %v7234_v9  ;;  %4496 = vmatpush.msra.mxu2 %v4469_v12  ;;  %v4369_v9 = vld [vmem:[%s8777_s4 + $0x400] sm:$0xff]  ;;  %v2360_v12 = vadd.f32 %v7328_v26, %v7241_v31 }
 0x477   : > { %v2339_v31 = vadd.f32 %v7328_v26, %v7103_v29  ;;  %v2318_v29 = vadd.f32 %v7328_v26, %v6912_v10  ;;  %v4519_v10 = vld [vmem:[%s8777_s4 + $0x478] sm:$0xff] }
 0x478   : > { %v2670_v35 = vmax.f32 %v2279_v62, 0.0  ;;  %v7824_v17 = vpop.f32.mrf.mxu2  ;;  %v2687_v62 = vmax.f32 %v2330_v25, 0.0  ;;  %v4370_v25 = vld [vmem:[%s8777_s4 + $0x408] sm:$0xff]  ;;  %v2696_v42 = vmax.f32 %v2357_v32, 0.0 }
 0x47a   : > { %5675 = vmatmul.msk.f32.gmra.mxu1 %vm2852_vm2, %v2670_v35  ;;  %5683 = vmatmul.msk.f32.gmra.mxu3 %vm2852_vm2, %v2678_v33  ;;  %v7826_v33 = vpop.f32.mrf.mxu3  ;;  %v4371_v35 = vld [vmem:[%s8777_s4 + $0x410] sm:$0xff] }
 0x47b   : > { %5691 = vmatmul.msk.f32.gmra.mxu2 %vm2852_vm2, %v2686_v41  ;;  %v2309_v41 = vadd.f32 %v7328_v26, %v6847_v24  ;;  %v4468_v24 = vld [vmem:[%s8777_s4 + $0x448] sm:$0xff]  ;;  %4398 = vmatpush.msrb.mxu3 %v4371_v35 }
 0x47c   : > { %4497 = vmatpush.msra.mxu2 %v4468_v24  ;;  %v2697_v24 = vmax.f32 %v2360_v12, 0.0 }
 0x47d   : > { %4399 = vmatpush.msrb.mxu3 %v4370_v25 }
 0x47e   : > { %4498 = vmatpush.msra.mxu2 %v4467_v37 }
 0x47f   : > { %4400 = vmatpush.msrb.mxu3 %v4369_v9  ;;  %v2363_v9 = vadd.f32 %v7328_v26, %v7319_v16  ;;  %v2342_v16 = vadd.f32 %v7328_v26, %v7119_v46  ;;  %v4617_v46 = vld [vmem:[%s8777_s4 + $0x4b8] sm:$0xff] }
 0x480   : > { %v7858_v5 = vpop.f32.mrf.mxu2 }
 0x482   : > { %5676 = vmatmul.msk.f32.gmra.mxu1 %vm2852_vm2, %v2671_v61  ;;  %5684 = vmatmul.msk.f32.gmra.mxu3 %vm2852_vm2, %v2679_v4  ;;  %v2680_v61 = vmax.f32 %v2309_v41, 0.0  ;;  %v2688_v4 = vmax.f32 %v2333_v13, 0.0  ;;  %v7873_v35 = vpop.f32.mrf.mxu3  ;;  %v2312_v41 = vadd.f32 %v7328_v26, %v6864_v22  ;;  %v2336_v13 = vadd.f32 %v7328_v26, %v7060_v7  ;;  %v4420_v22 = vld [vmem:[%s8777_s4 + $0x430] sm:$0xff] }
 0x483   : > { %5692 = vmatmul.msk.f32.gmra.mxu2 %vm2852_vm2, %v2687_v62  ;;  %v7860_v62 = vpop.f32.mrf.mxu1  ;;  %v2315_v7 = vadd.f32 %v7328_v26, %v6882_v23  ;;  %v4419_v23 = vld [vmem:[%s8777_s4 + $0x428] sm:$0xff] }
 0x484   : > { %v2681_v32 = vmax.f32 %v2312_v41, 0.0  ;;  %v2689_v25 = vmax.f32 %v2336_v13, 0.0  ;;  %v2698_v41 = vmax.f32 %v2363_v9, 0.0 }
 0x485   : > { %v2682_v37 = vmax.f32 %v2315_v7, 0.0 }
 0x48a   : > { %5685 = vmatmul.msk.f32.vlgmr.msra.gmra.mxu1 %vm2852_vm2, %v2680_v61  ;;  %5693 = vmatmul.msk.f32.vlgmr.msra.gmra.mxu3 %vm2852_vm2, %v2688_v4  ;;  %v7882_v61 = vpop.f32.mrf.mxu2 }
 0x48b   : > { %5701 = vmatmul.msk.f32.vlgmr.msrb.gmra.mxu2 %vm2852_vm2, %v2696_v42  ;;  %4446 = vmatpush.msra.mxu1 %v4421_v18  ;;  %v7884_v4 = vpop.f32.mrf.mxu1  ;;  %v7898_v42 = vpop.f32.mrf.mxu3  ;;  %v2690_v18 = vmax.f32 %v2339_v31, 0.0  ;;  %v4418_v31 = vld [vmem:[%s8777_s4 + $0x420] sm:$0xff] }
 0x48c   : > { %4544 = vmatpush.msra.mxu3 %v4519_v10  ;;  %4642 = vmatpush.msrb.mxu2 %v4617_v46 }
 0x48d   : > { %4447 = vmatpush.msra.mxu1 %v4420_v22  ;;  %v2691_v22 = vmax.f32 %v2342_v16, 0.0 }
 0x48f   : > { %4448 = vmatpush.msra.mxu1 %v4419_v23  ;;  %v4518_v23 = vld [vmem:[%s8777_s4 + $0x470] sm:$0xff] }
 0x490   : > { %4545 = vmatpush.msra.mxu3 %v4518_v23 }
 0x491   : > { %4449 = vmatpush.msra.mxu1 %v4418_v31  ;;  %v4568_v31 = vld [vmem:[%s8777_s4 + $0x498] sm:$0xff] }
 0x492   : > { %5686 = vmatmul.msk.f32.gmra.mxu1 %vm2852_vm2, %v2681_v32  ;;  %5694 = vmatmul.msk.f32.gmra.mxu3 %vm2852_vm2, %v2689_v25  ;;  %v7907_v12 = vpop.f32.mrf.mxu2  ;;  %v2366_v32 = vadd.f32 %v7328_v26, %v7340_v2  ;;  %v7933_v26 = vld [vmem:[%s8776_s3] ss:$0 sm:$0xff] }
 0x493   : > { %5702 = vmatmul.msk.f32.gmra.mxu2 %vm2852_vm2, %v2697_v24  ;;  %v7900_v13 = vpop.f32.mrf.mxu1  ;;  %v7916_v25 = vpop.f32.mrf.mxu3  ;;  %v2683_v24 = vmax.f32 %v2318_v29, 0.0  ;;  %v2345_v2 = vadd.f32 %v7933_v26, %v7126_v36  ;;  %v2369_v9 = vadd.f32 %v7933_v26, %v7347_v8  ;;  %v4616_v36 = vld [vmem:[%s8777_s4 + $0x4b0] sm:$0xff]  ;;  %v4517_v8 = vld [vmem:[%s8777_s4 + $0x468] sm:$0xff]  ;;  %v2348_v10 = vadd.f32 %v7933_v26, %v7133_v48 }
 0x494   : > { %v2699_v7 = vmax.f32 %v2366_v32, 0.0  ;;  %4643 = vmatpush.msrb.mxu2 %v4616_v36  ;;  %4546 = vmatpush.msra.mxu3 %v4517_v8  ;;  %v2372_v46 = vadd.f32 %v7933_v26, %v7354_v51  ;;  %v4567_v48 = vld [vmem:[%s8777_s4 + $0x490] sm:$0xff]  ;;  %v2351_v51 = vadd.f32 %v7933_v26, %v7211_v47  ;;  %v2354_v47 = vadd.f32 %v7933_v26, %v7227_v58  ;;  %v4764_v58 = vld [vmem:[%s8777_s4 + $0x518] sm:$0xff] }
 0x495   : > { %v2692_v16 = vmax.f32 %v2345_v2, 0.0  ;;  %v2700_v32 = vmax.f32 %v2369_v9, 0.0  ;;  %v2396_v2 = vadd.f32 %v7933_v26, %v6786_v11  ;;  %v2693_v23 = vmax.f32 %v2348_v10, 0.0 }
 0x496   : > { %v2701_v36 = vmax.f32 %v2372_v46, 0.0  ;;  %v2375_v11 = vadd.f32 %v7933_v26, %v6625_v38  ;;  %v4566_v38 = vld [vmem:[%s8777_s4 + $0x488] sm:$0xff]  ;;  %v2402_v46 = vadd.f32 %v7933_v26, %v6843_v19  ;;  %v4666_v19 = vld [vmem:[%s8777_s4 + $0x4d8] sm:$0xff] }
 0x497   : > { %v2709_v8 = vmax.f32 %v2396_v2, 0.0 }
 0x49a   : > { %5687 = vmatmul.msk.f32.gmra.mxu1 %vm2852_vm2, %v2682_v37  ;;  %5695 = vmatmul.msk.f32.gmra.mxu3 %vm2852_vm2, %v2690_v18  ;;  %v2393_v18 = vadd.f32 %v7933_v26, %v6761_v56  ;;  %v4615_v56 = vld [vmem:[%s8777_s4 + $0x4a8] sm:$0xff] }
 0x49b   : > { %5703 = vmatmul.msk.f32.gmra.mxu2 %vm2852_vm2, %v2698_v41  ;;  %v7939_v37 = vpop.f32.mrf.mxu1  ;;  %v7943_v41 = vpop.f32.mrf.mxu2 }
 0x49c   : > { %v7957_v29 = vpop.f32.mrf.mxu3  ;;  %4644 = vmatpush.msrb.mxu2 %v4615_v56 }
 0x4a2   : > { %5688 = vmatmul.msk.f32.gmra.mxu1 %vm2852_vm2, %v2683_v24  ;;  %5696 = vmatmul.msk.f32.gmra.mxu3 %vm2852_vm2, %v2691_v22  ;;  %v4516_v24 = vld [vmem:[%s8777_s4 + $0x460] sm:$0xff]  ;;  %v2708_v22 = vmax.f32 %v2393_v18, 0.0 }
 0x4a3   : > { %5704 = vmatmul.msk.f32.gmra.mxu2 %vm2852_vm2, %v2699_v7  ;;  %v4614_v7 = vld [vmem:[%s8777_s4 + $0x4a0] sm:$0xff]  ;;  %4547 = vmatpush.msra.mxu3 %v4516_v24  ;;  %v7979_v18 = vpop.f32.mrf.mxu1  ;;  %v2702_v24 = vmax.f32 %v2375_v11, 0.0  ;;  %v2381_v11 = vadd.f32 %v7933_v26, %v6663_v59  ;;  %v4763_v59 = vld [vmem:[%s8777_s4 + $0x510] sm:$0xff] }
 0x4a4   : > { %4645 = vmatpush.msrb.mxu2 %v4614_v7  ;;  %v7981_v56 = vpop.f32.mrf.mxu3 }
 0x4aa   : > { %5697 = vmatmul.msk.f32.vlgmr.msrb.gmra.mxu1 %vm2852_vm2, %v2692_v16  ;;  %5705 = vmatmul.msk.f32.vlgmr.msrb.gmra.mxu3 %vm2852_vm2, %v2700_v32  ;;  %v2399_v16 = vadd.f32 %v7933_v26, %v6809_v28  ;;  %v2378_v28 = vadd.f32 %v7933_v26, %v6645_v49  ;;  %v4565_v49 = vld [vmem:[%s8777_s4 + $0x480] sm:$0xff] }
 0x4ab   : > { %5713 = vmatmul.msk.f32.vlgmr.msra.gmra.mxu2 %vm2852_vm2, %v2708_v22  ;;  %4593 = vmatpush.msrb.mxu1 %v4568_v31  ;;  %v2694_v22 = vmax.f32 %v2351_v51, 0.0  ;;  %v7997_v7 = vpop.f32.mrf.mxu1  ;;  %v2405_v51 = vadd.f32 %v7933_v26, %v6860_v43  ;;  %v4664_v43 = vld [vmem:[%s8777_s4 + $0x4c8] sm:$0xff] }
 0x4ac   : > { %v2710_v31 = vmax.f32 %v2399_v16, 0.0  ;;  %v8004_v10 = vpop.f32.mrf.mxu3  ;;  %4691 = vmatpush.msrb.mxu3 %v4666_v19  ;;  %4789 = vmatpush.msra.mxu2 %v4764_v58  ;;  %v2429_v16 = vadd.f32 %v7933_v26, %v7058_v30  ;;  %v4762_v30 = vld [vmem:[%s8777_s4 + $0x508] sm:$0xff]  ;;  %v2408_v19 = vadd.f32 %v7933_v26, %v6933_v39  ;;  %v2432_v58 = vadd.f32 %v7933_v26, %v7139_v6 }
 0x4ad   : > { %v7977_v9 = vpop.f32.mrf.mxu2  ;;  %4594 = vmatpush.msrb.mxu1 %v4567_v48  ;;  %v2711_v48 = vmax.f32 %v2402_v46, 0.0  ;;  %v2387_v39 = vadd.f32 %v7933_v26, %v6705_v15  ;;  %v2411_v6 = vadd.f32 %v7933_v26, %v6959_v1  ;;  %v4713_v15 = vld [vmem:[%s8777_s4 + $0x4e8] sm:$0xff]  ;;  %v2390_v1 = vadd.f32 %v7933_v26, %v6737_v34  ;;  %v4712_v34 = vld [vmem:[%s8777_s4 + $0x4e0] sm:$0xff] }
 0x4ae   : > { %4790 = vmatpush.msra.mxu2 %v4763_v59  ;;  %v2720_v46 = vmax.f32 %v2429_v16, 0.0  ;;  %v2721_v59 = vmax.f32 %v2432_v58, 0.0 }
 0x4af   : > { %4595 = vmatpush.msrb.mxu1 %v4566_v38  ;;  %v2704_v38 = vmax.f32 %v2381_v11, 0.0 }
 0x4b0   : > { %4791 = vmatpush.msra.mxu2 %v4762_v30  ;;  %v2435_v30 = vadd.f32 %v7933_v26, %v7155_v20  ;;  %v2414_v20 = vadd.f32 %v7933_v26, %v6983_v54  ;;  %v4911_v54 = vld [vmem:[%s8777_s4 + $0x578] sm:$0xff] }
 0x4b1   : > { %4596 = vmatpush.msrb.mxu1 %v4565_v49  ;;  %v2384_v49 = vadd.f32 %v7933_v26, %v6681_v3  ;;  %v4714_v3 = vld [vmem:[%s8777_s4 + $0x4f0] sm:$0xff] }
 0x4b2   : > { %5698 = vmatmul.msk.f32.gmra.mxu1 %vm2852_vm2, %v2693_v23  ;;  %5706 = vmatmul.msk.f32.gmra.mxu3 %vm2852_vm2, %v2701_v36  ;;  %v2703_v23 = vmax.f32 %v2378_v28, 0.0  ;;  %v2695_v36 = vmax.f32 %v2354_v47, 0.0  ;;  %v2712_v28 = vmax.f32 %v2405_v51, 0.0  ;;  %v4663_v47 = vld [vmem:[%s8777_s4 + $0x4c0] sm:$0xff] }
 0x4b3   : > { %5714 = vmatmul.msk.f32.gmra.mxu2 %vm2852_vm2, %v2709_v8  ;;  %v8015_v8 = vpop.f32.mrf.mxu1  ;;  %v2705_v16 = vmax.f32 %v2384_v49, 0.0 }
 0x4b5   : > { %v7995_v32 = vpop.f32.mrf.mxu2 }
 0x4ba   : > { %5699 = vmatmul.msk.f32.gmra.mxu1 %vm2852_vm2, %v2694_v22  ;;  %5707 = vmatmul.msk.f32.gmra.mxu3 %vm2852_vm2, %v2702_v24  ;;  %v8035_v24 = vpop.f32.mrf.mxu3 }
 0x4bb   : > { %5715 = vmatmul.msk.f32.gmra.mxu2 %vm2852_vm2, %v2710_v31  ;;  %v4665_v31 = vld [vmem:[%s8777_s4 + $0x4d0] sm:$0xff] }
 0x4bc   : > { %4692 = vmatpush.msrb.mxu3 %v4665_v31  ;;  %v2713_v31 = vmax.f32 %v2408_v19, 0.0 }
 0x4bd   : > { %v8013_v2 = vpop.f32.mrf.mxu2 }
 0x4be   : > { %4693 = vmatpush.msrb.mxu3 %v4664_v43 }
 0x4c0   : > { %4694 = vmatpush.msrb.mxu3 %v4663_v47  ;;  %v2706_v47 = vmax.f32 %v2387_v39, 0.0  ;;  %v2441_v39 = vadd.f32 %v7933_v26, %v7169_v55 }
 0x4c2   : > { %5700 = vmatmul.msk.f32.gmra.mxu1 %vm2852_vm2, %v2695_v36  ;;  %5708 = vmatmul.msk.f32.gmra.mxu3 %vm2852_vm2, %v2703_v23  ;;  %v4761_v23 = vld [vmem:[%s8777_s4 + $0x500] sm:$0xff]  ;;  %v8057_v36 = vpop.f32.mrf.mxu1 }
 0x4c3   : > { %5716 = vmatmul.msk.f32.gmra.mxu2 %vm2852_vm2, %v2711_v48  ;;  %v4715_v48 = vld [vmem:[%s8777_s4 + $0x4f8] sm:$0xff] }
 0x4c4   : > { %4792 = vmatpush.msra.mxu2 %v4761_v23  ;;  %v2722_v23 = vmax.f32 %v2435_v30, 0.0  ;;  %v8886_v30 = vld [vmem:[#allocation70_spill] sm:$0xff] }
 0x4c5   : > { %v8037_v22 = vpop.f32.mrf.mxu2 }
 0x4ca   : > { %5709 = vmatmul.msk.f32.vlgmr.msra.gmra.mxu1 %vm2852_vm2, %v2704_v38  ;;  %5717 = vmatmul.msk.f32.vlgmr.msra.gmra.mxu3 %vm2852_vm2, %v2712_v28  ;;  %v8085_v43 = vpop.f32.mrf.mxu1 }
 0x4cb   : > { %5725 = vmatmul.msk.f32.vlgmr.msrb.gmra.mxu2 %vm2852_vm2, %v2720_v46  ;;  %4740 = vmatpush.msra.mxu1 %v4715_v48  ;;  %v2714_v46 = vmax.f32 %v2411_v6, 0.0  ;;  %v2438_v48 = vadd.f32 %v7933_v26, %v7162_v44  ;;  %v4813_v44 = vld [vmem:[%s8777_s4 + $0x538] sm:$0xff] }
 0x4cc   : > { %v8885_v6 = vld [vmem:[#allocation61_spill] sm:$0xff]  ;;  %4838 = vmatpush.msra.mxu3 %v4813_v44  ;;  %4936 = vmatpush.msrb.mxu2 %v4911_v54 }
 0x4cd   : > { %v8071_v11 = vpop.f32.mrf.mxu3  ;;  %v8073_v51 = vpop.f32.mrf.mxu2  ;;  %4741 = vmatpush.msra.mxu1 %v4714_v3  ;;  %v2417_v3 = vadd.f32 %v7933_v26, %v6995_v0  ;;  %v4910_v0 = vld [vmem:[%s8777_s4 + $0x570] sm:$0xff] }
 0x4ce   : > { %4937 = vmatpush.msrb.mxu2 %v4910_v0 }
 0x4cf   : > { %4742 = vmatpush.msra.mxu1 %v4713_v15 }
 0x4d1   : > { %4743 = vmatpush.msra.mxu1 %v4712_v34  ;;  %v2724_v34 = vmax.f32 %v2441_v39, 0.0 }
 0x4d2   : > { %5710 = vmatmul.msk.f32.gmra.mxu1 %vm2852_vm2, %v2705_v16  ;;  %5718 = vmatmul.msk.f32.gmra.mxu3 %vm2852_vm2, %v2713_v31  ;;  %v8109_v58 = vpop.f32.mrf.mxu1  ;;  %v2707_v16 = vmax.f32 %v2390_v1, 0.0  ;;  %v2715_v31 = vmax.f32 %v2414_v20, 0.0  ;;  %v4812_v20 = vld [vmem:[%s8777_s4 + $0x530] sm:$0xff] }
 0x4d3   : > { %5726 = vmatmul.msk.f32.gmra.mxu2 %vm2852_vm2, %v2721_v59  ;;  %v2723_v59 = vmax.f32 %v2438_v48, 0.0  ;;  %4839 = vmatpush.msra.mxu3 %v4812_v20  ;;  %v8891_v20 = vld [vmem:[#allocation73_spill] sm:$0xff] }
 0x4d5   : > { %v8089_v38 = vpop.f32.mrf.mxu3  ;;  %v8091_v28 = vpop.f32.mrf.mxu2 }
 0x4da   : > { %5711 = vmatmul.msk.f32.gmra.mxu1 %vm2852_vm2, %v2706_v47  ;;  %5719 = vmatmul.msk.f32.gmra.mxu3 %vm2852_vm2, %v2714_v46  ;;  %v3096_v47 = vadd.f32 %v8886_v30, %v8885_v6  ;;  %v8887_v46 = vld [vmem:[#allocation47_spill] sm:$0xff]  ;;  %v4908_v6 = vld [vmem:[%s8777_s4 + $0x560] sm:$0xff] }
 0x4db   : > { %5727 = vmatmul.msk.f32.gmra.mxu2 %vm2852_vm2, %v2722_v23  ;;  %v2465_v23 = vadd.f32 %v7933_v26, %v8887_v46 }
 0x4dc   : > { %v3336_v55 = vadd.f32 %v7589_v53, %v3096_v47  ;;  %v4810_v53 = vld [vmem:[%s8777_s4 + $0x520] sm:$0xff]  ;;  %v8889_v47 = vld [vmem:[#allocation36_spill] sm:$0xff] }
 0x4dd   : > { %v8105_v49 = vpop.f32.mrf.mxu3  ;;  %v8107_v19 = vpop.f32.mrf.mxu2  ;;  %v2732_v54 = vmax.f32 %v2465_v23, 0.0  ;;  %v2444_v46 = vadd.f32 %v7933_v26, %v8889_v47  ;;  %v8890_v23 = vld [vmem:[#allocation63_spill] sm:$0xff] }
 0x4de   : > { %v3532_v44 = vadd.f32 %v7731_v45, %v3336_v55  ;;  %v4862_v45 = vld [vmem:[%s8777_s4 + $0x558] sm:$0xff]  ;;  %v8892_v55 = vld [vmem:[#allocation6_spill] sm:$0xff] }
 0x4e0   : > { %v3728_v30 = vadd.f32 %v7900_v13, %v3532_v44  ;;  %v3099_v13 = vadd.f32 %v8891_v20, %v8890_v23 }
 0x4e2   : > { %5712 = vmatmul.msk.f32.gmra.mxu1 %vm2852_vm2, %v2707_v16  ;;  %5720 = vmatmul.msk.f32.gmra.mxu3 %vm2852_vm2, %v2715_v31  ;;  %v4811_v16 = vld [vmem:[%s8777_s4 + $0x528] sm:$0xff]  ;;  %v3924_v0 = vadd.f32 %v7977_v9, %v3728_v30 }
 0x4e3   : > { %5728 = vmatmul.msk.f32.gmra.mxu2 %vm2852_vm2, %v2723_v59  ;;  %v4909_v31 = vld [vmem:[%s8777_s4 + $0x568] sm:$0xff]  ;;  %v2716_v59 = vmax.f32 %v2417_v3, 0.0  ;;  %4840 = vmatpush.msra.mxu3 %v4811_v16  ;;  %v8888_v3 = vld [vmem:[#allocation25_spill] sm:$0xff]  ;;  %v2468_v16 = vadd.f32 %v7933_v26, %v8892_v55 }
 0x4e4   : > { %4938 = vmatpush.msrb.mxu2 %v4909_v31  ;;  %v2420_v39 = vadd.f32 %v7933_v26, %v8888_v3  ;;  %v2725_v3 = vmax.f32 %v2444_v46, 0.0  ;;  %v8896_v46 = vld [vmem:[#allocation76_spill] sm:$0xff] }
 0x4e5   : > { %v8131_v15 = vpop.f32.mrf.mxu3  ;;  %v8133_v1 = vpop.f32.mrf.mxu2  ;;  %4841 = vmatpush.msra.mxu3 %v4810_v53  ;;  %v2733_v23 = vmax.f32 %v2468_v16, 0.0  ;;  %v8898_v16 = vld [vmem:[#allocation88_spill] sm:$0xff] }
 0x4e6   : > { %4939 = vmatpush.msrb.mxu2 %v4908_v6  ;;  %v8893_v6 = vld [vmem:[#allocation26_spill] sm:$0xff] }
 0x4e7   : > { %v8142_v48 = vpop.f32.mrf.mxu1  ;;  %v2423_v30 = vadd.f32 %v7933_v26, %v8893_v6 }
 0x4ea   : > { %5721 = vmatmul.msk.f32.vlgmr.msrb.gmra.mxu1 %vm2852_vm2, %v2716_v59  ;;  %5729 = vmatmul.msk.f32.vlgmr.msrb.gmra.mxu3 %vm2852_vm2, %v2724_v34  ;;  %v3337_v59 = vadd.f32 %v7598_v27, %v3099_v13  ;;  %v4861_v27 = vld [vmem:[%s8777_s4 + $0x550] sm:$0xff]  ;;  %v8897_v13 = vld [vmem:[#allocation7_spill] sm:$0xff] }
 0x4eb   : > { %5737 = vmatmul.msk.f32.vlgmr.msra.gmra.mxu2 %vm2852_vm2, %v2732_v54  ;;  %4887 = vmatpush.msrb.mxu1 %v4862_v45  ;;  %v2717_v54 = vmax.f32 %v2420_v39, 0.0  ;;  %v8894_v45 = vld [vmem:[#allocation37_spill] sm:$0xff] }
 0x4ec   : > { %v3533_v47 = vadd.f32 %v7755_v60, %v3337_v59  ;;  %v2447_v60 = vadd.f32 %v7933_v26, %v8894_v45  ;;  %v8895_v39 = vld [vmem:[#allocation65_spill] sm:$0xff] }
 0x4ed   : > { %v4108_v31 = vpop.f32.mrf.mxu3  ;;  %4888 = vmatpush.msrb.mxu1 %v4861_v27 }
 0x4ee   : > { %v8174_v34 = vadd.f32 %v4108_v31, %v3924_v0  ;;  %v8176_v44 = vpop.f32.mrf.mxu2  ;;  %v3729_v9 = vadd.f32 %v7939_v37, %v3533_v47  ;;  %v3102_v37 = vadd.f32 %v8896_v46, %v8895_v39  ;;  %v2471_v0 = vadd.f32 %v7933_v26, %v8897_v13  ;;  %v8901_v39 = vld [vmem:[#allocation68_spill] sm:$0xff]  ;;  %v8902_v46 = vld [vmem:[#allocation79_spill] sm:$0xff] }
 0x4ef   : > { %v8178_v53 = vpop.f32.mrf.mxu1  ;;  %v2718_v47 = vmax.f32 %v2423_v30, 0.0 }
 0x4f0   : > { %v3925_v20 = vadd.f32 %v7995_v32, %v3729_v9  ;;  %v3338_v31 = vadd.f32 %v8898_v16, %v3102_v37  ;;  %v2734_v6 = vmax.f32 %v2471_v0, 0.0  ;;  %v4860_v32 = vld [vmem:[%s8777_s4 + $0x548] sm:$0xff] }
 0x4f1   : > { %4889 = vmatpush.msrb.mxu1 %v4860_v32  ;;  %v8899_v9 = vld [vmem:[#allocation27_spill] sm:$0xff] }
 0x4f2   : > { %5722 = vmatmul.msk.f32.gmra.mxu1 %vm2852_vm2, %v2717_v54  ;;  %5730 = vmatmul.msk.f32.gmra.mxu3 %vm2852_vm2, %v2725_v3  ;;  %v3534_v27 = vadd.f32 %v7791_v21, %v3338_v31  ;;  %v2426_v30 = vadd.f32 %v7933_v26, %v8899_v9 }
 0x4f3   : > { %5738 = vmatmul.msk.f32.gmra.mxu2 %vm2852_vm2, %v2733_v23  ;;  %v2726_v23 = vmax.f32 %v2447_v60, 0.0  ;;  %v8900_v60 = vld [vmem:[#allocation38_spill] sm:$0xff] }
 0x4f4   : > { %v3730_v45 = vadd.f32 %v7979_v18, %v3534_v27  ;;  %v2450_v21 = vadd.f32 %v7933_v26, %v8900_v60  ;;  %v3105_v18 = vadd.f32 %v8902_v46, %v8901_v39  ;;  %v2719_v27 = vmax.f32 %v2426_v30, 0.0  ;;  %v8905_v60 = vld [vmem:[#allocation59_spill] sm:$0xff]  ;;  %v8906_v39 = vld [vmem:[#allocation66_spill] sm:$0xff] }
 0x4f5   : > { %v4111_v55 = vpop.f32.mrf.mxu3  ;;  %v4859_v46 = vld [vmem:[%s8777_s4 + $0x540] sm:$0xff] }
 0x4f6   : > { %v8198_v59 = vadd.f32 %v4111_v55, %v3925_v20  ;;  %v8200_v54 = vpop.f32.mrf.mxu2  ;;  %v3926_v37 = vadd.f32 %v8013_v2, %v3730_v45  ;;  %v8903_v20 = vld [vmem:[#allocation8_spill] sm:$0xff]  ;;  %v8904_v55 = vld [vmem:[#allocation91_spill] sm:$0xff]  ;;  %v3010_v2 = vadd.f32 %v8906_v39, %v8905_v60  ;;  %4890 = vmatpush.msrb.mxu1 %v4859_v46 }
 0x4f7   : > { %v8202_v3 = vpop.f32.mrf.mxu1  ;;  %v2474_v13 = vadd.f32 %v7933_v26, %v8903_v20  ;;  %v3339_v16 = vadd.f32 %v8904_v55, %v3105_v18  ;;  %v8907_v18 = vld [vmem:[#allocation9_spill] sm:$0xff]  ;;  %v8909_v20 = vld [vmem:[#allocation87_spill] sm:$0xff] }
 0x4f8   : > { %v2477_v30 = vadd.f32 %v7933_v26, %v8907_v18  ;;  %v8910_v55 = vld [vmem:[#allocation17_spill] sm:$0xff]  ;;  %v5056_v46 = vld [vmem:[%s8777_s4 + $0x5c8] sm:$0xff] }
 0x4f9   : > { %v3535_v32 = vadd.f32 %v7808_v40, %v3339_v16  ;;  %v2735_v9 = vmax.f32 %v2474_v13, 0.0  ;;  %v4960_v40 = vld [vmem:[%s8777_s4 + $0x598] sm:$0xff]  ;;  %v3287_v13 = vadd.f32 %v8909_v20, %v3010_v2  ;;  %v2501_v16 = vadd.f32 %v7933_v26, %v8910_v55 }
 0x4fa   : > { %5723 = vmatmul.msk.f32.gmra.mxu1 %vm2852_vm2, %v2718_v47  ;;  %5731 = vmatmul.msk.f32.gmra.mxu3 %vm2852_vm2, %v2726_v23  ;;  %v2736_v18 = vmax.f32 %v2477_v30, 0.0  ;;  %v8913_v55 = vld [vmem:[#allocation69_spill] sm:$0xff]  ;;  %v8914_v30 = vld [vmem:[#allocation10_spill] sm:$0xff] }
 0x4fb   : > { %5739 = vmatmul.msk.f32.gmra.mxu2 %vm2852_vm2, %v2734_v6  ;;  %v2727_v6 = vmax.f32 %v2450_v21, 0.0  ;;  %v3731_v45 = vadd.f32 %v7997_v7, %v3535_v32  ;;  %v5058_v7 = vld [vmem:[%s8777_s4 + $0x5d8] sm:$0xff]  ;;  %v8908_v21 = vld [vmem:[#allocation39_spill] sm:$0xff]  ;;  %4985 = vmatpush.msrb.mxu3 %v4960_v40  ;;  %v5057_v32 = vld [vmem:[%s8777_s4 + $0x5d0] sm:$0xff]  ;;  %v2744_v20 = vmax.f32 %v2501_v16, 0.0 }
 0x4fc   : > { %5083 = vmatpush.msra.mxu2 %v5058_v7  ;;  %v8915_v16 = vld [vmem:[#allocation44_spill] sm:$0xff] }
 0x4fd   : > { %v4114_v0 = vpop.f32.mrf.mxu3 }
 0x4fe   : > { %v8222_v31 = vadd.f32 %v4114_v0, %v3926_v37  ;;  %v8224_v47 = vpop.f32.mrf.mxu2  ;;  %v2453_v37 = vadd.f32 %v7933_v26, %v8908_v21  ;;  %v3927_v0 = vadd.f32 %v8037_v22, %v3731_v45  ;;  %5084 = vmatpush.msra.mxu2 %v5057_v32  ;;  %v4958_v45 = vld [vmem:[%s8777_s4 + $0x588] sm:$0xff]  ;;  %v4957_v21 = vld [vmem:[%s8777_s4 + $0x580] sm:$0xff]  ;;  %v2456_v32 = vadd.f32 %v7933_v26, %v8915_v16 }
 0x4ff   : > { %v8226_v23 = vpop.f32.mrf.mxu1 }
 0x500   : > { %v2728_v40 = vmax.f32 %v2453_v37, 0.0  ;;  %5085 = vmatpush.msra.mxu2 %v5056_v46  ;;  %v2480_v37 = vadd.f32 %v7933_v26, %v8914_v30  ;;  %v2729_v30 = vmax.f32 %v2456_v32, 0.0  ;;  %v8922_v32 = vld [vmem:[#allocation45_spill] sm:$0xff] }
 0x502   : > { %5724 = vmatmul.msk.f32.gmra.mxu1 %vm2852_vm2, %v2719_v27  ;;  %5732 = vmatmul.msk.f32.gmra.mxu3 %vm2852_vm2, %v2727_v6  ;;  %v4959_v6 = vld [vmem:[%s8777_s4 + $0x590] sm:$0xff] }
 0x503   : > { %5740 = vmatmul.msk.f32.gmra.mxu2 %vm2852_vm2, %v2735_v9  ;;  %v8911_v9 = vld [vmem:[#allocation93_spill] sm:$0xff]  ;;  %4986 = vmatpush.msrb.mxu3 %v4959_v6 }
 0x504   : > { %v3483_v60 = vadd.f32 %v8911_v9, %v3287_v13  ;;  %v5055_v13 = vld [vmem:[%s8777_s4 + $0x5c0] sm:$0xff] }
 0x505   : > { %v4117_v27 = vpop.f32.mrf.mxu3  ;;  %4987 = vmatpush.msrb.mxu3 %v4958_v45  ;;  %v8916_v9 = vld [vmem:[#allocation90_spill] sm:$0xff]  ;;  %5086 = vmatpush.msra.mxu2 %v5055_v13  ;;  %v8920_v13 = vld [vmem:[#allocation72_spill] sm:$0xff] }
 0x506   : > { %v8259_v39 = vadd.f32 %v4117_v27, %v3927_v0  ;;  %v8261_v2 = vpop.f32.mrf.mxu2  ;;  %v3679_v7 = vadd.f32 %v7826_v33, %v3483_v60  ;;  %v8912_v0 = vld [vmem:[#allocation62_spill] sm:$0xff]  ;;  %v5009_v33 = vld [vmem:[%s8777_s4 + $0x5b8] sm:$0xff] }
 0x507   : > { %v8263_v22 = vpop.f32.mrf.mxu1  ;;  %v3013_v27 = vadd.f32 %v8913_v55, %v8912_v0  ;;  %4988 = vmatpush.msrb.mxu3 %v4957_v21  ;;  %v8917_v45 = vld [vmem:[#allocation18_spill] sm:$0xff] }
 0x508   : > { %v3875_v6 = vadd.f32 %v8015_v8, %v3679_v7  ;;  %v2504_v46 = vadd.f32 %v7933_v26, %v8917_v45 }
 0x509   : > { %v3288_v60 = vadd.f32 %v8916_v9, %v3013_v27  ;;  %v5008_v9 = vld [vmem:[%s8777_s4 + $0x5b0] sm:$0xff] }
 0x50a   : > { %5733 = vmatmul.msk.f32.vlgmr.msra.gmra.mxu1 %vm2852_vm2, %v2728_v40  ;;  %5741 = vmatmul.msk.f32.vlgmr.msra.gmra.mxu3 %vm2852_vm2, %v2736_v18  ;;  %v4071_v8 = vadd.f32 %v8073_v51, %v3875_v6  ;;  %v8918_v40 = vld [vmem:[#allocation96_spill] sm:$0xff]  ;;  %v2745_v16 = vmax.f32 %v2504_v46, 0.0  ;;  %v8924_v46 = vld [vmem:[#allocation19_spill] sm:$0xff] }
 0x50b   : > { %5749 = vmatmul.msk.f32.vlgmr.msrb.gmra.mxu2 %vm2852_vm2, %v2744_v20  ;;  %5034 = vmatpush.msra.mxu1 %v5009_v33  ;;  %v3484_v7 = vadd.f32 %v8918_v40, %v3288_v60  ;;  %v2737_v20 = vmax.f32 %v2480_v37, 0.0  ;;  %v8919_v51 = vld [vmem:[#allocation64_spill] sm:$0xff]  ;;  %v8921_v37 = vld [vmem:[#allocation11_spill] sm:$0xff]  ;;  %v2459_v60 = vadd.f32 %v7933_v26, %v8922_v32  ;;  %v8928_v32 = vld [vmem:[#allocation46_spill] sm:$0xff] }
 0x50c   : > { %v3016_v6 = vadd.f32 %v8920_v13, %v8919_v51 }
 0x50d   : > { %v4255_v18 = vpop.f32.mrf.mxu3  ;;  %v3680_v27 = vadd.f32 %v7873_v35, %v3484_v7  ;;  %5035 = vmatpush.msra.mxu1 %v5008_v9  ;;  %v2483_v35 = vadd.f32 %v7933_v26, %v8921_v37  ;;  %v2730_v51 = vmax.f32 %v2459_v60, 0.0  ;;  %v8926_v37 = vld [vmem:[#allocation75_spill] sm:$0xff]  ;;  %v2462_v60 = vadd.f32 %v7933_v26, %v8928_v32 }
 0x50e   : > { %v8296_v0 = vadd.f32 %v4255_v18, %v4071_v8  ;;  %v8298_v55 = vpop.f32.mrf.mxu2  ;;  %v8923_v8 = vld [vmem:[#allocation94_spill] sm:$0xff]  ;;  %v2507_v18 = vadd.f32 %v7933_v26, %v8924_v46 }
 0x50f   : > { %v8300_v21 = vpop.f32.mrf.mxu1  ;;  %v3876_v33 = vadd.f32 %v8057_v36, %v3680_v27  ;;  %v3289_v45 = vadd.f32 %v8923_v8, %v3016_v6  ;;  %v8925_v6 = vld [vmem:[#allocation67_spill] sm:$0xff]  ;;  %v8929_v8 = vld [vmem:[#allocation97_spill] sm:$0xff] }
 0x510   : > { %v2746_v9 = vmax.f32 %v2507_v18, 0.0 }
 0x511   : > { %v4072_v36 = vadd.f32 %v8091_v28, %v3876_v33  ;;  %v3485_v7 = vadd.f32 %v7710_v50, %v3289_v45  ;;  %v3019_v28 = vadd.f32 %v8926_v37, %v8925_v6  ;;  %v5007_v50 = vld [vmem:[%s8777_s4 + $0x5a8] sm:$0xff]  ;;  %v2731_v6 = vmax.f32 %v2462_v60, 0.0  ;;  %v8932_v37 = vld [vmem:[#allocation53_spill] sm:$0xff] }
 0x512   : > { %5734 = vmatmul.msk.f32.gmra.mxu1 %vm2852_vm2, %v2729_v30  ;;  %5742 = vmatmul.msk.f32.gmra.mxu3 %vm2852_vm2, %v2737_v20 }
 0x513   : > { %5750 = vmatmul.msk.f32.gmra.mxu2 %vm2852_vm2, %v2745_v16  ;;  %v2738_v16 = vmax.f32 %v2483_v35, 0.0  ;;  %v3681_v13 = vadd.f32 %v7898_v42, %v3485_v7  ;;  %5036 = vmatpush.msra.mxu1 %v5007_v50  ;;  %v8927_v35 = vld [vmem:[#allocation12_spill] sm:$0xff]  ;;  %v3290_v45 = vadd.f32 %v8929_v8, %v3019_v28  ;;  %v8933_v50 = vld [vmem:[#allocation51_spill] sm:$0xff] }
 0x514   : > { %v2486_v42 = vadd.f32 %v7933_v26, %v8927_v35  ;;  %v2924_v35 = vadd.f32 %v8933_v50, %v8932_v37  ;;  %v8939_v37 = vld [vmem:[#allocation103_spill] sm:$0xff] }
 0x515   : > { %v4258_v40 = vpop.f32.mrf.mxu3  ;;  %v3877_v33 = vadd.f32 %v8085_v43, %v3681_v13 }
 0x516   : > { %v8321_v20 = vadd.f32 %v4258_v40, %v4072_v36  ;;  %v8323_v30 = vpop.f32.mrf.mxu2  ;;  %v8930_v36 = vld [vmem:[#allocation20_spill] sm:$0xff]  ;;  %v8931_v40 = vld [vmem:[#allocation102_spill] sm:$0xff] }
 0x517   : > { %v8325_v27 = vpop.f32.mrf.mxu1  ;;  %v4073_v43 = vadd.f32 %v8107_v19, %v3877_v33  ;;  %v2510_v46 = vadd.f32 %v7933_v26, %v8930_v36  ;;  %v3486_v7 = vadd.f32 %v8931_v40, %v3290_v45  ;;  %v8934_v33 = vld [vmem:[#allocation82_spill] sm:$0xff]  ;;  %v8937_v36 = vld [vmem:[#allocation99_spill] sm:$0xff]  ;;  %v8938_v40 = vld [vmem:[#allocation32_spill] sm:$0xff] }
 0x518   : > { %v3238_v32 = vadd.f32 %v8934_v33, %v2924_v35  ;;  %v5006_v45 = vld [vmem:[%s8777_s4 + $0x5a0] sm:$0xff] }
 0x519   : > { %v3682_v28 = vadd.f32 %v7916_v25, %v3486_v7  ;;  %v2747_v19 = vmax.f32 %v2510_v46, 0.0  ;;  %5037 = vmatpush.msra.mxu1 %v5006_v45  ;;  %v5107_v25 = vld [vmem:[%s8777_s4 + $0x5f8] sm:$0xff]  ;;  %v2537_v7 = vadd.f32 %v7933_v26, %v8938_v40  ;;  %v8941_v45 = vld [vmem:[#allocation54_spill] sm:$0xff] }
 0x51a   : > { %5735 = vmatmul.msk.f32.gmra.mxu1 %vm2852_vm2, %v2730_v51  ;;  %5743 = vmatmul.msk.f32.gmra.mxu3 %vm2852_vm2, %v2738_v16  ;;  %v3434_v46 = vadd.f32 %v8937_v36, %v3238_v32 }
 0x51b   : > { %5751 = vmatmul.msk.f32.gmra.mxu2 %vm2852_vm2, %v2746_v9  ;;  %v2739_v9 = vmax.f32 %v2486_v42, 0.0  ;;  %v3878_v8 = vadd.f32 %v8109_v58, %v3682_v28  ;;  %v8935_v42 = vld [vmem:[#allocation13_spill] sm:$0xff]  ;;  %5132 = vmatpush.msra.mxu3 %v5107_v25  ;;  %v2756_v36 = vmax.f32 %v2537_v7, 0.0 }
 0x51c   : > { %v2489_v60 = vadd.f32 %v7933_v26, %v8935_v42  ;;  %v3630_v50 = vadd.f32 %v8939_v37, %v3434_v46  ;;  %v8942_v46 = vld [vmem:[#allocation84_spill] sm:$0xff] }
 0x51d   : > { %v4261_v18 = vpop.f32.mrf.mxu3 }
 0x51e   : > { %v8346_v16 = vadd.f32 %v4261_v18, %v4073_v43  ;;  %v8348_v51 = vpop.f32.mrf.mxu2  ;;  %v8936_v43 = vld [vmem:[#allocation21_spill] sm:$0xff]  ;;  %v4074_v18 = vadd.f32 %v8133_v1, %v3878_v8  ;;  %v5105_v1 = vld [vmem:[%s8777_s4 + $0x5e8] sm:$0xff]  ;;  %v2740_v33 = vmax.f32 %v2489_v60, 0.0  ;;  %v3826_v42 = vadd.f32 %v7957_v29, %v3630_v50  ;;  %v8943_v29 = vld [vmem:[#allocation14_spill] sm:$0xff] }
 0x51f   : > { %v8350_v13 = vpop.f32.mrf.mxu1  ;;  %v2513_v58 = vadd.f32 %v7933_v26, %v8936_v43  ;;  %v8940_v8 = vld [vmem:[#allocation55_spill] sm:$0xff]  ;;  %v5104_v43 = vld [vmem:[%s8777_s4 + $0x5e0] sm:$0xff]  ;;  %v5156_v60 = vld [vmem:[%s8777_s4 + $0x618] sm:$0xff] }
 0x520   : > { %v2927_v25 = vadd.f32 %v8941_v45, %v8940_v8  ;;  %v4022_v40 = vadd.f32 %v8142_v48, %v3826_v42  ;;  %v8946_v50 = vld [vmem:[#allocation33_spill] sm:$0xff] }
 0x521   : > { %v2748_v32 = vmax.f32 %v2513_v58, 0.0  ;;  %v2492_v58 = vadd.f32 %v7933_v26, %v8943_v29  ;;  %v8947_v8 = vld [vmem:[#allocation105_spill] sm:$0xff] }
 0x522   : > { %5736 = vmatmul.msk.f32.gmra.mxu1 %vm2852_vm2, %v2731_v6  ;;  %5744 = vmatmul.msk.f32.gmra.mxu3 %vm2852_vm2, %v2739_v9  ;;  %v5106_v6 = vld [vmem:[%s8777_s4 + $0x5f0] sm:$0xff]  ;;  %v4218_v48 = vadd.f32 %v8176_v44, %v4022_v40  ;;  %v8948_v29 = vld [vmem:[#allocation57_spill] sm:$0xff] }
 0x523   : > { %5752 = vmatmul.msk.f32.gmra.mxu2 %vm2852_vm2, %v2747_v19  ;;  %5133 = vmatpush.msra.mxu3 %v5106_v6  ;;  %v8945_v6 = vld [vmem:[#allocation101_spill] sm:$0xff] }
 0x525   : > { %v4264_v9 = vpop.f32.mrf.mxu3  ;;  %5134 = vmatpush.msra.mxu3 %v5105_v1  ;;  %v2540_v1 = vadd.f32 %v7933_v26, %v8946_v50  ;;  %v8953_v50 = vld [vmem:[#allocation104_spill] sm:$0xff] }
 0x526   : > { %v8378_v35 = vadd.f32 %v4264_v9, %v4074_v18  ;;  %v8380_v28 = vpop.f32.mrf.mxu2  ;;  %v3239_v18 = vadd.f32 %v8942_v46, %v2927_v25  ;;  %v8944_v9 = vld [vmem:[#allocation22_spill] sm:$0xff]  ;;  %v2741_v46 = vmax.f32 %v2492_v58, 0.0  ;;  %v5155_v58 = vld [vmem:[%s8777_s4 + $0x610] sm:$0xff] }
 0x527   : > { %v4304_v19 = vpop.f32.mrf.mxu1  ;;  %5135 = vmatpush.msra.mxu3 %v5104_v43  ;;  %v2516_v7 = vadd.f32 %v7933_v26, %v8944_v9  ;;  %v8949_v9 = vld [vmem:[#allocation56_spill] sm:$0xff] }
 0x528   : > { %v3435_v37 = vadd.f32 %v8945_v6, %v3239_v18  ;;  %v2930_v44 = vadd.f32 %v8949_v9, %v8948_v29  ;;  %v8950_v6 = vld [vmem:[#allocation86_spill] sm:$0xff] }
 0x529   : > { %v2749_v18 = vmax.f32 %v2516_v7, 0.0  ;;  %v8951_v7 = vld [vmem:[#allocation15_spill] sm:$0xff] }
 0x52a   : > { %5745 = vmatmul.msk.f32.vlgmr.msrb.gmra.mxu1 %vm2852_vm2, %v2740_v33  ;;  %5753 = vmatmul.msk.f32.vlgmr.msrb.gmra.mxu3 %vm2852_vm2, %v2748_v32  ;;  %v4316_v33 = vadd.f32 %v4304_v19, %v8174_v34  ;;  %v3631_v45 = vadd.f32 %v8947_v8, %v3435_v37  ;;  %v3240_v34 = vadd.f32 %v8950_v6, %v2930_v44  ;;  %v8952_v37 = vld [vmem:[#allocation23_spill] sm:$0xff]  ;;  %v8956_v6 = vld [vmem:[#allocation58_spill] sm:$0xff] }
 0x52b   : > { %5761 = vmatmul.msk.f32.vlgmr.msra.gmra.mxu2 %vm2852_vm2, %v2756_v36  ;;  %5181 = vmatpush.msrb.mxu1 %v5156_v60  ;;  %v2757_v60 = vmax.f32 %v2540_v1, 0.0 }
 0x52c   : > { %v3827_v40 = vadd.f32 %v7981_v56, %v3631_v45  ;;  %v2495_v56 = vadd.f32 %v7933_v26, %v8951_v7  ;;  %v3436_v1 = vadd.f32 %v8953_v50, %v3240_v34  ;;  %v8958_v7 = vld [vmem:[#allocation16_spill] sm:$0xff]  ;;  %v8960_v50 = vld [vmem:[#allocation35_spill] sm:$0xff] }
 0x52d   : > { %v4402_v32 = vpop.f32.mrf.mxu3  ;;  %5182 = vmatpush.msrb.mxu1 %v5155_v58  ;;  %v8957_v58 = vld [vmem:[#allocation89_spill] sm:$0xff] }
 0x52e   : > { %v8409_v25 = vadd.f32 %v4402_v32, %v4218_v48  ;;  %v4500_v42 = vpop.f32.mrf.mxu2  ;;  %v4023_v19 = vadd.f32 %v8178_v53, %v3827_v40  ;;  %v2519_v48 = vadd.f32 %v7933_v26, %v8952_v37  ;;  %v2742_v44 = vmax.f32 %v2495_v56, 0.0 }
 0x52f   : > { %v8411_v43 = vadd.f32 %v4500_v42, %v4316_v33  ;;  %v4307_v36 = vpop.f32.mrf.mxu1  ;;  %v8954_v33 = vld [vmem:[#allocation34_spill] sm:$0xff]  ;;  %v3632_v42 = vadd.f32 %v7805_v63, %v3436_v1  ;;  %v5154_v63 = vld [vmem:[%s8777_s4 + $0x608] sm:$0xff]  ;;  %v2498_v56 = vadd.f32 %v7933_v26, %v8958_v7  ;;  %v2546_v1 = vadd.f32 %v7933_v26, %v8960_v50 }
 0x530   : > { %v4219_v53 = vadd.f32 %v8200_v54, %v4023_v19  ;;  %v2543_v32 = vadd.f32 %v7933_v26, %v8954_v33  ;;  %v4317_v8 = vadd.f32 %v4307_v36, %v8198_v59  ;;  %v2750_v40 = vmax.f32 %v2519_v48, 0.0  ;;  %5183 = vmatpush.msrb.mxu1 %v5154_v63 }
 0x531   : > { %v3828_v34 = vadd.f32 %v8004_v10, %v3632_v42  ;;  %v8959_v10 = vld [vmem:[#allocation24_spill] sm:$0xff]  ;;  %v2743_v42 = vmax.f32 %v2498_v56, 0.0 }
 0x532   : > { %5746 = vmatmul.msk.f32.gmra.mxu1 %vm2852_vm2, %v2741_v46  ;;  %5754 = vmatmul.msk.f32.gmra.mxu3 %vm2852_vm2, %v2749_v18  ;;  %v2758_v19 = vmax.f32 %v2543_v32, 0.0  ;;  %v2522_v37 = vadd.f32 %v7933_v26, %v8959_v10 }
 0x533   : > { %5762 = vmatmul.msk.f32.gmra.mxu2 %vm2852_vm2, %v2757_v60  ;;  %v8955_v60 = vld [vmem:[#allocation60_spill] sm:$0xff]  ;;  %v4024_v36 = vadd.f32 %v8202_v3, %v3828_v34 }
 0x534   : > { %v2933_v54 = vadd.f32 %v8956_v6, %v8955_v60  ;;  %v5913_v60 = vmov 0   ;;  %v8963_v6 = vld [vmem:[#allocation92_spill] sm:$0xff] }
 0x535   : > { %v4405_v45 = vpop.f32.mrf.mxu3  ;;  %v4220_v3 = vadd.f32 %v8224_v47, %v4024_v36  ;;  %v8961_v47 = vld [vmem:[#allocation77_spill] sm:$0xff]  ;;  %5834 = vset.pattern.permute.xlu0 %v5913_v60  ;;  %5836 = vset.pattern.permute.xlu1 %v5913_v60  ;;  %v8965_v36 = vld [vmem:[#allocation40_spill] sm:$0xff] }
 0x536   : > { %v8435_v46 = vadd.f32 %v4405_v45, %v4219_v53  ;;  %v4503_v18 = vpop.f32.mrf.mxu2  ;;  %v3241_v59 = vadd.f32 %v8957_v58, %v2933_v54  ;;  %v2768_v58 = vld [vmem:[%s8467_s24] sm:$0xff]  ;;  %v2549_v63 = vadd.f32 %v7933_v26, %v8965_v36  ;;  %5838 = vset.pattern.permute.xlu2 %v5913_v60 }
 0x537   : > { %v8437_v29 = vadd.f32 %v4503_v18, %v4317_v8  ;;  %v4310_v9 = vpop.f32.mrf.mxu1  ;;  %2776 = vperm.xlu0 %5834, %v2768_v58  }
 0x538   : > { %v3437_v48 = vadd.f32 %v7786_v14, %v3241_v59  ;;  %v4318_v53 = vadd.f32 %v4310_v9, %v8222_v31  ;;  %v2751_v14 = vmax.f32 %v2522_v37, 0.0 }
 0x53a   : > { %5747 = vmatmul.msk.f32.gmra.mxu1 %vm2852_vm2, %v2742_v44  ;;  %5755 = vmatmul.msk.f32.gmra.mxu3 %vm2852_vm2, %v2750_v40  ;;  %v3633_v32 = vadd.f32 %v7824_v17, %v3437_v48  ;;  %v8962_v40 = vld [vmem:[#allocation71_spill] sm:$0xff]  ;;  %v2759_v17 = vmax.f32 %v2546_v1, 0.0 }
 0x53b   : > { %5763 = vmatmul.msk.f32.gmra.mxu2 %vm2852_vm2, %v2758_v19  ;;  %v3182_v31 = vadd.f32 %v8962_v40, %v8961_v47  ;;  %v5153_v19 = vld [vmem:[%s8777_s4 + $0x600] sm:$0xff]  ;;  %v8969_v47 = vld [vmem:[#allocation29_spill] sm:$0xff] }
 0x53c   : > { %v3829_v9 = vadd.f32 %v8035_v24, %v3633_v32  ;;  %v8964_v24 = vld [vmem:[#allocation28_spill] sm:$0xff]  ;;  %5184 = vmatpush.msrb.mxu1 %v5153_v19  ;;  %v8967_v32 = vld [vmem:[#allocation74_spill] sm:$0xff]  ;;  %v2528_v40 = vadd.f32 %v7933_v26, %v8969_v47 }
 0x53d   : > { %v4408_v33 = vpop.f32.mrf.mxu3  ;;  %v3385_v54 = vadd.f32 %v8963_v6, %v3182_v31  ;;  %v2525_v59 = vadd.f32 %v7933_v26, %v8964_v24  ;;  %v8970_v31 = vld [vmem:[#allocation41_spill] sm:$0xff] }
 0x53e   : > { %v8460_v8 = vadd.f32 %v4408_v33, %v4220_v3  ;;  %v4506_v45 = vpop.f32.mrf.mxu2  ;;  %v4025_v34 = vadd.f32 %v8226_v23, %v3829_v9  ;;  %v2760_v33 = vmax.f32 %v2549_v63, 0.0  ;;  %v2552_v9 = vadd.f32 %v7933_v26, %v8970_v31  ;;  %v8971_v63 = vld [vmem:[#allocation83_spill] sm:$0xff] }
 0x53f   : > { %v8462_v18 = vadd.f32 %v4506_v45, %v4318_v53  ;;  %v4313_v44 = vpop.f32.mrf.mxu1  ;;  %v3581_v23 = vadd.f32 %v7801_v52, %v3385_v54  ;;  %v2752_v50 = vmax.f32 %v2525_v59, 0.0  ;;  %v8966_v52 = vld [vmem:[#allocation80_spill] sm:$0xff]  ;;  %v2753_v19 = vmax.f32 %v2528_v40, 0.0  ;;  %v8979_v40 = vld [vmem:[#allocation31_spill] sm:$0xff] }
 0x540   : > { %v4221_v7 = vadd.f32 %v8261_v2, %v4025_v34  ;;  %v4319_v56 = vadd.f32 %v4313_v44, %v8259_v39  ;;  %v3185_v2 = vadd.f32 %v8967_v32, %v8966_v52  ;;  %v8968_v39 = vld [vmem:[#allocation95_spill] sm:$0xff]  ;;  %v2761_v36 = vmax.f32 %v2552_v9, 0.0 }
 0x541   : > { %v3777_v37 = vadd.f32 %v7858_v5, %v3581_v23  ;;  %v2769_v5 = vld [vmem:[%s8467_s24 + $0x8] sm:$0xff]  ;;  %v8972_v23 = vld [vmem:[#allocation78_spill] sm:$0xff] }
 0x542   : > { %5748 = vmatmul.msk.f32.gmra.mxu1 %vm2852_vm2, %v2743_v42  ;;  %5756 = vmatmul.msk.f32.gmra.mxu3 %vm2852_vm2, %v2751_v14  ;;  %v3386_v44 = vadd.f32 %v8968_v39, %v3185_v2  ;;  %v8976_v39 = vld [vmem:[#allocation85_spill] sm:$0xff]  ;;  %v8980_v9 = vld [vmem:[#allocation43_spill] sm:$0xff] }
 0x543   : > { %5764 = vmatmul.msk.f32.gmra.mxu2 %vm2852_vm2, %v2759_v17  ;;  %v3973_v45 = vadd.f32 %v8071_v11, %v3777_v37  ;;  %2781 = vperm.xlu1 %5836, %v2769_v5   ;;  %v5914_v17 = vmov 1  }
 0x544   : > { %v3582_v11 = vadd.f32 %v7822_v57, %v3386_v44  ;;  %5835 = vset.pattern.permute.xlu0 %v5914_v17  ;;  %v3188_v57 = vadd.f32 %v8972_v23, %v8971_v63  ;;  %v8977_v44 = vld [vmem:[#allocation81_spill] sm:$0xff] }
 0x545   : > { %v4411_v10 = vpop.f32.mrf.mxu3  ;;  %v4169_v14 = vadd.f32 %v8263_v22, %v3973_v45  ;;  %2808 = vperm.xlu0 %5835, %v2768_v58  }
 0x546   : > { %v8492_v48 = vadd.f32 %v4411_v10, %v4221_v7  ;;  %v4509_v3 = vpop.f32.mrf.mxu2  ;;  %v3778_v6 = vadd.f32 %v7882_v61, %v3582_v11  ;;  %v8974_v61 = vld [vmem:[#allocation30_spill] sm:$0xff] }
 0x547   : > { %v8494_v1 = vadd.f32 %v4509_v3, %v4319_v56  ;;  %v4451_v53 = vpop.f32.mrf.mxu1  ;;  %v8973_v56 = vld [vmem:[#allocation98_spill] sm:$0xff]  ;;  %v2531_v37 = vadd.f32 %v7933_v26, %v8974_v61  ;;  %v2770_v61 = vld [vmem:[%s8467_s24 + $0x10] sm:$0xff] }
 0x548   : > { %v4463_v42 = vadd.f32 %v4451_v53, %v8296_v0  ;;  %v4365_v0 = vadd.f32 %v8298_v55, %v4169_v14  ;;  %v3974_v55 = vadd.f32 %v8089_v38, %v3778_v6  ;;  %v3387_v10 = vadd.f32 %v8973_v56, %v3188_v57  ;;  %v8975_v3 = vld [vmem:[#allocation42_spill] sm:$0xff]  ;;  %2786 = vperm.xlu2 %5838, %v2770_v61  }
 0x549   : > { %v2754_v32 = vmax.f32 %v2531_v37, 0.0  ;;  %v3191_v14 = vadd.f32 %v8977_v44, %v8976_v39 }
 0x54a   : > { %5757 = vmatmul.msk.f32.vlgmr.msra.gmra.mxu1 %vm2852_vm2, %v2752_v50  ;;  %5765 = vmatmul.msk.f32.vlgmr.msra.gmra.mxu3 %vm2852_vm2, %v2760_v33  ;;  %v4170_v58 = vadd.f32 %v8300_v21, %v3974_v55  ;;  %v2555_v50 = vadd.f32 %v7933_v26, %v8975_v3  ;;  %v3583_v38 = vadd.f32 %v7860_v62, %v3387_v10 }
 0x54b   : > { %5837 = vset.pattern.permute.xlu1 %v5914_v17 }
 0x54c   : > { %2812 = vperm.xlu1 %5837, %v2769_v5   ;;  %v3779_v21 = vadd.f32 %v7907_v12, %v3583_v38  ;;  %v5848_v12 = vld [vmem:[%s8776_s3] ss:$0 sm:$0xff] }
 0x54d   : > { %v4549_v22 = vpop.f32.mrf.mxu3  ;;  %v2534_v31 = vadd.f32 %v5848_v12, %v8979_v40  ;;  %v2558_v11 = vadd.f32 %v5848_v12, %v8980_v9 }
 0x54e   : > { %v8513_v54 = vadd.f32 %v4549_v22, %v4365_v0  ;;  %v4647_v34 = vpop.f32.mrf.mxu2  ;;  %v3975_v26 = vadd.f32 %v8105_v49, %v3779_v21 }
 0x54f   : > { %v8515_v24 = vadd.f32 %v4647_v34, %v4463_v42  ;;  %v4454_v59 = vpop.f32.mrf.mxu1  ;;  %v2762_v42 = vmax.f32 %v2555_v50, 0.0 }
 0x550   : > { %v4464_v7 = vadd.f32 %v4454_v59, %v8321_v20  ;;  %v4366_v20 = vadd.f32 %v8323_v30, %v4170_v58  ;;  %v8978_v30 = vld [vmem:[#allocation100_spill] sm:$0xff]  ;;  %v4171_v47 = vadd.f32 %v8325_v27, %v3975_v26  ;;  %v2755_v59 = vmax.f32 %v2534_v31, 0.0  ;;  %5839 = vset.pattern.permute.xlu2 %v5914_v17 }
 0x551   : > { %v3388_v5 = vadd.f32 %v8978_v30, %v3191_v14  ;;  %2816 = vperm.xlu2 %5839, %v2770_v61  }
 0x552   : > { %5758 = vmatmul.msk.f32.gmra.mxu1 %vm2852_vm2, %v2753_v19  ;;  %5766 = vmatmul.msk.f32.gmra.mxu3 %vm2852_vm2, %v2761_v36  ;;  %v2763_v36 = vmax.f32 %v2558_v11, 0.0 }
 0x553   : > { %v3584_v49 = vadd.f32 %v7884_v4, %v3388_v5  ;;  %v2771_v4 = vld [vmem:[%s8467_s24 + $0x18] sm:$0xff]  ;;  %s5865_s24 = scalar_lea.hbm %s5864_s23, 32 }
 0x554   : > { %5840 = vset.pattern.permute.xlu1 %v5913_v60  ;;  %p5866_p0 = scmp.ne.s32.totalorder %s5864_s23, %s5865_s24  ;;  %p5871_p4 = scmp.lt.s32.totalorder %s5869_s27, %s5865_s24 }
 0x555   : > { %v4552_v53 = vpop.f32.mrf.mxu3  ;;  %v3780_v0 = vadd.f32 %v7943_v41, %v3584_v49  ;;  %2791 = vperm.xlu1 %5840, %v2771_v4   ;;  %v8981_v41 = vld [vmem:[#allocation48_spill] sm:$0xff] }
 0x556   : > { %v8533_v33 = vadd.f32 %v4552_v53, %v4366_v20  ;;  %v4650_v52 = vpop.f32.mrf.mxu2  ;;  %v2561_v60 = vadd.f32 %v5848_v12, %v8981_v41  ;;  %p5867_p1 = pnand %p5866_p0, %p6006_p6  ;;  %p5872_p5 = por %p5871_p4, %p5870_p3 }
 0x557   : > { %v8535_v2 = vadd.f32 %v4650_v52, %v4464_v7  ;;  %v4457_v45 = vpop.f32.mrf.mxu1  ;;  %v3976_v63 = vadd.f32 %v8131_v15, %v3780_v0 }
 0x558   : > { %v4465_v62 = vadd.f32 %v4457_v45, %v8346_v16  ;;  %v4367_v16 = vadd.f32 %v8348_v51, %v4171_v47  ;;  %v2764_v58 = vmax.f32 %v2561_v60, 0.0  ;;  %p5868_p2 = pneg %p5867_p1 }
 0x559   : > { %v4172_v51 = vadd.f32 %v8350_v13, %v3976_v63  ;;  %v8982_v13 = vld [vmem:[#allocation49_spill] sm:$0xff]  ;;  %2820 = vperm.xlu2 %5839, %v2771_v4   ;;  %v5234_v4 = vld [vmem:[%s8780_s7 + $0x60] sm:$0xff] }
 0x55a   : > { %5759 = vmatmul.msk.f32.gmra.mxu1 %vm2852_vm2, %v2754_v32  ;;  %5767 = vmatmul.msk.f32.gmra.mxu3 %vm2852_vm2, %v2762_v42  ;;  %v2564_v37 = vadd.f32 %v5848_v12, %v8982_v13  ;;  %v5228_v13 = vld [vmem:[%s8780_s7 + $0x30] sm:$0xff]  ;;  %p5873_p7 = pnand %p5872_p5, %p5868_p2 }
 0x55b   : > { %v4368_v57 = vadd.f32 %v8380_v28, %v4172_v51  ;;  %v5233_v51 = vld [vmem:[%s8780_s7 + $0x58] sm:$0xff] }
 0x55c   : > { %v2765_v38 = vmax.f32 %v2564_v37, 0.0 }
 0x55d   : > { %v4555_v27 = vpop.f32.mrf.mxu3 }
 0x55e   : > { %v4563_v22 = vadd.f32 %v4555_v27, %v4367_v16  ;;  %v4653_v6 = vpop.f32.mrf.mxu2 }
 0x55f   : > { %v8554_v34 = vadd.f32 %v4653_v6, %v4465_v62  ;;  %v4460_v19 = vpop.f32.mrf.mxu1 }
 0x560   : > { %v4466_v23 = vadd.f32 %v4460_v19, %v8378_v35 }
 0x562   : > { %5760 = vmatmul.msk.f32.gmra.mxu1 %vm2852_vm2, %v2755_v59  ;;  %5768 = vmatmul.msk.f32.gmra.mxu3 %vm2852_vm2, %v2763_v36  ;;  %v5236_v59 = vld [vmem:[%s8780_s7 + $0x70] sm:$0xff] }
 0x565   : > { %v4558_v55 = vpop.f32.mrf.mxu3 }
 0x566   : > { %v4564_v7 = vadd.f32 %v4558_v55, %v4368_v57  ;;  %v4656_v56 = vpop.f32.mrf.mxu2  ;;  %v5232_v57 = vld [vmem:[%s8780_s7 + $0x50] sm:$0xff] }
 0x567   : > { %v8564_v10 = vadd.f32 %v4656_v56, %v4466_v23  ;;  %v4598_v15 = vpop.f32.mrf.mxu1  ;;  %v5235_v23 = vld [vmem:[%s8780_s7 + $0x68] sm:$0xff] }
 0x568   : > { %v8567_v35 = vadd.f32 %v4598_v15, %v8409_v25  ;;  %v8983_v25 = vld [vmem:[#allocation50_spill] sm:$0xff]  ;;  %v5231_v56 = vld [vmem:[%s8780_s7 + $0x48] sm:$0xff] }
 0x569   : > { %v2567_v53 = vadd.f32 %v5848_v12, %v8983_v25  ;;  %v5230_v15 = vld [vmem:[%s8780_s7 + $0x40] sm:$0xff] }
 0x56a   : > { %5769 = vmatmul.msk.f32.vlgmr.msrb.gmra.mxu1 %vm2852_vm2, %v2764_v58  ;;  %v5229_v58 = vld [vmem:[%s8780_s7 + $0x38] sm:$0xff] }
 0x56b   : > { %v2766_v45 = vmax.f32 %v2567_v53, 0.0 }
 0x56d   : > { %v4696_v3 = vpop.f32.mrf.mxu3 }
 0x56e   : > { %v4708_v50 = vadd.f32 %v4696_v3, %v8411_v43  ;;  %v8984_v43 = vld [vmem:[#allocation52_spill] sm:$0xff] }
 0x56f   : > { %v4601_v28 = vpop.f32.mrf.mxu1 }
 0x570   : > { %v8574_v20 = vadd.f32 %v4601_v28, %v8435_v46  ;;  %v2570_v46 = vadd.f32 %v5848_v12, %v8984_v43  ;;  %v8597_v12 = vpop.f32.mrf.mxu2  ;;  %v5226_v28 = vld [vmem:[%s8780_s7 + $0x20] sm:$0xff] }
 0x572   : > { %5770 = vmatmul.msk.f32.gmra.mxu1 %vm2852_vm2, %v2765_v38  ;;  %v2767_v14 = vmax.f32 %v2570_v46, 0.0  ;;  %v5225_v38 = vld [vmem:[%s8780_s7 + $0x18] sm:$0xff] }
 0x575   : > { %v4699_v21 = vpop.f32.mrf.mxu3 }
 0x576   : > { %v4709_v52 = vadd.f32 %v4699_v21, %v8437_v29  ;;  %v5224_v21 = vld [vmem:[%s8780_s7 + $0x10] sm:$0xff] }
 0x577   : > { %v4604_v32 = vpop.f32.mrf.mxu1 }
 0x578   : > { %v8581_v42 = vadd.f32 %v4604_v32, %v8460_v8  ;;  %v8603_v31 = vpop.f32.mrf.mxu2  ;;  %v5223_v32 = vld [vmem:[%s8780_s7 + $0x8] sm:$0xff] }
 0x57a   : > { %5771 = vmatmul.msk.f32.gmra.mxu1 %vm2852_vm2, %v2766_v45  ;;  %v5222_v45 = vld [vmem:[%s8780_s7] sm:$0xff] }
 0x57d   : > { %v4702_v39 = vpop.f32.mrf.mxu3 }
 0x57e   : > { %v4710_v17 = vadd.f32 %v4702_v39, %v8462_v18 }
 0x57f   : > { %v4607_v44 = vpop.f32.mrf.mxu1 }
 0x580   : > { %v8587_v26 = vadd.f32 %v4607_v44, %v8492_v48  ;;  %v5842_v44 = vld [vmem:[%s8778_s5] ss:$0 sm:$0xff] }
 0x582   : > { %5772 = vmatmul.msk.f32.gmra.mxu1 %vm2852_vm2, %v2767_v14 }
 0x585   : > { %v4705_v29 = vpop.f32.mrf.mxu3 }
 0x586   : > { %v4711_v62 = vadd.f32 %v4705_v29, %v8494_v1 }
 0x587   : > { %v4745_v8 = vpop.f32.mrf.mxu1 }
 0x588   : > { %v8592_v30 = vadd.f32 %v4745_v8, %v8513_v54  ;;  %v8609_v54 = vpop.f32.mrf.mxu2 }
 0x58d   : > { %v8599_v18 = vpop.f32.mrf.mxu3 }
 0x58f   : > { %v4748_v5 = vpop.f32.mrf.mxu1 }
 0x590   : > { %v8595_v47 = vadd.f32 %v4748_v5, %v8533_v33  ;;  %v8620_v6 = vpop.f32.mrf.mxu2  ;;  %v8696_v5 = vld [vmem:[%s8778_s5 + $0x1] ss:$0 sm:$0xff] }
 0x595   : > { %v8605_v9 = vpop.f32.mrf.mxu3 }
 0x597   : > { %v4751_v40 = vpop.f32.mrf.mxu1 }
 0x598   : > { %v8601_v48 = vadd.f32 %v4751_v40, %v4563_v22  ;;  %v5237_v22 = vld [vmem:[%s8780_s7 + $0x78] sm:$0xff]  ;;  %v4941_v41 = vpop.f32.mrf.mxu2 }
 0x599   : > { %5242 = vmatpush.msrb.mxu2 %v5237_v22 }
 0x59b   : > { %5243 = vmatpush.msrb.mxu2 %v5236_v59 }
 0x59d   : > { %v8613_v33 = vpop.f32.mrf.mxu3  ;;  %5244 = vmatpush.msrb.mxu2 %v5235_v23 }
 0x59f   : > { %v4754_v1 = vpop.f32.mrf.mxu1  ;;  %5245 = vmatpush.msrb.mxu2 %v5234_v4 }
 0x5a0   : > { %v8607_v11 = vadd.f32 %v4754_v1, %v4564_v7  ;;  %v8652_v61 = vpop.f32.mrf.mxu2 }
 0x5a1   : > { %5246 = vmatpush.msrb.mxu2 %v5233_v51  ;;  %v4855_v51 = vadd.f32 %v8599_v18, %v8515_v24 }
 0x5a2   : > { %v2787_v59 = vpop.permute.xlu2 %2786 }
 0x5a3   : > { %5247 = vmatpush.msrb.mxu2 %v5232_v57 }
 0x5a5   : > { %v8622_v19 = vpop.f32.mrf.mxu3  ;;  %5248 = vmatpush.msrb.mxu2 %v5231_v56 }
 0x5a7   : > { %v4892_v49 = vpop.f32.mrf.mxu1  ;;  %5249 = vmatpush.msrb.mxu2 %v5230_v15 }
 0x5a8   : > { %v8611_v16 = vadd.f32 %v4892_v49, %v4708_v50  ;;  %v5227_v50 = vld [vmem:[%s8780_s7 + $0x28] sm:$0xff]  ;;  %v8666_v25 = vpop.f32.mrf.mxu2  ;;  %v4806_v49 = vadd.f32 %v8597_v12, %v8567_v35  ;;  %v4807_v35 = vadd.f32 %v8603_v31, %v8574_v20  ;;  %v4953_v12 = vadd.f32 %v4941_v41, %v8592_v30 }
 0x5a9   : > { %5250 = vmatpush.msrb.mxu2 %v5229_v58  ;;  %v2777_v43 = vpop.permute.xlu0 %2776  ;;  %v2797_v20 = vmul.f32 %v5842_v44, %v2787_v59 }
 0x5aa   : > { %v2795_v8 = vmul.f32 %v5842_v44, %v2777_v43 }
 0x5ab   : > { %5251 = vmatpush.msrb.mxu2 %v5228_v13 }
 0x5ad   : > { %v4990_v60 = vpop.f32.mrf.mxu3  ;;  %5252 = vmatpush.msrb.mxu2 %v5227_v50 }
 0x5ae   : > { %v5002_v23 = vadd.f32 %v4990_v60, %v4806_v49 }
 0x5af   : > { %v4895_v27 = vpop.f32.mrf.mxu1  ;;  %5253 = vmatpush.msrb.mxu2 %v5226_v28 }
 0x5b0   : > { %v8615_v0 = vadd.f32 %v4895_v27, %v4709_v52  ;;  %v8679_v39 = vpop.f32.mrf.mxu2 }
 0x5b1   : > { %5254 = vmatpush.msrb.mxu2 %v5225_v38 }
 0x5b3   : > { %5255 = vmatpush.msrb.mxu2 %v5224_v21 }
 0x5b5   : > { %v4993_v37 = vpop.f32.mrf.mxu3  ;;  %5256 = vmatpush.msrb.mxu2 %v5223_v32  ;;  %v2782_v14 = vpop.permute.xlu1 %2781 }
 0x5b6   : > { %v2796_v57 = vmul.f32 %v5842_v44, %v2782_v14  ;;  %v5003_v24 = vadd.f32 %v4993_v37, %v4807_v35  ;;  %v4954_v37 = vadd.f32 %v8652_v61, %v8595_v47 }
 0x5b7   : > { %v4898_v36 = vpop.f32.mrf.mxu1  ;;  %5257 = vmatpush.msrb.mxu2 %v5222_v45  ;;  %v2809_v40 = vpop.permute.xlu0 %2808 }
 0x5b8   : > { %v8627_v63 = vadd.f32 %v4898_v36, %v4710_v17  ;;  %v5088_v1 = vpop.f32.mrf.mxu2  ;;  %v2824_v22 = vmul.f32 %v8696_v5, %v2809_v40  ;;  %v2817_v45 = vpop.permute.xlu2 %2816 }
 0x5b9   : > { %v5100_v50 = vadd.f32 %v5088_v1, %v8611_v16  ;;  %v4808_v1 = vadd.f32 %v8609_v54, %v8581_v42 }
 0x5bd   : > { %v4996_v52 = vpop.f32.mrf.mxu3 }
 0x5be   : > { %v2813_v15 = vpop.permute.xlu1 %2812  ;;  %v5004_v59 = vadd.f32 %v4996_v52, %v4808_v1  ;;  %v4809_v52 = vadd.f32 %v8620_v6, %v8587_v26 }
 0x5bf   : > { %v4901_v55 = vpop.f32.mrf.mxu1  ;;  %v2825_v60 = vmul.f32 %v8696_v5, %v2813_v15 }
 0x5c0   : > { %v8641_v7 = vadd.f32 %v4901_v55, %v4711_v62  ;;  %v8691_v62 = vld [vmem:[%s8779_s6] ss:$0 sm:$0xff]  ;;  %v5091_v21 = vpop.f32.mrf.mxu2 }
 0x5c1   : > { %v2802_v27 = vadd.f32 %v8691_v62, %v2795_v8  ;;  %v2803_v28 = vadd.f32 %v8691_v62, %v2796_v57  ;;  %v5101_v49 = vadd.f32 %v5091_v21, %v8615_v0  ;;  %v2821_v57 = vpop.permute.xlu2 %2820 }
 0x5c3   : > { %v2828_v55 = vadd.f32 %v2824_v22, %v2802_v27  ;;  %v2829_v31 = vadd.f32 %v2825_v60, %v2803_v28  ;;  %v2804_v27 = vadd.f32 %v8691_v62, %v2797_v20  ;;  %v4858_v28 = vadd.f32 %v8622_v19, %v8564_v10 }
 0x5c5   : > { %v8681_v17 = vpop.f32.mrf.mxu3 }
 0x5c6   : > { %v5005_v35 = vadd.f32 %v8681_v17, %v4809_v52 }
 0x5c7   : > { %v5039_v3 = vpop.f32.mrf.mxu1  ;;  %v2792_v22 = vpop.permute.xlu1 %2791 }
 0x5c8   : > { %v5051_v58 = vadd.f32 %v5039_v3, %v4855_v51  ;;  %v4856_v3 = vadd.f32 %v8605_v9, %v8535_v2  ;;  %v2826_v2 = vmul.f32 %v8696_v5, %v2817_v45  ;;  %v2798_v51 = vmul.f32 %v5842_v44, %v2792_v22 }
 0x5c9   : > { %v2827_v44 = vmul.f32 %v8696_v5, %v2821_v57 }
 0x5ca   : > { %v2830_v54 = vadd.f32 %v2826_v2, %v2804_v27 }
 0x5cd   : > { %v5137_v36 = vpop.f32.mrf.mxu3 }
 0x5ce   : > { %v5149_v18 = vadd.f32 %v5137_v36, %v4953_v12 }
 0x5cf   : > { %v5042_v53 = vpop.f32.mrf.mxu1 }
 0x5d0   : > { %v5052_v16 = vadd.f32 %v5042_v53, %v4856_v3 }
 0x5d5   : > { %v5140_v43 = vpop.f32.mrf.mxu3 }
 0x5d6   : > { %v5150_v36 = vadd.f32 %v5140_v43, %v4954_v37 }
 0x5d7   : > { %v8677_v46 = vpop.f32.mrf.mxu1 }
 0x5dd   : > { %v5143_v0 = vpop.f32.mrf.mxu3 }
 0x5df   : > { %v8686_v29 = vpop.f32.mrf.mxu1 }
 0x5e5   : > { %v5146_v5 = vpop.f32.mrf.mxu3 }
 0x5e7   : > { %v5186_v4 = vpop.f32.mrf.mxu1 }
 0x5e8   : > { %v5198_v56 = vadd.f32 %v5186_v4, %v5002_v23  ;;  %v4857_v23 = vadd.f32 %v8613_v33, %v8554_v34  ;;  %v5094_v4 = vpop.f32.mrf.mxu2  ;;  %v2805_v33 = vadd.f32 %v8691_v62, %v2798_v51 }
 0x5e9   : > { %v5102_v34 = vadd.f32 %v5094_v4, %v8627_v63  ;;  %v5054_v63 = vadd.f32 %v8686_v29, %v4858_v28  ;;  %v5845_v29 = vld [vmem:[%s8781_s8] ss:$0 sm:$0xff] }
 0x5ea   : > { %v5202_v13 = vadd.f32 %v5198_v56, %v2828_v55  ;;  %v5053_v55 = vadd.f32 %v8677_v46, %v4857_v23  ;;  %v2831_v26 = vadd.f32 %v2827_v44, %v2805_v33 }
 0x5ec   : > { %v5206_v38 = vadd.f32 %v5202_v13, %v5051_v58  ;;  %v4955_v58 = vadd.f32 %v8666_v25, %v8601_v48 }
 0x5ee   : > { %v5210_v32 = vadd.f32 %v5206_v38, %v5100_v50  ;;  %v5151_v12 = vadd.f32 %v5143_v0, %v4955_v58  ;;  %v4956_v38 = vadd.f32 %v8679_v39, %v8607_v11 }
 0x5ef   : > { %v5189_v14 = vpop.f32.mrf.mxu1 }
 0x5f0   : > { %v5214_v30 = vadd.f32 %v5210_v32, %v5149_v18  ;;  %v5199_v41 = vadd.f32 %v5189_v14, %v5003_v24  ;;  %v5097_v25 = vpop.f32.mrf.mxu2  ;;  %v5152_v24 = vadd.f32 %v5146_v5, %v4956_v38 }
 0x5f1   : > { %v5103_v17 = vadd.f32 %v5097_v25, %v8641_v7 }
 0x5f2   : > { %v5218_v8 = vmax.f32 %v5214_v30, 0.0  ;;  %v5203_v40 = vadd.f32 %v5199_v41, %v2829_v31 }
 0x5f4   : > { %v5207_v9 = vadd.f32 %v5203_v40, %v5052_v16  ;;  %5258 = vmatmul.f32.vlgmr.msrb.gmra.mxu2 %v5218_v8 }
 0x5f6   : > { %v5211_v53 = vadd.f32 %v5207_v9, %v5101_v49 }
 0x5f7   : > { %v5192_v42 = vpop.f32.mrf.mxu1 }
 0x5f8   : > { %v5200_v47 = vadd.f32 %v5192_v42, %v5004_v59  ;;  %v5215_v61 = vadd.f32 %v5211_v53, %v5150_v36 }
 0x5fa   : > { %v5204_v56 = vadd.f32 %v5200_v47, %v2830_v54  ;;  %v5219_v15 = vmax.f32 %v5215_v61, 0.0 }
 0x5fc   : > { %v5208_v13 = vadd.f32 %v5204_v56, %v5053_v55  ;;  %5261 = vmatmul.f32.gmra.mxu2 %v5219_v15 }
 0x5fe   : > { %v5212_v46 = vadd.f32 %v5208_v13, %v5102_v34 }
 0x5ff   : > { %v5195_v50 = vpop.f32.mrf.mxu1 }
 0x600   : > { %v5201_v6 = vadd.f32 %v5195_v50, %v5005_v35  ;;  %v5216_v48 = vadd.f32 %v5212_v46, %v5151_v12 }
 0x602   : > { %v5205_v62 = vadd.f32 %v5201_v6, %v2831_v26  ;;  %v5220_v60 = vmax.f32 %v5216_v48, 0.0 }
 0x604   : > { %v5209_v21 = vadd.f32 %v5205_v62, %v5054_v63  ;;  %5264 = vmatmul.f32.gmra.mxu2 %v5220_v60 }
 0x606   : > { %v5213_v10 = vadd.f32 %v5209_v21, %v5103_v17 }
 0x608   : > { %v5217_v19 = vadd.f32 %v5213_v10, %v5152_v24 }
 0x60a   : > { %v5221_v18 = vmax.f32 %v5217_v19, 0.0 }
 0x60c   : > { %5267 = vmatmul.f32.gmra.mxu2 %v5221_v18 }
 0x677   : > { %v5259_v32 = vpop.f32.mrf.mxu2 }
 0x678   : > { %v5260_v45 = vadd.f32 %v5845_v29, %v5259_v32 }
 0x67a   : > { %5271 = vst [vmem:[%s1162_s26] sm:$0xff] %v5260_v45 }
 0x67f   : > { %v5262_v11 = vpop.f32.mrf.mxu2 }
 0x680   : > { %v5263_v7 = vadd.f32 %v5845_v29, %v5262_v11 }
 0x682   : > { %5272 = vst [vmem:[%s1162_s26 + $0x8] sm:$0xff] %v5263_v7 }
 0x687   : > { %v5265_v39 = vpop.f32.mrf.mxu2 }
 0x688   : > { %v5266_v3 = vadd.f32 %v5845_v29, %v5265_v39 }
 0x68a   : > { %5273 = vst [vmem:[%s1162_s26 + $0x10] sm:$0xff] %v5266_v3 }
 0x68f   : > { %v5268_v43 = vpop.f32.mrf.mxu2 }
 0x690   : > { %v5269_v14 = vadd.f32 %v5845_v29, %v5268_v43 }
 0x692   : > { %5274 = vst [vmem:[%s1162_s26 + $0x18] sm:$0xff] %v5269_v14 }
 0x693   : > { %5876 = shalt.err (!%p5873_p7)
}
 0x694   : > { %s5915_s17 = smov 128   ;;  %s5916_s26 = smov 8  }
 0x695   : > { %5791 = dma.vmem_to_hbm [thread:$0]  (%p6006_p6), %s5289_s16, 512, %s5291_s21, %s5276_s22, %s5915_s17, %s5915_s17, %s5916_s26  }
 0x696 PF: > { %s5305_s14 = sand.u32 1, %s5899_s30   ;;  %p5794_p10 = pnand %p5373_p9, %p6010_p8 }
 0x697   : > { %s5306_s13 = scalar_lea.sflag [#allocation4], %s5305_s14 }
 0x698   : > { %p5795_p11 = pneg %p5794_p10 }
 0x69a   : > { %5894 = dma.done.wait (%p5795_p11), %s5306_s13, 512  }
 0x69b   : > { %5896 = vsyncadd (%p5795_p11), %s5306_s13, 4294966784  ;;  %p19_p12 = scmp.ge.s32.totalorder %s5992_s15, 4   ;;  %s8985_s30 = smov %s5903_s10 }
 0x69c   : > { %s8986_s10 = smov %s5907_s11  ;;  %s8987_s11 = smov %s6004_s18 }
 0x69d   : > { %s8988_s12 = smov %s5992_s15  ;;  %21 = sbr.rel (!%p19_p12) target bundleno = 3 (0x3), region = 137 }
 0x6a2   :  { %5312 = vsyncpa [#allocation4], 1 }
 0x6a3   :  { %5314 = vsyncpa [#allocation4 + $0x1], 1 }

</bundles_post_ra>
